<compile_context>
chip_gen: v5e
topology: v5e:2x2
jax: 0.10.0
libtpu: 0.0.40
codegen_flags: <defaults>
</compile_context>

<pallas_src>
import functools

import jax
import jax.numpy as jnp
from jax.experimental import pallas as pl
from jax.experimental.pallas import tpu as pltpu

ACT_DTYPE = jnp.bfloat16     # inter-layer activations / MXU operands
SUBLANE = 16                 # bf16 sublane tile (channel blocks padded to this)
BN_EPS = 1e-5


def _round_up_ch(c):
    return -(-c // SUBLANE) * SUBLANE


# ----------------------------------------------------------------------------
# Pallas kernels
# ----------------------------------------------------------------------------
def _conv_bn_act_kernel(src_ref, w_ref, *rest, tap_starts, img_stride, hw, n_img,
                        cin, cpad, use_bn, use_bias, has_res, act):
    """Fused conv(+BN)(+bias)(+residual)(+act) for the whole batch.

    src_ref   : (Cin, Lsrc)         pre-column-shifted flattened source (bf16)
    w_ref     : (Cb, T*cpad)        packed tap-major weights (bf16)
    optional gamma/beta/bias refs : (Cb, 1) f32
    optional residual ref         : (Cb, N*HW) bf16
    out_ref   : (Cb, N*HW)
    patch_ref : VMEM scratch (T*cpad, N*HW) bf16
    """
    idx = 0
    if use_bn:
        gamma_ref = rest[idx]
        beta_ref = rest[idx + 1]
        idx += 2
    if use_bias:
        bias_ref = rest[idx]
        idx += 1
    if has_res:
        res_ref = rest[idx]
        idx += 1
    out_ref = rest[idx]
    patch_ref = rest[idx + 1]

    # ---- im2col gather into VMEM scratch (tap-major K, batch along lanes) ----
    if cpad != cin:
        patch_ref[...] = jnp.zeros_like(patch_ref)      # zero the channel pad rows
    for t, s0 in enumerate(tap_starts):                  # static unrolled (9 taps)
        for img in range(n_img):                         # static unrolled (N=2)
            base = img * img_stride + s0
            patch_ref[t * cpad:t * cpad + cin, img * hw:(img + 1) * hw] = \
                src_ref[:, base:base + hw]

    # ---- one large-K MXU matmul: (Cb, T*cpad) @ (T*cpad, N*HW) -> f32 ----
    acc = jnp.dot(w_ref[...], patch_ref[...], preferred_element_type=jnp.float32)

    if use_bias:
        acc = acc + bias_ref[...]

    if use_bn:
        # training-mode BatchNorm2d: biased stats over (N, H, W) == the lane axis.
        cnt = float(n_img * hw)
        mean = jnp.sum(acc, axis=1, keepdims=True) / cnt
        var = jnp.maximum(jnp.sum(acc * acc, axis=1, keepdims=True) / cnt - mean * mean, 0.0)
        scale = gamma_ref[...] * jax.lax.rsqrt(var + BN_EPS)
        acc = acc * scale + (beta_ref[...] - mean * scale)

    if has_res:
        acc = acc + res_ref[...].astype(jnp.float32)

    if act == "relu":
        acc = jnp.maximum(acc, 0.0)
    elif act == "tanh":
        acc = jnp.tanh(acc)

    out_ref[...] = acc.astype(out_ref.dtype)


def _up_conv_bn_relu_kernel(src_ref, w0_ref, w1_ref, w2_ref, w3_ref, gamma_ref,
                            beta_ref, out_ref, p0_ref, p1_ref, p2_ref, p3_ref, *,
                            phase_starts, img_stride, hw, n_img, cin):
    """Fused ConvTranspose2d(k3,s2,p1,op1) + BN + ReLU via 4 sub-pixel phases.

    src_ref  : (Cin, Lsrc)   bottom/right-zero-padded, column-shifted source (bf16)
    wX_ref   : (Cout, kX*Cin) packed per-phase weights (bf16)
    out_ref  : (4, Cout, N*HW) per-phase normalized outputs (interleaved in XLA)
    pX_ref   : VMEM scratch per phase (kX*Cin, N*HW) bf16
    """
    w_refs = (w0_ref, w1_ref, w2_ref, w3_ref)
    patch_refs = (p0_ref, p1_ref, p2_ref, p3_ref)

    accs = []
    for p in range(4):
        pr = patch_refs[p]
        for t, s0 in enumerate(phase_starts[p]):
            for img in range(n_img):
                base = img * img_stride + s0
                pr[t * cin:(t + 1) * cin, img * hw:(img + 1) * hw] = \
                    src_ref[:, base:base + hw]
        accs.append(jnp.dot(w_refs[p][...], pr[...], preferred_element_type=jnp.float32))

    # BatchNorm over all 4 phases together (= the full 2H x 2W output).
    cnt = float(4 * n_img * hw)
    s1 = jnp.sum(accs[0], axis=1, keepdims=True)
    s2 = jnp.sum(accs[0] * accs[0], axis=1, keepdims=True)
    for a in accs[1:]:
        s1 = s1 + jnp.sum(a, axis=1, keepdims=True)
        s2 = s2 + jnp.sum(a * a, axis=1, keepdims=True)
    mean = s1 / cnt
    var = jnp.maximum(s2 / cnt - mean * mean, 0.0)
    scale = gamma_ref[...] * jax.lax.rsqrt(var + BN_EPS)
    shift = beta_ref[...] - mean * scale

    for p in range(4):
        out_ref[p] = jnp.maximum(accs[p] * scale + shift, 0.0).astype(out_ref.dtype)


# ----------------------------------------------------------------------------
# Pallas wrappers
# ----------------------------------------------------------------------------
def fused_conv_layer(src, w_packed, *, tap_starts, img_stride, hw, n_img, cin,
                     gamma=None, beta=None, bias=None, residual=None, act=None,
                     out_dtype=ACT_DTYPE):
    cout, kpad = w_packed.shape
    cin_src, lsrc = src.shape
    assert cin_src == cin
    cpad = _round_up_ch(cin)
    use_bn = gamma is not None
    use_bias = bias is not None
    has_res = residual is not None
    ncols = n_img * hw

    # Split output channels over 2 programs when tile-aligned (keeps both v7x
    # TensorCores busy on the 32-channel layers).  BN stats are per channel, so
    # each program is fully independent.
    g = 2 if cout % (2 * SUBLANE) == 0 else 1
    cb = cout // g

    kern = functools.partial(
        _conv_bn_act_kernel, tap_starts=tuple(int(s) for s in tap_starts),
        img_stride=int(img_stride), hw=int(hw), n_img=int(n_img), cin=int(cin),
        cpad=int(cpad), use_bn=use_bn, use_bias=use_bias, has_res=has_res, act=act)

    in_specs = [pl.BlockSpec((cin, lsrc), lambda i: (0, 0)),
                pl.BlockSpec((cb, kpad), lambda i: (i, 0))]
    args = [src, w_packed]
    if use_bn:
        in_specs += [pl.BlockSpec((cb, 1), lambda i: (i, 0)),
                     pl.BlockSpec((cb, 1), lambda i: (i, 0))]
        args += [gamma, beta]
    if use_bias:
        in_specs.append(pl.BlockSpec((cb, 1), lambda i: (i, 0)))
        args.append(bias)
    if has_res:
        in_specs.append(pl.BlockSpec((cb, ncols), lambda i: (i, 0)))
        args.append(residual)

    return pl.pallas_call(
        kern,
        out_shape=jax.ShapeDtypeStruct((cout, ncols), out_dtype),
        grid=(g,),
        in_specs=in_specs,
        out_specs=pl.BlockSpec((cb, ncols), lambda i: (i, 0)),
        scratch_shapes=[pltpu.VMEM((len(tap_starts) * cpad, ncols), ACT_DTYPE)],
        compiler_params=pltpu.CompilerParams(dimension_semantics=("parallel",)),
    )(*args)


def fused_up_layer(src, w_phases, gamma, beta, *, phase_starts, img_stride, hw,
                   n_img, cin):
    cout = w_phases[0].shape[0]
    cin_src, lsrc = src.shape
    assert cin_src == cin
    ncols = n_img * hw

    kern = functools.partial(
        _up_conv_bn_relu_kernel,
        phase_starts=tuple(tuple(int(s) for s in ps) for ps in phase_starts),
        img_stride=int(img_stride), hw=int(hw), n_img=int(n_img), cin=int(cin))

    in_specs = [pl.BlockSpec((cin, lsrc), lambda i: (0, 0))]
    in_specs += [pl.BlockSpec(wp.shape, lambda i: (0, 0)) for wp in w_phases]
    in_specs += [pl.BlockSpec((cout, 1), lambda i: (0, 0)),
                 pl.BlockSpec((cout, 1), lambda i: (0, 0))]
    scratch = [pltpu.VMEM((wp.shape[1], ncols), ACT_DTYPE) for wp in w_phases]

    return pl.pallas_call(
        kern,
        out_shape=jax.ShapeDtypeStruct((4, cout, ncols), ACT_DTYPE),
        grid=(1,),
        in_specs=in_specs,
        out_specs=pl.BlockSpec((4, cout, ncols), lambda i: (0, 0, 0)),
        scratch_shapes=scratch,
        compiler_params=pltpu.CompilerParams(dimension_semantics=("parallel",)),
    )(src, *w_phases, gamma, beta)


# ----------------------------------------------------------------------------
# Plain-JAX glue: shifted-source builders (canonical activations are (C, N, H, W))
# ----------------------------------------------------------------------------
def build_src_s1(x, pad_mode):
    """Conv2d(k3,s1,p1) source: (C, N*3*Hp*W) + per-image-relative tap starts."""
    c, n, h, w = x.shape
    mode = "reflect" if pad_mode == "reflect" else "constant"
    xp = jnp.pad(x, ((0, 0), (0, 0), (1, 1), (1, 1)), mode=mode)
    hp = h + 2
    shards = [xp[:, :, :, dx:dx + w] for dx in range(3)]           # column shifts
    src = jnp.stack(shards, axis=2).reshape(c, n * 3 * hp * w)
    starts = [dx * hp * w + dy * w for dy in range(3) for dx in range(3)]
    return src, starts, 3 * hp * w, h * w


def build_src_s2(x):
    """Conv2d(k3,s2,p1) source via 4-phase space-to-depth + 2 column shifts."""
    c, n, h, w = x.shape
    xp = jnp.pad(x, ((0, 0), (0, 0), (1, 1), (1, 1)))
    ho, wo = h // 2, w // 2
    hq = ho + 1
    shards = []
    for a in range(2):
        for b in range(2):
            ph = xp[:, :, a::2, b::2]                              # (c, n, hq, wq)
            for s in range(2):
                shards.append(ph[:, :, :, s:s + wo])
    src = jnp.stack(shards, axis=2).reshape(c, n * 8 * hq * wo)
    starts = []
    for dy in range(3):
        for dx in range(3):
            shard = (2 * (dy % 2) + (dx % 2)) * 2 + dx // 2
            starts.append(shard * hq * wo + (dy // 2) * wo)
    return src, starts, 8 * hq * wo, ho * wo, (ho, wo)


# Sub-pixel decomposition of ConvTranspose2d(k3,s2,p1,op1):
# phase (ry, rx) -> list of ((row_off, col_off) into bottom/right-zero-padded x,
#                           (ky, kx) index into the transposed-conv weight).
_PHASES = ((0, 0), (0, 1), (1, 0), (1, 1))
_PHASE_TAPS = {
    (0, 0): [((0, 0), (1, 1))],
    (0, 1): [((0, 1), (1, 0)), ((0, 0), (1, 2))],
    (1, 0): [((1, 0), (0, 1)), ((0, 0), (2, 1))],
    (1, 1): [((1, 1), (0, 0)), ((1, 0), (0, 2)),
             ((0, 1), (2, 0)), ((0, 0), (2, 2))],
}


def build_src_up(x):
    """ConvTranspose2d source: bottom/right zero pad + 2 column shifts."""
    c, n, h, w = x.shape
    xz = jnp.pad(x, ((0, 0), (0, 0), (0, 1), (0, 1)))
    shards = [xz[:, :, :, s:s + w] for s in range(2)]
    src = jnp.stack(shards, axis=2).reshape(c, n * 2 * (h + 1) * w)
    phase_starts = []
    for key in _PHASES:
        taps = _PHASE_TAPS[key]
        phase_starts.append([dx * (h + 1) * w + dy * w for (dy, dx), _ in taps])
    return src, phase_starts, 2 * (h + 1) * w, h * w


# ----------------------------------------------------------------------------
# Layers
# ----------------------------------------------------------------------------
def conv_bn_relu_layer(x, pw, *, stride, pad_mode):
    c, n, h, w = x.shape
    if stride == 1:
        src, starts, img_stride, hw = build_src_s1(x, pad_mode)
        ho, wo = h, w
    else:
        src, starts, img_stride, hw, (ho, wo) = build_src_s2(x)
    cout = pw["w"].shape[0]
    y = fused_conv_layer(src, pw["w"], tap_starts=starts, img_stride=img_stride,
                         hw=hw, n_img=n, cin=c, gamma=pw["gamma"], beta=pw["beta"],
                         act="relu")
    return y.reshape(cout, n, ho, wo)


def resnet_block(x, pb):
    c, n, h, w = x.shape
    hw = h * w
    src, starts, img_stride, _ = build_src_s1(x, "reflect")
    h1 = fused_conv_layer(src, pb["w1"], tap_starts=starts, img_stride=img_stride,
                          hw=hw, n_img=n, cin=c, gamma=pb["g1"], beta=pb["be1"],
                          act="relu").reshape(c, n, h, w)
    src2, starts2, img_stride2, _ = build_src_s1(h1, "reflect")
    out = fused_conv_layer(src2, pb["w2"], tap_starts=starts2, img_stride=img_stride2,
                           hw=hw, n_img=n, cin=c, gamma=pb["g2"], beta=pb["be2"],
                           act=None, residual=x.reshape(c, n * hw))
    return out.reshape(c, n, h, w)


def conv_transpose_bn_relu_layer(x, pw):
    c, n, h, w = x.shape
    src, phase_starts, img_stride, hw = build_src_up(x)
    cout = pw["w_phases"][0].shape[0]
    y = fused_up_layer(src, pw["w_phases"], pw["gamma"], pw["beta"],
                       phase_starts=phase_starts, img_stride=img_stride,
                       hw=hw, n_img=n, cin=c)
    # TODO(synk): 2x2 sub-pixel interleave kept as one small XLA transpose.
    y = y.reshape(2, 2, cout, n, h, w)
    y = jnp.transpose(y, (2, 3, 4, 0, 5, 1)).reshape(cout, n, 2 * h, 2 * w)
    return y


def final_conv_tanh_layer(x, pw):
    c, n, h, w = x.shape
    src, starts, img_stride, hw = build_src_s1(x, "reflect")
    cout = pw["w"].shape[0]
    y = fused_conv_layer(src, pw["w"], tap_starts=starts, img_stride=img_stride,
                         hw=hw, n_img=n, cin=c, bias=pw["b"], act="tanh",
                         out_dtype=jnp.float32)
    return y.reshape(cout, n, h, w)


# ----------------------------------------------------------------------------
# GlobalGenerator forward (public API is NCHW, like PyTorch)
# ----------------------------------------------------------------------------
def global_generator_forward(prep, x_nchw, n_downsampling, n_blocks):
    x = jnp.transpose(x_nchw, (1, 0, 2, 3)).astype(ACT_DTYPE)    # -> (C, N, H, W)

    # ReflectionPad(1) + Conv(input_nc->ngf, k3) + BN + ReLU
    x = conv_bn_relu_layer(x, prep["first"], stride=1, pad_mode="reflect")

    # Downsampling: Conv(k3, s2, p1) + BN + ReLU
    for i in range(n_downsampling):
        x = conv_bn_relu_layer(x, prep["down"][i], stride=2, pad_mode="zero")

    # Resnet blocks (padding_type='reflect')
    for j in range(n_blocks):
        x = resnet_block(x, prep["res"][j])

    # Upsampling: ConvTranspose(k3, s2, p1, op1) + BN + ReLU
    for i in range(n_downsampling):
        x = conv_transpose_bn_relu_layer(x, prep["up"][i])

    # ReflectionPad(1) + Conv(ngf->output_nc, k3) + Tanh
    y = final_conv_tanh_layer(x, prep["last"])                   # (Cout, N, H, W) f32
    return jnp.transpose(y, (1, 0, 2, 3))                        # back to NCHW


# ----------------------------------------------------------------------------
# Parameter construction (PyTorch layout) + one-time packing (outside jit)
# ----------------------------------------------------------------------------
def init_params(key, input_nc, output_nc, ngf, n_downsampling, n_blocks):
    keys = iter(jax.random.split(key, 256))

    def conv_p(cout, cin):
        return {
            "w": 0.05 * jax.random.normal(next(keys), (cout, cin, 3, 3), jnp.float32),
            # NOTE: conv bias before training-mode BatchNorm is mathematically
            # cancelled by BN; kept in params for parity, not used in kernels.
            "b": 0.05 * jax.random.normal(next(keys), (cout,), jnp.float32),
            "gamma": 1.0 + 0.1 * jax.random.normal(next(keys), (cout,), jnp.float32),
            "beta": 0.1 * jax.random.normal(next(keys), (cout,), jnp.float32),
        }

    params = {"first": conv_p(ngf, input_nc), "down": [], "res": [], "up": []}
    for i in range(n_downsampling):
        mult = 2 ** i
        params["down"].append(conv_p(ngf * mult * 2, ngf * mult))
    dim = ngf * 2 ** n_downsampling
    for _ in range(n_blocks):
        p1, p2 = conv_p(dim, dim), conv_p(dim, dim)
        params["res"].append({"w1": p1["w"], "g1": p1["gamma"], "be1": p1["beta"],
                              "w2": p2["w"], "g2": p2["gamma"], "be2": p2["beta"]})
    for i in range(n_downsampling):
        mult = 2 ** (n_downsampling - i)
        cin, cout = ngf * mult, ngf * mult // 2
        params["up"].append({
            "w": 0.05 * jax.random.normal(next(keys), (cin, cout, 3, 3), jnp.float32),
            "gamma": 1.0 + 0.1 * jax.random.normal(next(keys), (cout,), jnp.float32),
            "beta": 0.1 * jax.random.normal(next(keys), (cout,), jnp.float32),
        })
    params["last"] = {
        "w": 0.05 * jax.random.normal(next(keys), (output_nc, ngf, 3, 3), jnp.float32),
        "b": 0.05 * jax.random.normal(next(keys), (output_nc,), jnp.float32),
    }
    return params


def prepare_params(params):
    """One-time (outside jit) packing: bf16 tap-major weights, (C,1) f32 vectors."""
    def pack_conv(w):
        cout, cin = w.shape[0], w.shape[1]
        cpad = _round_up_ch(cin)
        wt = jnp.transpose(w, (0, 2, 3, 1))                      # (Cout, ky, kx, Cin)
        if cpad != cin:
            wt = jnp.pad(wt, ((0, 0), (0, 0), (0, 0), (0, cpad - cin)))
        return wt.reshape(cout, 9 * cpad).astype(ACT_DTYPE)

    def vec(v):
        return jnp.asarray(v, jnp.float32).reshape(-1, 1)

    prep = {"first": {"w": pack_conv(params["first"]["w"]),
                      "gamma": vec(params["first"]["gamma"]),
                      "beta": vec(params["first"]["beta"])},
            "down": [], "res": [], "up": []}
    for p in params["down"]:
        prep["down"].append({"w": pack_conv(p["w"]), "gamma": vec(p["gamma"]),
                             "beta": vec(p["beta"])})
    for p in params["res"]:
        prep["res"].append({"w1": pack_conv(p["w1"]), "g1": vec(p["g1"]), "be1": vec(p["be1"]),
                            "w2": pack_conv(p["w2"]), "g2": vec(p["g2"]), "be2": vec(p["be2"])})
    for p in params["up"]:
        wt = p["w"]                                               # (Cin, Cout, 3, 3)
        phases = []
        for key in _PHASES:
            taps = _PHASE_TAPS[key]
            blocks = [jnp.transpose(wt[:, :, ky, kx]) for _, (ky, kx) in taps]
            phases.append(jnp.concatenate(blocks, axis=1).astype(ACT_DTYPE))
        prep["up"].append({"w_phases": tuple(phases), "gamma": vec(p["gamma"]),
                           "beta": vec(p["beta"])})
    prep["last"] = {"w": pack_conv(params["last"]["w"]), "b": vec(params["last"]["b"])}
    return prep


if __name__ == "__main__":
    # Small config: GlobalGenerator(input_nc=3, output_nc=3, ngf=8,
    #                               n_downsampling=2, n_blocks=2, BatchNorm2d, 'reflect')
    input_nc, output_nc, ngf, n_down, n_blocks = 3, 3, 8, 2, 2
    key = jax.random.PRNGKey(0)
    pkey, xkey = jax.random.split(key)

    params = init_params(pkey, input_nc, output_nc, ngf, n_down, n_blocks)
    prep = prepare_params(params)            # weight packing runs once, outside jit
    x = jax.random.normal(xkey, (2, input_nc, 16, 16), jnp.float32)   # NCHW input

    fwd = jax.jit(lambda p, xx: global_generator_forward(p, xx, n_down, n_blocks))
    out = jax.block_until_ready(fwd(prep, x))

    assert out.shape == (2, output_nc, 16, 16), out.shape
    assert bool(jnp.all(jnp.isfinite(out)))
    print("KERNEL_OK")
</pallas_src>

<mosaic_0001>
module attributes {stable_mosaic.version = 11 : i64} {
  func.func @_conv_bn_act_kernel(%arg0: i32, %arg1: memref<3x1728xbf16, #tpu.memory_space<vmem>>, %arg2: memref<8x144xbf16, #tpu.memory_space<vmem>>, %arg3: memref<8x1xf32, #tpu.memory_space<vmem>>, %arg4: memref<8x1xf32, #tpu.memory_space<vmem>>, %arg5: memref<8x512xbf16, #tpu.memory_space<vmem>>, %arg6: memref<144x512xbf16, #tpu.memory_space<vmem>>) attributes {dimension_semantics = [#tpu.dimension_semantics<parallel>], iteration_bounds = array<i64: 1>, scalar_prefetch = 0 : i64, scratch_operands = 1 : i64, tpu.core_type = #tpu.core_type<tc>, window_params = [{pipeline_mode = #tpu.pipeline_mode<synchronous>, transform_indices = @transform_0, window_bounds = array<i64: 3, 1728>}, {transform_indices = @transform_1, window_bounds = array<i64: 8, 144>}, {transform_indices = @transform_2, window_bounds = array<i64: 8, 1>}, {transform_indices = @transform_3, window_bounds = array<i64: 8, 1>}, {transform_indices = @transform_4, window_bounds = array<i64: 8, 512>}]} {
    %cst = arith.constant 0.000000e+00 : bf16
    %0 = vector.broadcast %cst : bf16 to vector<144x512xbf16>
    %c0 = arith.constant 0 : index
    %c0_0 = arith.constant 0 : index
    %1 = vector.load %arg6[%c0, %c0_0] : memref<144x512xbf16, #tpu.memory_space<vmem>>, vector<144x512xbf16>
    tpu.vector_store %arg6[%c0, %c0_0], %0 {strides = array<i32>} : memref<144x512xbf16, #tpu.memory_space<vmem>>, vector<144x512xbf16>,
    %c0_1 = arith.constant 0 : index
    %c0_2 = arith.constant 0 : index
    %2 = vector.load %arg1[%c0_1, %c0_2] : memref<3x1728xbf16, #tpu.memory_space<vmem>>, vector<3x256xbf16>
    %c0_3 = arith.constant 0 : index
    %c0_4 = arith.constant 0 : index
    %3 = vector.load %arg6[%c0_3, %c0_4] : memref<144x512xbf16, #tpu.memory_space<vmem>>, vector<3x256xbf16>
    tpu.vector_store %arg6[%c0_3, %c0_4], %2 {strides = array<i32>} : memref<144x512xbf16, #tpu.memory_space<vmem>>, vector<3x256xbf16>,
    %c0_5 = arith.constant 0 : index
    %c864 = arith.constant 864 : index
    %4 = vector.load %arg1[%c0_5, %c864] : memref<3x1728xbf16, #tpu.memory_space<vmem>>, vector<3x256xbf16>
    %c0_6 = arith.constant 0 : index
    %c256 = arith.constant 256 : index
    %5 = vector.load %arg6[%c0_6, %c256] : memref<144x512xbf16, #tpu.memory_space<vmem>>, vector<3x256xbf16>
    tpu.vector_store %arg6[%c0_6, %c256], %4 {strides = array<i32>} : memref<144x512xbf16, #tpu.memory_space<vmem>>, vector<3x256xbf16>,
    %c0_7 = arith.constant 0 : index
    %c288 = arith.constant 288 : index
    %6 = vector.load %arg1[%c0_7, %c288] : memref<3x1728xbf16, #tpu.memory_space<vmem>>, vector<3x256xbf16>
    %c16 = arith.constant 16 : index
    %c0_8 = arith.constant 0 : index
    %7 = vector.load %arg6[%c16, %c0_8] : memref<144x512xbf16, #tpu.memory_space<vmem>>, vector<3x256xbf16>
    tpu.vector_store %arg6[%c16, %c0_8], %6 {strides = array<i32>} : memref<144x512xbf16, #tpu.memory_space<vmem>>, vector<3x256xbf16>,
    %c0_9 = arith.constant 0 : index
    %c1152 = arith.constant 1152 : index
    %8 = vector.load %arg1[%c0_9, %c1152] : memref<3x1728xbf16, #tpu.memory_space<vmem>>, vector<3x256xbf16>
    %c16_10 = arith.constant 16 : index
    %c256_11 = arith.constant 256 : index
    %9 = vector.load %arg6[%c16_10, %c256_11] : memref<144x512xbf16, #tpu.memory_space<vmem>>, vector<3x256xbf16>
    tpu.vector_store %arg6[%c16_10, %c256_11], %8 {strides = array<i32>} : memref<144x512xbf16, #tpu.memory_space<vmem>>, vector<3x256xbf16>,
    %c0_12 = arith.constant 0 : index
    %c576 = arith.constant 576 : index
    %10 = vector.load %arg1[%c0_12, %c576] : memref<3x1728xbf16, #tpu.memory_space<vmem>>, vector<3x256xbf16>
    %c32 = arith.constant 32 : index
    %c0_13 = arith.constant 0 : index
    %11 = vector.load %arg6[%c32, %c0_13] : memref<144x512xbf16, #tpu.memory_space<vmem>>, vector<3x256xbf16>
    tpu.vector_store %arg6[%c32, %c0_13], %10 {strides = array<i32>} : memref<144x512xbf16, #tpu.memory_space<vmem>>, vector<3x256xbf16>,
    %c0_14 = arith.constant 0 : index
    %c1440 = arith.constant 1440 : index
    %12 = vector.load %arg1[%c0_14, %c1440] : memref<3x1728xbf16, #tpu.memory_space<vmem>>, vector<3x256xbf16>
    %c32_15 = arith.constant 32 : index
    %c256_16 = arith.constant 256 : index
    %13 = vector.load %arg6[%c32_15, %c256_16] : memref<144x512xbf16, #tpu.memory_space<vmem>>, vector<3x256xbf16>
    tpu.vector_store %arg6[%c32_15, %c256_16], %12 {strides = array<i32>} : memref<144x512xbf16, #tpu.memory_space<vmem>>, vector<3x256xbf16>,
    %c0_17 = arith.constant 0 : index
    %c16_18 = arith.constant 16 : index
    %14 = vector.load %arg1[%c0_17, %c16_18] : memref<3x1728xbf16, #tpu.memory_space<vmem>>, vector<3x256xbf16>
    %c48 = arith.constant 48 : index
    %c0_19 = arith.constant 0 : index
    %15 = vector.load %arg6[%c48, %c0_19] : memref<144x512xbf16, #tpu.memory_space<vmem>>, vector<3x256xbf16>
    tpu.vector_store %arg6[%c48, %c0_19], %14 {strides = array<i32>} : memref<144x512xbf16, #tpu.memory_space<vmem>>, vector<3x256xbf16>,
    %c0_20 = arith.constant 0 : index
    %c880 = arith.constant 880 : index
    %16 = vector.load %arg1[%c0_20, %c880] : memref<3x1728xbf16, #tpu.memory_space<vmem>>, vector<3x256xbf16>
    %c48_21 = arith.constant 48 : index
    %c256_22 = arith.constant 256 : index
    %17 = vector.load %arg6[%c48_21, %c256_22] : memref<144x512xbf16, #tpu.memory_space<vmem>>, vector<3x256xbf16>
    tpu.vector_store %arg6[%c48_21, %c256_22], %16 {strides = array<i32>} : memref<144x512xbf16, #tpu.memory_space<vmem>>, vector<3x256xbf16>,
    %c0_23 = arith.constant 0 : index
    %c304 = arith.constant 304 : index
    %18 = vector.load %arg1[%c0_23, %c304] : memref<3x1728xbf16, #tpu.memory_space<vmem>>, vector<3x256xbf16>
    %c64 = arith.constant 64 : index
    %c0_24 = arith.constant 0 : index
    %19 = vector.load %arg6[%c64, %c0_24] : memref<144x512xbf16, #tpu.memory_space<vmem>>, vector<3x256xbf16>
    tpu.vector_store %arg6[%c64, %c0_24], %18 {strides = array<i32>} : memref<144x512xbf16, #tpu.memory_space<vmem>>, vector<3x256xbf16>,
    %c0_25 = arith.constant 0 : index
    %c1168 = arith.constant 1168 : index
    %20 = vector.load %arg1[%c0_25, %c1168] : memref<3x1728xbf16, #tpu.memory_space<vmem>>, vector<3x256xbf16>
    %c64_26 = arith.constant 64 : index
    %c256_27 = arith.constant 256 : index
    %21 = vector.load %arg6[%c64_26, %c256_27] : memref<144x512xbf16, #tpu.memory_space<vmem>>, vector<3x256xbf16>
    tpu.vector_store %arg6[%c64_26, %c256_27], %20 {strides = array<i32>} : memref<144x512xbf16, #tpu.memory_space<vmem>>, vector<3x256xbf16>,
    %c0_28 = arith.constant 0 : index
    %c592 = arith.constant 592 : index
    %22 = vector.load %arg1[%c0_28, %c592] : memref<3x1728xbf16, #tpu.memory_space<vmem>>, vector<3x256xbf16>
    %c80 = arith.constant 80 : index
    %c0_29 = arith.constant 0 : index
    %23 = vector.load %arg6[%c80, %c0_29] : memref<144x512xbf16, #tpu.memory_space<vmem>>, vector<3x256xbf16>
    tpu.vector_store %arg6[%c80, %c0_29], %22 {strides = array<i32>} : memref<144x512xbf16, #tpu.memory_space<vmem>>, vector<3x256xbf16>,
    %c0_30 = arith.constant 0 : index
    %c1456 = arith.constant 1456 : index
    %24 = vector.load %arg1[%c0_30, %c1456] : memref<3x1728xbf16, #tpu.memory_space<vmem>>, vector<3x256xbf16>
    %c80_31 = arith.constant 80 : index
    %c256_32 = arith.constant 256 : index
    %25 = vector.load %arg6[%c80_31, %c256_32] : memref<144x512xbf16, #tpu.memory_space<vmem>>, vector<3x256xbf16>
    tpu.vector_store %arg6[%c80_31, %c256_32], %24 {strides = array<i32>} : memref<144x512xbf16, #tpu.memory_space<vmem>>, vector<3x256xbf16>,
    %c0_33 = arith.constant 0 : index
    %c32_34 = arith.constant 32 : index
    %26 = vector.load %arg1[%c0_33, %c32_34] : memref<3x1728xbf16, #tpu.memory_space<vmem>>, vector<3x256xbf16>
    %c96 = arith.constant 96 : index
    %c0_35 = arith.constant 0 : index
    %27 = vector.load %arg6[%c96, %c0_35] : memref<144x512xbf16, #tpu.memory_space<vmem>>, vector<3x256xbf16>
    tpu.vector_store %arg6[%c96, %c0_35], %26 {strides = array<i32>} : memref<144x512xbf16, #tpu.memory_space<vmem>>, vector<3x256xbf16>,
    %c0_36 = arith.constant 0 : index
    %c896 = arith.constant 896 : index
    %28 = vector.load %arg1[%c0_36, %c896] : memref<3x1728xbf16, #tpu.memory_space<vmem>>, vector<3x256xbf16>
    %c96_37 = arith.constant 96 : index
    %c256_38 = arith.constant 256 : index
    %29 = vector.load %arg6[%c96_37, %c256_38] : memref<144x512xbf16, #tpu.memory_space<vmem>>, vector<3x256xbf16>
    tpu.vector_store %arg6[%c96_37, %c256_38], %28 {strides = array<i32>} : memref<144x512xbf16, #tpu.memory_space<vmem>>, vector<3x256xbf16>,
    %c0_39 = arith.constant 0 : index
    %c320 = arith.constant 320 : index
    %30 = vector.load %arg1[%c0_39, %c320] : memref<3x1728xbf16, #tpu.memory_space<vmem>>, vector<3x256xbf16>
    %c112 = arith.constant 112 : index
    %c0_40 = arith.constant 0 : index
    %31 = vector.load %arg6[%c112, %c0_40] : memref<144x512xbf16, #tpu.memory_space<vmem>>, vector<3x256xbf16>
    tpu.vector_store %arg6[%c112, %c0_40], %30 {strides = array<i32>} : memref<144x512xbf16, #tpu.memory_space<vmem>>, vector<3x256xbf16>,
    %c0_41 = arith.constant 0 : index
    %c1184 = arith.constant 1184 : index
    %32 = vector.load %arg1[%c0_41, %c1184] : memref<3x1728xbf16, #tpu.memory_space<vmem>>, vector<3x256xbf16>
    %c112_42 = arith.constant 112 : index
    %c256_43 = arith.constant 256 : index
    %33 = vector.load %arg6[%c112_42, %c256_43] : memref<144x512xbf16, #tpu.memory_space<vmem>>, vector<3x256xbf16>
    tpu.vector_store %arg6[%c112_42, %c256_43], %32 {strides = array<i32>} : memref<144x512xbf16, #tpu.memory_space<vmem>>, vector<3x256xbf16>,
    %c0_44 = arith.constant 0 : index
    %c608 = arith.constant 608 : index
    %34 = vector.load %arg1[%c0_44, %c608] : memref<3x1728xbf16, #tpu.memory_space<vmem>>, vector<3x256xbf16>
    %c128 = arith.constant 128 : index
    %c0_45 = arith.constant 0 : index
    %35 = vector.load %arg6[%c128, %c0_45] : memref<144x512xbf16, #tpu.memory_space<vmem>>, vector<3x256xbf16>
    tpu.vector_store %arg6[%c128, %c0_45], %34 {strides = array<i32>} : memref<144x512xbf16, #tpu.memory_space<vmem>>, vector<3x256xbf16>,
    %c0_46 = arith.constant 0 : index
    %c1472 = arith.constant 1472 : index
    %36 = vector.load %arg1[%c0_46, %c1472] : memref<3x1728xbf16, #tpu.memory_space<vmem>>, vector<3x256xbf16>
    %c128_47 = arith.constant 128 : index
    %c256_48 = arith.constant 256 : index
    %37 = vector.load %arg6[%c128_47, %c256_48] : memref<144x512xbf16, #tpu.memory_space<vmem>>, vector<3x256xbf16>
    tpu.vector_store %arg6[%c128_47, %c256_48], %36 {strides = array<i32>} : memref<144x512xbf16, #tpu.memory_space<vmem>>, vector<3x256xbf16>,
    %c0_49 = arith.constant 0 : index
    %c0_50 = arith.constant 0 : index
    %38 = vector.load %arg2[%c0_49, %c0_50] : memref<8x144xbf16, #tpu.memory_space<vmem>>, vector<8x144xbf16>
    %c0_51 = arith.constant 0 : index
    %c0_52 = arith.constant 0 : index
    %39 = vector.load %arg6[%c0_51, %c0_52] : memref<144x512xbf16, #tpu.memory_space<vmem>>, vector<144x512xbf16>
    %cst_53 = arith.constant dense<0.000000e+00> : vector<8x512xf32>
    %40 = tpu.matmul %38, %39, %cst_53 {dimension_numbers = #tpu.dot_dimension_numbers<[1], [0], [0], [1], [0, 0, 1, 1], [], []>} : vector<8x144xbf16>, vector<144x512xbf16>, vector<8x512xf32> -> vector<8x512xf32>
    %cst_54 = arith.constant dense<0.000000e+00> : vector<8xf32>
    %41 = vector.multi_reduction <add>, %40, %cst_54 [1] : vector<8x512xf32> to vector<8xf32>
    %42 = vector.shape_cast %41 : vector<8xf32> to vector<8x1xf32>
    %cst_55 = arith.constant 5.120000e+02 : f32
    %43 = vector.broadcast %cst_55 : f32 to vector<8x1xf32>
    %44 = arith.divf %42, %43 : vector<8x1xf32>
    %45 = arith.mulf %40, %40 : vector<8x512xf32>
    %cst_56 = arith.constant dense<0.000000e+00> : vector<8xf32>
    %46 = vector.multi_reduction <add>, %45, %cst_56 [1] : vector<8x512xf32> to vector<8xf32>
    %47 = vector.shape_cast %46 : vector<8xf32> to vector<8x1xf32>
    %cst_57 = arith.constant 5.120000e+02 : f32
    %48 = vector.broadcast %cst_57 : f32 to vector<8x1xf32>
    %49 = arith.divf %47, %48 : vector<8x1xf32>
    %50 = arith.mulf %44, %44 : vector<8x1xf32>
    %51 = arith.subf %49, %50 : vector<8x1xf32>
    %cst_58 = arith.constant 0.000000e+00 : f32
    %52 = vector.broadcast %cst_58 : f32 to vector<8x1xf32>
    %53 = arith.maximumf %51, %52 : vector<8x1xf32>
    %c0_59 = arith.constant 0 : index
    %c0_60 = arith.constant 0 : index
    %54 = vector.load %arg3[%c0_59, %c0_60] : memref<8x1xf32, #tpu.memory_space<vmem>>, vector<8x1xf32>
    %cst_61 = arith.constant 9.99999974E-6 : f32
    %55 = vector.broadcast %cst_61 : f32 to vector<8x1xf32>
    %56 = arith.addf %53, %55 : vector<8x1xf32>
    %57 = math.rsqrt %56 : vector<8x1xf32>
    %58 = arith.mulf %54, %57 : vector<8x1xf32>
    %59 = vector.broadcast %58 : vector<8x1xf32> to vector<8x512xf32>
    %60 = arith.mulf %40, %59 : vector<8x512xf32>
    %c0_62 = arith.constant 0 : index
    %c0_63 = arith.constant 0 : index
    %61 = vector.load %arg4[%c0_62, %c0_63] : memref<8x1xf32, #tpu.memory_space<vmem>>, vector<8x1xf32>
    %62 = arith.mulf %44, %58 : vector<8x1xf32>
    %63 = arith.subf %61, %62 : vector<8x1xf32>
    %64 = vector.broadcast %63 : vector<8x1xf32> to vector<8x512xf32>
    %65 = arith.addf %60, %64 : vector<8x512xf32>
    %cst_64 = arith.constant 0.000000e+00 : f32
    %66 = vector.broadcast %cst_64 : f32 to vector<8x512xf32>
    %67 = arith.maximumf %65, %66 : vector<8x512xf32>
    %68 = arith.truncf %67 : vector<8x512xf32> to vector<8x512xbf16>
    %c0_65 = arith.constant 0 : index
    %c0_66 = arith.constant 0 : index
    %69 = vector.load %arg5[%c0_65, %c0_66] : memref<8x512xbf16, #tpu.memory_space<vmem>>, vector<8x512xbf16>
    tpu.vector_store %arg5[%c0_65, %c0_66], %68 {strides = array<i32>} : memref<8x512xbf16, #tpu.memory_space<vmem>>, vector<8x512xbf16>,
    return
  }
  func.func @transform_0(%arg0: i32) -> (i32, i32) {
    %c0_i32 = arith.constant 0 : i32
    %c0_i32_0 = arith.constant 0 : i32
    %c0_i32_1 = arith.constant 0 : i32
    return %c0_i32, %c0_i32_0 : i32, i32
  }
  func.func @transform_1(%arg0: i32) -> (i32, i32) {
    %c0_i32 = arith.constant 0 : i32
    %c0_i32_0 = arith.constant 0 : i32
    return %arg0, %c0_i32 : i32, i32
  }
  func.func @transform_2(%arg0: i32) -> (i32, i32) {
    %c0_i32 = arith.constant 0 : i32
    %c0_i32_0 = arith.constant 0 : i32
    return %arg0, %c0_i32 : i32, i32
  }
  func.func @transform_3(%arg0: i32) -> (i32, i32) {
    %c0_i32 = arith.constant 0 : i32
    %c0_i32_0 = arith.constant 0 : i32
    return %arg0, %c0_i32 : i32, i32
  }
  func.func @transform_4(%arg0: i32) -> (i32, i32) {
    %c0_i32 = arith.constant 0 : i32
    %c0_i32_0 = arith.constant 0 : i32
    return %arg0, %c0_i32 : i32, i32
  }
}

module attributes {stable_mosaic.version = 11 : i64} {
  func.func @_conv_bn_act_kernel(%arg0: i32, %arg1: memref<8x1152xbf16, #tpu.memory_space<vmem>>, %arg2: memref<16x144xbf16, #tpu.memory_space<vmem>>, %arg3: memref<16x1xf32, #tpu.memory_space<vmem>>, %arg4: memref<16x1xf32, #tpu.memory_space<vmem>>, %arg5: memref<16x128xbf16, #tpu.memory_space<vmem>>, %arg6: memref<144x128xbf16, #tpu.memory_space<vmem>>) attributes {dimension_semantics = [#tpu.dimension_semantics<parallel>], iteration_bounds = array<i64: 1>, scalar_prefetch = 0 : i64, scratch_operands = 1 : i64, tpu.core_type = #tpu.core_type<tc>, window_params = [{pipeline_mode = #tpu.pipeline_mode<synchronous>, transform_indices = @transform_0, window_bounds = array<i64: 8, 1152>}, {transform_indices = @transform_1, window_bounds = array<i64: 16, 144>}, {transform_indices = @transform_2, window_bounds = array<i64: 16, 1>}, {transform_indices = @transform_3, window_bounds = array<i64: 16, 1>}, {transform_indices = @transform_4, window_bounds = array<i64: 16, 128>}]} {
    %cst = arith.constant 0.000000e+00 : bf16
    %0 = vector.broadcast %cst : bf16 to vector<144x128xbf16>
    %c0 = arith.constant 0 : index
    %c0_0 = arith.constant 0 : index
    %1 = vector.load %arg6[%c0, %c0_0] : memref<144x128xbf16, #tpu.memory_space<vmem>>, vector<144x128xbf16>
    tpu.vector_store %arg6[%c0, %c0_0], %0 {strides = array<i32>} : memref<144x128xbf16, #tpu.memory_space<vmem>>, vector<144x128xbf16>,
    %c0_1 = arith.constant 0 : index
    %c0_2 = arith.constant 0 : index
    %2 = vector.load %arg1[%c0_1, %c0_2] : memref<8x1152xbf16, #tpu.memory_space<vmem>>, vector<8x64xbf16>
    %c0_3 = arith.constant 0 : index
    %c0_4 = arith.constant 0 : index
    %3 = vector.load %arg6[%c0_3, %c0_4] : memref<144x128xbf16, #tpu.memory_space<vmem>>, vector<8x64xbf16>
    tpu.vector_store %arg6[%c0_3, %c0_4], %2 {strides = array<i32>} : memref<144x128xbf16, #tpu.memory_space<vmem>>, vector<8x64xbf16>,
    %c0_5 = arith.constant 0 : index
    %c576 = arith.constant 576 : index
    %4 = vector.load %arg1[%c0_5, %c576] : memref<8x1152xbf16, #tpu.memory_space<vmem>>, vector<8x64xbf16>
    %c0_6 = arith.constant 0 : index
    %c64 = arith.constant 64 : index
    %5 = vector.load %arg6[%c0_6, %c64] : memref<144x128xbf16, #tpu.memory_space<vmem>>, vector<8x64xbf16>
    tpu.vector_store %arg6[%c0_6, %c64], %4 {strides = array<i32>} : memref<144x128xbf16, #tpu.memory_space<vmem>>, vector<8x64xbf16>,
    %c0_7 = arith.constant 0 : index
    %c144 = arith.constant 144 : index
    %6 = vector.load %arg1[%c0_7, %c144] : memref<8x1152xbf16, #tpu.memory_space<vmem>>, vector<8x64xbf16>
    %c16 = arith.constant 16 : index
    %c0_8 = arith.constant 0 : index
    %7 = vector.load %arg6[%c16, %c0_8] : memref<144x128xbf16, #tpu.memory_space<vmem>>, vector<8x64xbf16>
    tpu.vector_store %arg6[%c16, %c0_8], %6 {strides = array<i32>} : memref<144x128xbf16, #tpu.memory_space<vmem>>, vector<8x64xbf16>,
    %c0_9 = arith.constant 0 : index
    %c720 = arith.constant 720 : index
    %8 = vector.load %arg1[%c0_9, %c720] : memref<8x1152xbf16, #tpu.memory_space<vmem>>, vector<8x64xbf16>
    %c16_10 = arith.constant 16 : index
    %c64_11 = arith.constant 64 : index
    %9 = vector.load %arg6[%c16_10, %c64_11] : memref<144x128xbf16, #tpu.memory_space<vmem>>, vector<8x64xbf16>
    tpu.vector_store %arg6[%c16_10, %c64_11], %8 {strides = array<i32>} : memref<144x128xbf16, #tpu.memory_space<vmem>>, vector<8x64xbf16>,
    %c0_12 = arith.constant 0 : index
    %c72 = arith.constant 72 : index
    %10 = vector.load %arg1[%c0_12, %c72] : memref<8x1152xbf16, #tpu.memory_space<vmem>>, vector<8x64xbf16>
    %c32 = arith.constant 32 : index
    %c0_13 = arith.constant 0 : index
    %11 = vector.load %arg6[%c32, %c0_13] : memref<144x128xbf16, #tpu.memory_space<vmem>>, vector<8x64xbf16>
    tpu.vector_store %arg6[%c32, %c0_13], %10 {strides = array<i32>} : memref<144x128xbf16, #tpu.memory_space<vmem>>, vector<8x64xbf16>,
    %c0_14 = arith.constant 0 : index
    %c648 = arith.constant 648 : index
    %12 = vector.load %arg1[%c0_14, %c648] : memref<8x1152xbf16, #tpu.memory_space<vmem>>, vector<8x64xbf16>
    %c32_15 = arith.constant 32 : index
    %c64_16 = arith.constant 64 : index
    %13 = vector.load %arg6[%c32_15, %c64_16] : memref<144x128xbf16, #tpu.memory_space<vmem>>, vector<8x64xbf16>
    tpu.vector_store %arg6[%c32_15, %c64_16], %12 {strides = array<i32>} : memref<144x128xbf16, #tpu.memory_space<vmem>>, vector<8x64xbf16>,
    %c0_17 = arith.constant 0 : index
    %c288 = arith.constant 288 : index
    %14 = vector.load %arg1[%c0_17, %c288] : memref<8x1152xbf16, #tpu.memory_space<vmem>>, vector<8x64xbf16>
    %c48 = arith.constant 48 : index
    %c0_18 = arith.constant 0 : index
    %15 = vector.load %arg6[%c48, %c0_18] : memref<144x128xbf16, #tpu.memory_space<vmem>>, vector<8x64xbf16>
    tpu.vector_store %arg6[%c48, %c0_18], %14 {strides = array<i32>} : memref<144x128xbf16, #tpu.memory_space<vmem>>, vector<8x64xbf16>,
    %c0_19 = arith.constant 0 : index
    %c864 = arith.constant 864 : index
    %16 = vector.load %arg1[%c0_19, %c864] : memref<8x1152xbf16, #tpu.memory_space<vmem>>, vector<8x64xbf16>
    %c48_20 = arith.constant 48 : index
    %c64_21 = arith.constant 64 : index
    %17 = vector.load %arg6[%c48_20, %c64_21] : memref<144x128xbf16, #tpu.memory_space<vmem>>, vector<8x64xbf16>
    tpu.vector_store %arg6[%c48_20, %c64_21], %16 {strides = array<i32>} : memref<144x128xbf16, #tpu.memory_space<vmem>>, vector<8x64xbf16>,
    %c0_22 = arith.constant 0 : index
    %c432 = arith.constant 432 : index
    %18 = vector.load %arg1[%c0_22, %c432] : memref<8x1152xbf16, #tpu.memory_space<vmem>>, vector<8x64xbf16>
    %c64_23 = arith.constant 64 : index
    %c0_24 = arith.constant 0 : index
    %19 = vector.load %arg6[%c64_23, %c0_24] : memref<144x128xbf16, #tpu.memory_space<vmem>>, vector<8x64xbf16>
    tpu.vector_store %arg6[%c64_23, %c0_24], %18 {strides = array<i32>} : memref<144x128xbf16, #tpu.memory_space<vmem>>, vector<8x64xbf16>,
    %c0_25 = arith.constant 0 : index
    %c1008 = arith.constant 1008 : index
    %20 = vector.load %arg1[%c0_25, %c1008] : memref<8x1152xbf16, #tpu.memory_space<vmem>>, vector<8x64xbf16>
    %c64_26 = arith.constant 64 : index
    %c64_27 = arith.constant 64 : index
    %21 = vector.load %arg6[%c64_26, %c64_27] : memref<144x128xbf16, #tpu.memory_space<vmem>>, vector<8x64xbf16>
    tpu.vector_store %arg6[%c64_26, %c64_27], %20 {strides = array<i32>} : memref<144x128xbf16, #tpu.memory_space<vmem>>, vector<8x64xbf16>,
    %c0_28 = arith.constant 0 : index
    %c360 = arith.constant 360 : index
    %22 = vector.load %arg1[%c0_28, %c360] : memref<8x1152xbf16, #tpu.memory_space<vmem>>, vector<8x64xbf16>
    %c80 = arith.constant 80 : index
    %c0_29 = arith.constant 0 : index
    %23 = vector.load %arg6[%c80, %c0_29] : memref<144x128xbf16, #tpu.memory_space<vmem>>, vector<8x64xbf16>
    tpu.vector_store %arg6[%c80, %c0_29], %22 {strides = array<i32>} : memref<144x128xbf16, #tpu.memory_space<vmem>>, vector<8x64xbf16>,
    %c0_30 = arith.constant 0 : index
    %c936 = arith.constant 936 : index
    %24 = vector.load %arg1[%c0_30, %c936] : memref<8x1152xbf16, #tpu.memory_space<vmem>>, vector<8x64xbf16>
    %c80_31 = arith.constant 80 : index
    %c64_32 = arith.constant 64 : index
    %25 = vector.load %arg6[%c80_31, %c64_32] : memref<144x128xbf16, #tpu.memory_space<vmem>>, vector<8x64xbf16>
    tpu.vector_store %arg6[%c80_31, %c64_32], %24 {strides = array<i32>} : memref<144x128xbf16, #tpu.memory_space<vmem>>, vector<8x64xbf16>,
    %c0_33 = arith.constant 0 : index
    %c8 = arith.constant 8 : index
    %26 = vector.load %arg1[%c0_33, %c8] : memref<8x1152xbf16, #tpu.memory_space<vmem>>, vector<8x64xbf16>
    %c96 = arith.constant 96 : index
    %c0_34 = arith.constant 0 : index
    %27 = vector.load %arg6[%c96, %c0_34] : memref<144x128xbf16, #tpu.memory_space<vmem>>, vector<8x64xbf16>
    tpu.vector_store %arg6[%c96, %c0_34], %26 {strides = array<i32>} : memref<144x128xbf16, #tpu.memory_space<vmem>>, vector<8x64xbf16>,
    %c0_35 = arith.constant 0 : index
    %c584 = arith.constant 584 : index
    %28 = vector.load %arg1[%c0_35, %c584] : memref<8x1152xbf16, #tpu.memory_space<vmem>>, vector<8x64xbf16>
    %c96_36 = arith.constant 96 : index
    %c64_37 = arith.constant 64 : index
    %29 = vector.load %arg6[%c96_36, %c64_37] : memref<144x128xbf16, #tpu.memory_space<vmem>>, vector<8x64xbf16>
    tpu.vector_store %arg6[%c96_36, %c64_37], %28 {strides = array<i32>} : memref<144x128xbf16, #tpu.memory_space<vmem>>, vector<8x64xbf16>,
    %c0_38 = arith.constant 0 : index
    %c152 = arith.constant 152 : index
    %30 = vector.load %arg1[%c0_38, %c152] : memref<8x1152xbf16, #tpu.memory_space<vmem>>, vector<8x64xbf16>
    %c112 = arith.constant 112 : index
    %c0_39 = arith.constant 0 : index
    %31 = vector.load %arg6[%c112, %c0_39] : memref<144x128xbf16, #tpu.memory_space<vmem>>, vector<8x64xbf16>
    tpu.vector_store %arg6[%c112, %c0_39], %30 {strides = array<i32>} : memref<144x128xbf16, #tpu.memory_space<vmem>>, vector<8x64xbf16>,
    %c0_40 = arith.constant 0 : index
    %c728 = arith.constant 728 : index
    %32 = vector.load %arg1[%c0_40, %c728] : memref<8x1152xbf16, #tpu.memory_space<vmem>>, vector<8x64xbf16>
    %c112_41 = arith.constant 112 : index
    %c64_42 = arith.constant 64 : index
    %33 = vector.load %arg6[%c112_41, %c64_42] : memref<144x128xbf16, #tpu.memory_space<vmem>>, vector<8x64xbf16>
    tpu.vector_store %arg6[%c112_41, %c64_42], %32 {strides = array<i32>} : memref<144x128xbf16, #tpu.memory_space<vmem>>, vector<8x64xbf16>,
    %c0_43 = arith.constant 0 : index
    %c80_44 = arith.constant 80 : index
    %34 = vector.load %arg1[%c0_43, %c80_44] : memref<8x1152xbf16, #tpu.memory_space<vmem>>, vector<8x64xbf16>
    %c128 = arith.constant 128 : index
    %c0_45 = arith.constant 0 : index
    %35 = vector.load %arg6[%c128, %c0_45] : memref<144x128xbf16, #tpu.memory_space<vmem>>, vector<8x64xbf16>
    tpu.vector_store %arg6[%c128, %c0_45], %34 {strides = array<i32>} : memref<144x128xbf16, #tpu.memory_space<vmem>>, vector<8x64xbf16>,
    %c0_46 = arith.constant 0 : index
    %c656 = arith.constant 656 : index
    %36 = vector.load %arg1[%c0_46, %c656] : memref<8x1152xbf16, #tpu.memory_space<vmem>>, vector<8x64xbf16>
    %c128_47 = arith.constant 128 : index
    %c64_48 = arith.constant 64 : index
    %37 = vector.load %arg6[%c128_47, %c64_48] : memref<144x128xbf16, #tpu.memory_space<vmem>>, vector<8x64xbf16>
    tpu.vector_store %arg6[%c128_47, %c64_48], %36 {strides = array<i32>} : memref<144x128xbf16, #tpu.memory_space<vmem>>, vector<8x64xbf16>,
    %c0_49 = arith.constant 0 : index
    %c0_50 = arith.constant 0 : index
    %38 = vector.load %arg2[%c0_49, %c0_50] : memref<16x144xbf16, #tpu.memory_space<vmem>>, vector<16x144xbf16>
    %c0_51 = arith.constant 0 : index
    %c0_52 = arith.constant 0 : index
    %39 = vector.load %arg6[%c0_51, %c0_52] : memref<144x128xbf16, #tpu.memory_space<vmem>>, vector<144x128xbf16>
    %cst_53 = arith.constant dense<0.000000e+00> : vector<16x128xf32>
    %40 = tpu.matmul %38, %39, %cst_53 {dimension_numbers = #tpu.dot_dimension_numbers<[1], [0], [0], [1], [0, 0, 1, 1], [], []>} : vector<16x144xbf16>, vector<144x128xbf16>, vector<16x128xf32> -> vector<16x128xf32>
    %cst_54 = arith.constant dense<0.000000e+00> : vector<16xf32>
    %41 = vector.multi_reduction <add>, %40, %cst_54 [1] : vector<16x128xf32> to vector<16xf32>
    %42 = vector.shape_cast %41 : vector<16xf32> to vector<16x1xf32>
    %cst_55 = arith.constant 1.280000e+02 : f32
    %43 = vector.broadcast %cst_55 : f32 to vector<16x1xf32>
    %44 = arith.divf %42, %43 : vector<16x1xf32>
    %45 = arith.mulf %40, %40 : vector<16x128xf32>
    %cst_56 = arith.constant dense<0.000000e+00> : vector<16xf32>
    %46 = vector.multi_reduction <add>, %45, %cst_56 [1] : vector<16x128xf32> to vector<16xf32>
    %47 = vector.shape_cast %46 : vector<16xf32> to vector<16x1xf32>
    %cst_57 = arith.constant 1.280000e+02 : f32
    %48 = vector.broadcast %cst_57 : f32 to vector<16x1xf32>
    %49 = arith.divf %47, %48 : vector<16x1xf32>
    %50 = arith.mulf %44, %44 : vector<16x1xf32>
    %51 = arith.subf %49, %50 : vector<16x1xf32>
    %cst_58 = arith.constant 0.000000e+00 : f32
    %52 = vector.broadcast %cst_58 : f32 to vector<16x1xf32>
    %53 = arith.maximumf %51, %52 : vector<16x1xf32>
    %c0_59 = arith.constant 0 : index
    %c0_60 = arith.constant 0 : index
    %54 = vector.load %arg3[%c0_59, %c0_60] : memref<16x1xf32, #tpu.memory_space<vmem>>, vector<16x1xf32>
    %cst_61 = arith.constant 9.99999974E-6 : f32
    %55 = vector.broadcast %cst_61 : f32 to vector<16x1xf32>
    %56 = arith.addf %53, %55 : vector<16x1xf32>
    %57 = math.rsqrt %56 : vector<16x1xf32>
    %58 = arith.mulf %54, %57 : vector<16x1xf32>
    %59 = vector.broadcast %58 : vector<16x1xf32> to vector<16x128xf32>
    %60 = arith.mulf %40, %59 : vector<16x128xf32>
    %c0_62 = arith.constant 0 : index
    %c0_63 = arith.constant 0 : index
    %61 = vector.load %arg4[%c0_62, %c0_63] : memref<16x1xf32, #tpu.memory_space<vmem>>, vector<16x1xf32>
    %62 = arith.mulf %44, %58 : vector<16x1xf32>
    %63 = arith.subf %61, %62 : vector<16x1xf32>
    %64 = vector.broadcast %63 : vector<16x1xf32> to vector<16x128xf32>
    %65 = arith.addf %60, %64 : vector<16x128xf32>
    %cst_64 = arith.constant 0.000000e+00 : f32
    %66 = vector.broadcast %cst_64 : f32 to vector<16x128xf32>
    %67 = arith.maximumf %65, %66 : vector<16x128xf32>
    %68 = arith.truncf %67 : vector<16x128xf32> to vector<16x128xbf16>
    %c0_65 = arith.constant 0 : index
    %c0_66 = arith.constant 0 : index
    %69 = vector.load %arg5[%c0_65, %c0_66] : memref<16x128xbf16, #tpu.memory_space<vmem>>, vector<16x128xbf16>
    tpu.vector_store %arg5[%c0_65, %c0_66], %68 {strides = array<i32>} : memref<16x128xbf16, #tpu.memory_space<vmem>>, vector<16x128xbf16>,
    return
  }
  func.func @transform_0(%arg0: i32) -> (i32, i32) {
    %c0_i32 = arith.constant 0 : i32
    %c0_i32_0 = arith.constant 0 : i32
    %c0_i32_1 = arith.constant 0 : i32
    return %c0_i32, %c0_i32_0 : i32, i32
  }
  func.func @transform_1(%arg0: i32) -> (i32, i32) {
    %c0_i32 = arith.constant 0 : i32
    %c0_i32_0 = arith.constant 0 : i32
    return %arg0, %c0_i32 : i32, i32
  }
  func.func @transform_2(%arg0: i32) -> (i32, i32) {
    %c0_i32 = arith.constant 0 : i32
    %c0_i32_0 = arith.constant 0 : i32
    return %arg0, %c0_i32 : i32, i32
  }
  func.func @transform_3(%arg0: i32) -> (i32, i32) {
    %c0_i32 = arith.constant 0 : i32
    %c0_i32_0 = arith.constant 0 : i32
    return %arg0, %c0_i32 : i32, i32
  }
  func.func @transform_4(%arg0: i32) -> (i32, i32) {
    %c0_i32 = arith.constant 0 : i32
    %c0_i32_0 = arith.constant 0 : i32
    return %arg0, %c0_i32 : i32, i32
  }
}

module attributes {stable_mosaic.version = 11 : i64} {
  func.func @_conv_bn_act_kernel(%arg0: i32, %arg1: memref<16x320xbf16, #tpu.memory_space<vmem>>, %arg2: memref<16x144xbf16, #tpu.memory_space<vmem>>, %arg3: memref<16x1xf32, #tpu.memory_space<vmem>>, %arg4: memref<16x1xf32, #tpu.memory_space<vmem>>, %arg5: memref<16x32xbf16, #tpu.memory_space<vmem>>, %arg6: memref<144x32xbf16, #tpu.memory_space<vmem>>) attributes {dimension_semantics = [#tpu.dimension_semantics<parallel>], iteration_bounds = array<i64: 2>, scalar_prefetch = 0 : i64, scratch_operands = 1 : i64, tpu.core_type = #tpu.core_type<tc>, window_params = [{pipeline_mode = #tpu.pipeline_mode<synchronous>, transform_indices = @transform_0, window_bounds = array<i64: 16, 320>}, {transform_indices = @transform_1, window_bounds = array<i64: 16, 144>}, {transform_indices = @transform_2, window_bounds = array<i64: 16, 1>}, {transform_indices = @transform_3, window_bounds = array<i64: 16, 1>}, {transform_indices = @transform_4, window_bounds = array<i64: 16, 32>}]} {
    %c0 = arith.constant 0 : index
    %c0_0 = arith.constant 0 : index
    %0 = vector.load %arg1[%c0, %c0_0] : memref<16x320xbf16, #tpu.memory_space<vmem>>, vector<16x16xbf16>
    %c0_1 = arith.constant 0 : index
    %c0_2 = arith.constant 0 : index
    %1 = vector.load %arg6[%c0_1, %c0_2] : memref<144x32xbf16, #tpu.memory_space<vmem>>, vector<16x16xbf16>
    tpu.vector_store %arg6[%c0_1, %c0_2], %0 {strides = array<i32>} : memref<144x32xbf16, #tpu.memory_space<vmem>>, vector<16x16xbf16>,
    %c0_3 = arith.constant 0 : index
    %c160 = arith.constant 160 : index
    %2 = vector.load %arg1[%c0_3, %c160] : memref<16x320xbf16, #tpu.memory_space<vmem>>, vector<16x16xbf16>
    %c0_4 = arith.constant 0 : index
    %c16 = arith.constant 16 : index
    %3 = vector.load %arg6[%c0_4, %c16] : memref<144x32xbf16, #tpu.memory_space<vmem>>, vector<16x16xbf16>
    tpu.vector_store %arg6[%c0_4, %c16], %2 {strides = array<i32>} : memref<144x32xbf16, #tpu.memory_space<vmem>>, vector<16x16xbf16>,
    %c0_5 = arith.constant 0 : index
    %c40 = arith.constant 40 : index
    %4 = vector.load %arg1[%c0_5, %c40] : memref<16x320xbf16, #tpu.memory_space<vmem>>, vector<16x16xbf16>
    %c16_6 = arith.constant 16 : index
    %c0_7 = arith.constant 0 : index
    %5 = vector.load %arg6[%c16_6, %c0_7] : memref<144x32xbf16, #tpu.memory_space<vmem>>, vector<16x16xbf16>
    tpu.vector_store %arg6[%c16_6, %c0_7], %4 {strides = array<i32>} : memref<144x32xbf16, #tpu.memory_space<vmem>>, vector<16x16xbf16>,
    %c0_8 = arith.constant 0 : index
    %c200 = arith.constant 200 : index
    %6 = vector.load %arg1[%c0_8, %c200] : memref<16x320xbf16, #tpu.memory_space<vmem>>, vector<16x16xbf16>
    %c16_9 = arith.constant 16 : index
    %c16_10 = arith.constant 16 : index
    %7 = vector.load %arg6[%c16_9, %c16_10] : memref<144x32xbf16, #tpu.memory_space<vmem>>, vector<16x16xbf16>
    tpu.vector_store %arg6[%c16_9, %c16_10], %6 {strides = array<i32>} : memref<144x32xbf16, #tpu.memory_space<vmem>>, vector<16x16xbf16>,
    %c0_11 = arith.constant 0 : index
    %c20 = arith.constant 20 : index
    %8 = vector.load %arg1[%c0_11, %c20] : memref<16x320xbf16, #tpu.memory_space<vmem>>, vector<16x16xbf16>
    %c32 = arith.constant 32 : index
    %c0_12 = arith.constant 0 : index
    %9 = vector.load %arg6[%c32, %c0_12] : memref<144x32xbf16, #tpu.memory_space<vmem>>, vector<16x16xbf16>
    tpu.vector_store %arg6[%c32, %c0_12], %8 {strides = array<i32>} : memref<144x32xbf16, #tpu.memory_space<vmem>>, vector<16x16xbf16>,
    %c0_13 = arith.constant 0 : index
    %c180 = arith.constant 180 : index
    %10 = vector.load %arg1[%c0_13, %c180] : memref<16x320xbf16, #tpu.memory_space<vmem>>, vector<16x16xbf16>
    %c32_14 = arith.constant 32 : index
    %c16_15 = arith.constant 16 : index
    %11 = vector.load %arg6[%c32_14, %c16_15] : memref<144x32xbf16, #tpu.memory_space<vmem>>, vector<16x16xbf16>
    tpu.vector_store %arg6[%c32_14, %c16_15], %10 {strides = array<i32>} : memref<144x32xbf16, #tpu.memory_space<vmem>>, vector<16x16xbf16>,
    %c0_16 = arith.constant 0 : index
    %c80 = arith.constant 80 : index
    %12 = vector.load %arg1[%c0_16, %c80] : memref<16x320xbf16, #tpu.memory_space<vmem>>, vector<16x16xbf16>
    %c48 = arith.constant 48 : index
    %c0_17 = arith.constant 0 : index
    %13 = vector.load %arg6[%c48, %c0_17] : memref<144x32xbf16, #tpu.memory_space<vmem>>, vector<16x16xbf16>
    tpu.vector_store %arg6[%c48, %c0_17], %12 {strides = array<i32>} : memref<144x32xbf16, #tpu.memory_space<vmem>>, vector<16x16xbf16>,
    %c0_18 = arith.constant 0 : index
    %c240 = arith.constant 240 : index
    %14 = vector.load %arg1[%c0_18, %c240] : memref<16x320xbf16, #tpu.memory_space<vmem>>, vector<16x16xbf16>
    %c48_19 = arith.constant 48 : index
    %c16_20 = arith.constant 16 : index
    %15 = vector.load %arg6[%c48_19, %c16_20] : memref<144x32xbf16, #tpu.memory_space<vmem>>, vector<16x16xbf16>
    tpu.vector_store %arg6[%c48_19, %c16_20], %14 {strides = array<i32>} : memref<144x32xbf16, #tpu.memory_space<vmem>>, vector<16x16xbf16>,
    %c0_21 = arith.constant 0 : index
    %c120 = arith.constant 120 : index
    %16 = vector.load %arg1[%c0_21, %c120] : memref<16x320xbf16, #tpu.memory_space<vmem>>, vector<16x16xbf16>
    %c64 = arith.constant 64 : index
    %c0_22 = arith.constant 0 : index
    %17 = vector.load %arg6[%c64, %c0_22] : memref<144x32xbf16, #tpu.memory_space<vmem>>, vector<16x16xbf16>
    tpu.vector_store %arg6[%c64, %c0_22], %16 {strides = array<i32>} : memref<144x32xbf16, #tpu.memory_space<vmem>>, vector<16x16xbf16>,
    %c0_23 = arith.constant 0 : index
    %c280 = arith.constant 280 : index
    %18 = vector.load %arg1[%c0_23, %c280] : memref<16x320xbf16, #tpu.memory_space<vmem>>, vector<16x16xbf16>
    %c64_24 = arith.constant 64 : index
    %c16_25 = arith.constant 16 : index
    %19 = vector.load %arg6[%c64_24, %c16_25] : memref<144x32xbf16, #tpu.memory_space<vmem>>, vector<16x16xbf16>
    tpu.vector_store %arg6[%c64_24, %c16_25], %18 {strides = array<i32>} : memref<144x32xbf16, #tpu.memory_space<vmem>>, vector<16x16xbf16>,
    %c0_26 = arith.constant 0 : index
    %c100 = arith.constant 100 : index
    %20 = vector.load %arg1[%c0_26, %c100] : memref<16x320xbf16, #tpu.memory_space<vmem>>, vector<16x16xbf16>
    %c80_27 = arith.constant 80 : index
    %c0_28 = arith.constant 0 : index
    %21 = vector.load %arg6[%c80_27, %c0_28] : memref<144x32xbf16, #tpu.memory_space<vmem>>, vector<16x16xbf16>
    tpu.vector_store %arg6[%c80_27, %c0_28], %20 {strides = array<i32>} : memref<144x32xbf16, #tpu.memory_space<vmem>>, vector<16x16xbf16>,
    %c0_29 = arith.constant 0 : index
    %c260 = arith.constant 260 : index
    %22 = vector.load %arg1[%c0_29, %c260] : memref<16x320xbf16, #tpu.memory_space<vmem>>, vector<16x16xbf16>
    %c80_30 = arith.constant 80 : index
    %c16_31 = arith.constant 16 : index
    %23 = vector.load %arg6[%c80_30, %c16_31] : memref<144x32xbf16, #tpu.memory_space<vmem>>, vector<16x16xbf16>
    tpu.vector_store %arg6[%c80_30, %c16_31], %22 {strides = array<i32>} : memref<144x32xbf16, #tpu.memory_space<vmem>>, vector<16x16xbf16>,
    %c0_32 = arith.constant 0 : index
    %c4 = arith.constant 4 : index
    %24 = vector.load %arg1[%c0_32, %c4] : memref<16x320xbf16, #tpu.memory_space<vmem>>, vector<16x16xbf16>
    %c96 = arith.constant 96 : index
    %c0_33 = arith.constant 0 : index
    %25 = vector.load %arg6[%c96, %c0_33] : memref<144x32xbf16, #tpu.memory_space<vmem>>, vector<16x16xbf16>
    tpu.vector_store %arg6[%c96, %c0_33], %24 {strides = array<i32>} : memref<144x32xbf16, #tpu.memory_space<vmem>>, vector<16x16xbf16>,
    %c0_34 = arith.constant 0 : index
    %c164 = arith.constant 164 : index
    %26 = vector.load %arg1[%c0_34, %c164] : memref<16x320xbf16, #tpu.memory_space<vmem>>, vector<16x16xbf16>
    %c96_35 = arith.constant 96 : index
    %c16_36 = arith.constant 16 : index
    %27 = vector.load %arg6[%c96_35, %c16_36] : memref<144x32xbf16, #tpu.memory_space<vmem>>, vector<16x16xbf16>
    tpu.vector_store %arg6[%c96_35, %c16_36], %26 {strides = array<i32>} : memref<144x32xbf16, #tpu.memory_space<vmem>>, vector<16x16xbf16>,
    %c0_37 = arith.constant 0 : index
    %c44 = arith.constant 44 : index
    %28 = vector.load %arg1[%c0_37, %c44] : memref<16x320xbf16, #tpu.memory_space<vmem>>, vector<16x16xbf16>
    %c112 = arith.constant 112 : index
    %c0_38 = arith.constant 0 : index
    %29 = vector.load %arg6[%c112, %c0_38] : memref<144x32xbf16, #tpu.memory_space<vmem>>, vector<16x16xbf16>
    tpu.vector_store %arg6[%c112, %c0_38], %28 {strides = array<i32>} : memref<144x32xbf16, #tpu.memory_space<vmem>>, vector<16x16xbf16>,
    %c0_39 = arith.constant 0 : index
    %c204 = arith.constant 204 : index
    %30 = vector.load %arg1[%c0_39, %c204] : memref<16x320xbf16, #tpu.memory_space<vmem>>, vector<16x16xbf16>
    %c112_40 = arith.constant 112 : index
    %c16_41 = arith.constant 16 : index
    %31 = vector.load %arg6[%c112_40, %c16_41] : memref<144x32xbf16, #tpu.memory_space<vmem>>, vector<16x16xbf16>
    tpu.vector_store %arg6[%c112_40, %c16_41], %30 {strides = array<i32>} : memref<144x32xbf16, #tpu.memory_space<vmem>>, vector<16x16xbf16>,
    %c0_42 = arith.constant 0 : index
    %c24 = arith.constant 24 : index
    %32 = vector.load %arg1[%c0_42, %c24] : memref<16x320xbf16, #tpu.memory_space<vmem>>, vector<16x16xbf16>
    %c128 = arith.constant 128 : index
    %c0_43 = arith.constant 0 : index
    %33 = vector.load %arg6[%c128, %c0_43] : memref<144x32xbf16, #tpu.memory_space<vmem>>, vector<16x16xbf16>
    tpu.vector_store %arg6[%c128, %c0_43], %32 {strides = array<i32>} : memref<144x32xbf16, #tpu.memory_space<vmem>>, vector<16x16xbf16>,
    %c0_44 = arith.constant 0 : index
    %c184 = arith.constant 184 : index
    %34 = vector.load %arg1[%c0_44, %c184] : memref<16x320xbf16, #tpu.memory_space<vmem>>, vector<16x16xbf16>
    %c128_45 = arith.constant 128 : index
    %c16_46 = arith.constant 16 : index
    %35 = vector.load %arg6[%c128_45, %c16_46] : memref<144x32xbf16, #tpu.memory_space<vmem>>, vector<16x16xbf16>
    tpu.vector_store %arg6[%c128_45, %c16_46], %34 {strides = array<i32>} : memref<144x32xbf16, #tpu.memory_space<vmem>>, vector<16x16xbf16>,
    %c0_47 = arith.constant 0 : index
    %c0_48 = arith.constant 0 : index
    %36 = vector.load %arg2[%c0_47, %c0_48] : memref<16x144xbf16, #tpu.memory_space<vmem>>, vector<16x144xbf16>
    %c0_49 = arith.constant 0 : index
    %c0_50 = arith.constant 0 : index
    %37 = vector.load %arg6[%c0_49, %c0_50] : memref<144x32xbf16, #tpu.memory_space<vmem>>, vector<144x32xbf16>
    %cst = arith.constant dense<0.000000e+00> : vector<16x32xf32>
    %38 = tpu.matmul %36, %37, %cst {dimension_numbers = #tpu.dot_dimension_numbers<[1], [0], [0], [1], [0, 0, 1, 1], [], []>} : vector<16x144xbf16>, vector<144x32xbf16>, vector<16x32xf32> -> vector<16x32xf32>
    %cst_51 = arith.constant dense<0.000000e+00> : vector<16xf32>
    %39 = vector.multi_reduction <add>, %38, %cst_51 [1] : vector<16x32xf32> to vector<16xf32>
    %40 = vector.shape_cast %39 : vector<16xf32> to vector<16x1xf32>
    %cst_52 = arith.constant 3.200000e+01 : f32
    %41 = vector.broadcast %cst_52 : f32 to vector<16x1xf32>
    %42 = arith.divf %40, %41 : vector<16x1xf32>
    %43 = arith.mulf %38, %38 : vector<16x32xf32>
    %cst_53 = arith.constant dense<0.000000e+00> : vector<16xf32>
    %44 = vector.multi_reduction <add>, %43, %cst_53 [1] : vector<16x32xf32> to vector<16xf32>
    %45 = vector.shape_cast %44 : vector<16xf32> to vector<16x1xf32>
    %cst_54 = arith.constant 3.200000e+01 : f32
    %46 = vector.broadcast %cst_54 : f32 to vector<16x1xf32>
    %47 = arith.divf %45, %46 : vector<16x1xf32>
    %48 = arith.mulf %42, %42 : vector<16x1xf32>
    %49 = arith.subf %47, %48 : vector<16x1xf32>
    %cst_55 = arith.constant 0.000000e+00 : f32
    %50 = vector.broadcast %cst_55 : f32 to vector<16x1xf32>
    %51 = arith.maximumf %49, %50 : vector<16x1xf32>
    %c0_56 = arith.constant 0 : index
    %c0_57 = arith.constant 0 : index
    %52 = vector.load %arg3[%c0_56, %c0_57] : memref<16x1xf32, #tpu.memory_space<vmem>>, vector<16x1xf32>
    %cst_58 = arith.constant 9.99999974E-6 : f32
    %53 = vector.broadcast %cst_58 : f32 to vector<16x1xf32>
    %54 = arith.addf %51, %53 : vector<16x1xf32>
    %55 = math.rsqrt %54 : vector<16x1xf32>
    %56 = arith.mulf %52, %55 : vector<16x1xf32>
    %57 = vector.broadcast %56 : vector<16x1xf32> to vector<16x32xf32>
    %58 = arith.mulf %38, %57 : vector<16x32xf32>
    %c0_59 = arith.constant 0 : index
    %c0_60 = arith.constant 0 : index
    %59 = vector.load %arg4[%c0_59, %c0_60] : memref<16x1xf32, #tpu.memory_space<vmem>>, vector<16x1xf32>
    %60 = arith.mulf %42, %56 : vector<16x1xf32>
    %61 = arith.subf %59, %60 : vector<16x1xf32>
    %62 = vector.broadcast %61 : vector<16x1xf32> to vector<16x32xf32>
    %63 = arith.addf %58, %62 : vector<16x32xf32>
    %cst_61 = arith.constant 0.000000e+00 : f32
    %64 = vector.broadcast %cst_61 : f32 to vector<16x32xf32>
    %65 = arith.maximumf %63, %64 : vector<16x32xf32>
    %66 = arith.truncf %65 : vector<16x32xf32> to vector<16x32xbf16>
    %c0_62 = arith.constant 0 : index
    %c0_63 = arith.constant 0 : index
    %67 = vector.load %arg5[%c0_62, %c0_63] : memref<16x32xbf16, #tpu.memory_space<vmem>>, vector<16x32xbf16>
    tpu.vector_store %arg5[%c0_62, %c0_63], %66 {strides = array<i32>} : memref<16x32xbf16, #tpu.memory_space<vmem>>, vector<16x32xbf16>,
    return
  }
  func.func @transform_0(%arg0: i32) -> (i32, i32) {
    %c0_i32 = arith.constant 0 : i32
    %c0_i32_0 = arith.constant 0 : i32
    %c0_i32_1 = arith.constant 0 : i32
    return %c0_i32, %c0_i32_0 : i32, i32
  }
  func.func @transform_1(%arg0: i32) -> (i32, i32) {
    %c0_i32 = arith.constant 0 : i32
    %c0_i32_0 = arith.constant 0 : i32
    return %arg0, %c0_i32 : i32, i32
  }
  func.func @transform_2(%arg0: i32) -> (i32, i32) {
    %c0_i32 = arith.constant 0 : i32
    %c0_i32_0 = arith.constant 0 : i32
    return %arg0, %c0_i32 : i32, i32
  }
  func.func @transform_3(%arg0: i32) -> (i32, i32) {
    %c0_i32 = arith.constant 0 : i32
    %c0_i32_0 = arith.constant 0 : i32
    return %arg0, %c0_i32 : i32, i32
  }
  func.func @transform_4(%arg0: i32) -> (i32, i32) {
    %c0_i32 = arith.constant 0 : i32
    %c0_i32_0 = arith.constant 0 : i32
    return %arg0, %c0_i32 : i32, i32
  }
}

module attributes {stable_mosaic.version = 11 : i64} {
  func.func @_conv_bn_act_kernel(%arg0: i32, %arg1: memref<32x144xbf16, #tpu.memory_space<vmem>>, %arg2: memref<16x288xbf16, #tpu.memory_space<vmem>>, %arg3: memref<16x1xf32, #tpu.memory_space<vmem>>, %arg4: memref<16x1xf32, #tpu.memory_space<vmem>>, %arg5: memref<16x32xbf16, #tpu.memory_space<vmem>>, %arg6: memref<288x32xbf16, #tpu.memory_space<vmem>>) attributes {dimension_semantics = [#tpu.dimension_semantics<parallel>], iteration_bounds = array<i64: 2>, scalar_prefetch = 0 : i64, scratch_operands = 1 : i64, tpu.core_type = #tpu.core_type<tc>, window_params = [{pipeline_mode = #tpu.pipeline_mode<synchronous>, transform_indices = @transform_0, window_bounds = array<i64: 32, 144>}, {transform_indices = @transform_1, window_bounds = array<i64: 16, 288>}, {transform_indices = @transform_2, window_bounds = array<i64: 16, 1>}, {transform_indices = @transform_3, window_bounds = array<i64: 16, 1>}, {transform_indices = @transform_4, window_bounds = array<i64: 16, 32>}]} {
    %c0 = arith.constant 0 : index
    %c0_0 = arith.constant 0 : index
    %0 = vector.load %arg1[%c0, %c0_0] : memref<32x144xbf16, #tpu.memory_space<vmem>>, vector<32x16xbf16>
    %c0_1 = arith.constant 0 : index
    %c0_2 = arith.constant 0 : index
    %1 = vector.load %arg6[%c0_1, %c0_2] : memref<288x32xbf16, #tpu.memory_space<vmem>>, vector<32x16xbf16>
    tpu.vector_store %arg6[%c0_1, %c0_2], %0 {strides = array<i32>} : memref<288x32xbf16, #tpu.memory_space<vmem>>, vector<32x16xbf16>,
    %c0_3 = arith.constant 0 : index
    %c72 = arith.constant 72 : index
    %2 = vector.load %arg1[%c0_3, %c72] : memref<32x144xbf16, #tpu.memory_space<vmem>>, vector<32x16xbf16>
    %c0_4 = arith.constant 0 : index
    %c16 = arith.constant 16 : index
    %3 = vector.load %arg6[%c0_4, %c16] : memref<288x32xbf16, #tpu.memory_space<vmem>>, vector<32x16xbf16>
    tpu.vector_store %arg6[%c0_4, %c16], %2 {strides = array<i32>} : memref<288x32xbf16, #tpu.memory_space<vmem>>, vector<32x16xbf16>,
    %c0_5 = arith.constant 0 : index
    %c24 = arith.constant 24 : index
    %4 = vector.load %arg1[%c0_5, %c24] : memref<32x144xbf16, #tpu.memory_space<vmem>>, vector<32x16xbf16>
    %c32 = arith.constant 32 : index
    %c0_6 = arith.constant 0 : index
    %5 = vector.load %arg6[%c32, %c0_6] : memref<288x32xbf16, #tpu.memory_space<vmem>>, vector<32x16xbf16>
    tpu.vector_store %arg6[%c32, %c0_6], %4 {strides = array<i32>} : memref<288x32xbf16, #tpu.memory_space<vmem>>, vector<32x16xbf16>,
    %c0_7 = arith.constant 0 : index
    %c96 = arith.constant 96 : index
    %6 = vector.load %arg1[%c0_7, %c96] : memref<32x144xbf16, #tpu.memory_space<vmem>>, vector<32x16xbf16>
    %c32_8 = arith.constant 32 : index
    %c16_9 = arith.constant 16 : index
    %7 = vector.load %arg6[%c32_8, %c16_9] : memref<288x32xbf16, #tpu.memory_space<vmem>>, vector<32x16xbf16>
    tpu.vector_store %arg6[%c32_8, %c16_9], %6 {strides = array<i32>} : memref<288x32xbf16, #tpu.memory_space<vmem>>, vector<32x16xbf16>,
    %c0_10 = arith.constant 0 : index
    %c48 = arith.constant 48 : index
    %8 = vector.load %arg1[%c0_10, %c48] : memref<32x144xbf16, #tpu.memory_space<vmem>>, vector<32x16xbf16>
    %c64 = arith.constant 64 : index
    %c0_11 = arith.constant 0 : index
    %9 = vector.load %arg6[%c64, %c0_11] : memref<288x32xbf16, #tpu.memory_space<vmem>>, vector<32x16xbf16>
    tpu.vector_store %arg6[%c64, %c0_11], %8 {strides = array<i32>} : memref<288x32xbf16, #tpu.memory_space<vmem>>, vector<32x16xbf16>,
    %c0_12 = arith.constant 0 : index
    %c120 = arith.constant 120 : index
    %10 = vector.load %arg1[%c0_12, %c120] : memref<32x144xbf16, #tpu.memory_space<vmem>>, vector<32x16xbf16>
    %c64_13 = arith.constant 64 : index
    %c16_14 = arith.constant 16 : index
    %11 = vector.load %arg6[%c64_13, %c16_14] : memref<288x32xbf16, #tpu.memory_space<vmem>>, vector<32x16xbf16>
    tpu.vector_store %arg6[%c64_13, %c16_14], %10 {strides = array<i32>} : memref<288x32xbf16, #tpu.memory_space<vmem>>, vector<32x16xbf16>,
    %c0_15 = arith.constant 0 : index
    %c4 = arith.constant 4 : index
    %12 = vector.load %arg1[%c0_15, %c4] : memref<32x144xbf16, #tpu.memory_space<vmem>>, vector<32x16xbf16>
    %c96_16 = arith.constant 96 : index
    %c0_17 = arith.constant 0 : index
    %13 = vector.load %arg6[%c96_16, %c0_17] : memref<288x32xbf16, #tpu.memory_space<vmem>>, vector<32x16xbf16>
    tpu.vector_store %arg6[%c96_16, %c0_17], %12 {strides = array<i32>} : memref<288x32xbf16, #tpu.memory_space<vmem>>, vector<32x16xbf16>,
    %c0_18 = arith.constant 0 : index
    %c76 = arith.constant 76 : index
    %14 = vector.load %arg1[%c0_18, %c76] : memref<32x144xbf16, #tpu.memory_space<vmem>>, vector<32x16xbf16>
    %c96_19 = arith.constant 96 : index
    %c16_20 = arith.constant 16 : index
    %15 = vector.load %arg6[%c96_19, %c16_20] : memref<288x32xbf16, #tpu.memory_space<vmem>>, vector<32x16xbf16>
    tpu.vector_store %arg6[%c96_19, %c16_20], %14 {strides = array<i32>} : memref<288x32xbf16, #tpu.memory_space<vmem>>, vector<32x16xbf16>,
    %c0_21 = arith.constant 0 : index
    %c28 = arith.constant 28 : index
    %16 = vector.load %arg1[%c0_21, %c28] : memref<32x144xbf16, #tpu.memory_space<vmem>>, vector<32x16xbf16>
    %c128 = arith.constant 128 : index
    %c0_22 = arith.constant 0 : index
    %17 = vector.load %arg6[%c128, %c0_22] : memref<288x32xbf16, #tpu.memory_space<vmem>>, vector<32x16xbf16>
    tpu.vector_store %arg6[%c128, %c0_22], %16 {strides = array<i32>} : memref<288x32xbf16, #tpu.memory_space<vmem>>, vector<32x16xbf16>,
    %c0_23 = arith.constant 0 : index
    %c100 = arith.constant 100 : index
    %18 = vector.load %arg1[%c0_23, %c100] : memref<32x144xbf16, #tpu.memory_space<vmem>>, vector<32x16xbf16>
    %c128_24 = arith.constant 128 : index
    %c16_25 = arith.constant 16 : index
    %19 = vector.load %arg6[%c128_24, %c16_25] : memref<288x32xbf16, #tpu.memory_space<vmem>>, vector<32x16xbf16>
    tpu.vector_store %arg6[%c128_24, %c16_25], %18 {strides = array<i32>} : memref<288x32xbf16, #tpu.memory_space<vmem>>, vector<32x16xbf16>,
    %c0_26 = arith.constant 0 : index
    %c52 = arith.constant 52 : index
    %20 = vector.load %arg1[%c0_26, %c52] : memref<32x144xbf16, #tpu.memory_space<vmem>>, vector<32x16xbf16>
    %c160 = arith.constant 160 : index
    %c0_27 = arith.constant 0 : index
    %21 = vector.load %arg6[%c160, %c0_27] : memref<288x32xbf16, #tpu.memory_space<vmem>>, vector<32x16xbf16>
    tpu.vector_store %arg6[%c160, %c0_27], %20 {strides = array<i32>} : memref<288x32xbf16, #tpu.memory_space<vmem>>, vector<32x16xbf16>,
    %c0_28 = arith.constant 0 : index
    %c124 = arith.constant 124 : index
    %22 = vector.load %arg1[%c0_28, %c124] : memref<32x144xbf16, #tpu.memory_space<vmem>>, vector<32x16xbf16>
    %c160_29 = arith.constant 160 : index
    %c16_30 = arith.constant 16 : index
    %23 = vector.load %arg6[%c160_29, %c16_30] : memref<288x32xbf16, #tpu.memory_space<vmem>>, vector<32x16xbf16>
    tpu.vector_store %arg6[%c160_29, %c16_30], %22 {strides = array<i32>} : memref<288x32xbf16, #tpu.memory_space<vmem>>, vector<32x16xbf16>,
    %c0_31 = arith.constant 0 : index
    %c8 = arith.constant 8 : index
    %24 = vector.load %arg1[%c0_31, %c8] : memref<32x144xbf16, #tpu.memory_space<vmem>>, vector<32x16xbf16>
    %c192 = arith.constant 192 : index
    %c0_32 = arith.constant 0 : index
    %25 = vector.load %arg6[%c192, %c0_32] : memref<288x32xbf16, #tpu.memory_space<vmem>>, vector<32x16xbf16>
    tpu.vector_store %arg6[%c192, %c0_32], %24 {strides = array<i32>} : memref<288x32xbf16, #tpu.memory_space<vmem>>, vector<32x16xbf16>,
    %c0_33 = arith.constant 0 : index
    %c80 = arith.constant 80 : index
    %26 = vector.load %arg1[%c0_33, %c80] : memref<32x144xbf16, #tpu.memory_space<vmem>>, vector<32x16xbf16>
    %c192_34 = arith.constant 192 : index
    %c16_35 = arith.constant 16 : index
    %27 = vector.load %arg6[%c192_34, %c16_35] : memref<288x32xbf16, #tpu.memory_space<vmem>>, vector<32x16xbf16>
    tpu.vector_store %arg6[%c192_34, %c16_35], %26 {strides = array<i32>} : memref<288x32xbf16, #tpu.memory_space<vmem>>, vector<32x16xbf16>,
    %c0_36 = arith.constant 0 : index
    %c32_37 = arith.constant 32 : index
    %28 = vector.load %arg1[%c0_36, %c32_37] : memref<32x144xbf16, #tpu.memory_space<vmem>>, vector<32x16xbf16>
    %c224 = arith.constant 224 : index
    %c0_38 = arith.constant 0 : index
    %29 = vector.load %arg6[%c224, %c0_38] : memref<288x32xbf16, #tpu.memory_space<vmem>>, vector<32x16xbf16>
    tpu.vector_store %arg6[%c224, %c0_38], %28 {strides = array<i32>} : memref<288x32xbf16, #tpu.memory_space<vmem>>, vector<32x16xbf16>,
    %c0_39 = arith.constant 0 : index
    %c104 = arith.constant 104 : index
    %30 = vector.load %arg1[%c0_39, %c104] : memref<32x144xbf16, #tpu.memory_space<vmem>>, vector<32x16xbf16>
    %c224_40 = arith.constant 224 : index
    %c16_41 = arith.constant 16 : index
    %31 = vector.load %arg6[%c224_40, %c16_41] : memref<288x32xbf16, #tpu.memory_space<vmem>>, vector<32x16xbf16>
    tpu.vector_store %arg6[%c224_40, %c16_41], %30 {strides = array<i32>} : memref<288x32xbf16, #tpu.memory_space<vmem>>, vector<32x16xbf16>,
    %c0_42 = arith.constant 0 : index
    %c56 = arith.constant 56 : index
    %32 = vector.load %arg1[%c0_42, %c56] : memref<32x144xbf16, #tpu.memory_space<vmem>>, vector<32x16xbf16>
    %c256 = arith.constant 256 : index
    %c0_43 = arith.constant 0 : index
    %33 = vector.load %arg6[%c256, %c0_43] : memref<288x32xbf16, #tpu.memory_space<vmem>>, vector<32x16xbf16>
    tpu.vector_store %arg6[%c256, %c0_43], %32 {strides = array<i32>} : memref<288x32xbf16, #tpu.memory_space<vmem>>, vector<32x16xbf16>,
    %c0_44 = arith.constant 0 : index
    %c128_45 = arith.constant 128 : index
    %34 = vector.load %arg1[%c0_44, %c128_45] : memref<32x144xbf16, #tpu.memory_space<vmem>>, vector<32x16xbf16>
    %c256_46 = arith.constant 256 : index
    %c16_47 = arith.constant 16 : index
    %35 = vector.load %arg6[%c256_46, %c16_47] : memref<288x32xbf16, #tpu.memory_space<vmem>>, vector<32x16xbf16>
    tpu.vector_store %arg6[%c256_46, %c16_47], %34 {strides = array<i32>} : memref<288x32xbf16, #tpu.memory_space<vmem>>, vector<32x16xbf16>,
    %c0_48 = arith.constant 0 : index
    %c0_49 = arith.constant 0 : index
    %36 = vector.load %arg2[%c0_48, %c0_49] : memref<16x288xbf16, #tpu.memory_space<vmem>>, vector<16x288xbf16>
    %c0_50 = arith.constant 0 : index
    %c0_51 = arith.constant 0 : index
    %37 = vector.load %arg6[%c0_50, %c0_51] : memref<288x32xbf16, #tpu.memory_space<vmem>>, vector<288x32xbf16>
    %cst = arith.constant dense<0.000000e+00> : vector<16x32xf32>
    %38 = tpu.matmul %36, %37, %cst {dimension_numbers = #tpu.dot_dimension_numbers<[1], [0], [0], [1], [0, 0, 1, 1], [], []>} : vector<16x288xbf16>, vector<288x32xbf16>, vector<16x32xf32> -> vector<16x32xf32>
    %cst_52 = arith.constant dense<0.000000e+00> : vector<16xf32>
    %39 = vector.multi_reduction <add>, %38, %cst_52 [1] : vector<16x32xf32> to vector<16xf32>
    %40 = vector.shape_cast %39 : vector<16xf32> to vector<16x1xf32>
    %cst_53 = arith.constant 3.200000e+01 : f32
    %41 = vector.broadcast %cst_53 : f32 to vector<16x1xf32>
    %42 = arith.divf %40, %41 : vector<16x1xf32>
    %43 = arith.mulf %38, %38 : vector<16x32xf32>
    %cst_54 = arith.constant dense<0.000000e+00> : vector<16xf32>
    %44 = vector.multi_reduction <add>, %43, %cst_54 [1] : vector<16x32xf32> to vector<16xf32>
    %45 = vector.shape_cast %44 : vector<16xf32> to vector<16x1xf32>
    %cst_55 = arith.constant 3.200000e+01 : f32
    %46 = vector.broadcast %cst_55 : f32 to vector<16x1xf32>
    %47 = arith.divf %45, %46 : vector<16x1xf32>
    %48 = arith.mulf %42, %42 : vector<16x1xf32>
    %49 = arith.subf %47, %48 : vector<16x1xf32>
    %cst_56 = arith.constant 0.000000e+00 : f32
    %50 = vector.broadcast %cst_56 : f32 to vector<16x1xf32>
    %51 = arith.maximumf %49, %50 : vector<16x1xf32>
    %c0_57 = arith.constant 0 : index
    %c0_58 = arith.constant 0 : index
    %52 = vector.load %arg3[%c0_57, %c0_58] : memref<16x1xf32, #tpu.memory_space<vmem>>, vector<16x1xf32>
    %cst_59 = arith.constant 9.99999974E-6 : f32
    %53 = vector.broadcast %cst_59 : f32 to vector<16x1xf32>
    %54 = arith.addf %51, %53 : vector<16x1xf32>
    %55 = math.rsqrt %54 : vector<16x1xf32>
    %56 = arith.mulf %52, %55 : vector<16x1xf32>
    %57 = vector.broadcast %56 : vector<16x1xf32> to vector<16x32xf32>
    %58 = arith.mulf %38, %57 : vector<16x32xf32>
    %c0_60 = arith.constant 0 : index
    %c0_61 = arith.constant 0 : index
    %59 = vector.load %arg4[%c0_60, %c0_61] : memref<16x1xf32, #tpu.memory_space<vmem>>, vector<16x1xf32>
    %60 = arith.mulf %42, %56 : vector<16x1xf32>
    %61 = arith.subf %59, %60 : vector<16x1xf32>
    %62 = vector.broadcast %61 : vector<16x1xf32> to vector<16x32xf32>
    %63 = arith.addf %58, %62 : vector<16x32xf32>
    %cst_62 = arith.constant 0.000000e+00 : f32
    %64 = vector.broadcast %cst_62 : f32 to vector<16x32xf32>
    %65 = arith.maximumf %63, %64 : vector<16x32xf32>
    %66 = arith.truncf %65 : vector<16x32xf32> to vector<16x32xbf16>
    %c0_63 = arith.constant 0 : index
    %c0_64 = arith.constant 0 : index
    %67 = vector.load %arg5[%c0_63, %c0_64] : memref<16x32xbf16, #tpu.memory_space<vmem>>, vector<16x32xbf16>
    tpu.vector_store %arg5[%c0_63, %c0_64], %66 {strides = array<i32>} : memref<16x32xbf16, #tpu.memory_space<vmem>>, vector<16x32xbf16>,
    return
  }
  func.func @transform_0(%arg0: i32) -> (i32, i32) {
    %c0_i32 = arith.constant 0 : i32
    %c0_i32_0 = arith.constant 0 : i32
    %c0_i32_1 = arith.constant 0 : i32
    return %c0_i32, %c0_i32_0 : i32, i32
  }
  func.func @transform_1(%arg0: i32) -> (i32, i32) {
    %c0_i32 = arith.constant 0 : i32
    %c0_i32_0 = arith.constant 0 : i32
    return %arg0, %c0_i32 : i32, i32
  }
  func.func @transform_2(%arg0: i32) -> (i32, i32) {
    %c0_i32 = arith.constant 0 : i32
    %c0_i32_0 = arith.constant 0 : i32
    return %arg0, %c0_i32 : i32, i32
  }
  func.func @transform_3(%arg0: i32) -> (i32, i32) {
    %c0_i32 = arith.constant 0 : i32
    %c0_i32_0 = arith.constant 0 : i32
    return %arg0, %c0_i32 : i32, i32
  }
  func.func @transform_4(%arg0: i32) -> (i32, i32) {
    %c0_i32 = arith.constant 0 : i32
    %c0_i32_0 = arith.constant 0 : i32
    return %arg0, %c0_i32 : i32, i32
  }
}

module attributes {stable_mosaic.version = 11 : i64} {
  func.func @_conv_bn_act_kernel(%arg0: i32, %arg1: memref<32x144xbf16, #tpu.memory_space<vmem>>, %arg2: memref<16x288xbf16, #tpu.memory_space<vmem>>, %arg3: memref<16x1xf32, #tpu.memory_space<vmem>>, %arg4: memref<16x1xf32, #tpu.memory_space<vmem>>, %arg5: memref<16x32xbf16, #tpu.memory_space<vmem>>, %arg6: memref<16x32xbf16, #tpu.memory_space<vmem>>, %arg7: memref<288x32xbf16, #tpu.memory_space<vmem>>) attributes {dimension_semantics = [#tpu.dimension_semantics<parallel>], iteration_bounds = array<i64: 2>, scalar_prefetch = 0 : i64, scratch_operands = 1 : i64, tpu.core_type = #tpu.core_type<tc>, window_params = [{pipeline_mode = #tpu.pipeline_mode<synchronous>, transform_indices = @transform_0, window_bounds = array<i64: 32, 144>}, {transform_indices = @transform_1, window_bounds = array<i64: 16, 288>}, {transform_indices = @transform_2, window_bounds = array<i64: 16, 1>}, {transform_indices = @transform_3, window_bounds = array<i64: 16, 1>}, {transform_indices = @transform_4, window_bounds = array<i64: 16, 32>}, {transform_indices = @transform_5, window_bounds = array<i64: 16, 32>}]} {
    %c0 = arith.constant 0 : index
    %c0_0 = arith.constant 0 : index
    %0 = vector.load %arg1[%c0, %c0_0] : memref<32x144xbf16, #tpu.memory_space<vmem>>, vector<32x16xbf16>
    %c0_1 = arith.constant 0 : index
    %c0_2 = arith.constant 0 : index
    %1 = vector.load %arg7[%c0_1, %c0_2] : memref<288x32xbf16, #tpu.memory_space<vmem>>, vector<32x16xbf16>
    tpu.vector_store %arg7[%c0_1, %c0_2], %0 {strides = array<i32>} : memref<288x32xbf16, #tpu.memory_space<vmem>>, vector<32x16xbf16>,
    %c0_3 = arith.constant 0 : index
    %c72 = arith.constant 72 : index
    %2 = vector.load %arg1[%c0_3, %c72] : memref<32x144xbf16, #tpu.memory_space<vmem>>, vector<32x16xbf16>
    %c0_4 = arith.constant 0 : index
    %c16 = arith.constant 16 : index
    %3 = vector.load %arg7[%c0_4, %c16] : memref<288x32xbf16, #tpu.memory_space<vmem>>, vector<32x16xbf16>
    tpu.vector_store %arg7[%c0_4, %c16], %2 {strides = array<i32>} : memref<288x32xbf16, #tpu.memory_space<vmem>>, vector<32x16xbf16>,
    %c0_5 = arith.constant 0 : index
    %c24 = arith.constant 24 : index
    %4 = vector.load %arg1[%c0_5, %c24] : memref<32x144xbf16, #tpu.memory_space<vmem>>, vector<32x16xbf16>
    %c32 = arith.constant 32 : index
    %c0_6 = arith.constant 0 : index
    %5 = vector.load %arg7[%c32, %c0_6] : memref<288x32xbf16, #tpu.memory_space<vmem>>, vector<32x16xbf16>
    tpu.vector_store %arg7[%c32, %c0_6], %4 {strides = array<i32>} : memref<288x32xbf16, #tpu.memory_space<vmem>>, vector<32x16xbf16>,
    %c0_7 = arith.constant 0 : index
    %c96 = arith.constant 96 : index
    %6 = vector.load %arg1[%c0_7, %c96] : memref<32x144xbf16, #tpu.memory_space<vmem>>, vector<32x16xbf16>
    %c32_8 = arith.constant 32 : index
    %c16_9 = arith.constant 16 : index
    %7 = vector.load %arg7[%c32_8, %c16_9] : memref<288x32xbf16, #tpu.memory_space<vmem>>, vector<32x16xbf16>
    tpu.vector_store %arg7[%c32_8, %c16_9], %6 {strides = array<i32>} : memref<288x32xbf16, #tpu.memory_space<vmem>>, vector<32x16xbf16>,
    %c0_10 = arith.constant 0 : index
    %c48 = arith.constant 48 : index
    %8 = vector.load %arg1[%c0_10, %c48] : memref<32x144xbf16, #tpu.memory_space<vmem>>, vector<32x16xbf16>
    %c64 = arith.constant 64 : index
    %c0_11 = arith.constant 0 : index
    %9 = vector.load %arg7[%c64, %c0_11] : memref<288x32xbf16, #tpu.memory_space<vmem>>, vector<32x16xbf16>
    tpu.vector_store %arg7[%c64, %c0_11], %8 {strides = array<i32>} : memref<288x32xbf16, #tpu.memory_space<vmem>>, vector<32x16xbf16>,
    %c0_12 = arith.constant 0 : index
    %c120 = arith.constant 120 : index
    %10 = vector.load %arg1[%c0_12, %c120] : memref<32x144xbf16, #tpu.memory_space<vmem>>, vector<32x16xbf16>
    %c64_13 = arith.constant 64 : index
    %c16_14 = arith.constant 16 : index
    %11 = vector.load %arg7[%c64_13, %c16_14] : memref<288x32xbf16, #tpu.memory_space<vmem>>, vector<32x16xbf16>
    tpu.vector_store %arg7[%c64_13, %c16_14], %10 {strides = array<i32>} : memref<288x32xbf16, #tpu.memory_space<vmem>>, vector<32x16xbf16>,
    %c0_15 = arith.constant 0 : index
    %c4 = arith.constant 4 : index
    %12 = vector.load %arg1[%c0_15, %c4] : memref<32x144xbf16, #tpu.memory_space<vmem>>, vector<32x16xbf16>
    %c96_16 = arith.constant 96 : index
    %c0_17 = arith.constant 0 : index
    %13 = vector.load %arg7[%c96_16, %c0_17] : memref<288x32xbf16, #tpu.memory_space<vmem>>, vector<32x16xbf16>
    tpu.vector_store %arg7[%c96_16, %c0_17], %12 {strides = array<i32>} : memref<288x32xbf16, #tpu.memory_space<vmem>>, vector<32x16xbf16>,
    %c0_18 = arith.constant 0 : index
    %c76 = arith.constant 76 : index
    %14 = vector.load %arg1[%c0_18, %c76] : memref<32x144xbf16, #tpu.memory_space<vmem>>, vector<32x16xbf16>
    %c96_19 = arith.constant 96 : index
    %c16_20 = arith.constant 16 : index
    %15 = vector.load %arg7[%c96_19, %c16_20] : memref<288x32xbf16, #tpu.memory_space<vmem>>, vector<32x16xbf16>
    tpu.vector_store %arg7[%c96_19, %c16_20], %14 {strides = array<i32>} : memref<288x32xbf16, #tpu.memory_space<vmem>>, vector<32x16xbf16>,
    %c0_21 = arith.constant 0 : index
    %c28 = arith.constant 28 : index
    %16 = vector.load %arg1[%c0_21, %c28] : memref<32x144xbf16, #tpu.memory_space<vmem>>, vector<32x16xbf16>
    %c128 = arith.constant 128 : index
    %c0_22 = arith.constant 0 : index
    %17 = vector.load %arg7[%c128, %c0_22] : memref<288x32xbf16, #tpu.memory_space<vmem>>, vector<32x16xbf16>
    tpu.vector_store %arg7[%c128, %c0_22], %16 {strides = array<i32>} : memref<288x32xbf16, #tpu.memory_space<vmem>>, vector<32x16xbf16>,
    %c0_23 = arith.constant 0 : index
    %c100 = arith.constant 100 : index
    %18 = vector.load %arg1[%c0_23, %c100] : memref<32x144xbf16, #tpu.memory_space<vmem>>, vector<32x16xbf16>
    %c128_24 = arith.constant 128 : index
    %c16_25 = arith.constant 16 : index
    %19 = vector.load %arg7[%c128_24, %c16_25] : memref<288x32xbf16, #tpu.memory_space<vmem>>, vector<32x16xbf16>
    tpu.vector_store %arg7[%c128_24, %c16_25], %18 {strides = array<i32>} : memref<288x32xbf16, #tpu.memory_space<vmem>>, vector<32x16xbf16>,
    %c0_26 = arith.constant 0 : index
    %c52 = arith.constant 52 : index
    %20 = vector.load %arg1[%c0_26, %c52] : memref<32x144xbf16, #tpu.memory_space<vmem>>, vector<32x16xbf16>
    %c160 = arith.constant 160 : index
    %c0_27 = arith.constant 0 : index
    %21 = vector.load %arg7[%c160, %c0_27] : memref<288x32xbf16, #tpu.memory_space<vmem>>, vector<32x16xbf16>
    tpu.vector_store %arg7[%c160, %c0_27], %20 {strides = array<i32>} : memref<288x32xbf16, #tpu.memory_space<vmem>>, vector<32x16xbf16>,
    %c0_28 = arith.constant 0 : index
    %c124 = arith.constant 124 : index
    %22 = vector.load %arg1[%c0_28, %c124] : memref<32x144xbf16, #tpu.memory_space<vmem>>, vector<32x16xbf16>
    %c160_29 = arith.constant 160 : index
    %c16_30 = arith.constant 16 : index
    %23 = vector.load %arg7[%c160_29, %c16_30] : memref<288x32xbf16, #tpu.memory_space<vmem>>, vector<32x16xbf16>
    tpu.vector_store %arg7[%c160_29, %c16_30], %22 {strides = array<i32>} : memref<288x32xbf16, #tpu.memory_space<vmem>>, vector<32x16xbf16>,
    %c0_31 = arith.constant 0 : index
    %c8 = arith.constant 8 : index
    %24 = vector.load %arg1[%c0_31, %c8] : memref<32x144xbf16, #tpu.memory_space<vmem>>, vector<32x16xbf16>
    %c192 = arith.constant 192 : index
    %c0_32 = arith.constant 0 : index
    %25 = vector.load %arg7[%c192, %c0_32] : memref<288x32xbf16, #tpu.memory_space<vmem>>, vector<32x16xbf16>
    tpu.vector_store %arg7[%c192, %c0_32], %24 {strides = array<i32>} : memref<288x32xbf16, #tpu.memory_space<vmem>>, vector<32x16xbf16>,
    %c0_33 = arith.constant 0 : index
    %c80 = arith.constant 80 : index
    %26 = vector.load %arg1[%c0_33, %c80] : memref<32x144xbf16, #tpu.memory_space<vmem>>, vector<32x16xbf16>
    %c192_34 = arith.constant 192 : index
    %c16_35 = arith.constant 16 : index
    %27 = vector.load %arg7[%c192_34, %c16_35] : memref<288x32xbf16, #tpu.memory_space<vmem>>, vector<32x16xbf16>
    tpu.vector_store %arg7[%c192_34, %c16_35], %26 {strides = array<i32>} : memref<288x32xbf16, #tpu.memory_space<vmem>>, vector<32x16xbf16>,
    %c0_36 = arith.constant 0 : index
    %c32_37 = arith.constant 32 : index
    %28 = vector.load %arg1[%c0_36, %c32_37] : memref<32x144xbf16, #tpu.memory_space<vmem>>, vector<32x16xbf16>
    %c224 = arith.constant 224 : index
    %c0_38 = arith.constant 0 : index
    %29 = vector.load %arg7[%c224, %c0_38] : memref<288x32xbf16, #tpu.memory_space<vmem>>, vector<32x16xbf16>
    tpu.vector_store %arg7[%c224, %c0_38], %28 {strides = array<i32>} : memref<288x32xbf16, #tpu.memory_space<vmem>>, vector<32x16xbf16>,
    %c0_39 = arith.constant 0 : index
    %c104 = arith.constant 104 : index
    %30 = vector.load %arg1[%c0_39, %c104] : memref<32x144xbf16, #tpu.memory_space<vmem>>, vector<32x16xbf16>
    %c224_40 = arith.constant 224 : index
    %c16_41 = arith.constant 16 : index
    %31 = vector.load %arg7[%c224_40, %c16_41] : memref<288x32xbf16, #tpu.memory_space<vmem>>, vector<32x16xbf16>
    tpu.vector_store %arg7[%c224_40, %c16_41], %30 {strides = array<i32>} : memref<288x32xbf16, #tpu.memory_space<vmem>>, vector<32x16xbf16>,
    %c0_42 = arith.constant 0 : index
    %c56 = arith.constant 56 : index
    %32 = vector.load %arg1[%c0_42, %c56] : memref<32x144xbf16, #tpu.memory_space<vmem>>, vector<32x16xbf16>
    %c256 = arith.constant 256 : index
    %c0_43 = arith.constant 0 : index
    %33 = vector.load %arg7[%c256, %c0_43] : memref<288x32xbf16, #tpu.memory_space<vmem>>, vector<32x16xbf16>
    tpu.vector_store %arg7[%c256, %c0_43], %32 {strides = array<i32>} : memref<288x32xbf16, #tpu.memory_space<vmem>>, vector<32x16xbf16>,
    %c0_44 = arith.constant 0 : index
    %c128_45 = arith.constant 128 : index
    %34 = vector.load %arg1[%c0_44, %c128_45] : memref<32x144xbf16, #tpu.memory_space<vmem>>, vector<32x16xbf16>
    %c256_46 = arith.constant 256 : index
    %c16_47 = arith.constant 16 : index
    %35 = vector.load %arg7[%c256_46, %c16_47] : memref<288x32xbf16, #tpu.memory_space<vmem>>, vector<32x16xbf16>
    tpu.vector_store %arg7[%c256_46, %c16_47], %34 {strides = array<i32>} : memref<288x32xbf16, #tpu.memory_space<vmem>>, vector<32x16xbf16>,
    %c0_48 = arith.constant 0 : index
    %c0_49 = arith.constant 0 : index
    %36 = vector.load %arg2[%c0_48, %c0_49] : memref<16x288xbf16, #tpu.memory_space<vmem>>, vector<16x288xbf16>
    %c0_50 = arith.constant 0 : index
    %c0_51 = arith.constant 0 : index
    %37 = vector.load %arg7[%c0_50, %c0_51] : memref<288x32xbf16, #tpu.memory_space<vmem>>, vector<288x32xbf16>
    %cst = arith.constant dense<0.000000e+00> : vector<16x32xf32>
    %38 = tpu.matmul %36, %37, %cst {dimension_numbers = #tpu.dot_dimension_numbers<[1], [0], [0], [1], [0, 0, 1, 1], [], []>} : vector<16x288xbf16>, vector<288x32xbf16>, vector<16x32xf32> -> vector<16x32xf32>
    %cst_52 = arith.constant dense<0.000000e+00> : vector<16xf32>
    %39 = vector.multi_reduction <add>, %38, %cst_52 [1] : vector<16x32xf32> to vector<16xf32>
    %40 = vector.shape_cast %39 : vector<16xf32> to vector<16x1xf32>
    %cst_53 = arith.constant 3.200000e+01 : f32
    %41 = vector.broadcast %cst_53 : f32 to vector<16x1xf32>
    %42 = arith.divf %40, %41 : vector<16x1xf32>
    %43 = arith.mulf %38, %38 : vector<16x32xf32>
    %cst_54 = arith.constant dense<0.000000e+00> : vector<16xf32>
    %44 = vector.multi_reduction <add>, %43, %cst_54 [1] : vector<16x32xf32> to vector<16xf32>
    %45 = vector.shape_cast %44 : vector<16xf32> to vector<16x1xf32>
    %cst_55 = arith.constant 3.200000e+01 : f32
    %46 = vector.broadcast %cst_55 : f32 to vector<16x1xf32>
    %47 = arith.divf %45, %46 : vector<16x1xf32>
    %48 = arith.mulf %42, %42 : vector<16x1xf32>
    %49 = arith.subf %47, %48 : vector<16x1xf32>
    %cst_56 = arith.constant 0.000000e+00 : f32
    %50 = vector.broadcast %cst_56 : f32 to vector<16x1xf32>
    %51 = arith.maximumf %49, %50 : vector<16x1xf32>
    %c0_57 = arith.constant 0 : index
    %c0_58 = arith.constant 0 : index
    %52 = vector.load %arg3[%c0_57, %c0_58] : memref<16x1xf32, #tpu.memory_space<vmem>>, vector<16x1xf32>
    %cst_59 = arith.constant 9.99999974E-6 : f32
    %53 = vector.broadcast %cst_59 : f32 to vector<16x1xf32>
    %54 = arith.addf %51, %53 : vector<16x1xf32>
    %55 = math.rsqrt %54 : vector<16x1xf32>
    %56 = arith.mulf %52, %55 : vector<16x1xf32>
    %57 = vector.broadcast %56 : vector<16x1xf32> to vector<16x32xf32>
    %58 = arith.mulf %38, %57 : vector<16x32xf32>
    %c0_60 = arith.constant 0 : index
    %c0_61 = arith.constant 0 : index
    %59 = vector.load %arg4[%c0_60, %c0_61] : memref<16x1xf32, #tpu.memory_space<vmem>>, vector<16x1xf32>
    %60 = arith.mulf %42, %56 : vector<16x1xf32>
    %61 = arith.subf %59, %60 : vector<16x1xf32>
    %62 = vector.broadcast %61 : vector<16x1xf32> to vector<16x32xf32>
    %63 = arith.addf %58, %62 : vector<16x32xf32>
    %c0_62 = arith.constant 0 : index
    %c0_63 = arith.constant 0 : index
    %64 = vector.load %arg5[%c0_62, %c0_63] : memref<16x32xbf16, #tpu.memory_space<vmem>>, vector<16x32xbf16>
    %65 = arith.extf %64 : vector<16x32xbf16> to vector<16x32xf32>
    %66 = arith.addf %63, %65 : vector<16x32xf32>
    %67 = arith.truncf %66 : vector<16x32xf32> to vector<16x32xbf16>
    %c0_64 = arith.constant 0 : index
    %c0_65 = arith.constant 0 : index
    %68 = vector.load %arg6[%c0_64, %c0_65] : memref<16x32xbf16, #tpu.memory_space<vmem>>, vector<16x32xbf16>
    tpu.vector_store %arg6[%c0_64, %c0_65], %67 {strides = array<i32>} : memref<16x32xbf16, #tpu.memory_space<vmem>>, vector<16x32xbf16>,
    return
  }
  func.func @transform_0(%arg0: i32) -> (i32, i32) {
    %c0_i32 = arith.constant 0 : i32
    %c0_i32_0 = arith.constant 0 : i32
    %c0_i32_1 = arith.constant 0 : i32
    return %c0_i32, %c0_i32_0 : i32, i32
  }
  func.func @transform_1(%arg0: i32) -> (i32, i32) {
    %c0_i32 = arith.constant 0 : i32
    %c0_i32_0 = arith.constant 0 : i32
    return %arg0, %c0_i32 : i32, i32
  }
  func.func @transform_2(%arg0: i32) -> (i32, i32) {
    %c0_i32 = arith.constant 0 : i32
    %c0_i32_0 = arith.constant 0 : i32
    return %arg0, %c0_i32 : i32, i32
  }
  func.func @transform_3(%arg0: i32) -> (i32, i32) {
    %c0_i32 = arith.constant 0 : i32
    %c0_i32_0 = arith.constant 0 : i32
    return %arg0, %c0_i32 : i32, i32
  }
  func.func @transform_4(%arg0: i32) -> (i32, i32) {
    %c0_i32 = arith.constant 0 : i32
    %c0_i32_0 = arith.constant 0 : i32
    return %arg0, %c0_i32 : i32, i32
  }
  func.func @transform_5(%arg0: i32) -> (i32, i32) {
    %c0_i32 = arith.constant 0 : i32
    %c0_i32_0 = arith.constant 0 : i32
    return %arg0, %c0_i32 : i32, i32
  }
}

module attributes {stable_mosaic.version = 11 : i64} {
  func.func @_up_conv_bn_relu_kernel(%arg0: i32, %arg1: memref<32x80xbf16, #tpu.memory_space<vmem>>, %arg2: memref<16x32xbf16, #tpu.memory_space<vmem>>, %arg3: memref<16x64xbf16, #tpu.memory_space<vmem>>, %arg4: memref<16x64xbf16, #tpu.memory_space<vmem>>, %arg5: memref<16x128xbf16, #tpu.memory_space<vmem>>, %arg6: memref<16x1xf32, #tpu.memory_space<vmem>>, %arg7: memref<16x1xf32, #tpu.memory_space<vmem>>, %arg8: memref<4x16x32xbf16, #tpu.memory_space<vmem>>, %arg9: memref<32x32xbf16, #tpu.memory_space<vmem>>, %arg10: memref<64x32xbf16, #tpu.memory_space<vmem>>, %arg11: memref<64x32xbf16, #tpu.memory_space<vmem>>, %arg12: memref<128x32xbf16, #tpu.memory_space<vmem>>) attributes {dimension_semantics = [#tpu.dimension_semantics<parallel>], iteration_bounds = array<i64: 1>, scalar_prefetch = 0 : i64, scratch_operands = 4 : i64, tpu.core_type = #tpu.core_type<tc>, window_params = [{pipeline_mode = #tpu.pipeline_mode<synchronous>, transform_indices = @transform_0, window_bounds = array<i64: 32, 80>}, {pipeline_mode = #tpu.pipeline_mode<synchronous>, transform_indices = @transform_1, window_bounds = array<i64: 16, 32>}, {pipeline_mode = #tpu.pipeline_mode<synchronous>, transform_indices = @transform_2, window_bounds = array<i64: 16, 64>}, {pipeline_mode = #tpu.pipeline_mode<synchronous>, transform_indices = @transform_3, window_bounds = array<i64: 16, 64>}, {pipeline_mode = #tpu.pipeline_mode<synchronous>, transform_indices = @transform_4, window_bounds = array<i64: 16, 128>}, {pipeline_mode = #tpu.pipeline_mode<synchronous>, transform_indices = @transform_5, window_bounds = array<i64: 16, 1>}, {pipeline_mode = #tpu.pipeline_mode<synchronous>, transform_indices = @transform_6, window_bounds = array<i64: 16, 1>}, {pipeline_mode = #tpu.pipeline_mode<synchronous>, transform_indices = @transform_7, window_bounds = array<i64: 4, 16, 32>}]} {
    %c0 = arith.constant 0 : index
    %c0_0 = arith.constant 0 : index
    %0 = vector.load %arg1[%c0, %c0_0] : memref<32x80xbf16, #tpu.memory_space<vmem>>, vector<32x16xbf16>
    %c0_1 = arith.constant 0 : index
    %c0_2 = arith.constant 0 : index
    %1 = vector.load %arg9[%c0_1, %c0_2] : memref<32x32xbf16, #tpu.memory_space<vmem>>, vector<32x16xbf16>
    tpu.vector_store %arg9[%c0_1, %c0_2], %0 {strides = array<i32>} : memref<32x32xbf16, #tpu.memory_space<vmem>>, vector<32x16xbf16>,
    %c0_3 = arith.constant 0 : index
    %c40 = arith.constant 40 : index
    %2 = vector.load %arg1[%c0_3, %c40] : memref<32x80xbf16, #tpu.memory_space<vmem>>, vector<32x16xbf16>
    %c0_4 = arith.constant 0 : index
    %c16 = arith.constant 16 : index
    %3 = vector.load %arg9[%c0_4, %c16] : memref<32x32xbf16, #tpu.memory_space<vmem>>, vector<32x16xbf16>
    tpu.vector_store %arg9[%c0_4, %c16], %2 {strides = array<i32>} : memref<32x32xbf16, #tpu.memory_space<vmem>>, vector<32x16xbf16>,
    %c0_5 = arith.constant 0 : index
    %c0_6 = arith.constant 0 : index
    %4 = vector.load %arg2[%c0_5, %c0_6] : memref<16x32xbf16, #tpu.memory_space<vmem>>, vector<16x32xbf16>
    %c0_7 = arith.constant 0 : index
    %c0_8 = arith.constant 0 : index
    %5 = vector.load %arg9[%c0_7, %c0_8] : memref<32x32xbf16, #tpu.memory_space<vmem>>, vector<32x32xbf16>
    %cst = arith.constant dense<0.000000e+00> : vector<16x32xf32>
    %6 = tpu.matmul %4, %5, %cst {dimension_numbers = #tpu.dot_dimension_numbers<[1], [0], [0], [1], [0, 0, 1, 1], [], []>} : vector<16x32xbf16>, vector<32x32xbf16>, vector<16x32xf32> -> vector<16x32xf32>
    %c0_9 = arith.constant 0 : index
    %c20 = arith.constant 20 : index
    %7 = vector.load %arg1[%c0_9, %c20] : memref<32x80xbf16, #tpu.memory_space<vmem>>, vector<32x16xbf16>
    %c0_10 = arith.constant 0 : index
    %c0_11 = arith.constant 0 : index
    %8 = vector.load %arg10[%c0_10, %c0_11] : memref<64x32xbf16, #tpu.memory_space<vmem>>, vector<32x16xbf16>
    tpu.vector_store %arg10[%c0_10, %c0_11], %7 {strides = array<i32>} : memref<64x32xbf16, #tpu.memory_space<vmem>>, vector<32x16xbf16>,
    %c0_12 = arith.constant 0 : index
    %c60 = arith.constant 60 : index
    %9 = vector.load %arg1[%c0_12, %c60] : memref<32x80xbf16, #tpu.memory_space<vmem>>, vector<32x16xbf16>
    %c0_13 = arith.constant 0 : index
    %c16_14 = arith.constant 16 : index
    %10 = vector.load %arg10[%c0_13, %c16_14] : memref<64x32xbf16, #tpu.memory_space<vmem>>, vector<32x16xbf16>
    tpu.vector_store %arg10[%c0_13, %c16_14], %9 {strides = array<i32>} : memref<64x32xbf16, #tpu.memory_space<vmem>>, vector<32x16xbf16>,
    %c0_15 = arith.constant 0 : index
    %c0_16 = arith.constant 0 : index
    %11 = vector.load %arg1[%c0_15, %c0_16] : memref<32x80xbf16, #tpu.memory_space<vmem>>, vector<32x16xbf16>
    %c32 = arith.constant 32 : index
    %c0_17 = arith.constant 0 : index
    %12 = vector.load %arg10[%c32, %c0_17] : memref<64x32xbf16, #tpu.memory_space<vmem>>, vector<32x16xbf16>
    tpu.vector_store %arg10[%c32, %c0_17], %11 {strides = array<i32>} : memref<64x32xbf16, #tpu.memory_space<vmem>>, vector<32x16xbf16>,
    %c0_18 = arith.constant 0 : index
    %c40_19 = arith.constant 40 : index
    %13 = vector.load %arg1[%c0_18, %c40_19] : memref<32x80xbf16, #tpu.memory_space<vmem>>, vector<32x16xbf16>
    %c32_20 = arith.constant 32 : index
    %c16_21 = arith.constant 16 : index
    %14 = vector.load %arg10[%c32_20, %c16_21] : memref<64x32xbf16, #tpu.memory_space<vmem>>, vector<32x16xbf16>
    tpu.vector_store %arg10[%c32_20, %c16_21], %13 {strides = array<i32>} : memref<64x32xbf16, #tpu.memory_space<vmem>>, vector<32x16xbf16>,
    %c0_22 = arith.constant 0 : index
    %c0_23 = arith.constant 0 : index
    %15 = vector.load %arg3[%c0_22, %c0_23] : memref<16x64xbf16, #tpu.memory_space<vmem>>, vector<16x64xbf16>
    %c0_24 = arith.constant 0 : index
    %c0_25 = arith.constant 0 : index
    %16 = vector.load %arg10[%c0_24, %c0_25] : memref<64x32xbf16, #tpu.memory_space<vmem>>, vector<64x32xbf16>
    %cst_26 = arith.constant dense<0.000000e+00> : vector<16x32xf32>
    %17 = tpu.matmul %15, %16, %cst_26 {dimension_numbers = #tpu.dot_dimension_numbers<[1], [0], [0], [1], [0, 0, 1, 1], [], []>} : vector<16x64xbf16>, vector<64x32xbf16>, vector<16x32xf32> -> vector<16x32xf32>
    %c0_27 = arith.constant 0 : index
    %c4 = arith.constant 4 : index
    %18 = vector.load %arg1[%c0_27, %c4] : memref<32x80xbf16, #tpu.memory_space<vmem>>, vector<32x16xbf16>
    %c0_28 = arith.constant 0 : index
    %c0_29 = arith.constant 0 : index
    %19 = vector.load %arg11[%c0_28, %c0_29] : memref<64x32xbf16, #tpu.memory_space<vmem>>, vector<32x16xbf16>
    tpu.vector_store %arg11[%c0_28, %c0_29], %18 {strides = array<i32>} : memref<64x32xbf16, #tpu.memory_space<vmem>>, vector<32x16xbf16>,
    %c0_30 = arith.constant 0 : index
    %c44 = arith.constant 44 : index
    %20 = vector.load %arg1[%c0_30, %c44] : memref<32x80xbf16, #tpu.memory_space<vmem>>, vector<32x16xbf16>
    %c0_31 = arith.constant 0 : index
    %c16_32 = arith.constant 16 : index
    %21 = vector.load %arg11[%c0_31, %c16_32] : memref<64x32xbf16, #tpu.memory_space<vmem>>, vector<32x16xbf16>
    tpu.vector_store %arg11[%c0_31, %c16_32], %20 {strides = array<i32>} : memref<64x32xbf16, #tpu.memory_space<vmem>>, vector<32x16xbf16>,
    %c0_33 = arith.constant 0 : index
    %c0_34 = arith.constant 0 : index
    %22 = vector.load %arg1[%c0_33, %c0_34] : memref<32x80xbf16, #tpu.memory_space<vmem>>, vector<32x16xbf16>
    %c32_35 = arith.constant 32 : index
    %c0_36 = arith.constant 0 : index
    %23 = vector.load %arg11[%c32_35, %c0_36] : memref<64x32xbf16, #tpu.memory_space<vmem>>, vector<32x16xbf16>
    tpu.vector_store %arg11[%c32_35, %c0_36], %22 {strides = array<i32>} : memref<64x32xbf16, #tpu.memory_space<vmem>>, vector<32x16xbf16>,
    %c0_37 = arith.constant 0 : index
    %c40_38 = arith.constant 40 : index
    %24 = vector.load %arg1[%c0_37, %c40_38] : memref<32x80xbf16, #tpu.memory_space<vmem>>, vector<32x16xbf16>
    %c32_39 = arith.constant 32 : index
    %c16_40 = arith.constant 16 : index
    %25 = vector.load %arg11[%c32_39, %c16_40] : memref<64x32xbf16, #tpu.memory_space<vmem>>, vector<32x16xbf16>
    tpu.vector_store %arg11[%c32_39, %c16_40], %24 {strides = array<i32>} : memref<64x32xbf16, #tpu.memory_space<vmem>>, vector<32x16xbf16>,
    %c0_41 = arith.constant 0 : index
    %c0_42 = arith.constant 0 : index
    %26 = vector.load %arg4[%c0_41, %c0_42] : memref<16x64xbf16, #tpu.memory_space<vmem>>, vector<16x64xbf16>
    %c0_43 = arith.constant 0 : index
    %c0_44 = arith.constant 0 : index
    %27 = vector.load %arg11[%c0_43, %c0_44] : memref<64x32xbf16, #tpu.memory_space<vmem>>, vector<64x32xbf16>
    %cst_45 = arith.constant dense<0.000000e+00> : vector<16x32xf32>
    %28 = tpu.matmul %26, %27, %cst_45 {dimension_numbers = #tpu.dot_dimension_numbers<[1], [0], [0], [1], [0, 0, 1, 1], [], []>} : vector<16x64xbf16>, vector<64x32xbf16>, vector<16x32xf32> -> vector<16x32xf32>
    %c0_46 = arith.constant 0 : index
    %c24 = arith.constant 24 : index
    %29 = vector.load %arg1[%c0_46, %c24] : memref<32x80xbf16, #tpu.memory_space<vmem>>, vector<32x16xbf16>
    %c0_47 = arith.constant 0 : index
    %c0_48 = arith.constant 0 : index
    %30 = vector.load %arg12[%c0_47, %c0_48] : memref<128x32xbf16, #tpu.memory_space<vmem>>, vector<32x16xbf16>
    tpu.vector_store %arg12[%c0_47, %c0_48], %29 {strides = array<i32>} : memref<128x32xbf16, #tpu.memory_space<vmem>>, vector<32x16xbf16>,
    %c0_49 = arith.constant 0 : index
    %c64 = arith.constant 64 : index
    %31 = vector.load %arg1[%c0_49, %c64] : memref<32x80xbf16, #tpu.memory_space<vmem>>, vector<32x16xbf16>
    %c0_50 = arith.constant 0 : index
    %c16_51 = arith.constant 16 : index
    %32 = vector.load %arg12[%c0_50, %c16_51] : memref<128x32xbf16, #tpu.memory_space<vmem>>, vector<32x16xbf16>
    tpu.vector_store %arg12[%c0_50, %c16_51], %31 {strides = array<i32>} : memref<128x32xbf16, #tpu.memory_space<vmem>>, vector<32x16xbf16>,
    %c0_52 = arith.constant 0 : index
    %c4_53 = arith.constant 4 : index
    %33 = vector.load %arg1[%c0_52, %c4_53] : memref<32x80xbf16, #tpu.memory_space<vmem>>, vector<32x16xbf16>
    %c32_54 = arith.constant 32 : index
    %c0_55 = arith.constant 0 : index
    %34 = vector.load %arg12[%c32_54, %c0_55] : memref<128x32xbf16, #tpu.memory_space<vmem>>, vector<32x16xbf16>
    tpu.vector_store %arg12[%c32_54, %c0_55], %33 {strides = array<i32>} : memref<128x32xbf16, #tpu.memory_space<vmem>>, vector<32x16xbf16>,
    %c0_56 = arith.constant 0 : index
    %c44_57 = arith.constant 44 : index
    %35 = vector.load %arg1[%c0_56, %c44_57] : memref<32x80xbf16, #tpu.memory_space<vmem>>, vector<32x16xbf16>
    %c32_58 = arith.constant 32 : index
    %c16_59 = arith.constant 16 : index
    %36 = vector.load %arg12[%c32_58, %c16_59] : memref<128x32xbf16, #tpu.memory_space<vmem>>, vector<32x16xbf16>
    tpu.vector_store %arg12[%c32_58, %c16_59], %35 {strides = array<i32>} : memref<128x32xbf16, #tpu.memory_space<vmem>>, vector<32x16xbf16>,
    %c0_60 = arith.constant 0 : index
    %c20_61 = arith.constant 20 : index
    %37 = vector.load %arg1[%c0_60, %c20_61] : memref<32x80xbf16, #tpu.memory_space<vmem>>, vector<32x16xbf16>
    %c64_62 = arith.constant 64 : index
    %c0_63 = arith.constant 0 : index
    %38 = vector.load %arg12[%c64_62, %c0_63] : memref<128x32xbf16, #tpu.memory_space<vmem>>, vector<32x16xbf16>
    tpu.vector_store %arg12[%c64_62, %c0_63], %37 {strides = array<i32>} : memref<128x32xbf16, #tpu.memory_space<vmem>>, vector<32x16xbf16>,
    %c0_64 = arith.constant 0 : index
    %c60_65 = arith.constant 60 : index
    %39 = vector.load %arg1[%c0_64, %c60_65] : memref<32x80xbf16, #tpu.memory_space<vmem>>, vector<32x16xbf16>
    %c64_66 = arith.constant 64 : index
    %c16_67 = arith.constant 16 : index
    %40 = vector.load %arg12[%c64_66, %c16_67] : memref<128x32xbf16, #tpu.memory_space<vmem>>, vector<32x16xbf16>
    tpu.vector_store %arg12[%c64_66, %c16_67], %39 {strides = array<i32>} : memref<128x32xbf16, #tpu.memory_space<vmem>>, vector<32x16xbf16>,
    %c0_68 = arith.constant 0 : index
    %c0_69 = arith.constant 0 : index
    %41 = vector.load %arg1[%c0_68, %c0_69] : memref<32x80xbf16, #tpu.memory_space<vmem>>, vector<32x16xbf16>
    %c96 = arith.constant 96 : index
    %c0_70 = arith.constant 0 : index
    %42 = vector.load %arg12[%c96, %c0_70] : memref<128x32xbf16, #tpu.memory_space<vmem>>, vector<32x16xbf16>
    tpu.vector_store %arg12[%c96, %c0_70], %41 {strides = array<i32>} : memref<128x32xbf16, #tpu.memory_space<vmem>>, vector<32x16xbf16>,
    %c0_71 = arith.constant 0 : index
    %c40_72 = arith.constant 40 : index
    %43 = vector.load %arg1[%c0_71, %c40_72] : memref<32x80xbf16, #tpu.memory_space<vmem>>, vector<32x16xbf16>
    %c96_73 = arith.constant 96 : index
    %c16_74 = arith.constant 16 : index
    %44 = vector.load %arg12[%c96_73, %c16_74] : memref<128x32xbf16, #tpu.memory_space<vmem>>, vector<32x16xbf16>
    tpu.vector_store %arg12[%c96_73, %c16_74], %43 {strides = array<i32>} : memref<128x32xbf16, #tpu.memory_space<vmem>>, vector<32x16xbf16>,
    %c0_75 = arith.constant 0 : index
    %c0_76 = arith.constant 0 : index
    %45 = vector.load %arg5[%c0_75, %c0_76] : memref<16x128xbf16, #tpu.memory_space<vmem>>, vector<16x128xbf16>
    %c0_77 = arith.constant 0 : index
    %c0_78 = arith.constant 0 : index
    %46 = vector.load %arg12[%c0_77, %c0_78] : memref<128x32xbf16, #tpu.memory_space<vmem>>, vector<128x32xbf16>
    %cst_79 = arith.constant dense<0.000000e+00> : vector<16x32xf32>
    %47 = tpu.matmul %45, %46, %cst_79 {dimension_numbers = #tpu.dot_dimension_numbers<[1], [0], [0], [1], [0, 0, 1, 1], [], []>} : vector<16x128xbf16>, vector<128x32xbf16>, vector<16x32xf32> -> vector<16x32xf32>
    %cst_80 = arith.constant dense<0.000000e+00> : vector<16xf32>
    %48 = vector.multi_reduction <add>, %6, %cst_80 [1] : vector<16x32xf32> to vector<16xf32>
    %49 = vector.shape_cast %48 : vector<16xf32> to vector<16x1xf32>
    %50 = arith.mulf %6, %6 : vector<16x32xf32>
    %cst_81 = arith.constant dense<0.000000e+00> : vector<16xf32>
    %51 = vector.multi_reduction <add>, %50, %cst_81 [1] : vector<16x32xf32> to vector<16xf32>
    %52 = vector.shape_cast %51 : vector<16xf32> to vector<16x1xf32>
    %cst_82 = arith.constant dense<0.000000e+00> : vector<16xf32>
    %53 = vector.multi_reduction <add>, %17, %cst_82 [1] : vector<16x32xf32> to vector<16xf32>
    %54 = vector.shape_cast %53 : vector<16xf32> to vector<16x1xf32>
    %55 = arith.addf %49, %54 : vector<16x1xf32>
    %56 = arith.mulf %17, %17 : vector<16x32xf32>
    %cst_83 = arith.constant dense<0.000000e+00> : vector<16xf32>
    %57 = vector.multi_reduction <add>, %56, %cst_83 [1] : vector<16x32xf32> to vector<16xf32>
    %58 = vector.shape_cast %57 : vector<16xf32> to vector<16x1xf32>
    %59 = arith.addf %52, %58 : vector<16x1xf32>
    %cst_84 = arith.constant dense<0.000000e+00> : vector<16xf32>
    %60 = vector.multi_reduction <add>, %28, %cst_84 [1] : vector<16x32xf32> to vector<16xf32>
    %61 = vector.shape_cast %60 : vector<16xf32> to vector<16x1xf32>
    %62 = arith.addf %55, %61 : vector<16x1xf32>
    %63 = arith.mulf %28, %28 : vector<16x32xf32>
    %cst_85 = arith.constant dense<0.000000e+00> : vector<16xf32>
    %64 = vector.multi_reduction <add>, %63, %cst_85 [1] : vector<16x32xf32> to vector<16xf32>
    %65 = vector.shape_cast %64 : vector<16xf32> to vector<16x1xf32>
    %66 = arith.addf %59, %65 : vector<16x1xf32>
    %cst_86 = arith.constant dense<0.000000e+00> : vector<16xf32>
    %67 = vector.multi_reduction <add>, %47, %cst_86 [1] : vector<16x32xf32> to vector<16xf32>
    %68 = vector.shape_cast %67 : vector<16xf32> to vector<16x1xf32>
    %69 = arith.addf %62, %68 : vector<16x1xf32>
    %70 = arith.mulf %47, %47 : vector<16x32xf32>
    %cst_87 = arith.constant dense<0.000000e+00> : vector<16xf32>
    %71 = vector.multi_reduction <add>, %70, %cst_87 [1] : vector<16x32xf32> to vector<16xf32>
    %72 = vector.shape_cast %71 : vector<16xf32> to vector<16x1xf32>
    %73 = arith.addf %66, %72 : vector<16x1xf32>
    %cst_88 = arith.constant 1.280000e+02 : f32
    %74 = vector.broadcast %cst_88 : f32 to vector<16x1xf32>
    %75 = arith.divf %69, %74 : vector<16x1xf32>
    %cst_89 = arith.constant 1.280000e+02 : f32
    %76 = vector.broadcast %cst_89 : f32 to vector<16x1xf32>
    %77 = arith.divf %73, %76 : vector<16x1xf32>
    %78 = arith.mulf %75, %75 : vector<16x1xf32>
    %79 = arith.subf %77, %78 : vector<16x1xf32>
    %cst_90 = arith.constant 0.000000e+00 : f32
    %80 = vector.broadcast %cst_90 : f32 to vector<16x1xf32>
    %81 = arith.maximumf %79, %80 : vector<16x1xf32>
    %c0_91 = arith.constant 0 : index
    %c0_92 = arith.constant 0 : index
    %82 = vector.load %arg6[%c0_91, %c0_92] : memref<16x1xf32, #tpu.memory_space<vmem>>, vector<16x1xf32>
    %cst_93 = arith.constant 9.99999974E-6 : f32
    %83 = vector.broadcast %cst_93 : f32 to vector<16x1xf32>
    %84 = arith.addf %81, %83 : vector<16x1xf32>
    %85 = math.rsqrt %84 : vector<16x1xf32>
    %86 = arith.mulf %82, %85 : vector<16x1xf32>
    %c0_94 = arith.constant 0 : index
    %c0_95 = arith.constant 0 : index
    %87 = vector.load %arg7[%c0_94, %c0_95] : memref<16x1xf32, #tpu.memory_space<vmem>>, vector<16x1xf32>
    %88 = arith.mulf %75, %86 : vector<16x1xf32>
    %89 = arith.subf %87, %88 : vector<16x1xf32>
    %90 = vector.broadcast %86 : vector<16x1xf32> to vector<16x32xf32>
    %91 = arith.mulf %6, %90 : vector<16x32xf32>
    %92 = vector.broadcast %89 : vector<16x1xf32> to vector<16x32xf32>
    %93 = arith.addf %91, %92 : vector<16x32xf32>
    %cst_96 = arith.constant 0.000000e+00 : f32
    %94 = vector.broadcast %cst_96 : f32 to vector<16x32xf32>
    %95 = arith.maximumf %93, %94 : vector<16x32xf32>
    %96 = arith.truncf %95 : vector<16x32xf32> to vector<16x32xbf16>
    %c0_97 = arith.constant 0 : index
    %c0_98 = arith.constant 0 : index
    %c0_99 = arith.constant 0 : index
    %97 = vector.load %arg8[%c0_97, %c0_98, %c0_99] : memref<4x16x32xbf16, #tpu.memory_space<vmem>>, vector<1x16x32xbf16>
    %98 = vector.shape_cast %97 : vector<1x16x32xbf16> to vector<16x32xbf16>
    %99 = vector.shape_cast %96 : vector<16x32xbf16> to vector<1x16x32xbf16>
    tpu.vector_store %arg8[%c0_97, %c0_98, %c0_99], %99 {strides = array<i32>} : memref<4x16x32xbf16, #tpu.memory_space<vmem>>, vector<1x16x32xbf16>,
    %100 = vector.broadcast %86 : vector<16x1xf32> to vector<16x32xf32>
    %101 = arith.mulf %17, %100 : vector<16x32xf32>
    %102 = vector.broadcast %89 : vector<16x1xf32> to vector<16x32xf32>
    %103 = arith.addf %101, %102 : vector<16x32xf32>
    %cst_100 = arith.constant 0.000000e+00 : f32
    %104 = vector.broadcast %cst_100 : f32 to vector<16x32xf32>
    %105 = arith.maximumf %103, %104 : vector<16x32xf32>
    %106 = arith.truncf %105 : vector<16x32xf32> to vector<16x32xbf16>
    %c1 = arith.constant 1 : index
    %c0_101 = arith.constant 0 : index
    %c0_102 = arith.constant 0 : index
    %107 = vector.load %arg8[%c1, %c0_101, %c0_102] : memref<4x16x32xbf16, #tpu.memory_space<vmem>>, vector<1x16x32xbf16>
    %108 = vector.shape_cast %107 : vector<1x16x32xbf16> to vector<16x32xbf16>
    %109 = vector.shape_cast %106 : vector<16x32xbf16> to vector<1x16x32xbf16>
    tpu.vector_store %arg8[%c1, %c0_101, %c0_102], %109 {strides = array<i32>} : memref<4x16x32xbf16, #tpu.memory_space<vmem>>, vector<1x16x32xbf16>,
    %110 = vector.broadcast %86 : vector<16x1xf32> to vector<16x32xf32>
    %111 = arith.mulf %28, %110 : vector<16x32xf32>
    %112 = vector.broadcast %89 : vector<16x1xf32> to vector<16x32xf32>
    %113 = arith.addf %111, %112 : vector<16x32xf32>
    %cst_103 = arith.constant 0.000000e+00 : f32
    %114 = vector.broadcast %cst_103 : f32 to vector<16x32xf32>
    %115 = arith.maximumf %113, %114 : vector<16x32xf32>
    %116 = arith.truncf %115 : vector<16x32xf32> to vector<16x32xbf16>
    %c2 = arith.constant 2 : index
    %c0_104 = arith.constant 0 : index
    %c0_105 = arith.constant 0 : index
    %117 = vector.load %arg8[%c2, %c0_104, %c0_105] : memref<4x16x32xbf16, #tpu.memory_space<vmem>>, vector<1x16x32xbf16>
    %118 = vector.shape_cast %117 : vector<1x16x32xbf16> to vector<16x32xbf16>
    %119 = vector.shape_cast %116 : vector<16x32xbf16> to vector<1x16x32xbf16>
    tpu.vector_store %arg8[%c2, %c0_104, %c0_105], %119 {strides = array<i32>} : memref<4x16x32xbf16, #tpu.memory_space<vmem>>, vector<1x16x32xbf16>,
    %120 = vector.broadcast %86 : vector<16x1xf32> to vector<16x32xf32>
    %121 = arith.mulf %47, %120 : vector<16x32xf32>
    %122 = vector.broadcast %89 : vector<16x1xf32> to vector<16x32xf32>
    %123 = arith.addf %121, %122 : vector<16x32xf32>
    %cst_106 = arith.constant 0.000000e+00 : f32
    %124 = vector.broadcast %cst_106 : f32 to vector<16x32xf32>
    %125 = arith.maximumf %123, %124 : vector<16x32xf32>
    %126 = arith.truncf %125 : vector<16x32xf32> to vector<16x32xbf16>
    %c3 = arith.constant 3 : index
    %c0_107 = arith.constant 0 : index
    %c0_108 = arith.constant 0 : index
    %127 = vector.load %arg8[%c3, %c0_107, %c0_108] : memref<4x16x32xbf16, #tpu.memory_space<vmem>>, vector<1x16x32xbf16>
    %128 = vector.shape_cast %127 : vector<1x16x32xbf16> to vector<16x32xbf16>
    %129 = vector.shape_cast %126 : vector<16x32xbf16> to vector<1x16x32xbf16>
    tpu.vector_store %arg8[%c3, %c0_107, %c0_108], %129 {strides = array<i32>} : memref<4x16x32xbf16, #tpu.memory_space<vmem>>, vector<1x16x32xbf16>,
    return
  }
  func.func @transform_0(%arg0: i32) -> (i32, i32) {
    %c0_i32 = arith.constant 0 : i32
    %c0_i32_0 = arith.constant 0 : i32
    %c0_i32_1 = arith.constant 0 : i32
    return %c0_i32, %c0_i32_0 : i32, i32
  }
  func.func @transform_1(%arg0: i32) -> (i32, i32) {
    %c0_i32 = arith.constant 0 : i32
    %c0_i32_0 = arith.constant 0 : i32
    %c0_i32_1 = arith.constant 0 : i32
    return %c0_i32, %c0_i32_0 : i32, i32
  }
  func.func @transform_2(%arg0: i32) -> (i32, i32) {
    %c0_i32 = arith.constant 0 : i32
    %c0_i32_0 = arith.constant 0 : i32
    %c0_i32_1 = arith.constant 0 : i32
    return %c0_i32, %c0_i32_0 : i32, i32
  }
  func.func @transform_3(%arg0: i32) -> (i32, i32) {
    %c0_i32 = arith.constant 0 : i32
    %c0_i32_0 = arith.constant 0 : i32
    %c0_i32_1 = arith.constant 0 : i32
    return %c0_i32, %c0_i32_0 : i32, i32
  }
  func.func @transform_4(%arg0: i32) -> (i32, i32) {
    %c0_i32 = arith.constant 0 : i32
    %c0_i32_0 = arith.constant 0 : i32
    %c0_i32_1 = arith.constant 0 : i32
    return %c0_i32, %c0_i32_0 : i32, i32
  }
  func.func @transform_5(%arg0: i32) -> (i32, i32) {
    %c0_i32 = arith.constant 0 : i32
    %c0_i32_0 = arith.constant 0 : i32
    %c0_i32_1 = arith.constant 0 : i32
    return %c0_i32, %c0_i32_0 : i32, i32
  }
  func.func @transform_6(%arg0: i32) -> (i32, i32) {
    %c0_i32 = arith.constant 0 : i32
    %c0_i32_0 = arith.constant 0 : i32
    %c0_i32_1 = arith.constant 0 : i32
    return %c0_i32, %c0_i32_0 : i32, i32
  }
  func.func @transform_7(%arg0: i32) -> (i32, i32, i32) {
    %c0_i32 = arith.constant 0 : i32
    %c0_i32_0 = arith.constant 0 : i32
    %c0_i32_1 = arith.constant 0 : i32
    %c0_i32_2 = arith.constant 0 : i32
    return %c0_i32, %c0_i32_0, %c0_i32_1 : i32, i32, i32
  }
}

module attributes {stable_mosaic.version = 11 : i64} {
  func.func @_up_conv_bn_relu_kernel(%arg0: i32, %arg1: memref<16x288xbf16, #tpu.memory_space<vmem>>, %arg2: memref<8x16xbf16, #tpu.memory_space<vmem>>, %arg3: memref<8x32xbf16, #tpu.memory_space<vmem>>, %arg4: memref<8x32xbf16, #tpu.memory_space<vmem>>, %arg5: memref<8x64xbf16, #tpu.memory_space<vmem>>, %arg6: memref<8x1xf32, #tpu.memory_space<vmem>>, %arg7: memref<8x1xf32, #tpu.memory_space<vmem>>, %arg8: memref<4x8x128xbf16, #tpu.memory_space<vmem>>, %arg9: memref<16x128xbf16, #tpu.memory_space<vmem>>, %arg10: memref<32x128xbf16, #tpu.memory_space<vmem>>, %arg11: memref<32x128xbf16, #tpu.memory_space<vmem>>, %arg12: memref<64x128xbf16, #tpu.memory_space<vmem>>) attributes {dimension_semantics = [#tpu.dimension_semantics<parallel>], iteration_bounds = array<i64: 1>, scalar_prefetch = 0 : i64, scratch_operands = 4 : i64, tpu.core_type = #tpu.core_type<tc>, window_params = [{pipeline_mode = #tpu.pipeline_mode<synchronous>, transform_indices = @transform_0, window_bounds = array<i64: 16, 288>}, {pipeline_mode = #tpu.pipeline_mode<synchronous>, transform_indices = @transform_1, window_bounds = array<i64: 8, 16>}, {pipeline_mode = #tpu.pipeline_mode<synchronous>, transform_indices = @transform_2, window_bounds = array<i64: 8, 32>}, {pipeline_mode = #tpu.pipeline_mode<synchronous>, transform_indices = @transform_3, window_bounds = array<i64: 8, 32>}, {pipeline_mode = #tpu.pipeline_mode<synchronous>, transform_indices = @transform_4, window_bounds = array<i64: 8, 64>}, {pipeline_mode = #tpu.pipeline_mode<synchronous>, transform_indices = @transform_5, window_bounds = array<i64: 8, 1>}, {pipeline_mode = #tpu.pipeline_mode<synchronous>, transform_indices = @transform_6, window_bounds = array<i64: 8, 1>}, {pipeline_mode = #tpu.pipeline_mode<synchronous>, transform_indices = @transform_7, window_bounds = array<i64: 4, 8, 128>}]} {
    %c0 = arith.constant 0 : index
    %c0_0 = arith.constant 0 : index
    %0 = vector.load %arg1[%c0, %c0_0] : memref<16x288xbf16, #tpu.memory_space<vmem>>, vector<16x64xbf16>
    %c0_1 = arith.constant 0 : index
    %c0_2 = arith.constant 0 : index
    %1 = vector.load %arg9[%c0_1, %c0_2] : memref<16x128xbf16, #tpu.memory_space<vmem>>, vector<16x64xbf16>
    tpu.vector_store %arg9[%c0_1, %c0_2], %0 {strides = array<i32>} : memref<16x128xbf16, #tpu.memory_space<vmem>>, vector<16x64xbf16>,
    %c0_3 = arith.constant 0 : index
    %c144 = arith.constant 144 : index
    %2 = vector.load %arg1[%c0_3, %c144] : memref<16x288xbf16, #tpu.memory_space<vmem>>, vector<16x64xbf16>
    %c0_4 = arith.constant 0 : index
    %c64 = arith.constant 64 : index
    %3 = vector.load %arg9[%c0_4, %c64] : memref<16x128xbf16, #tpu.memory_space<vmem>>, vector<16x64xbf16>
    tpu.vector_store %arg9[%c0_4, %c64], %2 {strides = array<i32>} : memref<16x128xbf16, #tpu.memory_space<vmem>>, vector<16x64xbf16>,
    %c0_5 = arith.constant 0 : index
    %c0_6 = arith.constant 0 : index
    %4 = vector.load %arg2[%c0_5, %c0_6] : memref<8x16xbf16, #tpu.memory_space<vmem>>, vector<8x16xbf16>
    %c0_7 = arith.constant 0 : index
    %c0_8 = arith.constant 0 : index
    %5 = vector.load %arg9[%c0_7, %c0_8] : memref<16x128xbf16, #tpu.memory_space<vmem>>, vector<16x128xbf16>
    %cst = arith.constant dense<0.000000e+00> : vector<8x128xf32>
    %6 = tpu.matmul %4, %5, %cst {dimension_numbers = #tpu.dot_dimension_numbers<[1], [0], [0], [1], [0, 0, 1, 1], [], []>} : vector<8x16xbf16>, vector<16x128xbf16>, vector<8x128xf32> -> vector<8x128xf32>
    %c0_9 = arith.constant 0 : index
    %c72 = arith.constant 72 : index
    %7 = vector.load %arg1[%c0_9, %c72] : memref<16x288xbf16, #tpu.memory_space<vmem>>, vector<16x64xbf16>
    %c0_10 = arith.constant 0 : index
    %c0_11 = arith.constant 0 : index
    %8 = vector.load %arg10[%c0_10, %c0_11] : memref<32x128xbf16, #tpu.memory_space<vmem>>, vector<16x64xbf16>
    tpu.vector_store %arg10[%c0_10, %c0_11], %7 {strides = array<i32>} : memref<32x128xbf16, #tpu.memory_space<vmem>>, vector<16x64xbf16>,
    %c0_12 = arith.constant 0 : index
    %c216 = arith.constant 216 : index
    %9 = vector.load %arg1[%c0_12, %c216] : memref<16x288xbf16, #tpu.memory_space<vmem>>, vector<16x64xbf16>
    %c0_13 = arith.constant 0 : index
    %c64_14 = arith.constant 64 : index
    %10 = vector.load %arg10[%c0_13, %c64_14] : memref<32x128xbf16, #tpu.memory_space<vmem>>, vector<16x64xbf16>
    tpu.vector_store %arg10[%c0_13, %c64_14], %9 {strides = array<i32>} : memref<32x128xbf16, #tpu.memory_space<vmem>>, vector<16x64xbf16>,
    %c0_15 = arith.constant 0 : index
    %c0_16 = arith.constant 0 : index
    %11 = vector.load %arg1[%c0_15, %c0_16] : memref<16x288xbf16, #tpu.memory_space<vmem>>, vector<16x64xbf16>
    %c16 = arith.constant 16 : index
    %c0_17 = arith.constant 0 : index
    %12 = vector.load %arg10[%c16, %c0_17] : memref<32x128xbf16, #tpu.memory_space<vmem>>, vector<16x64xbf16>
    tpu.vector_store %arg10[%c16, %c0_17], %11 {strides = array<i32>} : memref<32x128xbf16, #tpu.memory_space<vmem>>, vector<16x64xbf16>,
    %c0_18 = arith.constant 0 : index
    %c144_19 = arith.constant 144 : index
    %13 = vector.load %arg1[%c0_18, %c144_19] : memref<16x288xbf16, #tpu.memory_space<vmem>>, vector<16x64xbf16>
    %c16_20 = arith.constant 16 : index
    %c64_21 = arith.constant 64 : index
    %14 = vector.load %arg10[%c16_20, %c64_21] : memref<32x128xbf16, #tpu.memory_space<vmem>>, vector<16x64xbf16>
    tpu.vector_store %arg10[%c16_20, %c64_21], %13 {strides = array<i32>} : memref<32x128xbf16, #tpu.memory_space<vmem>>, vector<16x64xbf16>,
    %c0_22 = arith.constant 0 : index
    %c0_23 = arith.constant 0 : index
    %15 = vector.load %arg3[%c0_22, %c0_23] : memref<8x32xbf16, #tpu.memory_space<vmem>>, vector<8x32xbf16>
    %c0_24 = arith.constant 0 : index
    %c0_25 = arith.constant 0 : index
    %16 = vector.load %arg10[%c0_24, %c0_25] : memref<32x128xbf16, #tpu.memory_space<vmem>>, vector<32x128xbf16>
    %cst_26 = arith.constant dense<0.000000e+00> : vector<8x128xf32>
    %17 = tpu.matmul %15, %16, %cst_26 {dimension_numbers = #tpu.dot_dimension_numbers<[1], [0], [0], [1], [0, 0, 1, 1], [], []>} : vector<8x32xbf16>, vector<32x128xbf16>, vector<8x128xf32> -> vector<8x128xf32>
    %c0_27 = arith.constant 0 : index
    %c8 = arith.constant 8 : index
    %18 = vector.load %arg1[%c0_27, %c8] : memref<16x288xbf16, #tpu.memory_space<vmem>>, vector<16x64xbf16>
    %c0_28 = arith.constant 0 : index
    %c0_29 = arith.constant 0 : index
    %19 = vector.load %arg11[%c0_28, %c0_29] : memref<32x128xbf16, #tpu.memory_space<vmem>>, vector<16x64xbf16>
    tpu.vector_store %arg11[%c0_28, %c0_29], %18 {strides = array<i32>} : memref<32x128xbf16, #tpu.memory_space<vmem>>, vector<16x64xbf16>,
    %c0_30 = arith.constant 0 : index
    %c152 = arith.constant 152 : index
    %20 = vector.load %arg1[%c0_30, %c152] : memref<16x288xbf16, #tpu.memory_space<vmem>>, vector<16x64xbf16>
    %c0_31 = arith.constant 0 : index
    %c64_32 = arith.constant 64 : index
    %21 = vector.load %arg11[%c0_31, %c64_32] : memref<32x128xbf16, #tpu.memory_space<vmem>>, vector<16x64xbf16>
    tpu.vector_store %arg11[%c0_31, %c64_32], %20 {strides = array<i32>} : memref<32x128xbf16, #tpu.memory_space<vmem>>, vector<16x64xbf16>,
    %c0_33 = arith.constant 0 : index
    %c0_34 = arith.constant 0 : index
    %22 = vector.load %arg1[%c0_33, %c0_34] : memref<16x288xbf16, #tpu.memory_space<vmem>>, vector<16x64xbf16>
    %c16_35 = arith.constant 16 : index
    %c0_36 = arith.constant 0 : index
    %23 = vector.load %arg11[%c16_35, %c0_36] : memref<32x128xbf16, #tpu.memory_space<vmem>>, vector<16x64xbf16>
    tpu.vector_store %arg11[%c16_35, %c0_36], %22 {strides = array<i32>} : memref<32x128xbf16, #tpu.memory_space<vmem>>, vector<16x64xbf16>,
    %c0_37 = arith.constant 0 : index
    %c144_38 = arith.constant 144 : index
    %24 = vector.load %arg1[%c0_37, %c144_38] : memref<16x288xbf16, #tpu.memory_space<vmem>>, vector<16x64xbf16>
    %c16_39 = arith.constant 16 : index
    %c64_40 = arith.constant 64 : index
    %25 = vector.load %arg11[%c16_39, %c64_40] : memref<32x128xbf16, #tpu.memory_space<vmem>>, vector<16x64xbf16>
    tpu.vector_store %arg11[%c16_39, %c64_40], %24 {strides = array<i32>} : memref<32x128xbf16, #tpu.memory_space<vmem>>, vector<16x64xbf16>,
    %c0_41 = arith.constant 0 : index
    %c0_42 = arith.constant 0 : index
    %26 = vector.load %arg4[%c0_41, %c0_42] : memref<8x32xbf16, #tpu.memory_space<vmem>>, vector<8x32xbf16>
    %c0_43 = arith.constant 0 : index
    %c0_44 = arith.constant 0 : index
    %27 = vector.load %arg11[%c0_43, %c0_44] : memref<32x128xbf16, #tpu.memory_space<vmem>>, vector<32x128xbf16>
    %cst_45 = arith.constant dense<0.000000e+00> : vector<8x128xf32>
    %28 = tpu.matmul %26, %27, %cst_45 {dimension_numbers = #tpu.dot_dimension_numbers<[1], [0], [0], [1], [0, 0, 1, 1], [], []>} : vector<8x32xbf16>, vector<32x128xbf16>, vector<8x128xf32> -> vector<8x128xf32>
    %c0_46 = arith.constant 0 : index
    %c80 = arith.constant 80 : index
    %29 = vector.load %arg1[%c0_46, %c80] : memref<16x288xbf16, #tpu.memory_space<vmem>>, vector<16x64xbf16>
    %c0_47 = arith.constant 0 : index
    %c0_48 = arith.constant 0 : index
    %30 = vector.load %arg12[%c0_47, %c0_48] : memref<64x128xbf16, #tpu.memory_space<vmem>>, vector<16x64xbf16>
    tpu.vector_store %arg12[%c0_47, %c0_48], %29 {strides = array<i32>} : memref<64x128xbf16, #tpu.memory_space<vmem>>, vector<16x64xbf16>,
    %c0_49 = arith.constant 0 : index
    %c224 = arith.constant 224 : index
    %31 = vector.load %arg1[%c0_49, %c224] : memref<16x288xbf16, #tpu.memory_space<vmem>>, vector<16x64xbf16>
    %c0_50 = arith.constant 0 : index
    %c64_51 = arith.constant 64 : index
    %32 = vector.load %arg12[%c0_50, %c64_51] : memref<64x128xbf16, #tpu.memory_space<vmem>>, vector<16x64xbf16>
    tpu.vector_store %arg12[%c0_50, %c64_51], %31 {strides = array<i32>} : memref<64x128xbf16, #tpu.memory_space<vmem>>, vector<16x64xbf16>,
    %c0_52 = arith.constant 0 : index
    %c8_53 = arith.constant 8 : index
    %33 = vector.load %arg1[%c0_52, %c8_53] : memref<16x288xbf16, #tpu.memory_space<vmem>>, vector<16x64xbf16>
    %c16_54 = arith.constant 16 : index
    %c0_55 = arith.constant 0 : index
    %34 = vector.load %arg12[%c16_54, %c0_55] : memref<64x128xbf16, #tpu.memory_space<vmem>>, vector<16x64xbf16>
    tpu.vector_store %arg12[%c16_54, %c0_55], %33 {strides = array<i32>} : memref<64x128xbf16, #tpu.memory_space<vmem>>, vector<16x64xbf16>,
    %c0_56 = arith.constant 0 : index
    %c152_57 = arith.constant 152 : index
    %35 = vector.load %arg1[%c0_56, %c152_57] : memref<16x288xbf16, #tpu.memory_space<vmem>>, vector<16x64xbf16>
    %c16_58 = arith.constant 16 : index
    %c64_59 = arith.constant 64 : index
    %36 = vector.load %arg12[%c16_58, %c64_59] : memref<64x128xbf16, #tpu.memory_space<vmem>>, vector<16x64xbf16>
    tpu.vector_store %arg12[%c16_58, %c64_59], %35 {strides = array<i32>} : memref<64x128xbf16, #tpu.memory_space<vmem>>, vector<16x64xbf16>,
    %c0_60 = arith.constant 0 : index
    %c72_61 = arith.constant 72 : index
    %37 = vector.load %arg1[%c0_60, %c72_61] : memref<16x288xbf16, #tpu.memory_space<vmem>>, vector<16x64xbf16>
    %c32 = arith.constant 32 : index
    %c0_62 = arith.constant 0 : index
    %38 = vector.load %arg12[%c32, %c0_62] : memref<64x128xbf16, #tpu.memory_space<vmem>>, vector<16x64xbf16>
    tpu.vector_store %arg12[%c32, %c0_62], %37 {strides = array<i32>} : memref<64x128xbf16, #tpu.memory_space<vmem>>, vector<16x64xbf16>,
    %c0_63 = arith.constant 0 : index
    %c216_64 = arith.constant 216 : index
    %39 = vector.load %arg1[%c0_63, %c216_64] : memref<16x288xbf16, #tpu.memory_space<vmem>>, vector<16x64xbf16>
    %c32_65 = arith.constant 32 : index
    %c64_66 = arith.constant 64 : index
    %40 = vector.load %arg12[%c32_65, %c64_66] : memref<64x128xbf16, #tpu.memory_space<vmem>>, vector<16x64xbf16>
    tpu.vector_store %arg12[%c32_65, %c64_66], %39 {strides = array<i32>} : memref<64x128xbf16, #tpu.memory_space<vmem>>, vector<16x64xbf16>,
    %c0_67 = arith.constant 0 : index
    %c0_68 = arith.constant 0 : index
    %41 = vector.load %arg1[%c0_67, %c0_68] : memref<16x288xbf16, #tpu.memory_space<vmem>>, vector<16x64xbf16>
    %c48 = arith.constant 48 : index
    %c0_69 = arith.constant 0 : index
    %42 = vector.load %arg12[%c48, %c0_69] : memref<64x128xbf16, #tpu.memory_space<vmem>>, vector<16x64xbf16>
    tpu.vector_store %arg12[%c48, %c0_69], %41 {strides = array<i32>} : memref<64x128xbf16, #tpu.memory_space<vmem>>, vector<16x64xbf16>,
    %c0_70 = arith.constant 0 : index
    %c144_71 = arith.constant 144 : index
    %43 = vector.load %arg1[%c0_70, %c144_71] : memref<16x288xbf16, #tpu.memory_space<vmem>>, vector<16x64xbf16>
    %c48_72 = arith.constant 48 : index
    %c64_73 = arith.constant 64 : index
    %44 = vector.load %arg12[%c48_72, %c64_73] : memref<64x128xbf16, #tpu.memory_space<vmem>>, vector<16x64xbf16>
    tpu.vector_store %arg12[%c48_72, %c64_73], %43 {strides = array<i32>} : memref<64x128xbf16, #tpu.memory_space<vmem>>, vector<16x64xbf16>,
    %c0_74 = arith.constant 0 : index
    %c0_75 = arith.constant 0 : index
    %45 = vector.load %arg5[%c0_74, %c0_75] : memref<8x64xbf16, #tpu.memory_space<vmem>>, vector<8x64xbf16>
    %c0_76 = arith.constant 0 : index
    %c0_77 = arith.constant 0 : index
    %46 = vector.load %arg12[%c0_76, %c0_77] : memref<64x128xbf16, #tpu.memory_space<vmem>>, vector<64x128xbf16>
    %cst_78 = arith.constant dense<0.000000e+00> : vector<8x128xf32>
    %47 = tpu.matmul %45, %46, %cst_78 {dimension_numbers = #tpu.dot_dimension_numbers<[1], [0], [0], [1], [0, 0, 1, 1], [], []>} : vector<8x64xbf16>, vector<64x128xbf16>, vector<8x128xf32> -> vector<8x128xf32>
    %cst_79 = arith.constant dense<0.000000e+00> : vector<8xf32>
    %48 = vector.multi_reduction <add>, %6, %cst_79 [1] : vector<8x128xf32> to vector<8xf32>
    %49 = vector.shape_cast %48 : vector<8xf32> to vector<8x1xf32>
    %50 = arith.mulf %6, %6 : vector<8x128xf32>
    %cst_80 = arith.constant dense<0.000000e+00> : vector<8xf32>
    %51 = vector.multi_reduction <add>, %50, %cst_80 [1] : vector<8x128xf32> to vector<8xf32>
    %52 = vector.shape_cast %51 : vector<8xf32> to vector<8x1xf32>
    %cst_81 = arith.constant dense<0.000000e+00> : vector<8xf32>
    %53 = vector.multi_reduction <add>, %17, %cst_81 [1] : vector<8x128xf32> to vector<8xf32>
    %54 = vector.shape_cast %53 : vector<8xf32> to vector<8x1xf32>
    %55 = arith.addf %49, %54 : vector<8x1xf32>
    %56 = arith.mulf %17, %17 : vector<8x128xf32>
    %cst_82 = arith.constant dense<0.000000e+00> : vector<8xf32>
    %57 = vector.multi_reduction <add>, %56, %cst_82 [1] : vector<8x128xf32> to vector<8xf32>
    %58 = vector.shape_cast %57 : vector<8xf32> to vector<8x1xf32>
    %59 = arith.addf %52, %58 : vector<8x1xf32>
    %cst_83 = arith.constant dense<0.000000e+00> : vector<8xf32>
    %60 = vector.multi_reduction <add>, %28, %cst_83 [1] : vector<8x128xf32> to vector<8xf32>
    %61 = vector.shape_cast %60 : vector<8xf32> to vector<8x1xf32>
    %62 = arith.addf %55, %61 : vector<8x1xf32>
    %63 = arith.mulf %28, %28 : vector<8x128xf32>
    %cst_84 = arith.constant dense<0.000000e+00> : vector<8xf32>
    %64 = vector.multi_reduction <add>, %63, %cst_84 [1] : vector<8x128xf32> to vector<8xf32>
    %65 = vector.shape_cast %64 : vector<8xf32> to vector<8x1xf32>
    %66 = arith.addf %59, %65 : vector<8x1xf32>
    %cst_85 = arith.constant dense<0.000000e+00> : vector<8xf32>
    %67 = vector.multi_reduction <add>, %47, %cst_85 [1] : vector<8x128xf32> to vector<8xf32>
    %68 = vector.shape_cast %67 : vector<8xf32> to vector<8x1xf32>
    %69 = arith.addf %62, %68 : vector<8x1xf32>
    %70 = arith.mulf %47, %47 : vector<8x128xf32>
    %cst_86 = arith.constant dense<0.000000e+00> : vector<8xf32>
    %71 = vector.multi_reduction <add>, %70, %cst_86 [1] : vector<8x128xf32> to vector<8xf32>
    %72 = vector.shape_cast %71 : vector<8xf32> to vector<8x1xf32>
    %73 = arith.addf %66, %72 : vector<8x1xf32>
    %cst_87 = arith.constant 5.120000e+02 : f32
    %74 = vector.broadcast %cst_87 : f32 to vector<8x1xf32>
    %75 = arith.divf %69, %74 : vector<8x1xf32>
    %cst_88 = arith.constant 5.120000e+02 : f32
    %76 = vector.broadcast %cst_88 : f32 to vector<8x1xf32>
    %77 = arith.divf %73, %76 : vector<8x1xf32>
    %78 = arith.mulf %75, %75 : vector<8x1xf32>
    %79 = arith.subf %77, %78 : vector<8x1xf32>
    %cst_89 = arith.constant 0.000000e+00 : f32
    %80 = vector.broadcast %cst_89 : f32 to vector<8x1xf32>
    %81 = arith.maximumf %79, %80 : vector<8x1xf32>
    %c0_90 = arith.constant 0 : index
    %c0_91 = arith.constant 0 : index
    %82 = vector.load %arg6[%c0_90, %c0_91] : memref<8x1xf32, #tpu.memory_space<vmem>>, vector<8x1xf32>
    %cst_92 = arith.constant 9.99999974E-6 : f32
    %83 = vector.broadcast %cst_92 : f32 to vector<8x1xf32>
    %84 = arith.addf %81, %83 : vector<8x1xf32>
    %85 = math.rsqrt %84 : vector<8x1xf32>
    %86 = arith.mulf %82, %85 : vector<8x1xf32>
    %c0_93 = arith.constant 0 : index
    %c0_94 = arith.constant 0 : index
    %87 = vector.load %arg7[%c0_93, %c0_94] : memref<8x1xf32, #tpu.memory_space<vmem>>, vector<8x1xf32>
    %88 = arith.mulf %75, %86 : vector<8x1xf32>
    %89 = arith.subf %87, %88 : vector<8x1xf32>
    %90 = vector.broadcast %86 : vector<8x1xf32> to vector<8x128xf32>
    %91 = arith.mulf %6, %90 : vector<8x128xf32>
    %92 = vector.broadcast %89 : vector<8x1xf32> to vector<8x128xf32>
    %93 = arith.addf %91, %92 : vector<8x128xf32>
    %cst_95 = arith.constant 0.000000e+00 : f32
    %94 = vector.broadcast %cst_95 : f32 to vector<8x128xf32>
    %95 = arith.maximumf %93, %94 : vector<8x128xf32>
    %96 = arith.truncf %95 : vector<8x128xf32> to vector<8x128xbf16>
    %c0_96 = arith.constant 0 : index
    %c0_97 = arith.constant 0 : index
    %c0_98 = arith.constant 0 : index
    %97 = vector.load %arg8[%c0_96, %c0_97, %c0_98] : memref<4x8x128xbf16, #tpu.memory_space<vmem>>, vector<1x8x128xbf16>
    %98 = vector.shape_cast %97 : vector<1x8x128xbf16> to vector<8x128xbf16>
    %99 = vector.shape_cast %96 : vector<8x128xbf16> to vector<1x8x128xbf16>
    tpu.vector_store %arg8[%c0_96, %c0_97, %c0_98], %99 {strides = array<i32>} : memref<4x8x128xbf16, #tpu.memory_space<vmem>>, vector<1x8x128xbf16>,
    %100 = vector.broadcast %86 : vector<8x1xf32> to vector<8x128xf32>
    %101 = arith.mulf %17, %100 : vector<8x128xf32>
    %102 = vector.broadcast %89 : vector<8x1xf32> to vector<8x128xf32>
    %103 = arith.addf %101, %102 : vector<8x128xf32>
    %cst_99 = arith.constant 0.000000e+00 : f32
    %104 = vector.broadcast %cst_99 : f32 to vector<8x128xf32>
    %105 = arith.maximumf %103, %104 : vector<8x128xf32>
    %106 = arith.truncf %105 : vector<8x128xf32> to vector<8x128xbf16>
    %c1 = arith.constant 1 : index
    %c0_100 = arith.constant 0 : index
    %c0_101 = arith.constant 0 : index
    %107 = vector.load %arg8[%c1, %c0_100, %c0_101] : memref<4x8x128xbf16, #tpu.memory_space<vmem>>, vector<1x8x128xbf16>
    %108 = vector.shape_cast %107 : vector<1x8x128xbf16> to vector<8x128xbf16>
    %109 = vector.shape_cast %106 : vector<8x128xbf16> to vector<1x8x128xbf16>
    tpu.vector_store %arg8[%c1, %c0_100, %c0_101], %109 {strides = array<i32>} : memref<4x8x128xbf16, #tpu.memory_space<vmem>>, vector<1x8x128xbf16>,
    %110 = vector.broadcast %86 : vector<8x1xf32> to vector<8x128xf32>
    %111 = arith.mulf %28, %110 : vector<8x128xf32>
    %112 = vector.broadcast %89 : vector<8x1xf32> to vector<8x128xf32>
    %113 = arith.addf %111, %112 : vector<8x128xf32>
    %cst_102 = arith.constant 0.000000e+00 : f32
    %114 = vector.broadcast %cst_102 : f32 to vector<8x128xf32>
    %115 = arith.maximumf %113, %114 : vector<8x128xf32>
    %116 = arith.truncf %115 : vector<8x128xf32> to vector<8x128xbf16>
    %c2 = arith.constant 2 : index
    %c0_103 = arith.constant 0 : index
    %c0_104 = arith.constant 0 : index
    %117 = vector.load %arg8[%c2, %c0_103, %c0_104] : memref<4x8x128xbf16, #tpu.memory_space<vmem>>, vector<1x8x128xbf16>
    %118 = vector.shape_cast %117 : vector<1x8x128xbf16> to vector<8x128xbf16>
    %119 = vector.shape_cast %116 : vector<8x128xbf16> to vector<1x8x128xbf16>
    tpu.vector_store %arg8[%c2, %c0_103, %c0_104], %119 {strides = array<i32>} : memref<4x8x128xbf16, #tpu.memory_space<vmem>>, vector<1x8x128xbf16>,
    %120 = vector.broadcast %86 : vector<8x1xf32> to vector<8x128xf32>
    %121 = arith.mulf %47, %120 : vector<8x128xf32>
    %122 = vector.broadcast %89 : vector<8x1xf32> to vector<8x128xf32>
    %123 = arith.addf %121, %122 : vector<8x128xf32>
    %cst_105 = arith.constant 0.000000e+00 : f32
    %124 = vector.broadcast %cst_105 : f32 to vector<8x128xf32>
    %125 = arith.maximumf %123, %124 : vector<8x128xf32>
    %126 = arith.truncf %125 : vector<8x128xf32> to vector<8x128xbf16>
    %c3 = arith.constant 3 : index
    %c0_106 = arith.constant 0 : index
    %c0_107 = arith.constant 0 : index
    %127 = vector.load %arg8[%c3, %c0_106, %c0_107] : memref<4x8x128xbf16, #tpu.memory_space<vmem>>, vector<1x8x128xbf16>
    %128 = vector.shape_cast %127 : vector<1x8x128xbf16> to vector<8x128xbf16>
    %129 = vector.shape_cast %126 : vector<8x128xbf16> to vector<1x8x128xbf16>
    tpu.vector_store %arg8[%c3, %c0_106, %c0_107], %129 {strides = array<i32>} : memref<4x8x128xbf16, #tpu.memory_space<vmem>>, vector<1x8x128xbf16>,
    return
  }
  func.func @transform_0(%arg0: i32) -> (i32, i32) {
    %c0_i32 = arith.constant 0 : i32
    %c0_i32_0 = arith.constant 0 : i32
    %c0_i32_1 = arith.constant 0 : i32
    return %c0_i32, %c0_i32_0 : i32, i32
  }
  func.func @transform_1(%arg0: i32) -> (i32, i32) {
    %c0_i32 = arith.constant 0 : i32
    %c0_i32_0 = arith.constant 0 : i32
    %c0_i32_1 = arith.constant 0 : i32
    return %c0_i32, %c0_i32_0 : i32, i32
  }
  func.func @transform_2(%arg0: i32) -> (i32, i32) {
    %c0_i32 = arith.constant 0 : i32
    %c0_i32_0 = arith.constant 0 : i32
    %c0_i32_1 = arith.constant 0 : i32
    return %c0_i32, %c0_i32_0 : i32, i32
  }
  func.func @transform_3(%arg0: i32) -> (i32, i32) {
    %c0_i32 = arith.constant 0 : i32
    %c0_i32_0 = arith.constant 0 : i32
    %c0_i32_1 = arith.constant 0 : i32
    return %c0_i32, %c0_i32_0 : i32, i32
  }
  func.func @transform_4(%arg0: i32) -> (i32, i32) {
    %c0_i32 = arith.constant 0 : i32
    %c0_i32_0 = arith.constant 0 : i32
    %c0_i32_1 = arith.constant 0 : i32
    return %c0_i32, %c0_i32_0 : i32, i32
  }
  func.func @transform_5(%arg0: i32) -> (i32, i32) {
    %c0_i32 = arith.constant 0 : i32
    %c0_i32_0 = arith.constant 0 : i32
    %c0_i32_1 = arith.constant 0 : i32
    return %c0_i32, %c0_i32_0 : i32, i32
  }
  func.func @transform_6(%arg0: i32) -> (i32, i32) {
    %c0_i32 = arith.constant 0 : i32
    %c0_i32_0 = arith.constant 0 : i32
    %c0_i32_1 = arith.constant 0 : i32
    return %c0_i32, %c0_i32_0 : i32, i32
  }
  func.func @transform_7(%arg0: i32) -> (i32, i32, i32) {
    %c0_i32 = arith.constant 0 : i32
    %c0_i32_0 = arith.constant 0 : i32
    %c0_i32_1 = arith.constant 0 : i32
    %c0_i32_2 = arith.constant 0 : i32
    return %c0_i32, %c0_i32_0, %c0_i32_1 : i32, i32, i32
  }
}

module attributes {stable_mosaic.version = 11 : i64} {
  func.func @_conv_bn_act_kernel(%arg0: i32, %arg1: memref<8x1728xbf16, #tpu.memory_space<vmem>>, %arg2: memref<3x144xbf16, #tpu.memory_space<vmem>>, %arg3: memref<3x1xf32, #tpu.memory_space<vmem>>, %arg4: memref<3x512xf32, #tpu.memory_space<vmem>>, %arg5: memref<144x512xbf16, #tpu.memory_space<vmem>>) attributes {dimension_semantics = [#tpu.dimension_semantics<parallel>], iteration_bounds = array<i64: 1>, scalar_prefetch = 0 : i64, scratch_operands = 1 : i64, tpu.core_type = #tpu.core_type<tc>, window_params = [{pipeline_mode = #tpu.pipeline_mode<synchronous>, transform_indices = @transform_0, window_bounds = array<i64: 8, 1728>}, {transform_indices = @transform_1, window_bounds = array<i64: 3, 144>}, {transform_indices = @transform_2, window_bounds = array<i64: 3, 1>}, {transform_indices = @transform_3, window_bounds = array<i64: 3, 512>}]} {
    %cst = arith.constant 0.000000e+00 : bf16
    %0 = vector.broadcast %cst : bf16 to vector<144x512xbf16>
    %c0 = arith.constant 0 : index
    %c0_0 = arith.constant 0 : index
    %1 = vector.load %arg5[%c0, %c0_0] : memref<144x512xbf16, #tpu.memory_space<vmem>>, vector<144x512xbf16>
    tpu.vector_store %arg5[%c0, %c0_0], %0 {strides = array<i32>} : memref<144x512xbf16, #tpu.memory_space<vmem>>, vector<144x512xbf16>,
    %c0_1 = arith.constant 0 : index
    %c0_2 = arith.constant 0 : index
    %2 = vector.load %arg1[%c0_1, %c0_2] : memref<8x1728xbf16, #tpu.memory_space<vmem>>, vector<8x256xbf16>
    %c0_3 = arith.constant 0 : index
    %c0_4 = arith.constant 0 : index
    %3 = vector.load %arg5[%c0_3, %c0_4] : memref<144x512xbf16, #tpu.memory_space<vmem>>, vector<8x256xbf16>
    tpu.vector_store %arg5[%c0_3, %c0_4], %2 {strides = array<i32>} : memref<144x512xbf16, #tpu.memory_space<vmem>>, vector<8x256xbf16>,
    %c0_5 = arith.constant 0 : index
    %c864 = arith.constant 864 : index
    %4 = vector.load %arg1[%c0_5, %c864] : memref<8x1728xbf16, #tpu.memory_space<vmem>>, vector<8x256xbf16>
    %c0_6 = arith.constant 0 : index
    %c256 = arith.constant 256 : index
    %5 = vector.load %arg5[%c0_6, %c256] : memref<144x512xbf16, #tpu.memory_space<vmem>>, vector<8x256xbf16>
    tpu.vector_store %arg5[%c0_6, %c256], %4 {strides = array<i32>} : memref<144x512xbf16, #tpu.memory_space<vmem>>, vector<8x256xbf16>,
    %c0_7 = arith.constant 0 : index
    %c288 = arith.constant 288 : index
    %6 = vector.load %arg1[%c0_7, %c288] : memref<8x1728xbf16, #tpu.memory_space<vmem>>, vector<8x256xbf16>
    %c16 = arith.constant 16 : index
    %c0_8 = arith.constant 0 : index
    %7 = vector.load %arg5[%c16, %c0_8] : memref<144x512xbf16, #tpu.memory_space<vmem>>, vector<8x256xbf16>
    tpu.vector_store %arg5[%c16, %c0_8], %6 {strides = array<i32>} : memref<144x512xbf16, #tpu.memory_space<vmem>>, vector<8x256xbf16>,
    %c0_9 = arith.constant 0 : index
    %c1152 = arith.constant 1152 : index
    %8 = vector.load %arg1[%c0_9, %c1152] : memref<8x1728xbf16, #tpu.memory_space<vmem>>, vector<8x256xbf16>
    %c16_10 = arith.constant 16 : index
    %c256_11 = arith.constant 256 : index
    %9 = vector.load %arg5[%c16_10, %c256_11] : memref<144x512xbf16, #tpu.memory_space<vmem>>, vector<8x256xbf16>
    tpu.vector_store %arg5[%c16_10, %c256_11], %8 {strides = array<i32>} : memref<144x512xbf16, #tpu.memory_space<vmem>>, vector<8x256xbf16>,
    %c0_12 = arith.constant 0 : index
    %c576 = arith.constant 576 : index
    %10 = vector.load %arg1[%c0_12, %c576] : memref<8x1728xbf16, #tpu.memory_space<vmem>>, vector<8x256xbf16>
    %c32 = arith.constant 32 : index
    %c0_13 = arith.constant 0 : index
    %11 = vector.load %arg5[%c32, %c0_13] : memref<144x512xbf16, #tpu.memory_space<vmem>>, vector<8x256xbf16>
    tpu.vector_store %arg5[%c32, %c0_13], %10 {strides = array<i32>} : memref<144x512xbf16, #tpu.memory_space<vmem>>, vector<8x256xbf16>,
    %c0_14 = arith.constant 0 : index
    %c1440 = arith.constant 1440 : index
    %12 = vector.load %arg1[%c0_14, %c1440] : memref<8x1728xbf16, #tpu.memory_space<vmem>>, vector<8x256xbf16>
    %c32_15 = arith.constant 32 : index
    %c256_16 = arith.constant 256 : index
    %13 = vector.load %arg5[%c32_15, %c256_16] : memref<144x512xbf16, #tpu.memory_space<vmem>>, vector<8x256xbf16>
    tpu.vector_store %arg5[%c32_15, %c256_16], %12 {strides = array<i32>} : memref<144x512xbf16, #tpu.memory_space<vmem>>, vector<8x256xbf16>,
    %c0_17 = arith.constant 0 : index
    %c16_18 = arith.constant 16 : index
    %14 = vector.load %arg1[%c0_17, %c16_18] : memref<8x1728xbf16, #tpu.memory_space<vmem>>, vector<8x256xbf16>
    %c48 = arith.constant 48 : index
    %c0_19 = arith.constant 0 : index
    %15 = vector.load %arg5[%c48, %c0_19] : memref<144x512xbf16, #tpu.memory_space<vmem>>, vector<8x256xbf16>
    tpu.vector_store %arg5[%c48, %c0_19], %14 {strides = array<i32>} : memref<144x512xbf16, #tpu.memory_space<vmem>>, vector<8x256xbf16>,
    %c0_20 = arith.constant 0 : index
    %c880 = arith.constant 880 : index
    %16 = vector.load %arg1[%c0_20, %c880] : memref<8x1728xbf16, #tpu.memory_space<vmem>>, vector<8x256xbf16>
    %c48_21 = arith.constant 48 : index
    %c256_22 = arith.constant 256 : index
    %17 = vector.load %arg5[%c48_21, %c256_22] : memref<144x512xbf16, #tpu.memory_space<vmem>>, vector<8x256xbf16>
    tpu.vector_store %arg5[%c48_21, %c256_22], %16 {strides = array<i32>} : memref<144x512xbf16, #tpu.memory_space<vmem>>, vector<8x256xbf16>,
    %c0_23 = arith.constant 0 : index
    %c304 = arith.constant 304 : index
    %18 = vector.load %arg1[%c0_23, %c304] : memref<8x1728xbf16, #tpu.memory_space<vmem>>, vector<8x256xbf16>
    %c64 = arith.constant 64 : index
    %c0_24 = arith.constant 0 : index
    %19 = vector.load %arg5[%c64, %c0_24] : memref<144x512xbf16, #tpu.memory_space<vmem>>, vector<8x256xbf16>
    tpu.vector_store %arg5[%c64, %c0_24], %18 {strides = array<i32>} : memref<144x512xbf16, #tpu.memory_space<vmem>>, vector<8x256xbf16>,
    %c0_25 = arith.constant 0 : index
    %c1168 = arith.constant 1168 : index
    %20 = vector.load %arg1[%c0_25, %c1168] : memref<8x1728xbf16, #tpu.memory_space<vmem>>, vector<8x256xbf16>
    %c64_26 = arith.constant 64 : index
    %c256_27 = arith.constant 256 : index
    %21 = vector.load %arg5[%c64_26, %c256_27] : memref<144x512xbf16, #tpu.memory_space<vmem>>, vector<8x256xbf16>
    tpu.vector_store %arg5[%c64_26, %c256_27], %20 {strides = array<i32>} : memref<144x512xbf16, #tpu.memory_space<vmem>>, vector<8x256xbf16>,
    %c0_28 = arith.constant 0 : index
    %c592 = arith.constant 592 : index
    %22 = vector.load %arg1[%c0_28, %c592] : memref<8x1728xbf16, #tpu.memory_space<vmem>>, vector<8x256xbf16>
    %c80 = arith.constant 80 : index
    %c0_29 = arith.constant 0 : index
    %23 = vector.load %arg5[%c80, %c0_29] : memref<144x512xbf16, #tpu.memory_space<vmem>>, vector<8x256xbf16>
    tpu.vector_store %arg5[%c80, %c0_29], %22 {strides = array<i32>} : memref<144x512xbf16, #tpu.memory_space<vmem>>, vector<8x256xbf16>,
    %c0_30 = arith.constant 0 : index
    %c1456 = arith.constant 1456 : index
    %24 = vector.load %arg1[%c0_30, %c1456] : memref<8x1728xbf16, #tpu.memory_space<vmem>>, vector<8x256xbf16>
    %c80_31 = arith.constant 80 : index
    %c256_32 = arith.constant 256 : index
    %25 = vector.load %arg5[%c80_31, %c256_32] : memref<144x512xbf16, #tpu.memory_space<vmem>>, vector<8x256xbf16>
    tpu.vector_store %arg5[%c80_31, %c256_32], %24 {strides = array<i32>} : memref<144x512xbf16, #tpu.memory_space<vmem>>, vector<8x256xbf16>,
    %c0_33 = arith.constant 0 : index
    %c32_34 = arith.constant 32 : index
    %26 = vector.load %arg1[%c0_33, %c32_34] : memref<8x1728xbf16, #tpu.memory_space<vmem>>, vector<8x256xbf16>
    %c96 = arith.constant 96 : index
    %c0_35 = arith.constant 0 : index
    %27 = vector.load %arg5[%c96, %c0_35] : memref<144x512xbf16, #tpu.memory_space<vmem>>, vector<8x256xbf16>
    tpu.vector_store %arg5[%c96, %c0_35], %26 {strides = array<i32>} : memref<144x512xbf16, #tpu.memory_space<vmem>>, vector<8x256xbf16>,
    %c0_36 = arith.constant 0 : index
    %c896 = arith.constant 896 : index
    %28 = vector.load %arg1[%c0_36, %c896] : memref<8x1728xbf16, #tpu.memory_space<vmem>>, vector<8x256xbf16>
    %c96_37 = arith.constant 96 : index
    %c256_38 = arith.constant 256 : index
    %29 = vector.load %arg5[%c96_37, %c256_38] : memref<144x512xbf16, #tpu.memory_space<vmem>>, vector<8x256xbf16>
    tpu.vector_store %arg5[%c96_37, %c256_38], %28 {strides = array<i32>} : memref<144x512xbf16, #tpu.memory_space<vmem>>, vector<8x256xbf16>,
    %c0_39 = arith.constant 0 : index
    %c320 = arith.constant 320 : index
    %30 = vector.load %arg1[%c0_39, %c320] : memref<8x1728xbf16, #tpu.memory_space<vmem>>, vector<8x256xbf16>
    %c112 = arith.constant 112 : index
    %c0_40 = arith.constant 0 : index
    %31 = vector.load %arg5[%c112, %c0_40] : memref<144x512xbf16, #tpu.memory_space<vmem>>, vector<8x256xbf16>
    tpu.vector_store %arg5[%c112, %c0_40], %30 {strides = array<i32>} : memref<144x512xbf16, #tpu.memory_space<vmem>>, vector<8x256xbf16>,
    %c0_41 = arith.constant 0 : index
    %c1184 = arith.constant 1184 : index
    %32 = vector.load %arg1[%c0_41, %c1184] : memref<8x1728xbf16, #tpu.memory_space<vmem>>, vector<8x256xbf16>
    %c112_42 = arith.constant 112 : index
    %c256_43 = arith.constant 256 : index
    %33 = vector.load %arg5[%c112_42, %c256_43] : memref<144x512xbf16, #tpu.memory_space<vmem>>, vector<8x256xbf16>
    tpu.vector_store %arg5[%c112_42, %c256_43], %32 {strides = array<i32>} : memref<144x512xbf16, #tpu.memory_space<vmem>>, vector<8x256xbf16>,
    %c0_44 = arith.constant 0 : index
    %c608 = arith.constant 608 : index
    %34 = vector.load %arg1[%c0_44, %c608] : memref<8x1728xbf16, #tpu.memory_space<vmem>>, vector<8x256xbf16>
    %c128 = arith.constant 128 : index
    %c0_45 = arith.constant 0 : index
    %35 = vector.load %arg5[%c128, %c0_45] : memref<144x512xbf16, #tpu.memory_space<vmem>>, vector<8x256xbf16>
    tpu.vector_store %arg5[%c128, %c0_45], %34 {strides = array<i32>} : memref<144x512xbf16, #tpu.memory_space<vmem>>, vector<8x256xbf16>,
    %c0_46 = arith.constant 0 : index
    %c1472 = arith.constant 1472 : index
    %36 = vector.load %arg1[%c0_46, %c1472] : memref<8x1728xbf16, #tpu.memory_space<vmem>>, vector<8x256xbf16>
    %c128_47 = arith.constant 128 : index
    %c256_48 = arith.constant 256 : index
    %37 = vector.load %arg5[%c128_47, %c256_48] : memref<144x512xbf16, #tpu.memory_space<vmem>>, vector<8x256xbf16>
    tpu.vector_store %arg5[%c128_47, %c256_48], %36 {strides = array<i32>} : memref<144x512xbf16, #tpu.memory_space<vmem>>, vector<8x256xbf16>,
    %c0_49 = arith.constant 0 : index
    %c0_50 = arith.constant 0 : index
    %38 = vector.load %arg2[%c0_49, %c0_50] : memref<3x144xbf16, #tpu.memory_space<vmem>>, vector<3x144xbf16>
    %c0_51 = arith.constant 0 : index
    %c0_52 = arith.constant 0 : index
    %39 = vector.load %arg5[%c0_51, %c0_52] : memref<144x512xbf16, #tpu.memory_space<vmem>>, vector<144x512xbf16>
    %cst_53 = arith.constant dense<0.000000e+00> : vector<3x512xf32>
    %40 = tpu.matmul %38, %39, %cst_53 {dimension_numbers = #tpu.dot_dimension_numbers<[1], [0], [0], [1], [0, 0, 1, 1], [], []>} : vector<3x144xbf16>, vector<144x512xbf16>, vector<3x512xf32> -> vector<3x512xf32>
    %c0_54 = arith.constant 0 : index
    %c0_55 = arith.constant 0 : index
    %41 = vector.load %arg3[%c0_54, %c0_55] : memref<3x1xf32, #tpu.memory_space<vmem>>, vector<3x1xf32>
    %42 = vector.broadcast %41 : vector<3x1xf32> to vector<3x512xf32>
    %43 = arith.addf %40, %42 : vector<3x512xf32>
    %44 = math.tanh %43 : vector<3x512xf32>
    %c0_56 = arith.constant 0 : index
    %c0_57 = arith.constant 0 : index
    %45 = vector.load %arg4[%c0_56, %c0_57] : memref<3x512xf32, #tpu.memory_space<vmem>>, vector<3x512xf32>
    tpu.vector_store %arg4[%c0_56, %c0_57], %44 {strides = array<i32>} : memref<3x512xf32, #tpu.memory_space<vmem>>, vector<3x512xf32>,
    return
  }
  func.func @transform_0(%arg0: i32) -> (i32, i32) {
    %c0_i32 = arith.constant 0 : i32
    %c0_i32_0 = arith.constant 0 : i32
    %c0_i32_1 = arith.constant 0 : i32
    return %c0_i32, %c0_i32_0 : i32, i32
  }
  func.func @transform_1(%arg0: i32) -> (i32, i32) {
    %c0_i32 = arith.constant 0 : i32
    %c0_i32_0 = arith.constant 0 : i32
    return %arg0, %c0_i32 : i32, i32
  }
  func.func @transform_2(%arg0: i32) -> (i32, i32) {
    %c0_i32 = arith.constant 0 : i32
    %c0_i32_0 = arith.constant 0 : i32
    return %arg0, %c0_i32 : i32, i32
  }
  func.func @transform_3(%arg0: i32) -> (i32, i32) {
    %c0_i32 = arith.constant 0 : i32
    %c0_i32_0 = arith.constant 0 : i32
    return %arg0, %c0_i32 : i32, i32
  }
}

</mosaic_0001>

<bundles_post_ra>
// kernel: _lambda_.10
= control target key start
LH: loop header
LB: loop body
LE: loop exit
PB: predicated region body
PF: predicated region fallthrough
CT: control target
= control target key end

     0   :  { %s980_s23 = smov 96   ;;  %s981_s28 = smov 64   ;;  %v986_v49 = vmov 0   ;;  %vm59_vm0 = vcmask 1041408   ;;  %vm60_vm1 = vsmask.f32 1280  ;;  %s1261_s0 = inlined_call_operand.vmem [shape: bf16[3,1728], index: 0, kind: input, shape index: {}]   ;;  %s1262_s1 = inlined_call_operand.vmem [shape: bf16[8,144], index: 1, kind: input, shape index: {}]   ;;  %s1263_s2 = inlined_call_operand.vmem [shape: f32[8,1], index: 2, kind: input, shape index: {}]   ;;  %s1264_s3 = inlined_call_operand.vmem [shape: f32[8,1], index: 3, kind: input, shape index: {}]   ;;  %s1265_s4 = inlined_call_operand.vmem [shape: bf16[8,512], index: 4, kind: output, shape index: {}]  }
   0x1   :  { %v54_v0 = vld [vmem:[%s1261_s0] sm:$0xf]  ;;  %v69_v1 = vld [vmem:[%s1261_s0 + $0xc] sm:$0x3f]  ;;  %v90_v3 = vld [vmem:[%s1261_s0 + $0x4] sm:$0x3f]  ;;  %974 = vset.pattern.permute.xlu2 %v986_v49  ;;  %975 = vset.pattern.permute.xlu0 %v986_v49 }
   0x2   :  { %56 = vst [vmem:[#allocation1] ss:$2 sm:$0xff] %v54_v0  ;;  %v110_v6 = vld [vmem:[%s1261_s0 + $0x12] sm:$0xf]  ;;  %v118_v9 = vld [vmem:[%s1261_s0 + $0x8] sm:$0x3f]  ;;  %vm61_vm4 = vmand %vm59_vm0, %vm60_vm1 }
   0x3   :  { %v138_v11 = vld [vmem:[%s1261_s0 + $0x16] sm:$0x3f]  ;;  %v157_v14 = vld [vmem:[%s1261_s0] sm:$0x3f]  ;;  %v177_v17 = vld [vmem:[%s1261_s0 + $0xc] sm:$0x3f] }
   0x4   :  { %s982_s7 = smov 112   ;;  %v197_v20 = vld [vmem:[%s1261_s0 + $0x4] sm:$0x3f]  ;;  %v217_v23 = vld [vmem:[%s1261_s0 + $0x12] sm:$0x3f]  ;;  %s983_s12 = smov 80  }
   0x5   :  { %v236_v26 = vld [vmem:[%s1261_s0 + $0x8] sm:$0x3f]  ;;  %v256_v29 = vld [vmem:[%s1261_s0 + $0x16] sm:$0x3f]  ;;  %s984_s17 = smov 48   ;;  %s985_s25 = smov 16  }
   0x6   :  { %v275_v32 = vld [vmem:[%s1261_s0] sm:$0x3f]  ;;  %v294_v35 = vld [vmem:[%s1261_s0 + $0xe] sm:$0xf]  ;;  %v321_v40 = vld [vmem:[%s1261_s0 + $0x12] sm:$0x3f] }
   0x7   :  { %v302_v38 = vld [vmem:[%s1261_s0 + $0x4] sm:$0x3f]  ;;  %v359_v46 = vld [vmem:[%s1261_s0 + $0x16] sm:$0x3f]  ;;  %26 = vst [vmem:[#allocation2 + $0x40] sm:$0xff] %v986_v49  ;;  %vm62_vm2 = vcmask 1045508  }
   0x8   :  { %v340_v43 = vld [vmem:[%s1261_s0 + $0x8] sm:$0x3f]  ;;  %18 = vst [vmem:[#allocation2] sm:$0xff] %v986_v49  ;;  %s987_s0 = smov 32   ;;  %vm63_vm3 = vsmask.f32 5376 }
   0x9   :  { %v1020_v2 = vld.sshfl [vmem:[#allocation1] sm:$0xff pattern:$0x75643120]  ;;  %19 = vst [vmem:[#allocation2 + $0x8] sm:$0xff] %v986_v49  ;;  %vm64_vm5 = vmand %vm62_vm2, %vm63_vm3  ;;  %vm82_vm6 = vcmask 1043456   ;;  %vm132_vm7 = vcmask 523264  }
   0xa   :  { %71 = vst [vmem:[#allocation1] ss:$2 sm:$0xff] %v69_v1  ;;  %vm1125_vm8 = vmor %vm64_vm5, %vm61_vm4  ;;  %vm104_vm9 = vcmask 785408   ;;  %vm250_vm10 = vcmask 392192   ;;  %vm211_vm11 = vcmask 654336   ;;  %vm171_vm12 = vcmask 916480  }
   0xb   :  { %20 = vst [vmem:[#allocation2 + $0x10] sm:$0xff] %v986_v49  ;;  %vm191_vm13 = vcmask 130048   ;;  %vm84_vm14 = vcmask 261120  }
   0xc   :  { %21 = vst [vmem:[#allocation2 + $0x18] sm:$0xff] %v986_v49 }
   0xd   :  { %22 = vst [vmem:[#allocation2 + $0x20] sm:$0xff] %v986_v49 }
   0xe   :  { %23 = vst [vmem:[#allocation2 + $0x28] sm:$0xff] %v986_v49  ;;  %v135_v57 = vld [vmem:[#allocation2 + $0x40] sm:$0x33] }
   0xf   :  { %24 = vst [vmem:[#allocation2 + $0x30] sm:$0xff] %v986_v49 }
  0x10   :  { %25 = vst [vmem:[#allocation2 + $0x38] sm:$0xff] %v986_v49 }
  0x11   :  { %v1025_v4 = vld.sshfl [vmem:[#allocation1] sm:$0xff pattern:$0x75643120]  ;;  %v1027_v5 = vld.sshfl [vmem:[#allocation1 + $0x8] sm:$0xff pattern:$0x75643120] }
  0x12   :  { %92 = vst [vmem:[#allocation1] ss:$2 sm:$0xff] %v90_v3 }
  0x13   :  { %27 = vst [vmem:[#allocation2 + $0x48] sm:$0xff] %v986_v49 }
  0x14   :  { %28 = vst [vmem:[#allocation2 + $0x50] sm:$0xff] %v986_v49 }
  0x15   :  { %29 = vst [vmem:[#allocation2 + $0x58] sm:$0xff] %v986_v49 }
  0x16   :  { %30 = vst [vmem:[#allocation2 + $0x60] sm:$0xff] %v986_v49 }
  0x17   :  { %31 = vst [vmem:[#allocation2 + $0x68] sm:$0xff] %v986_v49 }
  0x18   :  { %32 = vst [vmem:[#allocation2 + $0x70] sm:$0xff] %v986_v49 }
  0x19   :  { %v93_v7 = vld.sshfl [vmem:[#allocation1] sm:$0xff pattern:$0x75643120]  ;;  %v95_v8 = vld.sshfl [vmem:[#allocation1 + $0x8] sm:$0xff pattern:$0x75643120] }
  0x1a   :  { %112 = vst [vmem:[#allocation1] ss:$2 sm:$0xff] %v110_v6  ;;  %99 = vrot.lane.b32.xlu0 %v95_v8, %s980_s23  ;;  %97 = vrot.lane.b32.xlu2 %v93_v7, %s980_s23  ;;  %v107_v7 = vld [vmem:[#allocation2 + $0x20] sm:$0x33] }
  0x1b   :  { %33 = vst [vmem:[#allocation2 + $0x78] sm:$0xff] %v986_v49 }
  0x1c   :  { %34 = vst [vmem:[#allocation2 + $0x80] sm:$0xff] %v986_v49 }
  0x1d   :  { %35 = vst [vmem:[#allocation2 + $0x88] sm:$0xff] %v986_v49 }
  0x1e   :  { %36 = vst [vmem:[#allocation2 + $0x90] sm:$0xff] %v986_v49 }
  0x1f   :  { %37 = vst [vmem:[#allocation2 + $0x98] sm:$0xff] %v986_v49 }
  0x20   :  { %38 = vst [vmem:[#allocation2 + $0xa0] sm:$0xff] %v986_v49 }
  0x21   :  { %v1037_v10 = vld.sshfl [vmem:[#allocation1] sm:$0xff pattern:$0x75643120]  ;;  %39 = vst [vmem:[#allocation2 + $0xa8] sm:$0xff] %v986_v49 }
  0x22   :  { %120 = vst [vmem:[#allocation1] ss:$2 sm:$0xff] %v118_v9 }
  0x23   :  { %40 = vst [vmem:[#allocation2 + $0xb0] sm:$0xff] %v986_v49 }
  0x24   :  { %41 = vst [vmem:[#allocation2 + $0xb8] sm:$0xff] %v986_v49 }
  0x25   :  { %42 = vst [vmem:[#allocation2 + $0xc0] sm:$0xff] %v986_v49 }
  0x26   :  { %43 = vst [vmem:[#allocation2 + $0xc8] sm:$0xff] %v986_v49  ;;  %v948_v56 = vld [vmem:[#allocation2 + $0x94] sm:$0xf0] }
  0x27   :  { %44 = vst [vmem:[#allocation2 + $0xd0] sm:$0xff] %v986_v49 }
  0x28   :  { %45 = vst [vmem:[#allocation2 + $0xd8] sm:$0xff] %v986_v49 }
  0x29   :  { %v121_v12 = vld.sshfl [vmem:[#allocation1] sm:$0xff pattern:$0x75643120]  ;;  %v123_v13 = vld.sshfl [vmem:[#allocation1 + $0x8] sm:$0xff pattern:$0x75643120] }
  0x2a   :  { %125 = vrot.lane.b32.xlu1 %v121_v12, %s981_s28  ;;  %140 = vst [vmem:[#allocation1] ss:$2 sm:$0xff] %v138_v11  ;;  %127 = vrot.lane.b32.xlu2 %v123_v13, %s981_s28 }
  0x2b   :  { %46 = vst [vmem:[#allocation2 + $0xe0] sm:$0xff] %v986_v49 }
  0x2c   :  { %47 = vst [vmem:[#allocation2 + $0xe8] sm:$0xff] %v986_v49 }
  0x2d   :  { %48 = vst [vmem:[#allocation2 + $0xf0] sm:$0xff] %v986_v49 }
  0x2e   :  { %49 = vst [vmem:[#allocation2 + $0xf8] sm:$0xff] %v986_v49 }
  0x2f   :  { %50 = vst [vmem:[#allocation2 + $0x100] sm:$0xff] %v986_v49 }
  0x30   :  { %51 = vst [vmem:[#allocation2 + $0x108] sm:$0xff] %v986_v49 }
  0x31   :  { %v1047_v15 = vld.sshfl [vmem:[#allocation1] sm:$0xff pattern:$0x75643120]  ;;  %v1049_v16 = vld.sshfl [vmem:[#allocation1 + $0x8] sm:$0xff pattern:$0x75643120] }
  0x32   :  { %159 = vst [vmem:[#allocation1] ss:$2 sm:$0xff] %v157_v14 }
  0x33   :  { %52 = vst [vmem:[#allocation2 + $0x110] sm:$0xff] %v986_v49 }
  0x34   :  { %53 = vst [vmem:[#allocation2 + $0x118] sm:$0xff] %v986_v49 }
  0x39   :  { %v160_v18 = vld.sshfl [vmem:[#allocation1] sm:$0xff pattern:$0x75643120]  ;;  %v162_v19 = vld.sshfl [vmem:[#allocation1 + $0x8] sm:$0xff pattern:$0x75643120] }
  0x3a   :  { %179 = vst [vmem:[#allocation1] ss:$2 sm:$0xff] %v177_v17  ;;  %166 = vrot.lane.b32.xlu0 %v162_v19, %s982_s7  ;;  %164 = vrot.lane.b32.xlu2 %v160_v18, %s982_s7  ;;  %v253_v19 = vld [vmem:[#allocation2 + $0xa0] sm:$0x33] }
  0x41   :  { %v180_v21 = vld.sshfl [vmem:[#allocation1] sm:$0xff pattern:$0x75643120]  ;;  %v182_v22 = vld.sshfl [vmem:[#allocation1 + $0x8] sm:$0xff pattern:$0x75643120] }
  0x42   :  { %199 = vst [vmem:[#allocation1] ss:$2 sm:$0xff] %v197_v20 }
  0x49   :  { %v202_v24 = vld.sshfl [vmem:[#allocation1 + $0x8] sm:$0xff pattern:$0x75643120]  ;;  %v200_v25 = vld.sshfl [vmem:[#allocation1] sm:$0xff pattern:$0x75643120] }
  0x4a   :  { %206 = vrot.lane.b32.xlu1 %v202_v24, %s983_s12  ;;  %219 = vst [vmem:[#allocation1] ss:$2 sm:$0xff] %v217_v23  ;;  %204 = vrot.lane.b32.xlu0 %v200_v25, %s983_s12 }
  0x51   :  { %v220_v27 = vld.sshfl [vmem:[#allocation1] sm:$0xff pattern:$0x75643120]  ;;  %v222_v28 = vld.sshfl [vmem:[#allocation1 + $0x8] sm:$0xff pattern:$0x75643120] }
  0x52   :  { %238 = vst [vmem:[#allocation1] ss:$2 sm:$0xff] %v236_v26  ;;  %v174_v26 = vld [vmem:[#allocation2 + $0x60] sm:$0x33] }
  0x59   :  { %v239_v30 = vld.sshfl [vmem:[#allocation1] sm:$0xff pattern:$0x75643120]  ;;  %v241_v31 = vld.sshfl [vmem:[#allocation1 + $0x8] sm:$0xff pattern:$0x75643120] }
  0x5a   :  { %258 = vst [vmem:[#allocation1] ss:$2 sm:$0xff] %v256_v29  ;;  %243 = vrot.lane.b32.xlu2 %v239_v30, %s984_s17 }
  0x61   :  { %v259_v33 = vld.sshfl [vmem:[#allocation1] sm:$0xff pattern:$0x75643120]  ;;  %v261_v34 = vld.sshfl [vmem:[#allocation1 + $0x8] sm:$0xff pattern:$0x75643120] }
  0x62   :  { %263 = vrot.lane.b32.xlu1 %v259_v33, %s983_s12  ;;  %277 = vst [vmem:[#allocation1] ss:$2 sm:$0xff] %v275_v32  ;;  %245 = vrot.lane.b32.xlu2 %v241_v31, %s984_s17 }
  0x69   :  { %v278_v36 = vld.sshfl [vmem:[#allocation1] sm:$0xff pattern:$0x75643120]  ;;  %v280_v37 = vld.sshfl [vmem:[#allocation1 + $0x8] sm:$0xff pattern:$0x75643120] }
  0x6a   :  { %282 = vrot.lane.b32.xlu1 %v278_v36, %s980_s23  ;;  %296 = vst [vmem:[#allocation1] ss:$2 sm:$0xff] %v294_v35  ;;  %265 = vrot.lane.b32.xlu2 %v261_v34, %s983_s12  ;;  %v272_v35 = vld [vmem:[#allocation2 + $0xa8] sm:$0x33] }
  0x71   :  { %v1078_v39 = vld.sshfl [vmem:[#allocation1] sm:$0xff pattern:$0x75643120] }
  0x72   :  { %284 = vrot.lane.b32.xlu1 %v280_v37, %s980_s23  ;;  %304 = vst [vmem:[#allocation1] ss:$2 sm:$0xff] %v302_v38  ;;  %186 = vrot.lane.b32.xlu2 %v182_v22, %s985_s25  ;;  %v214_v22 = vld [vmem:[#allocation2 + $0x80] sm:$0x33] }
  0x74   :  { %v1102_v50 = vpop.permute.xlu2 %97 }
  0x75   :  { %v101_v0 = vrot.slane %v1102_v50, 4 }
  0x79   :  { %v305_v41 = vld.sshfl [vmem:[#allocation1] sm:$0xff pattern:$0x75643120]  ;;  %v307_v42 = vld.sshfl [vmem:[#allocation1 + $0x8] sm:$0xff pattern:$0x75643120] }
  0x7a   :  { %309 = vrot.lane.b32.xlu0 %v305_v41, %s981_s28  ;;  %226 = vrot.lane.b32.xlu1 %v222_v28, %s982_s7  ;;  %323 = vst [vmem:[#allocation1] ss:$2 sm:$0xff] %v321_v40 }
  0x81   :  { %v326_v44 = vld.sshfl [vmem:[#allocation1 + $0x8] sm:$0xff pattern:$0x75643120]  ;;  %v324_v45 = vld.sshfl [vmem:[#allocation1] sm:$0xff pattern:$0x75643120] }
  0x82   :  { %311 = vrot.lane.b32.xlu0 %v307_v42, %s981_s28  ;;  %330 = vrot.lane.b32.xlu1 %v326_v44, %s980_s23  ;;  %342 = vst [vmem:[#allocation1] ss:$2 sm:$0xff] %v340_v43  ;;  %v291_v44 = vld [vmem:[#allocation2 + $0xc0] sm:$0x33] }
  0x84   :  { %v128_v52 = vpop.permute.xlu2 %127 }
  0x85   :  { %v130_v53 = vrot.slane %v128_v52, 4 }
  0x89   :  { %v345_v47 = vld.sshfl [vmem:[#allocation1 + $0x8] sm:$0xff pattern:$0x75643120]  ;;  %v343_v48 = vld.sshfl [vmem:[#allocation1] sm:$0xff pattern:$0x75643120] }
  0x8a   :  { %224 = vrot.lane.b32.xlu0 %v220_v27, %s982_s7  ;;  %184 = vrot.lane.b32.xlu1 %v180_v21, %s985_s25  ;;  %361 = vst [vmem:[#allocation1] ss:$2 sm:$0xff] %v359_v46 }
  0x8c   :  { %v100_v62 = vpop.permute.xlu0 %99 }
  0x8d   :  { %v102_v1 = vrot.slane %v100_v62, 4 }
  0x91   :  { %v362_v51 = vld.sshfl [vmem:[#allocation1] sm:$0xff pattern:$0x75643120]  ;;  %v364_v58 = vld.sshfl [vmem:[#allocation1 + $0x8] sm:$0xff pattern:$0x75643120] }
  0x92   :  { %328 = vrot.lane.b32.xlu0 %v324_v45, %s980_s23  ;;  %349 = vrot.lane.b32.xlu1 %v345_v47, %s987_s0 }
  0x93   :  { %366 = vrot.lane.b32.xlu2 %v362_v51, %s981_s28 }
  0x94   :  { %v165_v63 = vpop.permute.xlu2 %164 }
  0x95   :  { %v168_v8 = vrot.slane %v165_v63, 4 }
  0x9a   :  { %347 = vrot.lane.b32.xlu0 %v343_v48, %s987_s0  ;;  %76 = vrot.lane.b32.xlu1 %v1025_v4, %s987_s0 }
  0x9b   :  { %145 = vrot.lane.b32.xlu2 %v1047_v15, %s980_s23 }
  0x9c   :  { %v126_v54 = vpop.permute.xlu1 %125 }
  0x9d   :  { %v129_v55 = vrot.slane %v126_v54, 4 }
  0x9f   :  { %v131_v59 = vsel %vm82_vm6, %v129_v55, %v130_v53  ;;  %v66_v55 = vld [vmem:[#allocation2] sm:$0x33] }
  0xa0   :  { %v133_v60 = vsel %vm132_vm7, %v126_v54, %v131_v59  ;;  %v299_v59 = vld [vmem:[#allocation2 + $0xc8] sm:$0x33] }
  0xa1   :  { %v136_v61 = vsel %vm1125_vm8, %v133_v60, %v135_v57  ;;  %v318_v57 = vld [vmem:[#allocation2 + $0xe0] sm:$0x33] }
  0xa2   :  { %368 = vrot.lane.b32.xlu0 %v364_v58, %s981_s28  ;;  %137 = vst [vmem:[#allocation2 + $0x40] sm:$0x33] %v136_v61  ;;  %v67_v58 = vsel %vm1125_vm8, %v1020_v2, %v66_v55  ;;  %v300_v61 = vsel %vm1125_vm8, %v1078_v39, %v299_v59 }
  0xa3   :  { %78 = vrot.lane.b32.xlu2 %v1027_v5, %s987_s0  ;;  %v103_v5 = vsel %vm82_vm6, %v101_v0, %v102_v1  ;;  %68 = vst [vmem:[#allocation2] sm:$0x33] %v67_v58 }
  0xa4   :  { %v105_v6 = vsel %vm104_vm9, %v1102_v50, %v103_v5  ;;  %301 = vst [vmem:[#allocation2 + $0xc8] sm:$0x33] %v300_v61  ;;  %v87_v61 = vld [vmem:[#allocation2 + $0x8] sm:$0x33] }
  0xa5   :  { %v108_v11 = vsel %vm1125_vm8, %v105_v6, %v107_v7  ;;  %v233_v7 = vld [vmem:[#allocation2 + $0x88] sm:$0x33] }
  0xa6   :  { %109 = vst [vmem:[#allocation2 + $0x20] sm:$0x33] %v108_v11  ;;  %v897_v11 = vld [vmem:[#allocation2 + $0xf0] sm:$0xf0] }
  0xaa   :  { %147 = vrot.lane.b32.xlu0 %v1049_v16, %s980_s23 }
  0xac   :  { %v167_v3 = vpop.permute.xlu0 %166 }
  0xad   :  { %v169_v9 = vrot.slane %v167_v3, 4 }
  0xaf   :  { %v170_v16 = vsel %vm82_vm6, %v168_v8, %v169_v9  ;;  %v194_v8 = vld [vmem:[#allocation2 + $0x68] sm:$0x33]  ;;  %v959_v9 = vld [vmem:[#allocation2 + $0xec] sm:$0xf0] }
  0xb0   :  { %v172_v25 = vsel %vm171_vm12, %v165_v63, %v170_v16 }
  0xb1   :  { %v175_v29 = vsel %vm1125_vm8, %v172_v25, %v174_v26 }
  0xb2   :  { %176 = vst [vmem:[#allocation2 + $0x60] sm:$0x33] %v175_v29 }
  0xb4   :  { %v244_v4 = vpop.permute.xlu2 %243 }
  0xb5   :  { %v247_v12 = vrot.slane %v244_v4, 4 }
  0xbc   :  { %v207_v13 = vpop.permute.xlu1 %206  ;;  %v246_v14 = vpop.permute.xlu2 %245 }
  0xbd   :  { %v209_v15 = vrot.slane %v207_v13, 4  ;;  %v248_v17 = vrot.slane %v246_v14, 4  ;;  %v205_v18 = vpop.permute.xlu0 %204 }
  0xbe   :  { %v208_v20 = vrot.slane %v205_v18, 4 }
  0xbf   :  { %v249_v21 = vsel %vm82_vm6, %v247_v12, %v248_v17 }
  0xc0   :  { %v251_v23 = vsel %vm250_vm10, %v244_v4, %v249_v21  ;;  %v210_v24 = vsel %vm82_vm6, %v208_v20, %v209_v15 }
  0xc1   :  { %v254_v27 = vsel %vm1125_vm8, %v251_v23, %v253_v19  ;;  %v212_v28 = vsel %vm211_vm11, %v205_v18, %v210_v24  ;;  %v881_v23 = vld [vmem:[#allocation2 + $0xd0] sm:$0xf0] }
  0xc2   :  { %255 = vst [vmem:[#allocation2 + $0xa0] sm:$0x33] %v254_v27  ;;  %v215_v30 = vsel %vm1125_vm8, %v212_v28, %v214_v22  ;;  %v955_v22 = vld [vmem:[#allocation2 + $0xcc] sm:$0xf0] }
  0xc3   :  { %216 = vst [vmem:[#allocation2 + $0x80] sm:$0x33] %v215_v30  ;;  %v337_v30 = vld [vmem:[#allocation2 + $0xe8] sm:$0x33] }
  0xc4   :  { %v266_v31 = vpop.permute.xlu2 %265 }
  0xc5   :  { %v268_v32 = vrot.slane %v266_v31, 4 }
  0xcc   :  { %v187_v50 = vpop.permute.xlu2 %186 }
  0xcd   :  { %v189_v3 = vrot.slane %v187_v50, 4 }
  0xd4   :  { %v264_v33 = vpop.permute.xlu1 %263 }
  0xd5   :  { %v267_v34 = vrot.slane %v264_v33, 4 }
  0xd7   :  { %v269_v36 = vsel %vm82_vm6, %v267_v34, %v268_v32 }
  0xd8   :  { %v270_v37 = vsel %vm211_vm11, %v264_v33, %v269_v36  ;;  %v863_v33 = vld [vmem:[#allocation2 + $0xa0] sm:$0xf]  ;;  %v949_v36 = vld [vmem:[#allocation2 + $0xa4] sm:$0xf] }
  0xd9   :  { %v273_v38 = vsel %vm1125_vm8, %v270_v37, %v272_v35  ;;  %v951_v35 = vld [vmem:[#allocation2 + $0xac] sm:$0xf0]  ;;  %v865_v37 = vld [vmem:[#allocation2 + $0xb0] sm:$0xf0] }
  0xda   :  { %274 = vst [vmem:[#allocation2 + $0xa8] sm:$0x33] %v273_v38 }
  0xdc   :  { %v283_v40 = vpop.permute.xlu1 %282 }
  0xdd   :  { %v286_v41 = vrot.slane %v283_v40, 4 }
  0xe4   :  { %v285_v42 = vpop.permute.xlu1 %284 }
  0xe5   :  { %v287_v43 = vrot.slane %v285_v42, 4 }
  0xe7   :  { %v288_v45 = vsel %vm82_vm6, %v286_v41, %v287_v43  ;;  %v847_v41 = vld [vmem:[#allocation2 + $0x80] sm:$0xf]  ;;  %v864_v43 = vor.u32 %v951_v35, %v863_v33 }
  0xe8   :  { %v289_v46 = vsel %vm104_vm9, %v283_v40, %v288_v45  ;;  %v947_v45 = vld [vmem:[#allocation2 + $0x8c] sm:$0xf0]  ;;  %v783_v35 = vld [vmem:[#allocation2] sm:$0xf] }
  0xe9   :  { %v292_v47 = vsel %vm1125_vm8, %v289_v46, %v291_v44  ;;  %v868_v44 = vor.u32 %v949_v36, %v865_v37  ;;  %v115_v46 = vld [vmem:[#allocation2 + $0x28] sm:$0x33]  ;;  %v848_v58 = vor.u32 %v947_v45, %v847_v41  ;;  %v931_v36 = vld [vmem:[#allocation2 + $0xc] sm:$0xf0]  ;;  %v956_v41 = vld [vmem:[#allocation2 + $0xd4] sm:$0xf0] }
  0xea   :  { %293 = vst [vmem:[#allocation2 + $0xc0] sm:$0x33] %v292_v47 }
  0xec   :  { %v310_v48 = vpop.permute.xlu0 %309  ;;  %v227_v49 = vpop.permute.xlu1 %226 }
  0xed   :  { %v313_v53 = vrot.slane %v310_v48, 4  ;;  %v1191_v0 = vpop.permute.xlu2 %366  ;;  %v229_v1 = vrot.slane %v227_v49, 4  ;;  %v849_v49 = vld [vmem:[#allocation2 + $0x90] sm:$0xf0] }
  0xf1   :  { %v879_v25 = vld [vmem:[#allocation2 + $0xc0] sm:$0xf]  ;;  %v953_v26 = vld [vmem:[#allocation2 + $0xc4] sm:$0xf] }
  0xf2   :  { %v880_v31 = vor.u32 %v955_v22, %v879_v25  ;;  %v884_v32 = vor.u32 %v953_v26, %v881_v23  ;;  %v933_v22 = vld [vmem:[#allocation2 + $0x24] sm:$0xf]  ;;  %v378_v23 = vld [vmem:[%s1262_s1] sm:$0xff]  ;;  %v963_v25 = vld [vmem:[#allocation2 + $0x10c] sm:$0xf0] }
  0xf3   :  { %v801_v26 = vld [vmem:[#allocation2 + $0x30] sm:$0xf0] }
  0xf4   :  { %v312_v51 = vpop.permute.xlu0 %311  ;;  %v331_v52 = vpop.permute.xlu1 %330 }
  0xf5   :  { %v314_v54 = vrot.slane %v312_v51, 4  ;;  %v1199_v18 = vpop.permute.xlu2 %145  ;;  %v333_v24 = vrot.slane %v331_v52, 4  ;;  %v116_v51 = vsel %vm1125_vm8, %v1037_v10, %v115_v46  ;;  %v784_v46 = vor.u32 %v931_v36, %v783_v35  ;;  %v825_v35 = vld [vmem:[#allocation2 + $0x58] sm:$0xf0] }
  0xf6   :  { %117 = vst [vmem:[#allocation2 + $0x28] sm:$0x33] %v116_v51  ;;  %v913_v51 = vld [vmem:[#allocation2 + $0x110] sm:$0xf0] }
  0xf7   :  { %v315_v60 = vsel %vm82_vm6, %v313_v53, %v314_v54 }
  0xf8   :  { %v316_v62 = vsel %vm132_vm7, %v310_v48, %v315_v60  ;;  %v945_v48 = vld [vmem:[#allocation2 + $0x84] sm:$0xf]  ;;  %v943_v60 = vld [vmem:[#allocation2 + $0x6c] sm:$0xf0] }
  0xf9   :  { %v319_v63 = vsel %vm1125_vm8, %v316_v62, %v318_v57  ;;  %v356_v57 = vld [vmem:[#allocation2 + $0x100] sm:$0x33]  ;;  %v852_v59 = vor.u32 %v945_v48, %v849_v49 }
  0xfa   :  { %320 = vst [vmem:[#allocation2 + $0xe0] sm:$0x33] %v319_v63  ;;  %v831_v63 = vld [vmem:[#allocation2 + $0x60] sm:$0xf] }
  0xfc   :  { %v225_v2 = vpop.permute.xlu0 %224  ;;  %v185_v4 = vpop.permute.xlu1 %184 }
  0xfd   :  { %v228_v5 = vrot.slane %v225_v2, 4  ;;  %v188_v6 = vrot.slane %v185_v4, 4  ;;  %v79_v42 = vpop.permute.xlu2 %78  ;;  %v934_v36 = vld [vmem:[#allocation2 + $0x2c] sm:$0xf] }
  0xfe   :  { %v81_v50 = vrot.slane %v79_v42, 4  ;;  %v804_v42 = vor.u32 %v933_v22, %v801_v26 }
  0xff   :  { %v230_v39 = vsel %vm82_vm6, %v228_v5, %v229_v1  ;;  %v190_v12 = vsel %vm82_vm6, %v188_v6, %v189_v3  ;;  %v941_v1 = vld [vmem:[#allocation2 + $0x64] sm:$0xf]  ;;  %v833_v3 = vld [vmem:[#allocation2 + $0x70] sm:$0xf0]  ;;  %v815_v6 = vld [vmem:[#allocation2 + $0x40] sm:$0xf] }
 0x100   :  { %v231_v13 = vsel %vm171_vm12, %v225_v2, %v230_v39  ;;  %v192_v14 = vsel %vm191_vm13, %v185_v4, %v190_v12  ;;  %v836_v39 = vor.u32 %v941_v1, %v833_v3  ;;  %v370_v12 = vrot.slane %v1191_v0, 4 }
 0x101   :  { %v234_v15 = vsel %vm1125_vm8, %v231_v13, %v233_v7  ;;  %v895_v16 = vld [vmem:[#allocation2 + $0xe0] sm:$0xf]  ;;  %v957_v17 = vld [vmem:[#allocation2 + $0xe4] sm:$0xf]  ;;  %v195_v19 = vsel %vm1125_vm8, %v192_v14, %v194_v8  ;;  %v832_v8 = vor.u32 %v943_v60, %v831_v63  ;;  %v817_v13 = vld [vmem:[#allocation2 + $0x50] sm:$0xf0] }
 0x102   :  { %235 = vst [vmem:[#allocation2 + $0x88] sm:$0x33] %v234_v15  ;;  %v896_v20 = vor.u32 %v959_v9, %v895_v16  ;;  %v900_v21 = vor.u32 %v957_v17, %v897_v11  ;;  %v939_v9 = vld [vmem:[#allocation2 + $0x4c] sm:$0xf0]  ;;  %v937_v11 = vld [vmem:[#allocation2 + $0x44] sm:$0xf] }
 0x103   :  { %196 = vst [vmem:[#allocation2 + $0x68] sm:$0x33] %v195_v19  ;;  %v799_v16 = vld [vmem:[#allocation2 + $0x20] sm:$0xf]  ;;  %v935_v17 = vld [vmem:[#allocation2 + $0x2c] sm:$0xf0] }
 0x104   :  { %605 = vmatpush.bf16.msra.mxu0 %v896_v20  ;;  %631 = vmatpush.bf16.msra.mxu2 %v900_v21  ;;  %v329_v27 = vpop.permute.xlu0 %328  ;;  %v350_v28 = vpop.permute.xlu1 %349  ;;  %v375_v19 = vld [vmem:[#allocation2 + $0x108] sm:$0x33]  ;;  %v816_v20 = vor.u32 %v939_v9, %v815_v6  ;;  %v820_v21 = vor.u32 %v937_v11, %v817_v13  ;;  %v800_v37 = vor.u32 %v935_v17, %v799_v16  ;;  %v905_v63 = vld [vmem:[#allocation2 + $0xf8] sm:$0xf0]  ;;  %v944_v13 = vld [vmem:[#allocation2 + $0x74] sm:$0xf0] }
 0x105   :  { %v332_v29 = vrot.slane %v329_v27, 4  ;;  %v352_v47 = vrot.slane %v350_v28, 4  ;;  %v417_v28 = vunpack.c.h.b16 %v378_v23  ;;  %v954_v6 = vld [vmem:[#allocation2 + $0xcc] sm:$0xf]  ;;  %v940_v17 = vld [vmem:[#allocation2 + $0x54] sm:$0xf0] }
 0x107   :  { %v334_v34 = vsel %vm82_vm6, %v332_v29, %v333_v24 }
 0x108   :  { %v335_v38 = vsel %vm104_vm9, %v329_v27, %v334_v34  ;;  %606 = vmatpush.bf16.msra.mxu0 %v880_v31  ;;  %632 = vmatpush.bf16.msra.mxu2 %v884_v32  ;;  %v960_v27 = vld [vmem:[#allocation2 + $0xf4] sm:$0xf0]  ;;  %v929_v31 = vld [vmem:[#allocation2 + $0x4] sm:$0xf]  ;;  %v785_v32 = vld [vmem:[#allocation2 + $0x10] sm:$0xf0] }
 0x109   :  { %v338_v40 = vsel %vm1125_vm8, %v335_v38, %v337_v30  ;;  %v788_v48 = vor.u32 %v929_v31, %v785_v32  ;;  %v946_v22 = vld [vmem:[#allocation2 + $0x8c] sm:$0xf]  ;;  %v932_v31 = vld [vmem:[#allocation2 + $0x14] sm:$0xf0] }
 0x10a   :  { %339 = vst [vmem:[#allocation2 + $0xe8] sm:$0x33] %v338_v40  ;;  %v887_v40 = vld [vmem:[#allocation2 + $0xc8] sm:$0xf] }
 0x10c   :  { %607 = vmatpush.bf16.msra.mxu0 %v864_v43  ;;  %633 = vmatpush.bf16.msra.mxu2 %v868_v44  ;;  %v348_v52 = vpop.permute.xlu0 %347  ;;  %v77_v53 = vpop.permute.xlu1 %76  ;;  %v1228_v44 = vpack.c.b16 %v417_v28, %v417_v28  ;;  %v942_v28 = vld [vmem:[#allocation2 + $0x6c] sm:$0xf] }
 0x10d   :  { %v351_v54 = vrot.slane %v348_v52, 4  ;;  %v80_v55 = vrot.slane %v77_v53, 4 }
 0x10f   :  { %v353_v62 = vsel %vm82_vm6, %v351_v54, %v352_v47  ;;  %v83_v10 = vsel %vm82_vm6, %v80_v55, %v81_v50  ;;  %v416_v47 = vunpack.c.l.b16 %v378_v23  ;;  %v964_v55 = vld [vmem:[#allocation2 + $0x114] sm:$0xf0]  ;;  %v857_v23 = vld [vmem:[#allocation2 + $0x98] sm:$0xf0] }
 0x110   :  { %v354_v2 = vsel %vm84_vm14, %v348_v52, %v353_v62  ;;  %608 = vmatpush.bf16.msra.mxu0 %v848_v58  ;;  %634 = vmatpush.bf16.msra.mxu2 %v852_v59  ;;  %v85_v4 = vsel %vm84_vm14, %v77_v53, %v83_v10  ;;  %v888_v52 = vor.u32 %v956_v41, %v887_v40  ;;  %v154_v53 = vld [vmem:[#allocation2 + $0x48] sm:$0x33]  ;;  %v952_v62 = vld [vmem:[#allocation2 + $0xb4] sm:$0xf0] }
 0x111   :  { %v357_v5 = vsel %vm1125_vm8, %v354_v2, %v356_v57  ;;  %v88_v7 = vsel %vm1125_vm8, %v85_v4, %v87_v61  ;;  %v903_v30 = vld [vmem:[#allocation2 + $0xe8] sm:$0xf]  ;;  %v921_v57 = vld [vmem:[#allocation2 + $0x118] sm:$0xf0]  ;;  %v1235_v60 = vpack.c.b16 %v416_v47, %v416_v47  ;;  %v958_v2 = vld [vmem:[#allocation2 + $0xec] sm:$0xf]  ;;  %v860_v26 = vor.u32 %v946_v22, %v857_v23 }
 0x112   :  { %358 = vst [vmem:[#allocation2 + $0x100] sm:$0x33] %v357_v5  ;;  %v904_v43 = vor.u32 %v960_v27, %v903_v30  ;;  %v871_v61 = vld [vmem:[#allocation2 + $0xa8] sm:$0xf] }
 0x113   :  { %89 = vst [vmem:[#allocation2 + $0x8] sm:$0x33] %v88_v7  ;;  %v889_v7 = vld [vmem:[#allocation2 + $0xd8] sm:$0xf0] }
 0x114   :  { %609 = vmatpush.bf16.msra.mxu0 %v832_v8  ;;  %635 = vmatpush.bf16.msra.mxu2 %v836_v39  ;;  %v369_v14 = vpop.permute.xlu0 %368  ;;  %v908_v8 = vor.u32 %v958_v2, %v905_v63  ;;  %v855_v39 = vld [vmem:[#allocation2 + $0x88] sm:$0xf]  ;;  %v892_v9 = vor.u32 %v954_v6, %v889_v7 }
 0x115   :  { %v371_v15 = vrot.slane %v369_v14, 4  ;;  %v856_v11 = vor.u32 %v948_v56, %v855_v39  ;;  %v950_v14 = vld [vmem:[#allocation2 + $0xac] sm:$0xf]  ;;  %v988_v39 = vmov 512.0  }
 0x116   :  { %976 = vrcp.f32 %v988_v39 }
 0x117   :  { %v372_v24 = vsel %vm82_vm6, %v370_v12, %v371_v15  ;;  %v839_v12 = vld [vmem:[#allocation2 + $0x68] sm:$0xf]  ;;  %v873_v15 = vld [vmem:[#allocation2 + $0xb8] sm:$0xf0] }
 0x118   :  { %v373_v29 = vsel %vm132_vm7, %v1191_v0, %v372_v24  ;;  %610 = vmatpush.bf16.msra.mxu0 %v816_v20  ;;  %636 = vmatpush.bf16.msra.mxu2 %v820_v21  ;;  %v149_v0 = vrot.slane %v1199_v18, 4  ;;  %v876_v20 = vor.u32 %v950_v14, %v873_v15  ;;  %v807_v24 = vld [vmem:[#allocation2 + $0x28] sm:$0xf] }
 0x119   :  { %v376_v33 = vsel %vm1125_vm8, %v373_v29, %v375_v19  ;;  %v911_v34 = vld [vmem:[#allocation2 + $0x100] sm:$0xf]  ;;  %v961_v50 = vld [vmem:[#allocation2 + $0x104] sm:$0xf]  ;;  %v840_v19 = vor.u32 %v944_v13, %v839_v12  ;;  %v841_v29 = vld [vmem:[#allocation2 + $0x78] sm:$0xf0] }
 0x11a   :  { %377 = vst [vmem:[#allocation2 + $0x108] sm:$0x33] %v376_v33  ;;  %v912_v38 = vor.u32 %v963_v25, %v911_v34  ;;  %v916_v59 = vor.u32 %v961_v50, %v913_v51  ;;  %v936_v25 = vld [vmem:[#allocation2 + $0x34] sm:$0xf0]  ;;  %v791_v30 = vld [vmem:[#allocation2 + $0x8] sm:$0xf]  ;;  %v844_v32 = vor.u32 %v942_v28, %v841_v29 }
 0x11b   :  { %v808_v27 = vor.u32 %v936_v25, %v807_v24  ;;  %v792_v33 = vor.u32 %v932_v31, %v791_v30  ;;  %v930_v41 = vld [vmem:[#allocation2 + $0xc] sm:$0xf]  ;;  %v735_v29 = vld [vmem:[%s1263_s2] sm:$0xff] }
 0x11c   :  { %611 = vmatpush.bf16.msra.mxu0 %v800_v37  ;;  %625 = vmatpush.bf16.msra.mxu1 %v912_v38  ;;  %v148_v45 = vpop.permute.xlu0 %147  ;;  %v809_v37 = vld [vmem:[#allocation2 + $0x38] sm:$0xf0]  ;;  %v977_v56 = vpop.eup %976 }
 0x11d   :  { %637 = vmatpush.bf16.msra.mxu2 %v804_v42  ;;  %v150_v49 = vrot.slane %v148_v45, 4  ;;  %v812_v40 = vor.u32 %v934_v36, %v809_v37  ;;  %v793_v42 = vld [vmem:[#allocation2 + $0x18] sm:$0xf0]  ;;  %vm719_vm15 = vweird.f32 %v977_v56 }
 0x11f   :  { %v151_v54 = vsel %vm82_vm6, %v149_v0, %v150_v49  ;;  %925 = vmatmul.msk.bf16.vlgmr.msra.gmra.mxu1 %vm191_vm13, %v1228_v44 }
 0x120   :  { %657 = vmatpush.bf16.msrb.mxu1 %v904_v43  ;;  %v152_v58 = vsel %vm104_vm9, %v1199_v18, %v151_v54  ;;  %612 = vmatpush.bf16.msra.mxu0 %v784_v46  ;;  %v872_v18 = vor.u32 %v952_v62, %v871_v61  ;;  %v796_v43 = vor.u32 %v930_v41, %v793_v42 }
 0x121   :  { %638 = vmatpush.bf16.msra.mxu2 %v788_v48  ;;  %v155_v1 = vsel %vm1125_vm8, %v152_v58, %v154_v53  ;;  %v919_v3 = vld [vmem:[#allocation2 + $0x108] sm:$0xf]  ;;  %v962_v10 = vld [vmem:[#allocation2 + $0x10c] sm:$0xf] }
 0x122   :  { %156 = vst [vmem:[#allocation2 + $0x48] sm:$0x33] %v155_v1  ;;  %v920_v4 = vor.u32 %v964_v55, %v919_v3  ;;  %v924_v5 = vor.u32 %v962_v10, %v921_v57 }
 0x123   :  { %613 = vmatmul.bf16.vlgmr.msra.gmra.mxu0 %v1235_v60 }
 0x124   :  { %658 = vmatpush.bf16.msrb.mxu1 %v888_v52  ;;  %639 = vmatmul.bf16.vlgmr.msra.gmra.mxu2 %v1235_v60 }
 0x125   :  { %651 = vmatpush.bf16.msrb.mxu2 %v916_v59  ;;  %677 = vmatpush.bf16.msra.mxu3 %v920_v4 }
 0x126   :  { %703 = vmatpush.bf16.msrb.mxu0 %v924_v5 }
 0x128   :  { %659 = vmatpush.bf16.msrb.mxu1 %v872_v18  ;;  %927 = vmatmul.msk.bf16.vlgmr.msra.gmra.mxu3 %vm191_vm13, %v1228_v44 }
 0x129   :  { %683 = vmatpush.bf16.msrb.mxu3 %v908_v8  ;;  %v823_v16 = vld [vmem:[#allocation2 + $0x48] sm:$0xf]  ;;  %v938_v34 = vld [vmem:[#allocation2 + $0x4c] sm:$0xf] }
 0x12a   :  { %v824_v21 = vor.u32 %v940_v17, %v823_v16  ;;  %v828_v38 = vor.u32 %v938_v34, %v825_v35  ;;  %v757_v34 = vld [vmem:[%s1264_s3] sm:$0xff] }
 0x12c   :  { %660 = vmatpush.bf16.msrb.mxu1 %v856_v11 }
 0x12d   :  { %684 = vmatpush.bf16.msrb.mxu3 %v892_v9  ;;  %v715_v9 = vmul.f32 512.0, %v977_v56 }
 0x12f   :  { %v716_v11 = vsub.f32 1.0, %v715_v9 }
 0x130   :  { %661 = vmatpush.bf16.msrb.mxu1 %v840_v19 }
 0x131   :  { %685 = vmatpush.bf16.msrb.mxu3 %v876_v20  ;;  %v717_v12 = vmul.f32 %v977_v56, %v716_v11 }
 0x133   :  { %928 = vmatmul.msk.bf16.vlgmr.msrb.gmra.mxu0 %vm191_vm13, %v1228_v44  ;;  %v718_v13 = vadd.f32 %v977_v56, %v717_v12 }
 0x134   :  { %662 = vmatpush.bf16.msrb.mxu1 %v824_v21  ;;  %926 = vmatmul.msk.bf16.vlgmr.msrb.gmra.mxu2 %vm191_vm13, %v1228_v44 }
 0x135   :  { %686 = vmatpush.bf16.msrb.mxu3 %v860_v26  ;;  %v720_v14 = vsel %vm719_vm15, %v977_v56, %v718_v13 }
 0x138   :  { %663 = vmatpush.bf16.msrb.mxu1 %v808_v27 }
 0x139   :  { %687 = vmatpush.bf16.msrb.mxu3 %v844_v32 }
 0x13c   :  { %664 = vmatpush.bf16.msrb.mxu1 %v792_v33 }
 0x13d   :  { %688 = vmatpush.bf16.msrb.mxu3 %v828_v38 }
 0x13f   :  { %665 = vmatmul.bf16.vlgmr.msrb.gmra.mxu1 %v1235_v60 }
 0x141   :  { %689 = vmatpush.bf16.msrb.mxu3 %v812_v40 }
 0x145   :  { %690 = vmatpush.bf16.msrb.mxu3 %v796_v43 }
 0x148   :  { %691 = vmatmul.bf16.vlgmr.msrb.gmra.mxu3 %v1235_v60 }
 0x19c   :  { %v627_v0 = vpop.f32.mrf.mxu1 }
 0x1a0   :  { %v614_v44 = vpop.f32.mrf.mxu0 }
 0x1a1   :  { %v628_v55 = vadd.f32 %v627_v0, %v614_v44 }
 0x1a3   :  { %v722_v61 = vmul.f32 %v628_v55, %v628_v55 }
 0x1a4   :  { %v629_v45 = vpop.f32.mrf.mxu1 }
 0x1a7   :  { %v640_v46 = vpop.f32.mrf.mxu2 }
 0x1a8   :  { %v616_v47 = vpop.f32.mrf.mxu0 }
 0x1ab   :  { %v679_v48 = vpop.f32.mrf.mxu3 }
 0x1af   :  { %v642_v49 = vpop.f32.mrf.mxu2 }
 0x1b0   :  { %v705_v50 = vpop.f32.mrf.mxu0 }
 0x1b3   :  { %v681_v51 = vpop.f32.mrf.mxu3 }
 0x1b7   :  { %v653_v52 = vpop.f32.mrf.mxu2 }
 0x1b8   :  { %v707_v53 = vpop.f32.mrf.mxu0  ;;  %v654_v57 = vadd.f32 %v653_v52, %v640_v46 }
 0x1ba   :  { %v723_v62 = vmul.f32 %v654_v57, %v654_v57  ;;  %v709_v60 = vadd.f32 %v654_v57, %v628_v55 }
 0x1bc   :  { %v666_v54 = vpop.f32.mrf.mxu1  ;;  %v726_v3 = vadd.f32 %v723_v62, %v722_v61 }
 0x1bd   :  { %v680_v63 = vadd.f32 %v679_v48, %v666_v54 }
 0x1bf   :  { %v655_v58 = vpop.f32.mrf.mxu2  ;;  %v724_v1 = vmul.f32 %v680_v63, %v680_v63  ;;  %v710_v4 = vadd.f32 %v709_v60, %v680_v63 }
 0x1c1   :  { %v727_v6 = vadd.f32 %v726_v3, %v724_v1 }
 0x1c4   :  { %v668_v59 = vpop.f32.mrf.mxu1 }
 0x1cb   :  { %v692_v10 = vpop.f32.mrf.mxu3 }
 0x1cc   :  { %v706_v2 = vadd.f32 %v705_v50, %v692_v10 }
 0x1ce   :  { %v711_v5 = vadd.f32 %v710_v4, %v706_v2  ;;  %v725_v18 = vmul.f32 %v706_v2, %v706_v2 }
 0x1d0   :  { %712 = vadd.xlane.f32.xlu0 %v711_v5  ;;  %v728_v7 = vadd.f32 %v727_v6, %v725_v18 }
 0x1d2   :  { %729 = vadd.xlane.f32.xlu1 %v728_v7 }
 0x1d3   :  { %v694_v8 = vpop.f32.mrf.mxu3 }
 0x243   :  { %v713_v15 = vpop.xlane.xlu0 %712 }
 0x244   :  { %v721_v16 = vmul.f32 %v720_v14, %v713_v15 }
 0x245   :  { %v730_v17 = vpop.xlane.xlu1 %729 }
 0x246   :  { %v732_v19 = vmul.f32 %v721_v16, %v721_v16  ;;  %v731_v20 = vmul.f32 %v730_v17, %v720_v14 }
 0x248   :  { %v733_v21 = vsub.f32 %v731_v20, %v732_v19 }
 0x24a   :  { %v734_v22 = vmax.f32 %v733_v21, 0.0 }
 0x24c   :  { %v736_v23 = vadd.f32 1e-05, %v734_v22 }
 0x24e   :  { %978 = vrsqrt.f32 %v736_v23  ;;  %vm743_vm1 = vweird.f32 %v736_v23 }
 0x254   :  { %v979_v24 = vpop.eup %978 }
 0x255   :  { %v738_v25 = vmul.f32 %v979_v24, %v736_v23  ;;  %vm744_vm0 = vweird.f32 %v979_v24 }
 0x256   :  { %vm745_vm2 = vmor %vm743_vm1, %vm744_vm0 }
 0x257   :  { %v739_v26 = vmul.f32 %v979_v24, %v738_v25 }
 0x259   :  { %v740_v27 = vmul.f32 0.5, %v739_v26 }
 0x25b   :  { %v741_v28 = vsub.f32 1.5, %v740_v27 }
 0x25d   :  { %v742_v30 = vmul.f32 %v979_v24, %v741_v28 }
 0x25f   :  { %v746_v31 = vsel %vm745_vm2, %v979_v24, %v742_v30 }
 0x260   :  { %v747_v32 = vmul.f32 %v746_v31, %v735_v29 }
 0x262   :  { %750 = vperm.xlu2 %974, %v747_v32   ;;  %v758_v33 = vmul.f32 %v747_v32, %v721_v16 }
 0x264   :  { %v759_v35 = vsub.f32 %v757_v34, %v758_v33 }
 0x26a   :  { %762 = vperm.xlu2 %974, %v759_v35  }
 0x2bc   :  { %v751_v36 = vpop.permute.xlu2 %750 }
 0x2bd   :  { %v753_v37 = vmul.f32 %v751_v36, %v628_v55  ;;  %v754_v38 = vmul.f32 %v751_v36, %v654_v57  ;;  %v755_v40 = vmul.f32 %v751_v36, %v680_v63  ;;  %v756_v41 = vmul.f32 %v751_v36, %v706_v2 }
 0x2c4   :  { %v763_v42 = vpop.permute.xlu2 %762 }
 0x2c5   :  { %v765_v43 = vadd.f32 %v763_v42, %v753_v37  ;;  %v766_v0 = vadd.f32 %v763_v42, %v754_v38  ;;  %v767_v44 = vadd.f32 %v763_v42, %v755_v40  ;;  %v768_v45 = vadd.f32 %v763_v42, %v756_v41 }
 0x2c7   :  { %v769_v46 = vmax.f32 %v765_v43, 0.0  ;;  %v770_v47 = vmax.f32 %v766_v0, 0.0  ;;  %v771_v48 = vmax.f32 %v767_v44, 0.0  ;;  %v772_v49 = vmax.f32 %v768_v45, 0.0 }
 0x2c9   :  { %v773_v50 = vpack.c.bf16 %v770_v47, %v769_v46  ;;  %v774_v51 = vpack.c.bf16 %v772_v49, %v771_v48 }
 0x2cb   :  { %775 = vst [vmem:[%s1265_s4] sm:$0xff] %v773_v50 }
 0x2cc   :  { %776 = vst [vmem:[%s1265_s4 + $0x8] sm:$0xff] %v774_v51 }

// kernel: _lambda_.11
= control target key start
LH: loop header
LB: loop body
LE: loop exit
PB: predicated region body
PF: predicated region fallthrough
CT: control target
= control target key end

     0   :  { %s450_s19 = smov 104   ;;  %s451_s20 = smov 120   ;;  %v458_v14 = vmov 0   ;;  %vm107_vm0 = vcmask 195584   ;;  %vm37_vm1 = vcmask 519168   ;;  %vm40_vm2 = vcmask 1043968   ;;  %s590_s0 = inlined_call_operand.vmem [shape: bf16[8,1152], index: 0, kind: input, shape index: {}]   ;;  %s591_s1 = inlined_call_operand.vmem [shape: bf16[16,144], index: 1, kind: input, shape index: {}]   ;;  %s592_s2 = inlined_call_operand.vmem [shape: f32[16,1], index: 2, kind: input, shape index: {}]   ;;  %s593_s3 = inlined_call_operand.vmem [shape: f32[16,1], index: 3, kind: input, shape index: {}]   ;;  %s594_s4 = inlined_call_operand.vmem [shape: bf16[16,128], index: 4, kind: output, shape index: {}]  }
   0x1   :  { %v138_v0 = vld [vmem:[%s590_s0 + $0x14] sm:$0xff]  ;;  %v102_v2 = vld [vmem:[%s590_s0 + $0x8] sm:$0xff]  ;;  %s452_s23 = smov 24   ;;  %v132_v3 = vld [vmem:[%s590_s0 + $0x4] sm:$0xf]  ;;  %s453_s8 = smov 80   ;;  %441 = vset.pattern.permute.xlu1 %v458_v14  ;;  %443 = vset.pattern.permute.xlu0 %v458_v14 }
   0x2   :  { %v123_v1 = vld [vmem:[%s590_s0 + $0x10] sm:$0xff]  ;;  %140 = vrot.lane.b32.xlu0 %v138_v0, %s450_s19  ;;  %104 = vrot.lane.b32.xlu2 %v102_v2, %s452_s23  ;;  %v117_v4 = vld [vmem:[%s590_s0] sm:$0xf]  ;;  %s454_s11 = smov 96   ;;  %s455_s16 = smov 56   ;;  %vm143_vm3 = vcmask 850944  }
   0x3   :  { %125 = vrot.lane.b32.xlu1 %v123_v1, %s451_s20  ;;  %v111_v5 = vld [vmem:[%s590_s0 + $0x1c] sm:$0xf]  ;;  %v87_v7 = vld [vmem:[%s590_s0 + $0xc] sm:$0xf]  ;;  %v72_v9 = vld [vmem:[%s590_s0 + $0x8] sm:$0xf]  ;;  %442 = vset.pattern.permute.xlu2 %v458_v14 }
   0x4   :  { %v93_v6 = vld [vmem:[%s590_s0 + $0x1c] sm:$0xff]  ;;  %v66_v11 = vld [vmem:[%s590_s0 + $0x14] sm:$0xf]  ;;  %v42_v12 = vld [vmem:[%s590_s0 + $0x4] sm:$0xf]  ;;  %s456_s21 = smov 112  }
   0x5   :  { %v78_v8 = vld [vmem:[%s590_s0 + $0x18] sm:$0xff]  ;;  %v57_v10 = vld [vmem:[%s590_s0] sm:$0xff]  ;;  %s457_s22 = smov 48   ;;  %v156_v13 = vld [vmem:[%s590_s0 + $0x14] sm:$0xf]  ;;  %vm128_vm4 = vcmask 982016  }
   0x6   :  { %32 = vst [vmem:[#allocation2 + $0x38] sm:$0xf] %v458_v14  ;;  %v36_v28 = vld [vmem:[%s590_s0] sm:$0xf]  ;;  %vm152_vm5 = vcmask 392192   ;;  %vm98_vm6 = vcmask 654336  }
   0x7   :  { %18 = vst [vmem:[#allocation2] sm:$0xf] %v458_v14  ;;  %v39_v31 = vld [vmem:[%s590_s0 + $0x10] sm:$0xf]  ;;  %vm83_vm7 = vcmask 785408   ;;  %vm62_vm8 = vcmask 457728  }
   0x8   :  { %19 = vst [vmem:[#allocation2 + $0x4] sm:$0xf] %v458_v14  ;;  %vm53_vm9 = vcmask 916480   ;;  %v372_v57 = vld [vmem:[%s591_s1] sm:$0xf]  ;;  %vm245_vm10 = vcmask 130048  }
   0x9   :  { %20 = vst [vmem:[#allocation2 + $0x8] sm:$0xf] %v458_v14  ;;  %v416_v58 = vld [vmem:[%s591_s1 + $0x4] sm:$0xf0]  ;;  %v415_v59 = vld [vmem:[%s591_s1 + $0x4] sm:$0xf] }
   0xa   :  { %134 = vrot.lane.b32.xlu0 %v132_v3, %s450_s19  ;;  %113 = vrot.lane.b32.xlu2 %v111_v5, %s452_s23  ;;  %21 = vst [vmem:[#allocation2 + $0xc] sm:$0xf] %v458_v14  ;;  %v374_v60 = vld [vmem:[%s591_s1 + $0x8] sm:$0xf0]  ;;  %v373_v62 = vor.u32 %v416_v58, %v372_v57 }
   0xb   :  { %119 = vrot.lane.b32.xlu1 %v117_v4, %s451_s20  ;;  %22 = vst [vmem:[#allocation2 + $0x10] sm:$0xf] %v458_v14  ;;  %v377_v63 = vor.u32 %v415_v59, %v374_v60 }
   0xc   :  { %23 = vst [vmem:[#allocation2 + $0x14] sm:$0xf] %v458_v14 }
   0xd   :  { %24 = vst [vmem:[#allocation2 + $0x18] sm:$0xf] %v458_v14 }
   0xe   :  { %25 = vst [vmem:[#allocation2 + $0x1c] sm:$0xf] %v458_v14 }
   0xf   :  { %26 = vst [vmem:[#allocation2 + $0x20] sm:$0xf] %v458_v14 }
  0x10   :  { %27 = vst [vmem:[#allocation2 + $0x24] sm:$0xf] %v458_v14 }
  0x11   :  { %28 = vst [vmem:[#allocation2 + $0x28] sm:$0xf] %v458_v14 }
  0x12   :  { %95 = vrot.lane.b32.xlu0 %v93_v6, %s453_s8  ;;  %80 = vrot.lane.b32.xlu2 %v78_v8, %s454_s11  ;;  %29 = vst [vmem:[#allocation2 + $0x2c] sm:$0xf] %v458_v14  ;;  %v459_v8 = vmov 128.0  }
  0x13   :  { %89 = vrot.lane.b32.xlu1 %v87_v7, %s453_s8  ;;  %30 = vst [vmem:[#allocation2 + $0x30] sm:$0xf] %v458_v14  ;;  %444 = vrcp.f32 %v459_v8 }
  0x14   :  { %31 = vst [vmem:[#allocation2 + $0x34] sm:$0xf] %v458_v14 }
  0x15   :  { %33 = vst [vmem:[#allocation2 + $0x3c] sm:$0xf] %v458_v14 }
  0x16   :  { %34 = vst [vmem:[#allocation2 + $0x40] sm:$0xf] %v458_v14 }
  0x17   :  { %35 = vst [vmem:[#allocation2 + $0x44] sm:$0xf] %v458_v14 }
  0x18   :  { %38 = vst.msk [vmem:[#allocation2] sm:$0xf] %vm37_vm1, %v36_v28 }
  0x19   :  { %41 = vst.msk [vmem:[#allocation2] sm:$0xf] %vm40_vm2, %v39_v31 }
  0x1a   :  { %74 = vrot.lane.b32.xlu0 %v72_v9, %s454_s11  ;;  %68 = vrot.lane.b32.xlu2 %v66_v11, %s455_s16  ;;  %v445_v9 = vpop.eup %444 }
  0x1b   :  { %59 = vrot.lane.b32.xlu1 %v57_v10, %s455_s16  ;;  %vm286_vm11 = vweird.f32 %v445_v9 }
  0x20   :  { %v417_v56 = vld [vmem:[#allocation2] sm:$0xff] }
  0x22   :  { %50 = vrot.lane.b32.xlu0 %v138_v0, %s456_s21  ;;  %149 = vrot.lane.b32.xlu2 %v57_v10, %s457_s22  ;;  %v282_v10 = vmul.f32 128.0, %v445_v9 }
  0x23   :  { %44 = vrot.lane.b32.xlu1 %v42_v12, %s456_s21 }
  0x24   :  { %v283_v11 = vsub.f32 1.0, %v282_v10 }
  0x26   :  { %v284_v12 = vmul.f32 %v445_v9, %v283_v11 }
  0x2a   :  { %158 = vrot.lane.b32.xlu0 %v156_v13, %s457_s22  ;;  %v285_v13 = vadd.f32 %v445_v9, %v284_v12 }
  0x2c   :  { %v287_v14 = vsel %vm286_vm11, %v445_v9, %v285_v13 }
  0x5c   :  { %v105_v15 = vpop.permute.xlu2 %104 }
  0x5d   :  { %v106_v16 = vrot.slane %v105_v15, 4 }
  0x5f   :  { %v108_v17 = vsel %vm107_vm0, %v105_v15, %v106_v16 }
  0x60   :  { %110 = vst.msk [vmem:[#allocation2 + $0x28] sm:$0xf] %vm37_vm1, %v108_v17 }
  0x64   :  { %v114_v18 = vpop.permute.xlu2 %113 }
  0x65   :  { %116 = vst.msk [vmem:[#allocation2 + $0x28] sm:$0xf] %vm40_vm2, %v114_v18 }
  0x6c   :  { %v81_v19 = vpop.permute.xlu2 %80  ;;  %v422_v45 = vld [vmem:[#allocation2 + $0x28] sm:$0xff] }
  0x6d   :  { %v82_v39 = vrot.slane %v81_v19, 4 }
  0x6f   :  { %v84_v43 = vsel %vm83_vm7, %v81_v19, %v82_v39 }
  0x74   :  { %v141_v20 = vpop.permute.xlu0 %140  ;;  %v69_v22 = vpop.permute.xlu2 %68 }
  0x75   :  { %v126_v21 = vpop.permute.xlu1 %125  ;;  %v142_v23 = vrot.slane %v141_v20, 4 }
  0x76   :  { %v127_v24 = vrot.slane %v126_v21, 4 }
  0x77   :  { %v144_v27 = vsel %vm143_vm3, %v141_v20, %v142_v23 }
  0x78   :  { %v129_v29 = vsel %vm128_vm4, %v126_v21, %v127_v24 }
  0x7c   :  { %v135_v25 = vpop.permute.xlu0 %134  ;;  %v150_v30 = vpop.permute.xlu2 %149 }
  0x7d   :  { %v120_v26 = vpop.permute.xlu1 %119  ;;  %137 = vst.msk [vmem:[#allocation2 + $0x38] sm:$0xf] %vm37_vm1, %v135_v25  ;;  %v151_v32 = vrot.slane %v150_v30, 4 }
  0x7e   :  { %146 = vst.msk [vmem:[#allocation2 + $0x38] sm:$0xf] %vm40_vm2, %v144_v27 }
  0x7f   :  { %122 = vst.msk [vmem:[#allocation2 + $0x30] sm:$0xf] %vm37_vm1, %v120_v26  ;;  %v153_v33 = vsel %vm152_vm5, %v150_v30, %v151_v32 }
  0x80   :  { %131 = vst.msk [vmem:[#allocation2 + $0x30] sm:$0xf] %vm40_vm2, %v129_v29 }
  0x81   :  { %155 = vst.msk [vmem:[#allocation2 + $0x40] sm:$0xf] %vm37_vm1, %v153_v33 }
  0x84   :  { %v96_v34 = vpop.permute.xlu0 %95 }
  0x85   :  { %v90_v35 = vpop.permute.xlu1 %89  ;;  %v97_v36 = vrot.slane %v96_v34, 4  ;;  %v424_v37 = vld [vmem:[#allocation2 + $0x38] sm:$0xff] }
  0x86   :  { %92 = vst.msk [vmem:[#allocation2 + $0x20] sm:$0xf] %vm37_vm1, %v90_v35  ;;  %249 = vmatpush.bf16.msra.mxu0 %v424_v37 }
  0x87   :  { %v99_v38 = vsel %vm98_vm6, %v96_v34, %v97_v36  ;;  %v423_v40 = vld [vmem:[#allocation2 + $0x30] sm:$0xff]  ;;  %v304_v36 = vld [vmem:[%s592_s2] sm:$0xff] }
  0x88   :  { %101 = vst.msk [vmem:[#allocation2 + $0x20] sm:$0xf] %vm40_vm2, %v99_v38 }
  0x8a   :  { %250 = vmatpush.bf16.msra.mxu0 %v423_v40  ;;  %v342_v40 = vld [vmem:[%s593_s3] sm:$0xff] }
  0x8c   :  { %v75_v41 = vpop.permute.xlu0 %74 }
  0x8d   :  { %v60_v42 = vpop.permute.xlu1 %59  ;;  %77 = vst.msk [vmem:[#allocation2 + $0x18] sm:$0xf] %vm37_vm1, %v75_v41 }
  0x8e   :  { %v61_v44 = vrot.slane %v60_v42, 4  ;;  %86 = vst.msk [vmem:[#allocation2 + $0x18] sm:$0xf] %vm40_vm2, %v84_v43  ;;  %251 = vmatpush.bf16.msra.mxu0 %v422_v45 }
  0x8f   :  { %v421_v47 = vld [vmem:[#allocation2 + $0x20] sm:$0xff] }
  0x90   :  { %v63_v46 = vsel %vm62_vm8, %v60_v42, %v61_v44 }
  0x91   :  { %65 = vst.msk [vmem:[#allocation2 + $0x10] sm:$0xf] %vm37_vm1, %v63_v46 }
  0x92   :  { %71 = vst.msk [vmem:[#allocation2 + $0x10] sm:$0xf] %vm40_vm2, %v69_v22  ;;  %252 = vmatpush.bf16.msra.mxu0 %v421_v47 }
  0x94   :  { %v51_v48 = vpop.permute.xlu0 %50 }
  0x95   :  { %v45_v49 = vpop.permute.xlu1 %44  ;;  %v52_v50 = vrot.slane %v51_v48, 4  ;;  %v420_v51 = vld [vmem:[#allocation2 + $0x18] sm:$0xff] }
  0x96   :  { %47 = vst.msk [vmem:[#allocation2 + $0x8] sm:$0xf] %vm37_vm1, %v45_v49  ;;  %253 = vmatpush.bf16.msra.mxu0 %v420_v51 }
  0x97   :  { %v54_v52 = vsel %vm53_vm9, %v51_v48, %v52_v50  ;;  %v305_v48 = vld [vmem:[%s592_s2 + $0x8] sm:$0xff] }
  0x98   :  { %56 = vst.msk [vmem:[#allocation2 + $0x8] sm:$0xf] %vm40_vm2, %v54_v52  ;;  %v343_v52 = vld [vmem:[%s593_s3 + $0x8] sm:$0xff] }
  0x99   :  { %v419_v53 = vld [vmem:[#allocation2 + $0x10] sm:$0xff] }
  0x9a   :  { %254 = vmatpush.bf16.msra.mxu0 %v419_v53 }
  0x9c   :  { %v159_v54 = vpop.permute.xlu0 %158 }
  0x9d   :  { %161 = vst.msk [vmem:[#allocation2 + $0x40] sm:$0xf] %vm40_vm2, %v159_v54 }
  0x9f   :  { %v418_v55 = vld [vmem:[#allocation2 + $0x8] sm:$0xff] }
  0xa0   :  { %255 = vmatpush.bf16.msra.mxu0 %v418_v55 }
  0xa4   :  { %v425_v61 = vld [vmem:[#allocation2 + $0x40] sm:$0xff]  ;;  %256 = vmatpush.bf16.msra.mxu0 %v417_v56 }
  0xa5   :  { %270 = vmatpush.bf16.msra.mxu1 %v425_v61 }
  0xa7   :  { %257 = vmatmul.bf16.vlgmr.msra.gmra.mxu0 %v373_v62 }
  0xa8   :  { %414 = vmatmul.msk.bf16.vlgmr.msra.gmra.mxu1 %vm245_vm10, %v377_v63 }
 0x124   :  { %v258_v0 = vpop.f32.mrf.mxu0 }
 0x125   :  { %v272_v1 = vpop.f32.mrf.mxu1 }
 0x126   :  { %v563_v2 = vadd.f32 %v272_v1, %v258_v0 }
 0x128   :  { %277 = vadd.xlane.f32.xlu1 %v563_v2  ;;  %v290_v3 = vmul.f32 %v563_v2, %v563_v2 }
 0x12a   :  { %292 = vadd.xlane.f32.xlu0 %v290_v3 }
 0x12c   :  { %v260_v4 = vpop.f32.mrf.mxu0 }
 0x12d   :  { %v274_v5 = vpop.f32.mrf.mxu1 }
 0x12e   :  { %v568_v6 = vadd.f32 %v274_v5, %v260_v4 }
 0x130   :  { %279 = vadd.xlane.f32.xlu2 %v568_v6  ;;  %v291_v7 = vmul.f32 %v568_v6, %v568_v6 }
 0x138   :  { %294 = vadd.xlane.f32.xlu2 %v291_v7 }
 0x19b   :  { %v278_v15 = vpop.xlane.xlu1 %277 }
 0x19c   :  { %v288_v16 = vmul.f32 %v287_v14, %v278_v15 }
 0x19d   :  { %v293_v17 = vpop.xlane.xlu0 %292 }
 0x19e   :  { %v298_v18 = vmul.f32 %v288_v16, %v288_v16  ;;  %v296_v19 = vmul.f32 %v293_v17, %v287_v14 }
 0x1a0   :  { %v300_v20 = vsub.f32 %v296_v19, %v298_v18 }
 0x1a2   :  { %v302_v21 = vmax.f32 %v300_v20, 0.0 }
 0x1a3   :  { %v280_v22 = vpop.xlane.xlu2 %279 }
 0x1a4   :  { %v306_v23 = vadd.f32 1e-05, %v302_v21  ;;  %v289_v24 = vmul.f32 %v287_v14, %v280_v22 }
 0x1a6   :  { %446 = vrsqrt.f32 %v306_v23  ;;  %v299_v27 = vmul.f32 %v289_v24, %v289_v24  ;;  %vm314_vm13 = vweird.f32 %v306_v23 }
 0x1ab   :  { %v295_v25 = vpop.xlane.xlu2 %294 }
 0x1ac   :  { %v447_v26 = vpop.eup %446  ;;  %v297_v28 = vmul.f32 %v295_v25, %v287_v14 }
 0x1ad   :  { %v309_v29 = vmul.f32 %v447_v26, %v306_v23  ;;  %vm315_vm12 = vweird.f32 %v447_v26 }
 0x1ae   :  { %v301_v30 = vsub.f32 %v297_v28, %v299_v27  ;;  %vm316_vm14 = vmor %vm314_vm13, %vm315_vm12 }
 0x1af   :  { %v310_v31 = vmul.f32 %v447_v26, %v309_v29 }
 0x1b0   :  { %v303_v32 = vmax.f32 %v301_v30, 0.0 }
 0x1b1   :  { %v311_v33 = vmul.f32 0.5, %v310_v31 }
 0x1b2   :  { %v307_v34 = vadd.f32 1e-05, %v303_v32 }
 0x1b3   :  { %v312_v35 = vsub.f32 1.5, %v311_v33 }
 0x1b4   :  { %448 = vrsqrt.f32 %v307_v34  ;;  %vm324_vm0 = vweird.f32 %v307_v34 }
 0x1b5   :  { %v313_v37 = vmul.f32 %v447_v26, %v312_v35 }
 0x1b7   :  { %v317_v38 = vsel %vm316_vm14, %v447_v26, %v313_v37 }
 0x1b8   :  { %v328_v39 = vmul.f32 %v317_v38, %v304_v36 }
 0x1ba   :  { %v449_v41 = vpop.eup %448  ;;  %332 = vperm.xlu1 %441, %v328_v39   ;;  %v344_v42 = vmul.f32 %v328_v39, %v288_v16 }
 0x1bb   :  { %v319_v43 = vmul.f32 %v449_v41, %v307_v34  ;;  %vm325_vm15 = vweird.f32 %v449_v41 }
 0x1bc   :  { %v346_v44 = vsub.f32 %v342_v40, %v344_v42  ;;  %vm326_vm1 = vmor %vm324_vm0, %vm325_vm15 }
 0x1bd   :  { %v320_v45 = vmul.f32 %v449_v41, %v319_v43 }
 0x1be   :  { %350 = vperm.xlu0 %443, %v346_v44  }
 0x1bf   :  { %v321_v46 = vmul.f32 0.5, %v320_v45 }
 0x1c1   :  { %v322_v47 = vsub.f32 1.5, %v321_v46 }
 0x1c3   :  { %v323_v49 = vmul.f32 %v449_v41, %v322_v47 }
 0x1c5   :  { %v327_v50 = vsel %vm326_vm1, %v449_v41, %v323_v49 }
 0x1c6   :  { %v329_v51 = vmul.f32 %v327_v50, %v305_v48 }
 0x1c8   :  { %337 = vperm.xlu2 %442, %v329_v51   ;;  %v345_v53 = vmul.f32 %v329_v51, %v289_v24 }
 0x1ca   :  { %v347_v54 = vsub.f32 %v343_v52, %v345_v53 }
 0x1cc   :  { %355 = vperm.xlu1 %441, %v347_v54  }
 0x222   :  { %v338_v56 = vpop.permute.xlu2 %337 }
 0x223   :  { %v341_v59 = vmul.f32 %v338_v56, %v568_v6 }
 0x22c   :  { %v333_v55 = vpop.permute.xlu1 %332 }
 0x22d   :  { %v340_v58 = vmul.f32 %v333_v55, %v563_v2 }
 0x230   :  { %v351_v57 = vpop.permute.xlu0 %350 }
 0x231   :  { %v358_v60 = vadd.f32 %v351_v57, %v340_v58 }
 0x233   :  { %v360_v63 = vmax.f32 %v358_v60, 0.0 }
 0x23e   :  { %v356_v61 = vpop.permute.xlu1 %355 }
 0x23f   :  { %v359_v62 = vadd.f32 %v356_v61, %v341_v59 }
 0x241   :  { %v361_v0 = vmax.f32 %v359_v62, 0.0 }
 0x243   :  { %v429_v1 = vpack.c.bf16 %v361_v0, %v360_v63 }
 0x245   :  { %430 = vst [vmem:[%s594_s4] sm:$0xff] %v429_v1  }

// kernel: _lambda_.12
= control target key start
LH: loop header
LB: loop body
LE: loop exit
PB: predicated region body
PF: predicated region fallthrough
CT: control target
= control target key end

     0   :  { %s911_s15 = smov 0   ;;  %s1107_s0 = inlined_call_operand.vmem [shape: bf16[16,320], index: 0, kind: input, shape index: {}]   ;;  %s1108_s1 = inlined_call_operand.vmem [shape: bf16[32,144], index: 1, kind: input, shape index: {}]   ;;  %s1109_s2 = inlined_call_operand.vmem [shape: f32[32,1], index: 2, kind: input, shape index: {}]   ;;  %s1110_s3 = inlined_call_operand.vmem [shape: f32[32,1], index: 3, kind: input, shape index: {}]   ;;  %s1111_s4 = inlined_call_operand.vmem [shape: bf16[32,32], index: 4, kind: output, shape index: {}]  }
   0x1 LB: > { %s754_s16 = sadd.s32 4294967295, %s867_s15   ;;  %p758_p0 = scmp.ge.s32.totalorder %s867_s15, 1  ;;  %s867_s15 = sphi %s911_s15, %s14_s15  }
   0x2   : > { %p186_p1 = scmp.lt.s32.totalorder %s867_s15, 3 }
   0x4   : > { %p187_p2 = pnand %p758_p0, %p186_p1 }
   0x5   : > { %s869_s21 = smov (!%p187_p2), 68   ;;  %s870_s22 = smov (!%p187_p2), 84  }
   0x6   : > { %190 = sbr.rel (%p187_p2) target bundleno = 641 (0x281), region = 36  ;;  %s871_s25 = smov (!%p187_p2), 124  }
   0x7   : > { %s872_s10 = smov (!%p187_p2), 108   ;;  %s873_s13 = smov (!%p187_p2), 28  }
   0x8   : > { %s874_s20 = smov (!%p187_p2), 8   ;;  %s875_s27 = smov (!%p187_p2), 12  }
   0x9   : > { %s876_s30 = smov (!%p187_p2), 120   ;;  %s877_s9 = smov (!%p187_p2), 48  }
   0xa   : > { %s878_s19 = smov (!%p187_p2), 32   ;;  %s879_s26 = smov (!%p187_p2), 92  }
   0xb   : > { %v428_v0 = vld [vmem:[%s1107_s0 + $0x4] sm:$0xf]  ;;  %v416_v1 = vld [vmem:[%s1107_s0] sm:$0xf]  ;;  %v429_v3 = vld [vmem:[%s1107_s0 + $0x10] sm:$0xf] }
   0xc   : > { %432 = vrot.lane.b32.xlu1 %v428_v0, %s869_s21  ;;  %420 = vrot.lane.b32.xlu0 %v416_v1, %s870_s22  ;;  %v392_v2 = vld [vmem:[%s1107_s0] sm:$0xf]  ;;  %v417_v4 = vld [vmem:[%s1107_s0 + $0xc] sm:$0xf]  ;;  %s880_s7 = smov 88   ;;  %s882_s17 = smov 104  }
   0xd   : > { %396 = vrot.lane.b32.xlu2 %v392_v2, %s871_s25  ;;  %v393_v5 = vld [vmem:[%s1107_s0 + $0xc] sm:$0xf]  ;;  %v405_v6 = vld [vmem:[%s1107_s0 + $0x10] sm:$0xf]  ;;  %v404_v7 = vld [vmem:[%s1107_s0 + $0x4] sm:$0xf] }
   0xe   : > { %v368_v8 = vld [vmem:[%s1107_s0] sm:$0xf]  ;;  %v369_v10 = vld [vmem:[%s1107_s0 + $0xc] sm:$0xf]  ;;  %v381_v12 = vld [vmem:[%s1107_s0 + $0x14] sm:$0xf] }
   0xf   : > { %v339_v9 = vld [vmem:[%s1107_s0] sm:$0xff]  ;;  %v340_v11 = vld [vmem:[%s1107_s0 + $0xc] sm:$0xff]  ;;  %v380_v13 = vld [vmem:[%s1107_s0 + $0x8] sm:$0xf]  ;;  %s883_s24 = smov 112   ;;  %vm251_vm0 = vcmask 125952  }
  0x10   : > { %v356_v14 = vld [vmem:[%s1107_s0 + $0x8] sm:$0xf]  ;;  %v315_v15 = vld [vmem:[%s1107_s0] sm:$0xf]  ;;  %v357_v16 = vld [vmem:[%s1107_s0 + $0x14] sm:$0xf] }
  0x11   : > { %v316_v17 = vld [vmem:[%s1107_s0 + $0xc] sm:$0xf]  ;;  %v328_v18 = vld [vmem:[%s1107_s0 + $0x10] sm:$0xf]  ;;  %v327_v19 = vld [vmem:[%s1107_s0 + $0x4] sm:$0xf] }
  0x12   : > { %v291_v20 = vld [vmem:[%s1107_s0] sm:$0xf]  ;;  %v303_v21 = vld [vmem:[%s1107_s0 + $0x4] sm:$0xf]  ;;  %v292_v22 = vld [vmem:[%s1107_s0 + $0xc] sm:$0xf] }
  0x13   : > { %v304_v23 = vld [vmem:[%s1107_s0 + $0x10] sm:$0xf]  ;;  %v268_v24 = vld [vmem:[%s1107_s0 + $0xc] sm:$0xf]  ;;  %v267_v25 = vld [vmem:[%s1107_s0] sm:$0xf] }
  0x14   : > { %434 = vrot.lane.b32.xlu1 %v429_v3, %s869_s21  ;;  %422 = vrot.lane.b32.xlu0 %v417_v4, %s870_s22  ;;  %v279_v26 = vld [vmem:[%s1107_s0 + $0x4] sm:$0xf]  ;;  %v440_v27 = vld [vmem:[%s1107_s0] sm:$0xf]  ;;  %vm264_vm1 = vcmask 257152   ;;  %vm349_vm2 = vcmask 64512  }
  0x15   : > { %398 = vrot.lane.b32.xlu2 %v393_v5, %s871_s25  ;;  %v280_v28 = vld [vmem:[%s1107_s0 + $0x10] sm:$0xf]  ;;  %v441_v29 = vld [vmem:[%s1107_s0 + $0xc] sm:$0xf]  ;;  %v254_v31 = vld [vmem:[%s1107_s0 + $0x4] sm:$0xf] }
  0x16   : > { %v255_v30 = vld [vmem:[%s1107_s0 + $0x10] sm:$0xf]  ;;  %v452_v32 = vld [vmem:[%s1107_s0 + $0x4] sm:$0xf]  ;;  %v250_v0 = vld [vmem:[%s1107_s0 + $0xc] sm:$0xf] }
  0x17   : > { %v453_v33 = vld [vmem:[%s1107_s0 + $0x10] sm:$0xf]  ;;  %v249_v2 = vld [vmem:[%s1107_s0] sm:$0xf]  ;;  %253 = vst.msk [vmem:[#allocation2 + $0x4] sm:$0xf] %vm251_vm0, %v250_v0 }
  0x18   : > { %252 = vst.msk [vmem:[#allocation2] sm:$0xf] %vm251_vm0, %v249_v2  ;;  %vm547_vm3 = vcmask 130048   ;;  %vm579_vm4 = vcmask 261120   ;;  %vm671_vm12 = vcmask 257024  }
  0x1c   : > { %410 = vrot.lane.b32.xlu1 %v405_v6, %s872_s10  ;;  %408 = vrot.lane.b32.xlu0 %v404_v7, %s872_s10 }
  0x1d   : > { %372 = vrot.lane.b32.xlu2 %v368_v8, %s873_s13 }
  0x24   : > { %343 = vrot.lane.b32.xlu1 %v339_v9, %s874_s20  ;;  %374 = vrot.lane.b32.xlu0 %v369_v10, %s873_s13 }
  0x25   : > { %345 = vrot.lane.b32.xlu2 %v340_v11, %s874_s20 }
  0x2c   : > { %386 = vrot.lane.b32.xlu1 %v381_v12, %s875_s27  ;;  %384 = vrot.lane.b32.xlu0 %v380_v13, %s875_s27 }
  0x2d   : > { %360 = vrot.lane.b32.xlu2 %v356_v14, %s876_s30 }
  0x34   : > { %319 = vrot.lane.b32.xlu1 %v315_v15, %s877_s9  ;;  %362 = vrot.lane.b32.xlu0 %v357_v16, %s876_s30 }
  0x35   : > { %321 = vrot.lane.b32.xlu2 %v316_v17, %s877_s9 }
  0x3c   : > { %333 = vrot.lane.b32.xlu1 %v328_v18, %s878_s19  ;;  %331 = vrot.lane.b32.xlu0 %v327_v19, %s878_s19 }
  0x3d   : > { %295 = vrot.lane.b32.xlu2 %v291_v20, %s872_s10 }
  0x44   : > { %307 = vrot.lane.b32.xlu1 %v303_v21, %s879_s26  ;;  %297 = vrot.lane.b32.xlu0 %v292_v22, %s872_s10  ;;  %s881_s10 = smov 72  }
  0x45   : > { %309 = vrot.lane.b32.xlu2 %v304_v23, %s879_s26 }
  0x4c   : > { %273 = vrot.lane.b32.xlu1 %v268_v24, %s880_s7  ;;  %271 = vrot.lane.b32.xlu0 %v267_v25, %s880_s7 }
  0x4d   : > { %283 = vrot.lane.b32.xlu2 %v279_v26, %s881_s10 }
  0x54   : > { %444 = vrot.lane.b32.xlu1 %v440_v27, %s882_s17  ;;  %285 = vrot.lane.b32.xlu0 %v280_v28, %s881_s10 }
  0x55   : > { %446 = vrot.lane.b32.xlu2 %v441_v29, %s882_s17 }
  0x5c   : > { %260 = vrot.lane.b32.xlu1 %v255_v30, %s883_s24  ;;  %258 = vrot.lane.b32.xlu0 %v254_v31, %s883_s24 }
  0x5d   : > { %456 = vrot.lane.b32.xlu2 %v452_v32, %s880_s7 }
  0x64   : > { %458 = vrot.lane.b32.xlu0 %v453_v33, %s880_s7  ;;  %s759_s7 = sshll.u32 %s754_s16, 1 }
  0x65   : > { %p224_p3 = scmp.lt.s32.totalorder %s759_s7, 3 }
  0x67   : > { %v397_v34 = vpop.permute.xlu2 %396  ;;  %s1113_s7 = smov (!%p224_p3, %s759_s7), 3 }
  0x68   : > { %402 = vst.msk [vmem:[#allocation2 + $0x30] sm:$0xf] %vm251_vm0, %v397_v34  ;;  %s1072_s8 = sshll.u32 %s1113_s7, 3  ;;  %s767_s19 = sshll.u32 %s1113_s7, 2 }
  0x69   : > { %s228_s10 = scalar_lea.vmem %s1108_s1, %s1072_s8  ;;  %s234_s13 = scalar_lea.vmem %s1109_s2, %s1072_s8 }
  0x6a   : > { %v770_v16 = vld [vmem:[%s228_s10] sm:$0xf]  ;;  %v817_v17 = vld [vmem:[%s228_s10 + $0x4] sm:$0xf0]  ;;  %v816_v21 = vld [vmem:[%s228_s10 + $0x4] sm:$0xf]  ;;  %s240_s18 = scalar_lea.vmem %s1110_s3, %s1072_s8  ;;  %s246_s22 = scalar_lea.vmem %s1111_s4, %s767_s19 }
  0x6b   : > { %v771_v20 = vor.u32 %v817_v17, %v770_v16  ;;  %v772_v22 = vld [vmem:[%s228_s10 + $0x8] sm:$0xf0]  ;;  %v611_v2 = vld [vmem:[%s234_s13] sm:$0xff] }
  0x6c   : > { %v775_v24 = vor.u32 %v816_v21, %v772_v22 }
  0x6f   : > { %v399_v35 = vpop.permute.xlu2 %398 }
  0x70   : > { %403 = vst.msk [vmem:[#allocation2 + $0x34] sm:$0xf] %vm251_vm0, %v399_v35 }
  0x77   : > { %v373_v36 = vpop.permute.xlu2 %372 }
  0x78   : > { %378 = vst.msk [vmem:[#allocation2 + $0x28] sm:$0xf] %vm251_vm0, %v373_v36 }
  0x7e   : > { %v433_v37 = vpop.permute.xlu1 %432  ;;  %v421_v38 = vpop.permute.xlu0 %420 }
  0x7f   : > { %426 = vst.msk [vmem:[#allocation2 + $0x38] sm:$0xf] %vm251_vm0, %v421_v38  ;;  %v346_v39 = vpop.permute.xlu2 %345 }
  0x80   : > { %438 = vst.msk [vmem:[#allocation2 + $0x38] sm:$0xf] %vm264_vm1, %v433_v37  ;;  %v348_v40 = vrot.slane %v346_v39, 4  ;;  %v884_v37 = vmov 32.0  }
  0x81   : > { %855 = vrcp.f32 %v884_v37 }
  0x82   : > { %v351_v41 = vsel %vm349_vm2, %v346_v39, %v348_v40 }
  0x83   : > { %355 = vst.msk [vmem:[#allocation2 + $0x24] sm:$0xf] %vm251_vm0, %v351_v41 }
  0x86   : > { %v435_v42 = vpop.permute.xlu1 %434  ;;  %v423_v43 = vpop.permute.xlu0 %422 }
  0x87   : > { %427 = vst.msk [vmem:[#allocation2 + $0x3c] sm:$0xf] %vm251_vm0, %v423_v43  ;;  %v361_v44 = vpop.permute.xlu2 %360  ;;  %v856_v38 = vpop.eup %855 }
  0x88   : > { %439 = vst.msk [vmem:[#allocation2 + $0x3c] sm:$0xf] %vm264_vm1, %v435_v42  ;;  %v587_v39 = vmul.f32 32.0, %v856_v38  ;;  %vm591_vm5 = vweird.f32 %v856_v38 }
  0x8a   : > { %v588_v40 = vsub.f32 1.0, %v587_v39 }
  0x8c   : > { %v589_v41 = vmul.f32 %v856_v38, %v588_v40 }
  0x8e   : > { %v411_v45 = vpop.permute.xlu1 %410  ;;  %v409_v46 = vpop.permute.xlu0 %408  ;;  %v590_v42 = vadd.f32 %v856_v38, %v589_v41 }
  0x8f   : > { %415 = vst.msk [vmem:[#allocation2 + $0x34] sm:$0xf] %vm264_vm1, %v411_v45  ;;  %v825_v47 = vld [vmem:[#allocation2 + $0x38] sm:$0xff]  ;;  %v322_v48 = vpop.permute.xlu2 %321 }
  0x90   : > { %414 = vst.msk [vmem:[#allocation2 + $0x30] sm:$0xf] %vm264_vm1, %v409_v46  ;;  %551 = vmatpush.bf16.msra.mxu0 %v825_v47  ;;  %v592_v43 = vsel %vm591_vm5, %v856_v38, %v590_v42 }
  0x91   : > { %326 = vst.msk [vmem:[#allocation2 + $0x1c] sm:$0xf] %vm251_vm0, %v322_v48 }
  0x96   : > { %v344_v49 = vpop.permute.xlu1 %343  ;;  %v375_v50 = vpop.permute.xlu0 %374 }
  0x97   : > { %v347_v51 = vrot.slane %v344_v49, 4  ;;  %379 = vst.msk [vmem:[#allocation2 + $0x2c] sm:$0xf] %vm251_vm0, %v375_v50  ;;  %v824_v52 = vld [vmem:[#allocation2 + $0x30] sm:$0xff]  ;;  %v296_v54 = vpop.permute.xlu2 %295 }
  0x98   : > { %552 = vmatpush.bf16.msra.mxu0 %v824_v52  ;;  %301 = vst.msk [vmem:[#allocation2 + $0x10] sm:$0xf] %vm251_vm0, %v296_v54 }
  0x99   : > { %v350_v53 = vsel %vm349_vm2, %v344_v49, %v347_v51 }
  0x9a   : > { %354 = vst.msk [vmem:[#allocation2 + $0x20] sm:$0xf] %vm251_vm0, %v350_v53 }
  0x9b   : > { %366 = vst.msk [vmem:[#allocation2 + $0x20] sm:$0xf] %vm264_vm1, %v361_v44  ;;  %v885_v44 = vmov 0  }
  0x9c   : > { %852 = vset.pattern.permute.xlu1 %v885_v44  ;;  %854 = vset.pattern.permute.xlu0 %v885_v44 }
  0x9d   : > { %853 = vset.pattern.permute.xlu2 %v885_v44 }
  0x9e   : > { %v387_v55 = vpop.permute.xlu1 %386  ;;  %v385_v56 = vpop.permute.xlu0 %384 }
  0x9f   : > { %391 = vst.msk [vmem:[#allocation2 + $0x2c] sm:$0xf] %vm264_vm1, %v387_v55  ;;  %v310_v57 = vpop.permute.xlu2 %309 }
  0xa0   : > { %390 = vst.msk [vmem:[#allocation2 + $0x28] sm:$0xf] %vm264_vm1, %v385_v56 }
  0xa6   : > { %v320_v58 = vpop.permute.xlu1 %319  ;;  %v363_v59 = vpop.permute.xlu0 %362 }
  0xa7   : > { %325 = vst.msk [vmem:[#allocation2 + $0x18] sm:$0xf] %vm251_vm0, %v320_v58  ;;  %v823_v60 = vld [vmem:[#allocation2 + $0x28] sm:$0xff]  ;;  %v284_v61 = vpop.permute.xlu2 %283 }
  0xa8   : > { %367 = vst.msk [vmem:[#allocation2 + $0x24] sm:$0xf] %vm264_vm1, %v363_v59  ;;  %553 = vmatpush.bf16.msra.mxu0 %v823_v60 }
  0xae   : > { %v334_v62 = vpop.permute.xlu1 %333  ;;  %v332_v63 = vpop.permute.xlu0 %331 }
  0xaf   : > { %338 = vst.msk [vmem:[#allocation2 + $0x1c] sm:$0xf] %vm264_vm1, %v334_v62  ;;  %v822_v1 = vld [vmem:[#allocation2 + $0x20] sm:$0xff]  ;;  %v447_v3 = vpop.permute.xlu2 %446 }
  0xb0   : > { %337 = vst.msk [vmem:[#allocation2 + $0x18] sm:$0xf] %vm264_vm1, %v332_v63  ;;  %554 = vmatpush.bf16.msra.mxu0 %v822_v1 }
  0xb1   : > { %451 = vst.msk [vmem:[#allocation2 + $0x44] sm:$0xf] %vm251_vm0, %v447_v3 }
  0xb6   : > { %v308_v4 = vpop.permute.xlu1 %307  ;;  %v298_v5 = vpop.permute.xlu0 %297 }
  0xb7   : > { %302 = vst.msk [vmem:[#allocation2 + $0x14] sm:$0xf] %vm251_vm0, %v298_v5  ;;  %v821_v6 = vld [vmem:[#allocation2 + $0x18] sm:$0xff]  ;;  %v457_v10 = vpop.permute.xlu2 %456 }
  0xb8   : > { %313 = vst.msk [vmem:[#allocation2 + $0x10] sm:$0xf] %vm264_vm1, %v308_v4  ;;  %555 = vmatpush.bf16.msra.mxu0 %v821_v6  ;;  %v649_v6 = vld [vmem:[%s240_s18] sm:$0xff] }
  0xb9   : > { %314 = vst.msk [vmem:[#allocation2 + $0x14] sm:$0xf] %vm264_vm1, %v310_v57 }
  0xbe   : > { %v274_v7 = vpop.permute.xlu1 %273  ;;  %v272_v8 = vpop.permute.xlu0 %271 }
  0xbf   : > { %278 = vst.msk [vmem:[#allocation2 + $0xc] sm:$0xf] %vm251_vm0, %v274_v7 }
  0xc0   : > { %277 = vst.msk [vmem:[#allocation2 + $0x8] sm:$0xf] %vm251_vm0, %v272_v8  ;;  %v820_v9 = vld [vmem:[#allocation2 + $0x10] sm:$0xff] }
  0xc1   : > { %289 = vst.msk [vmem:[#allocation2 + $0x8] sm:$0xf] %vm264_vm1, %v284_v61  ;;  %556 = vmatpush.bf16.msra.mxu0 %v820_v9 }
  0xc6   : > { %v445_v11 = vpop.permute.xlu1 %444  ;;  %v286_v12 = vpop.permute.xlu0 %285 }
  0xc7   : > { %450 = vst.msk [vmem:[#allocation2 + $0x40] sm:$0xf] %vm251_vm0, %v445_v11 }
  0xc8   : > { %290 = vst.msk [vmem:[#allocation2 + $0xc] sm:$0xf] %vm264_vm1, %v286_v12 }
  0xc9   : > { %462 = vst.msk [vmem:[#allocation2 + $0x40] sm:$0xf] %vm264_vm1, %v457_v10 }
  0xce   : > { %v261_v13 = vpop.permute.xlu1 %260  ;;  %v259_v14 = vpop.permute.xlu0 %258 }
  0xcf   : > { %266 = vst.msk [vmem:[#allocation2 + $0x4] sm:$0xf] %vm264_vm1, %v261_v13  ;;  %v819_v15 = vld [vmem:[#allocation2 + $0x8] sm:$0xff] }
  0xd0   : > { %265 = vst.msk [vmem:[#allocation2] sm:$0xf] %vm264_vm1, %v259_v14  ;;  %557 = vmatpush.bf16.msra.mxu0 %v819_v15  ;;  %v612_v14 = vld [vmem:[%s234_s13 + $0x8] sm:$0xff] }
  0xd6   : > { %v459_v18 = vpop.permute.xlu0 %458 }
  0xd7   : > { %463 = vst.msk [vmem:[#allocation2 + $0x44] sm:$0xf] %vm264_vm1, %v459_v18  ;;  %v818_v19 = vld [vmem:[#allocation2] sm:$0xff]  ;;  %v650_v18 = vld [vmem:[%s240_s18 + $0x8] sm:$0xff] }
  0xd8   : > { %558 = vmatpush.bf16.msra.mxu0 %v818_v19 }
  0xdb   : > { %559 = vmatmul.bf16.vlgmr.msra.gmra.mxu0 %v771_v20 }
  0xde   : > { %v826_v23 = vld [vmem:[#allocation2 + $0x40] sm:$0xff] }
  0xdf   : > { %572 = vmatpush.bf16.msra.mxu1 %v826_v23 }
  0xe2   : > { %812 = vmatmul.msk.bf16.vlgmr.msra.gmra.mxu1 %vm547_vm3, %v775_v24 }
 0x158   : > { %v560_v25 = vpop.f32.mrf.mxu0 }
 0x15f   : > { %v574_v26 = vpop.f32.mrf.mxu1 }
 0x160   : > { %v1080_v27 = vadd.f32 %v574_v26, %v560_v25  ;;  %v562_v31 = vpop.f32.mrf.mxu0 }
 0x162   : > { %v580_v28 = vsel %vm579_vm4, %v1080_v27, 0.0  ;;  %v595_v29 = vmul.f32 %v1080_v27, %v1080_v27 }
 0x163   : > { %581 = vadd.xlane.f32.xlu1 %v580_v28 }
 0x164   : > { %v597_v30 = vsel %vm579_vm4, %v595_v29, 0.0 }
 0x165   : > { %598 = vadd.xlane.f32.xlu0 %v597_v30 }
 0x167   : > { %v576_v32 = vpop.f32.mrf.mxu1 }
 0x168   : > { %v1085_v33 = vadd.f32 %v576_v32, %v562_v31 }
 0x16a   : > { %v583_v34 = vsel %vm579_vm4, %v1085_v33, 0.0  ;;  %v596_v35 = vmul.f32 %v1085_v33, %v1085_v33 }
 0x16b   : > { %584 = vadd.xlane.f32.xlu2 %v583_v34 }
 0x16c   : > { %v600_v36 = vsel %vm579_vm4, %v596_v35, 0.0 }
 0x173   : > { %601 = vadd.xlane.f32.xlu2 %v600_v36 }
 0x1d6   : > { %v582_v45 = vpop.xlane.xlu1 %581 }
 0x1d7   : > { %v593_v46 = vmul.f32 %v592_v43, %v582_v45 }
 0x1d8   : > { %v599_v47 = vpop.xlane.xlu0 %598 }
 0x1d9   : > { %v605_v48 = vmul.f32 %v593_v46, %v593_v46  ;;  %v603_v49 = vmul.f32 %v599_v47, %v592_v43 }
 0x1db   : > { %v607_v50 = vsub.f32 %v603_v49, %v605_v48 }
 0x1dd   : > { %v609_v51 = vmax.f32 %v607_v50, 0.0 }
 0x1de   : > { %v585_v52 = vpop.xlane.xlu2 %584 }
 0x1df   : > { %v613_v53 = vadd.f32 1e-05, %v609_v51  ;;  %v594_v54 = vmul.f32 %v592_v43, %v585_v52 }
 0x1e1   : > { %857 = vrsqrt.f32 %v613_v53  ;;  %v606_v57 = vmul.f32 %v594_v54, %v594_v54  ;;  %vm621_vm7 = vweird.f32 %v613_v53 }
 0x1e6   : > { %v602_v55 = vpop.xlane.xlu2 %601 }
 0x1e7   : > { %v858_v56 = vpop.eup %857  ;;  %v604_v58 = vmul.f32 %v602_v55, %v592_v43 }
 0x1e8   : > { %v616_v59 = vmul.f32 %v858_v56, %v613_v53  ;;  %vm622_vm6 = vweird.f32 %v858_v56 }
 0x1e9   : > { %v608_v60 = vsub.f32 %v604_v58, %v606_v57  ;;  %vm623_vm8 = vmor %vm621_vm7, %vm622_vm6 }
 0x1ea   : > { %v617_v61 = vmul.f32 %v858_v56, %v616_v59 }
 0x1eb   : > { %v610_v62 = vmax.f32 %v608_v60, 0.0 }
 0x1ec   : > { %v618_v63 = vmul.f32 0.5, %v617_v61 }
 0x1ed   : > { %v614_v0 = vadd.f32 1e-05, %v610_v62 }
 0x1ee   : > { %v619_v1 = vsub.f32 1.5, %v618_v63 }
 0x1ef   : > { %859 = vrsqrt.f32 %v614_v0  ;;  %vm631_vm10 = vweird.f32 %v614_v0 }
 0x1f0   : > { %v620_v3 = vmul.f32 %v858_v56, %v619_v1 }
 0x1f2   : > { %v624_v4 = vsel %vm623_vm8, %v858_v56, %v620_v3 }
 0x1f3   : > { %v635_v5 = vmul.f32 %v624_v4, %v611_v2 }
 0x1f5   : > { %v860_v7 = vpop.eup %859  ;;  %639 = vperm.xlu1 %852, %v635_v5   ;;  %v651_v8 = vmul.f32 %v635_v5, %v593_v46 }
 0x1f6   : > { %v626_v9 = vmul.f32 %v860_v7, %v614_v0  ;;  %vm632_vm9 = vweird.f32 %v860_v7 }
 0x1f7   : > { %v653_v10 = vsub.f32 %v649_v6, %v651_v8  ;;  %vm633_vm11 = vmor %vm631_vm10, %vm632_vm9 }
 0x1f8   : > { %v627_v11 = vmul.f32 %v860_v7, %v626_v9 }
 0x1f9   : > { %657 = vperm.xlu0 %854, %v653_v10  }
 0x1fa   : > { %v628_v12 = vmul.f32 0.5, %v627_v11 }
 0x1fc   : > { %v629_v13 = vsub.f32 1.5, %v628_v12 }
 0x1fe   : > { %v630_v15 = vmul.f32 %v860_v7, %v629_v13 }
 0x200   : > { %v634_v16 = vsel %vm633_vm11, %v860_v7, %v630_v15 }
 0x201   : > { %v636_v17 = vmul.f32 %v634_v16, %v612_v14 }
 0x203   : > { %644 = vperm.xlu2 %853, %v636_v17   ;;  %v652_v19 = vmul.f32 %v636_v17, %v594_v54 }
 0x205   : > { %v654_v20 = vsub.f32 %v650_v18, %v652_v19 }
 0x207   : > { %662 = vperm.xlu1 %852, %v654_v20  }
 0x25d   : > { %v645_v28 = vpop.permute.xlu2 %644 }
 0x25e   : > { %v648_v29 = vmul.f32 %v645_v28, %v1085_v33 }
 0x267   : > { %v640_v21 = vpop.permute.xlu1 %639 }
 0x268   : > { %v647_v22 = vmul.f32 %v640_v21, %v1080_v27 }
 0x26b   : > { %v658_v23 = vpop.permute.xlu0 %657 }
 0x26c   : > { %v665_v24 = vadd.f32 %v658_v23, %v647_v22 }
 0x26e   : > { %v667_v25 = vmax.f32 %v665_v24, 0.0 }
 0x270   : > { %v669_v26 = vpack.c.bf16 %v667_v25, %v667_v25 }
 0x272   : > { %672 = vst.msk [vmem:[%s246_s22] sm:$0xf] %vm671_vm12, %v669_v26 }
 0x279   : > { %v663_v30 = vpop.permute.xlu1 %662 }
 0x27a   : > { %v666_v31 = vadd.f32 %v663_v30, %v648_v29 }
 0x27c   : > { %v668_v32 = vmax.f32 %v666_v31, 0.0 }
 0x27e   : > { %v670_v34 = vpack.c.bf16 %v668_v32, %v668_v32 }
 0x280   : > { %673 = vst.msk [vmem:[%s246_s22 + $0x4] sm:$0xf] %vm671_vm12, %v670_v34 }
 0x281 PF: > { %s14_s15 = sadd.s32 1, %s867_s15  }
 0x282   : > { %p11_p4 = scmp.ge.s32.totalorder %s14_s15, 4  }
 0x284   :  { %13 = sbr.rel (!%p11_p4) target bundleno = 1 (0x1), region = 72 }

// kernel: _lambda_.13
= control target key start
LH: loop header
LB: loop body
LE: loop exit
PB: predicated region body
PF: predicated region fallthrough
CT: control target
= control target key end

     0   :  { %s1276_s15 = smov 0   ;;  %s1635_s0 = inlined_call_operand.vmem [shape: bf16[32,144], index: 0, kind: input, shape index: {}]   ;;  %s1636_s1 = inlined_call_operand.vmem [shape: bf16[32,288], index: 1, kind: input, shape index: {}]   ;;  %s1637_s2 = inlined_call_operand.vmem [shape: f32[32,1], index: 2, kind: input, shape index: {}]   ;;  %s1638_s3 = inlined_call_operand.vmem [shape: f32[32,1], index: 3, kind: input, shape index: {}]   ;;  %s1639_s4 = inlined_call_operand.vmem [shape: bf16[32,32], index: 4, kind: output, shape index: {}]  }
   0x1 LB: > { %s1068_s16 = sadd.s32 4294967295, %s1231_s15   ;;  %p1072_p0 = scmp.ge.s32.totalorder %s1231_s15, 1  ;;  %s1231_s15 = sphi %s1276_s15, %s14_s15  }
   0x2   : > { %p186_p1 = scmp.lt.s32.totalorder %s1231_s15, 3 }
   0x4   : > { %p187_p2 = pnand %p1072_p0, %p186_p1 }
   0x5   : > { %s1233_s21 = smov (!%p187_p2), 96   ;;  %s1234_s22 = smov (!%p187_p2), 124  }
   0x6   : > { %190 = sbr.rel (%p187_p2) target bundleno = 724 (0x2d4), region = 36  ;;  %s1235_s25 = smov (!%p187_p2), 68  }
   0x7   : > { %s1236_s12 = smov (!%p187_p2), 40   ;;  %s1237_s8 = smov (!%p187_p2), 24  }
   0x8   : > { %s1238_s17 = smov (!%p187_p2), 80   ;;  %s1239_s18 = smov (!%p187_p2), 120  }
   0x9   : > { %s1240_s27 = smov (!%p187_p2), 64   ;;  %s1241_s19 = smov (!%p187_p2), 20  }
   0xa   : > { %s1245_s26 = smov (!%p187_p2), 72   ;;  %s1246_s5 = smov (!%p187_p2), 16  }
   0xb   : > { %v591_v0 = vld [vmem:[%s1635_s0 + $0x10] sm:$0xf]  ;;  %v592_v3 = vld [vmem:[%s1635_s0 + $0x18] sm:$0xf]  ;;  %v388_v8 = vld [vmem:[%s1635_s0] sm:$0xf] }
   0xc   : > { %v390_v1 = vld [vmem:[%s1635_s0 + $0x10] sm:$0xf]  ;;  %601 = vrot.lane.b32.xlu1 %v591_v0, %s1233_s21  ;;  %v391_v4 = vld [vmem:[%s1635_s0 + $0x18] sm:$0xf]  ;;  %v589_v9 = vld [vmem:[%s1635_s0] sm:$0xf] }
   0xd   : > { %400 = vrot.lane.b32.xlu0 %v390_v1, %s1234_s22  ;;  %v414_v2 = vld [vmem:[%s1635_s0 + $0x10] sm:$0xf]  ;;  %v415_v5 = vld [vmem:[%s1635_s0 + $0x18] sm:$0xf]  ;;  %v389_v10 = vld [vmem:[%s1635_s0 + $0x8] sm:$0xf] }
   0xe   : > { %424 = vrot.lane.b32.xlu2 %v414_v2, %s1235_s25  ;;  %v616_v6 = vld [vmem:[%s1635_s0 + $0x18] sm:$0xf]  ;;  %v615_v7 = vld [vmem:[%s1635_s0 + $0x10] sm:$0xf]  ;;  %v590_v11 = vld [vmem:[%s1635_s0 + $0x8] sm:$0xf] }
   0xf   : > { %v413_v12 = vld [vmem:[%s1635_s0 + $0x8] sm:$0xf]  ;;  %v412_v13 = vld [vmem:[%s1635_s0] sm:$0xf]  ;;  %v357_v16 = vld [vmem:[%s1635_s0 + $0x10] sm:$0xff]  ;;  %vm253_vm0 = vcmask 125952  }
  0x10   : > { %v613_v14 = vld [vmem:[%s1635_s0] sm:$0xf]  ;;  %v614_v15 = vld [vmem:[%s1635_s0 + $0x8] sm:$0xf]  ;;  %v358_v17 = vld [vmem:[%s1635_s0 + $0x18] sm:$0xff]  ;;  %vm278_vm1 = vcmask 257152  }
  0x11   : > { %v334_v18 = vld [vmem:[%s1635_s0 + $0x18] sm:$0xf]  ;;  %v333_v19 = vld [vmem:[%s1635_s0 + $0x10] sm:$0xf]  ;;  %v356_v24 = vld [vmem:[%s1635_s0 + $0x8] sm:$0xff]  ;;  %vm375_vm2 = vcmask 195584  }
  0x12   : > { %v543_v20 = vld [vmem:[%s1635_s0 + $0x10] sm:$0xf]  ;;  %v544_v22 = vld [vmem:[%s1635_s0 + $0x18] sm:$0xf]  ;;  %v355_v25 = vld [vmem:[%s1635_s0] sm:$0xff]  ;;  %vm528_vm3 = vcmask 162816  }
  0x13   : > { %v567_v21 = vld [vmem:[%s1635_s0 + $0x10] sm:$0xf]  ;;  %v568_v23 = vld [vmem:[%s1635_s0 + $0x18] sm:$0xf]  ;;  %v331_v26 = vld [vmem:[%s1635_s0] sm:$0xf] }
  0x14   : > { %603 = vrot.lane.b32.xlu1 %v592_v3, %s1233_s21  ;;  %v541_v27 = vld [vmem:[%s1635_s0] sm:$0xf]  ;;  %v332_v28 = vld [vmem:[%s1635_s0 + $0x8] sm:$0xf]  ;;  %v285_v32 = vld [vmem:[%s1635_s0 + $0x10] sm:$0xf] }
  0x15   : > { %402 = vrot.lane.b32.xlu0 %v391_v4, %s1234_s22  ;;  %v542_v29 = vld [vmem:[%s1635_s0 + $0x8] sm:$0xf]  ;;  %v565_v31 = vld [vmem:[%s1635_s0] sm:$0xf]  ;;  %v286_v33 = vld [vmem:[%s1635_s0 + $0x18] sm:$0xf] }
  0x16   : > { %426 = vrot.lane.b32.xlu2 %v415_v5, %s1235_s25  ;;  %v566_v30 = vld [vmem:[%s1635_s0 + $0x8] sm:$0xf]  ;;  %v486_v35 = vld [vmem:[%s1635_s0 + $0x10] sm:$0xf]  ;;  %v487_v36 = vld [vmem:[%s1635_s0 + $0x18] sm:$0xf] }
  0x17   : > { %v309_v37 = vld [vmem:[%s1635_s0 + $0x10] sm:$0xf]  ;;  %v310_v39 = vld [vmem:[%s1635_s0 + $0x18] sm:$0xf]  ;;  %v284_v41 = vld [vmem:[%s1635_s0 + $0x8] sm:$0xf] }
  0x18   : > { %v283_v42 = vld [vmem:[%s1635_s0] sm:$0xf]  ;;  %v485_v47 = vld [vmem:[%s1635_s0 + $0x8] sm:$0xf]  ;;  %v639_v48 = vld [vmem:[%s1635_s0 + $0x10] sm:$0xf] }
  0x19   : > { %v484_v43 = vld [vmem:[%s1635_s0] sm:$0xf]  ;;  %v640_v49 = vld [vmem:[%s1635_s0 + $0x18] sm:$0xf]  ;;  %v308_v54 = vld [vmem:[%s1635_s0 + $0x8] sm:$0xf] }
  0x1a   : > { %v307_v53 = vld [vmem:[%s1635_s0] sm:$0xf]  ;;  %v663_v55 = vld [vmem:[%s1635_s0 + $0x14] sm:$0xf]  ;;  %v664_v60 = vld [vmem:[%s1635_s0 + $0x1c] sm:$0xf] }
  0x1b   : > { %v438_v61 = vld [vmem:[%s1635_s0 + $0x10] sm:$0xf]  ;;  %v439_v62 = vld [vmem:[%s1635_s0 + $0x18] sm:$0xf]  ;;  %v637_v3 = vld [vmem:[%s1635_s0] sm:$0xf] }
  0x1c   : > { %627 = vrot.lane.b32.xlu1 %v616_v6, %s1236_s12  ;;  %v638_v4 = vld [vmem:[%s1635_s0 + $0x8] sm:$0xf]  ;;  %v260_v5 = vld [vmem:[%s1635_s0 + $0x10] sm:$0xf]  ;;  %s1073_s29 = sshll.u32 %s1068_s16, 1  ;;  %vm848_vm4 = vcmask 261120  }
  0x1d   : > { %625 = vrot.lane.b32.xlu0 %v615_v7, %s1236_s12  ;;  %p224_p3 = scmp.lt.s32.totalorder %s1073_s29, 3  ;;  %vm985_vm12 = vcmask 257024  }
  0x1e   : > { %396 = vrot.lane.b32.xlu2 %v388_v8, %s1234_s22 }
  0x1f   : > { %s1641_s29 = smov (!%p224_p3, %s1073_s29), 3 }
  0x20   : > { %s1189_s30 = smul.u32 12, %s1641_s29  ;;  %s1076_s7 = sshll.u32 %s1641_s29, 3 }
  0x21   : > { %s240_s13 = scalar_lea.vmem %s1638_s3, %s1076_s7  ;;  %s1080_s14 = sshll.u32 %s1641_s29, 2 }
  0x22   : > { %s228_s6 = scalar_lea.vmem %s1636_s1, %s1189_s30 }
  0x24   : > { %597 = vrot.lane.b32.xlu1 %v589_v9, %s1233_s21  ;;  %v462_v9 = vld [vmem:[%s1635_s0 + $0x10] sm:$0xf] }
  0x25   : > { %398 = vrot.lane.b32.xlu0 %v389_v10, %s1234_s22  ;;  %s1244_s22 = smov 48   ;;  %v261_v10 = vld [vmem:[%s1635_s0 + $0x18] sm:$0xf] }
  0x26   : > { %599 = vrot.lane.b32.xlu2 %v590_v11, %s1233_s21  ;;  %s1243_s21 = smov 76   ;;  %v463_v11 = vld [vmem:[%s1635_s0 + $0x18] sm:$0xf] }
  0x2c   : > { %422 = vrot.lane.b32.xlu1 %v413_v12, %s1235_s25 }
  0x2d   : > { %420 = vrot.lane.b32.xlu0 %v412_v13, %s1235_s25  ;;  %s1247_s25 = smov 100  }
  0x2e   : > { %621 = vrot.lane.b32.xlu2 %v613_v14, %s1236_s12 }
  0x34   : > { %367 = vrot.lane.b32.xlu1 %v357_v16, %s1237_s8 }
  0x35   : > { %623 = vrot.lane.b32.xlu0 %v614_v15, %s1236_s12  ;;  %v662_v15 = vld [vmem:[%s1635_s0 + $0xc] sm:$0xf] }
  0x36   : > { %369 = vrot.lane.b32.xlu2 %v358_v17, %s1237_s8 }
  0x3c   : > { %345 = vrot.lane.b32.xlu1 %v334_v18, %s1238_s17  ;;  %v661_v18 = vld [vmem:[%s1635_s0 + $0x4] sm:$0xf] }
  0x3d   : > { %343 = vrot.lane.b32.xlu0 %v333_v19, %s1238_s17  ;;  %v436_v19 = vld [vmem:[%s1635_s0] sm:$0xf] }
  0x3e   : > { %553 = vrot.lane.b32.xlu2 %v543_v20, %s1239_s18 }
  0x44   : > { %577 = vrot.lane.b32.xlu1 %v567_v21, %s1240_s27 }
  0x45   : > { %555 = vrot.lane.b32.xlu0 %v544_v22, %s1239_s18 }
  0x46   : > { %579 = vrot.lane.b32.xlu2 %v568_v23, %s1240_s27 }
  0x4c   : > { %365 = vrot.lane.b32.xlu1 %v356_v24, %s1237_s8 }
  0x4d   : > { %363 = vrot.lane.b32.xlu0 %v355_v25, %s1237_s8 }
  0x4e   : > { %339 = vrot.lane.b32.xlu2 %v331_v26, %s1238_s17 }
  0x54   : > { %549 = vrot.lane.b32.xlu1 %v541_v27, %s1239_s18  ;;  %v437_v27 = vld [vmem:[%s1635_s0 + $0x8] sm:$0xf] }
  0x55   : > { %341 = vrot.lane.b32.xlu0 %v332_v28, %s1238_s17  ;;  %s1242_s17 = smov 104   ;;  %v258_v28 = vld [vmem:[%s1635_s0] sm:$0xf] }
  0x56   : > { %551 = vrot.lane.b32.xlu2 %v542_v29, %s1239_s18  ;;  %v259_v29 = vld [vmem:[%s1635_s0 + $0x8] sm:$0xf] }
  0x5c   : > { %575 = vrot.lane.b32.xlu1 %v566_v30, %s1240_s27 }
  0x5d   : > { %573 = vrot.lane.b32.xlu0 %v565_v31, %s1240_s27  ;;  %s1248_s27 = smov 44  }
  0x5e   : > { %520 = vrot.lane.b32.xlu2 %v357_v16, %s1241_s19 }
  0x64   : > { %295 = vrot.lane.b32.xlu1 %v285_v32, %s1242_s17  ;;  %v460_v32 = vld [vmem:[%s1635_s0] sm:$0xf] }
  0x65   : > { %522 = vrot.lane.b32.xlu0 %v358_v17, %s1241_s19 }
  0x66   : > { %297 = vrot.lane.b32.xlu2 %v286_v33, %s1242_s17 }
  0x68   : > { %v425_v34 = vpop.permute.xlu2 %424 }
  0x6c   : > { %498 = vrot.lane.b32.xlu1 %v487_v36, %s1243_s21 }
  0x6d   : > { %496 = vrot.lane.b32.xlu0 %v486_v35, %s1243_s21  ;;  %v461_v35 = vld [vmem:[%s1635_s0 + $0x8] sm:$0xf] }
  0x6e   : > { %319 = vrot.lane.b32.xlu2 %v309_v37, %s1244_s22 }
  0x70   : > { %v427_v38 = vpop.permute.xlu2 %426 }
  0x74   : > { %516 = vrot.lane.b32.xlu1 %v355_v25, %s1241_s19 }
  0x75   : > { %321 = vrot.lane.b32.xlu0 %v310_v39, %s1244_s22 }
  0x76   : > { %518 = vrot.lane.b32.xlu2 %v356_v24, %s1241_s19  ;;  %s246_s19 = scalar_lea.vmem %s1639_s4, %s1080_s14 }
  0x78   : > { %v397_v40 = vpop.permute.xlu2 %396 }
  0x79   : > { %408 = vst.msk [vmem:[#allocation2 + $0x30] sm:$0xf] %vm253_vm0, %v397_v40 }
  0x7c   : > { %293 = vrot.lane.b32.xlu1 %v284_v41, %s1242_s17 }
  0x7d   : > { %291 = vrot.lane.b32.xlu0 %v283_v42, %s1242_s17 }
  0x7e   : > { %v602_v44 = vpop.permute.xlu1 %601  ;;  %492 = vrot.lane.b32.xlu2 %v484_v43, %s1243_s21 }
  0x7f   : > { %v401_v45 = vpop.permute.xlu0 %400  ;;  %611 = vst.msk [vmem:[#allocation2 + $0x78] sm:$0xf] %vm253_vm0, %v602_v44 }
  0x80   : > { %410 = vst.msk [vmem:[#allocation2 + $0x38] sm:$0xf] %vm253_vm0, %v401_v45  ;;  %v600_v46 = vpop.permute.xlu2 %599 }
  0x81   : > { %434 = vst.msk [vmem:[#allocation2 + $0x38] sm:$0xf] %vm278_vm1, %v425_v34 }
  0x82   : > { %610 = vst.msk [vmem:[#allocation2 + $0x74] sm:$0xf] %vm253_vm0, %v600_v46 }
  0x84   : > { %649 = vrot.lane.b32.xlu1 %v639_v48, %s1245_s26 }
  0x85   : > { %494 = vrot.lane.b32.xlu0 %v485_v47, %s1243_s21 }
  0x86   : > { %v604_v50 = vpop.permute.xlu1 %603  ;;  %651 = vrot.lane.b32.xlu2 %v640_v49, %s1245_s26 }
  0x87   : > { %v403_v51 = vpop.permute.xlu0 %402  ;;  %612 = vst.msk [vmem:[#allocation2 + $0x7c] sm:$0xf] %vm253_vm0, %v604_v50 }
  0x88   : > { %411 = vst.msk [vmem:[#allocation2 + $0x3c] sm:$0xf] %vm253_vm0, %v403_v51  ;;  %v622_v52 = vpop.permute.xlu2 %621 }
  0x89   : > { %435 = vst.msk [vmem:[#allocation2 + $0x3c] sm:$0xf] %vm278_vm1, %v427_v38 }
  0x8c   : > { %317 = vrot.lane.b32.xlu1 %v308_v54, %s1244_s22 }
  0x8d   : > { %315 = vrot.lane.b32.xlu0 %v307_v53, %s1244_s22 }
  0x8e   : > { %v628_v56 = vpop.permute.xlu1 %627  ;;  %673 = vrot.lane.b32.xlu2 %v663_v55, %s1246_s5 }
  0x8f   : > { %v626_v57 = vpop.permute.xlu0 %625  ;;  %636 = vst.msk [vmem:[#allocation2 + $0x7c] sm:$0xf] %vm278_vm1, %v628_v56 }
  0x90   : > { %635 = vst.msk [vmem:[#allocation2 + $0x78] sm:$0xf] %vm278_vm1, %v626_v57  ;;  %v1178_v58 = vld [vmem:[#allocation2 + $0x38] sm:$0xff]  ;;  %v370_v59 = vpop.permute.xlu2 %369 }
  0x91   : > { %852 = vmatpush.bf16.msra.mxu0 %v1178_v58  ;;  %v374_v17 = vrot.slane %v370_v59, 4 }
  0x93   : > { %v379_v20 = vsel %vm375_vm2, %v370_v59, %v374_v17 }
  0x94   : > { %448 = vrot.lane.b32.xlu1 %v438_v61, %s1247_s25 }
  0x95   : > { %675 = vrot.lane.b32.xlu0 %v664_v60, %s1246_s5 }
  0x96   : > { %v598_v63 = vpop.permute.xlu1 %597  ;;  %450 = vrot.lane.b32.xlu2 %v439_v62, %s1247_s25 }
  0x97   : > { %v399_v0 = vpop.permute.xlu0 %398  ;;  %609 = vst.msk [vmem:[#allocation2 + $0x70] sm:$0xf] %vm253_vm0, %v598_v63  ;;  %v1186_v1 = vld [vmem:[#allocation2 + $0x78] sm:$0xff] }
  0x98   : > { %409 = vst.msk [vmem:[#allocation2 + $0x34] sm:$0xf] %vm253_vm0, %v399_v0  ;;  %v554_v2 = vpop.permute.xlu2 %553  ;;  %866 = vmatpush.bf16.msra.mxu1 %v1186_v1 }
  0x99   : > { %633 = vst.msk [vmem:[#allocation2 + $0x70] sm:$0xf] %vm278_vm1, %v622_v52 }
  0x9a   : > { %563 = vst.msk [vmem:[#allocation2 + $0x68] sm:$0xf] %vm253_vm0, %v554_v2 }
  0x9c   : > { %647 = vrot.lane.b32.xlu1 %v638_v4, %s1245_s26 }
  0x9d   : > { %645 = vrot.lane.b32.xlu0 %v637_v3, %s1245_s26 }
  0x9e   : > { %v423_v6 = vpop.permute.xlu1 %422  ;;  %270 = vrot.lane.b32.xlu2 %v260_v5, %s1245_s26 }
  0x9f   : > { %v421_v7 = vpop.permute.xlu0 %420  ;;  %433 = vst.msk [vmem:[#allocation2 + $0x34] sm:$0xf] %vm278_vm1, %v423_v6 }
  0xa0   : > { %432 = vst.msk [vmem:[#allocation2 + $0x30] sm:$0xf] %vm278_vm1, %v421_v7  ;;  %v580_v8 = vpop.permute.xlu2 %579 }
  0xa4   : > { %472 = vrot.lane.b32.xlu1 %v462_v9, %s1248_s27 }
  0xa5   : > { %272 = vrot.lane.b32.xlu0 %v261_v10, %s1245_s26 }
  0xa6   : > { %v368_v13 = vpop.permute.xlu1 %367  ;;  %474 = vrot.lane.b32.xlu2 %v463_v11, %s1248_s27 }
  0xa7   : > { %v624_v12 = vpop.permute.xlu0 %623  ;;  %v1177_v14 = vld [vmem:[#allocation2 + $0x30] sm:$0xff]  ;;  %v373_v21 = vrot.slane %v368_v13, 4 }
  0xa8   : > { %634 = vst.msk [vmem:[#allocation2 + $0x74] sm:$0xf] %vm278_vm1, %v624_v12  ;;  %v340_v16 = vpop.permute.xlu2 %339  ;;  %853 = vmatpush.bf16.msra.mxu0 %v1177_v14  ;;  %v252_v14 = vld [vmem:[%s1635_s0 + $0x18] sm:$0xf] }
  0xa9   : > { %351 = vst.msk [vmem:[#allocation2 + $0x20] sm:$0xf] %vm253_vm0, %v340_v16  ;;  %v378_v26 = vsel %vm375_vm2, %v368_v13, %v373_v21 }
  0xaa   : > { %257 = vst.msk [vmem:[#allocation2 + $0xc] sm:$0xf] %vm253_vm0, %v252_v14 }
  0xac   : > { %671 = vrot.lane.b32.xlu1 %v662_v15, %s1246_s5 }
  0xad   : > { %669 = vrot.lane.b32.xlu0 %v661_v18, %s1246_s5  ;;  %s234_s5 = scalar_lea.vmem %s1637_s2, %s1076_s7 }
  0xae   : > { %v346_v22 = vpop.permute.xlu1 %345  ;;  %444 = vrot.lane.b32.xlu2 %v436_v19, %s1247_s25 }
  0xaf   : > { %v344_v23 = vpop.permute.xlu0 %343  ;;  %v1185_v24 = vld [vmem:[#allocation2 + $0x70] sm:$0xff]  ;;  %354 = vst.msk [vmem:[#allocation2 + $0x2c] sm:$0xf] %vm253_vm0, %v346_v22  ;;  %v250_v22 = vld [vmem:[%s1635_s0 + $0x8] sm:$0xf] }
  0xb0   : > { %387 = vst.msk [vmem:[#allocation2 + $0x2c] sm:$0xf] %vm278_vm1, %v379_v20  ;;  %867 = vmatpush.bf16.msra.mxu1 %v1185_v24  ;;  %v552_v25 = vpop.permute.xlu2 %551  ;;  %v249_v24 = vld [vmem:[%s1635_s0] sm:$0xf] }
  0xb1   : > { %353 = vst.msk [vmem:[#allocation2 + $0x28] sm:$0xf] %vm253_vm0, %v344_v23 }
  0xb2   : > { %386 = vst.msk [vmem:[#allocation2 + $0x28] sm:$0xf] %vm278_vm1, %v378_v26 }
  0xb3   : > { %562 = vst.msk [vmem:[#allocation2 + $0x64] sm:$0xf] %vm253_vm0, %v552_v25 }
  0xb4   : > { %266 = vrot.lane.b32.xlu1 %v258_v28, %s1245_s26  ;;  %255 = vst.msk [vmem:[#allocation2 + $0x4] sm:$0xf] %vm253_vm0, %v250_v22 }
  0xb5   : > { %446 = vrot.lane.b32.xlu0 %v437_v27, %s1247_s25  ;;  %254 = vst.msk [vmem:[#allocation2] sm:$0xf] %vm253_vm0, %v249_v24 }
  0xb6   : > { %v578_v30 = vpop.permute.xlu1 %577  ;;  %268 = vrot.lane.b32.xlu2 %v259_v29, %s1245_s26 }
  0xb7   : > { %v556_v31 = vpop.permute.xlu0 %555  ;;  %587 = vst.msk [vmem:[#allocation2 + $0x68] sm:$0xf] %vm278_vm1, %v578_v30 }
  0xb8   : > { %564 = vst.msk [vmem:[#allocation2 + $0x6c] sm:$0xf] %vm253_vm0, %v556_v31  ;;  %v521_v33 = vpop.permute.xlu2 %520 }
  0xb9   : > { %588 = vst.msk [vmem:[#allocation2 + $0x6c] sm:$0xf] %vm278_vm1, %v580_v8  ;;  %v1176_v34 = vld [vmem:[#allocation2 + $0x28] sm:$0xff]  ;;  %v526_v55 = vrot.slane %v521_v33, 4  ;;  %v251_v8 = vld [vmem:[%s1635_s0 + $0x10] sm:$0xf] }
  0xba   : > { %854 = vmatpush.bf16.msra.mxu0 %v1176_v34  ;;  %256 = vst.msk [vmem:[#allocation2 + $0x8] sm:$0xf] %vm253_vm0, %v251_v8 }
  0xbb   : > { %v531_v59 = vsel %vm528_vm3, %v521_v33, %v526_v55 }
  0xbc   : > { %470 = vrot.lane.b32.xlu1 %v461_v35, %s1248_s27  ;;  %v1091_v35 = vld [vmem:[%s228_s6 + $0x8] sm:$0xf] }
  0xbd   : > { %468 = vrot.lane.b32.xlu0 %v460_v32, %s1248_s27 }
  0xbe   : > { %v366_v36 = vpop.permute.xlu1 %365 }
  0xbf   : > { %v364_v37 = vpop.permute.xlu0 %363  ;;  %v372_v42 = vrot.slane %v366_v36, 4 }
  0xc0   : > { %v371_v38 = vrot.slane %v364_v37, 4  ;;  %v1184_v39 = vld [vmem:[#allocation2 + $0x68] sm:$0xff]  ;;  %v298_v40 = vpop.permute.xlu2 %297 }
  0xc1   : > { %306 = vst.msk [vmem:[#allocation2 + $0x1c] sm:$0xf] %vm253_vm0, %v298_v40  ;;  %868 = vmatpush.bf16.msra.mxu1 %v1184_v39  ;;  %v377_v45 = vsel %vm375_vm2, %v366_v36, %v372_v42  ;;  %v1170_v36 = vld [vmem:[%s228_s6 + $0x10] sm:$0xf0]  ;;  %v1169_v42 = vld [vmem:[%s228_s6 + $0x8] sm:$0xf0] }
  0xc2   : > { %v376_v41 = vsel %vm375_vm2, %v364_v37, %v371_v38  ;;  %v1092_v40 = vor.u32 %v1170_v36, %v1091_v35 }
  0xc3   : > { %384 = vst.msk [vmem:[#allocation2 + $0x20] sm:$0xf] %vm278_vm1, %v376_v41  ;;  %v1083_v41 = vld [vmem:[%s228_s6] sm:$0xf] }
  0xc6   : > { %v550_v43 = vpop.permute.xlu1 %549 }
  0xc7   : > { %v342_v44 = vpop.permute.xlu0 %341  ;;  %561 = vst.msk [vmem:[#allocation2 + $0x60] sm:$0xf] %vm253_vm0, %v550_v43 }
  0xc8   : > { %352 = vst.msk [vmem:[#allocation2 + $0x24] sm:$0xf] %vm253_vm0, %v342_v44  ;;  %v320_v46 = vpop.permute.xlu2 %319 }
  0xc9   : > { %385 = vst.msk [vmem:[#allocation2 + $0x24] sm:$0xf] %vm278_vm1, %v377_v45 }
  0xce   : > { %v576_v47 = vpop.permute.xlu1 %575 }
  0xcf   : > { %v574_v48 = vpop.permute.xlu0 %573  ;;  %586 = vst.msk [vmem:[#allocation2 + $0x64] sm:$0xf] %vm278_vm1, %v576_v47  ;;  %v1168_v47 = vld [vmem:[%s228_s6 + $0x4] sm:$0xf] }
  0xd0   : > { %585 = vst.msk [vmem:[#allocation2 + $0x60] sm:$0xf] %vm278_vm1, %v574_v48  ;;  %v1175_v49 = vld [vmem:[#allocation2 + $0x20] sm:$0xff]  ;;  %v519_v50 = vpop.permute.xlu2 %518  ;;  %v1085_v48 = vld [vmem:[%s228_s6 + $0xc] sm:$0xf0] }
  0xd1   : > { %855 = vmatpush.bf16.msra.mxu0 %v1175_v49  ;;  %v525_v9 = vrot.slane %v519_v50, 4 }
  0xd3   : > { %v530_v12 = vsel %vm528_vm3, %v519_v50, %v525_v9  ;;  %v1088_v50 = vor.u32 %v1168_v47, %v1085_v48  ;;  %v964_v48 = vld [vmem:[%s240_s13 + $0x8] sm:$0xff] }
  0xd6   : > { %v296_v52 = vpop.permute.xlu1 %295 }
  0xd7   : > { %v523_v51 = vpop.permute.xlu0 %522  ;;  %305 = vst.msk [vmem:[#allocation2 + $0x18] sm:$0xf] %vm253_vm0, %v296_v52  ;;  %v1183_v53 = vld [vmem:[#allocation2 + $0x60] sm:$0xff] }
  0xd8   : > { %329 = vst.msk [vmem:[#allocation2 + $0x18] sm:$0xf] %vm278_vm1, %v320_v46  ;;  %v493_v54 = vpop.permute.xlu2 %492  ;;  %869 = vmatpush.bf16.msra.mxu1 %v1183_v53  ;;  %v527_v56 = vrot.slane %v523_v51, 4  ;;  %v1084_v46 = vor.u32 %v1169_v42, %v1083_v41 }
  0xd9   : > { %504 = vst.msk [vmem:[#allocation2 + $0x50] sm:$0xf] %vm253_vm0, %v493_v54 }
  0xda   : > { %v532_v61 = vsel %vm528_vm3, %v523_v51, %v527_v56 }
  0xde   : > { %v499_v58 = vpop.permute.xlu1 %498 }
  0xdf   : > { %v497_v57 = vpop.permute.xlu0 %496  ;;  %507 = vst.msk [vmem:[#allocation2 + $0x5c] sm:$0xf] %vm253_vm0, %v499_v58 }
  0xe0   : > { %506 = vst.msk [vmem:[#allocation2 + $0x58] sm:$0xf] %vm253_vm0, %v497_v57  ;;  %v652_v60 = vpop.permute.xlu2 %651 }
  0xe1   : > { %539 = vst.msk [vmem:[#allocation2 + $0x58] sm:$0xf] %vm278_vm1, %v531_v59 }
  0xe2   : > { %540 = vst.msk [vmem:[#allocation2 + $0x5c] sm:$0xf] %vm278_vm1, %v532_v61 }
  0xe3   : > { %660 = vst.msk [vmem:[#allocation2 + $0x8c] sm:$0xf] %vm253_vm0, %v652_v60 }
  0xe6   : > { %v517_v63 = vpop.permute.xlu1 %516 }
  0xe7   : > { %v322_v62 = vpop.permute.xlu0 %321  ;;  %v524_v0 = vrot.slane %v517_v63, 4 }
  0xe8   : > { %330 = vst.msk [vmem:[#allocation2 + $0x1c] sm:$0xf] %vm278_vm1, %v322_v62  ;;  %v674_v1 = vpop.permute.xlu2 %673 }
  0xe9   : > { %v529_v2 = vsel %vm528_vm3, %v517_v63, %v524_v0  ;;  %v1182_v3 = vld [vmem:[#allocation2 + $0x58] sm:$0xff] }
  0xea   : > { %537 = vst.msk [vmem:[#allocation2 + $0x50] sm:$0xf] %vm278_vm1, %v529_v2  ;;  %870 = vmatpush.bf16.msra.mxu1 %v1182_v3  ;;  %v1249_v3 = vmov 32.0  }
  0xeb   : > { %1219 = vrcp.f32 %v1249_v3 }
  0xee   : > { %v294_v4 = vpop.permute.xlu1 %293 }
  0xef   : > { %v292_v5 = vpop.permute.xlu0 %291  ;;  %v1174_v6 = vld [vmem:[#allocation2 + $0x18] sm:$0xff]  ;;  %304 = vst.msk [vmem:[#allocation2 + $0x14] sm:$0xf] %vm253_vm0, %v294_v4 }
  0xf0   : > { %303 = vst.msk [vmem:[#allocation2 + $0x10] sm:$0xf] %vm253_vm0, %v292_v5  ;;  %856 = vmatpush.bf16.msra.mxu0 %v1174_v6  ;;  %v451_v7 = vpop.permute.xlu2 %450 }
  0xf1   : > { %459 = vst.msk [vmem:[#allocation2 + $0x4c] sm:$0xf] %vm253_vm0, %v451_v7  ;;  %v1220_v4 = vpop.eup %1219 }
  0xf2   : > { %v901_v5 = vmul.f32 32.0, %v1220_v4  ;;  %vm905_vm5 = vweird.f32 %v1220_v4 }
  0xf4   : > { %v902_v6 = vsub.f32 1.0, %v901_v5 }
  0xf6   : > { %v650_v11 = vpop.permute.xlu1 %649  ;;  %v903_v7 = vmul.f32 %v1220_v4, %v902_v6 }
  0xf7   : > { %v495_v10 = vpop.permute.xlu0 %494  ;;  %659 = vst.msk [vmem:[#allocation2 + $0x88] sm:$0xf] %vm253_vm0, %v650_v11 }
  0xf8   : > { %505 = vst.msk [vmem:[#allocation2 + $0x54] sm:$0xf] %vm253_vm0, %v495_v10  ;;  %v271_v13 = vpop.permute.xlu2 %270  ;;  %v904_v8 = vadd.f32 %v1220_v4, %v903_v7  ;;  %v1250_v10 = vmov 0  }
  0xf9   : > { %538 = vst.msk [vmem:[#allocation2 + $0x54] sm:$0xf] %vm278_vm1, %v530_v12  ;;  %1216 = vset.pattern.permute.xlu2 %v1250_v10  ;;  %1218 = vset.pattern.permute.xlu1 %v1250_v10 }
  0xfa   : > { %683 = vst.msk [vmem:[#allocation2 + $0x88] sm:$0xf] %vm278_vm1, %v674_v1  ;;  %v906_v9 = vsel %vm905_vm5, %v1220_v4, %v904_v8  ;;  %1217 = vset.pattern.permute.xlu0 %v1250_v10 }
  0xfb   : > { %281 = vst.msk [vmem:[#allocation2 + $0x8] sm:$0xf] %vm278_vm1, %v271_v13 }
  0xfe   : > { %v318_v16 = vpop.permute.xlu1 %317 }
  0xff   : > { %v316_v15 = vpop.permute.xlu0 %315  ;;  %328 = vst.msk [vmem:[#allocation2 + $0x14] sm:$0xf] %vm278_vm1, %v318_v16 }
 0x100   : > { %327 = vst.msk [vmem:[#allocation2 + $0x10] sm:$0xf] %vm278_vm1, %v316_v15  ;;  %v1181_v17 = vld [vmem:[#allocation2 + $0x50] sm:$0xff]  ;;  %v475_v18 = vpop.permute.xlu2 %474 }
 0x101   : > { %871 = vmatpush.bf16.msra.mxu1 %v1181_v17  ;;  %483 = vst.msk [vmem:[#allocation2 + $0x4c] sm:$0xf] %vm278_vm1, %v475_v18 }
 0x106   : > { %v449_v20 = vpop.permute.xlu1 %448 }
 0x107   : > { %v676_v19 = vpop.permute.xlu0 %675  ;;  %v1173_v21 = vld [vmem:[#allocation2 + $0x10] sm:$0xff]  ;;  %458 = vst.msk [vmem:[#allocation2 + $0x48] sm:$0xf] %vm253_vm0, %v449_v20 }
 0x108   : > { %684 = vst.msk [vmem:[#allocation2 + $0x8c] sm:$0xf] %vm278_vm1, %v676_v19  ;;  %v445_v23 = vpop.permute.xlu2 %444  ;;  %857 = vmatpush.bf16.msra.mxu0 %v1173_v21 }
 0x109   : > { %456 = vst.msk [vmem:[#allocation2 + $0x40] sm:$0xf] %vm253_vm0, %v445_v23 }
 0x10e   : > { %v648_v26 = vpop.permute.xlu1 %647 }
 0x10f   : > { %v646_v25 = vpop.permute.xlu0 %645  ;;  %v1188_v27 = vld [vmem:[#allocation2 + $0x88] sm:$0xff]  ;;  %658 = vst.msk [vmem:[#allocation2 + $0x84] sm:$0xf] %vm253_vm0, %v648_v26 }
 0x110   : > { %657 = vst.msk [vmem:[#allocation2 + $0x80] sm:$0xf] %vm253_vm0, %v646_v25  ;;  %886 = vmatpush.bf16.msra.mxu2 %v1188_v27  ;;  %v269_v28 = vpop.permute.xlu2 %268 }
 0x111   : > { %280 = vst.msk [vmem:[#allocation2 + $0x4] sm:$0xf] %vm278_vm1, %v269_v28 }
 0x116   : > { %v473_v29 = vpop.permute.xlu1 %472 }
 0x117   : > { %v273_v30 = vpop.permute.xlu0 %272  ;;  %482 = vst.msk [vmem:[#allocation2 + $0x48] sm:$0xf] %vm278_vm1, %v473_v29 }
 0x118   : > { %282 = vst.msk [vmem:[#allocation2 + $0xc] sm:$0xf] %vm278_vm1, %v273_v30 }
 0x11e   : > { %v672_v31 = vpop.permute.xlu1 %671  ;;  %v1180_v33 = vld [vmem:[#allocation2 + $0x48] sm:$0xff] }
 0x11f   : > { %v670_v32 = vpop.permute.xlu0 %669  ;;  %682 = vst.msk [vmem:[#allocation2 + $0x84] sm:$0xf] %vm278_vm1, %v672_v31  ;;  %v1172_v34 = vld [vmem:[#allocation2 + $0x8] sm:$0xff]  ;;  %872 = vmatpush.bf16.msra.mxu1 %v1180_v33 }
 0x120   : > { %681 = vst.msk [vmem:[#allocation2 + $0x80] sm:$0xf] %vm278_vm1, %v670_v32  ;;  %858 = vmatpush.bf16.msra.mxu0 %v1172_v34  ;;  %v925_v34 = vld [vmem:[%s234_s5] sm:$0xff] }
 0x126   : > { %v267_v38 = vpop.permute.xlu1 %266 }
 0x127   : > { %v447_v37 = vpop.permute.xlu0 %446  ;;  %v1187_v39 = vld [vmem:[#allocation2 + $0x80] sm:$0xff]  ;;  %279 = vst.msk [vmem:[#allocation2] sm:$0xf] %vm278_vm1, %v267_v38 }
 0x128   : > { %457 = vst.msk [vmem:[#allocation2 + $0x44] sm:$0xf] %vm253_vm0, %v447_v37  ;;  %887 = vmatpush.bf16.msra.mxu2 %v1187_v39 }
 0x12b   : > { %1165 = vmatmul.msk.bf16.vlgmr.msra.gmra.mxu2 %vm848_vm4, %v1092_v40  ;;  %v963_v40 = vld [vmem:[%s240_s13] sm:$0xff] }
 0x12e   : > { %v471_v44 = vpop.permute.xlu1 %470  ;;  %v1171_v45 = vld [vmem:[#allocation2] sm:$0xff] }
 0x12f   : > { %v469_v43 = vpop.permute.xlu0 %468  ;;  %481 = vst.msk [vmem:[#allocation2 + $0x44] sm:$0xf] %vm278_vm1, %v471_v44  ;;  %859 = vmatpush.bf16.msra.mxu0 %v1171_v45  ;;  %v926_v44 = vld [vmem:[%s234_s5 + $0x8] sm:$0xff] }
 0x130   : > { %480 = vst.msk [vmem:[#allocation2 + $0x40] sm:$0xf] %vm278_vm1, %v469_v43 }
 0x132   : > { %860 = vmatmul.bf16.vlgmr.msra.gmra.mxu0 %v1084_v46 }
 0x137   : > { %v1179_v49 = vld [vmem:[#allocation2 + $0x40] sm:$0xff] }
 0x138   : > { %873 = vmatpush.bf16.msra.mxu1 %v1179_v49 }
 0x13b   : > { %874 = vmatmul.bf16.vlgmr.msra.gmra.mxu1 %v1088_v50 }
 0x1ae   : > { %v889_v52 = vpop.f32.mrf.mxu2 }
 0x1af   : > { %v861_v51 = vpop.f32.mrf.mxu0 }
 0x1b6   : > { %v891_v62 = vpop.f32.mrf.mxu2 }
 0x1b7   : > { %v863_v59 = vpop.f32.mrf.mxu0 }
 0x1b8   : > { %v875_v53 = vpop.f32.mrf.mxu1 }
 0x1b9   : > { %v876_v54 = vadd.f32 %v875_v53, %v861_v51 }
 0x1bb   : > { %v1605_v55 = vadd.f32 %v889_v52, %v876_v54 }
 0x1bd   : > { %v894_v56 = vsel %vm848_vm4, %v1605_v55, 0.0  ;;  %v909_v57 = vmul.f32 %v1605_v55, %v1605_v55 }
 0x1be   : > { %895 = vadd.xlane.f32.xlu2 %v894_v56 }
 0x1bf   : > { %v911_v58 = vsel %vm848_vm4, %v909_v57, 0.0 }
 0x1c0   : > { %v877_v60 = vpop.f32.mrf.mxu1  ;;  %912 = vadd.xlane.f32.xlu1 %v911_v58 }
 0x1c1   : > { %v878_v61 = vadd.f32 %v877_v60, %v863_v59 }
 0x1c3   : > { %v1612_v63 = vadd.f32 %v891_v62, %v878_v61 }
 0x1c5   : > { %v897_v0 = vsel %vm848_vm4, %v1612_v63, 0.0  ;;  %v910_v1 = vmul.f32 %v1612_v63, %v1612_v63 }
 0x1c6   : > { %898 = vadd.xlane.f32.xlu0 %v897_v0 }
 0x1c7   : > { %v914_v2 = vsel %vm848_vm4, %v910_v1, 0.0 }
 0x1c8   : > { %915 = vadd.xlane.f32.xlu2 %v914_v2 }
 0x231   : > { %v896_v11 = vpop.xlane.xlu2 %895 }
 0x232   : > { %v907_v12 = vmul.f32 %v906_v9, %v896_v11 }
 0x233   : > { %v913_v13 = vpop.xlane.xlu1 %912 }
 0x234   : > { %v919_v14 = vmul.f32 %v907_v12, %v907_v12  ;;  %v917_v15 = vmul.f32 %v913_v13, %v906_v9 }
 0x236   : > { %v921_v16 = vsub.f32 %v917_v15, %v919_v14 }
 0x238   : > { %v923_v17 = vmax.f32 %v921_v16, 0.0 }
 0x239   : > { %v899_v18 = vpop.xlane.xlu0 %898 }
 0x23a   : > { %v927_v19 = vadd.f32 1e-05, %v923_v17  ;;  %v908_v20 = vmul.f32 %v906_v9, %v899_v18 }
 0x23b   : > { %v916_v21 = vpop.xlane.xlu2 %915 }
 0x23c   : > { %1221 = vrsqrt.f32 %v927_v19  ;;  %v920_v22 = vmul.f32 %v908_v20, %v908_v20  ;;  %v918_v23 = vmul.f32 %v916_v21, %v906_v9  ;;  %vm935_vm7 = vweird.f32 %v927_v19 }
 0x23e   : > { %v922_v24 = vsub.f32 %v918_v23, %v920_v22 }
 0x240   : > { %v924_v25 = vmax.f32 %v922_v24, 0.0 }
 0x242   : > { %v1222_v26 = vpop.eup %1221  ;;  %v928_v27 = vadd.f32 1e-05, %v924_v25 }
 0x243   : > { %v930_v28 = vmul.f32 %v1222_v26, %v927_v19  ;;  %vm936_vm6 = vweird.f32 %v1222_v26 }
 0x244   : > { %1223 = vrsqrt.f32 %v928_v27  ;;  %vm937_vm8 = vmor %vm935_vm7, %vm936_vm6  ;;  %vm945_vm10 = vweird.f32 %v928_v27 }
 0x245   : > { %v931_v29 = vmul.f32 %v1222_v26, %v930_v28 }
 0x247   : > { %v932_v30 = vmul.f32 0.5, %v931_v29 }
 0x249   : > { %v933_v31 = vsub.f32 1.5, %v932_v30 }
 0x24a   : > { %v1224_v32 = vpop.eup %1223 }
 0x24b   : > { %v940_v33 = vmul.f32 %v1224_v32, %v928_v27  ;;  %v934_v35 = vmul.f32 %v1222_v26, %v933_v31  ;;  %vm946_vm9 = vweird.f32 %v1224_v32 }
 0x24c   : > { %vm947_vm11 = vmor %vm945_vm10, %vm946_vm9 }
 0x24d   : > { %v941_v36 = vmul.f32 %v1224_v32, %v940_v33  ;;  %v938_v37 = vsel %vm937_vm8, %v1222_v26, %v934_v35 }
 0x24e   : > { %v949_v38 = vmul.f32 %v938_v37, %v925_v34 }
 0x24f   : > { %v942_v39 = vmul.f32 0.5, %v941_v36 }
 0x250   : > { %953 = vperm.xlu2 %1216, %v949_v38   ;;  %v965_v41 = vmul.f32 %v949_v38, %v907_v12 }
 0x251   : > { %v943_v42 = vsub.f32 1.5, %v942_v39 }
 0x252   : > { %v967_v43 = vsub.f32 %v963_v40, %v965_v41 }
 0x253   : > { %v944_v45 = vmul.f32 %v1224_v32, %v943_v42 }
 0x254   : > { %971 = vperm.xlu1 %1218, %v967_v43  }
 0x255   : > { %v948_v46 = vsel %vm947_vm11, %v1224_v32, %v944_v45 }
 0x256   : > { %v950_v47 = vmul.f32 %v948_v46, %v926_v44 }
 0x258   : > { %958 = vperm.xlu0 %1217, %v950_v47   ;;  %v966_v49 = vmul.f32 %v950_v47, %v908_v20 }
 0x25a   : > { %v968_v50 = vsub.f32 %v964_v48, %v966_v49 }
 0x25c   : > { %976 = vperm.xlu2 %1216, %v968_v50  }
 0x2aa   : > { %v954_v51 = vpop.permute.xlu2 %953 }
 0x2ab   : > { %v961_v52 = vmul.f32 %v954_v51, %v1605_v55 }
 0x2b6   : > { %v977_v60 = vpop.permute.xlu2 %976 }
 0x2c6   : > { %v972_v53 = vpop.permute.xlu1 %971 }
 0x2c7   : > { %v979_v54 = vadd.f32 %v972_v53, %v961_v52 }
 0x2c9   : > { %v981_v56 = vmax.f32 %v979_v54, 0.0 }
 0x2ca   : > { %v959_v57 = vpop.permute.xlu0 %958 }
 0x2cb   : > { %v983_v58 = vpack.c.bf16 %v981_v56, %v981_v56  ;;  %v962_v59 = vmul.f32 %v959_v57, %v1612_v63 }
 0x2cd   : > { %986 = vst.msk [vmem:[%s246_s19] sm:$0xf] %vm985_vm12, %v983_v58  ;;  %v980_v61 = vadd.f32 %v977_v60, %v962_v59 }
 0x2cf   : > { %v982_v62 = vmax.f32 %v980_v61, 0.0 }
 0x2d1   : > { %v984_v0 = vpack.c.bf16 %v982_v62, %v982_v62 }
 0x2d3   : > { %987 = vst.msk [vmem:[%s246_s19 + $0x4] sm:$0xf] %vm985_vm12, %v984_v0 }
 0x2d4 PF: > { %s14_s15 = sadd.s32 1, %s1231_s15  }
 0x2d5   : > { %p11_p4 = scmp.ge.s32.totalorder %s14_s15, 4  }
 0x2d7   :  { %13 = sbr.rel (!%p11_p4) target bundleno = 1 (0x1), region = 72 }

// kernel: _lambda_.14
= control target key start
LH: loop header
LB: loop body
LE: loop exit
PB: predicated region body
PF: predicated region fallthrough
CT: control target
= control target key end

     0   :  { %s1352_s18 = smov 0   ;;  %s1714_s0 = inlined_call_operand.vmem [shape: bf16[32,144], index: 0, kind: input, shape index: {}]   ;;  %s1715_s1 = inlined_call_operand.vmem [shape: bf16[32,288], index: 1, kind: input, shape index: {}]   ;;  %s1716_s2 = inlined_call_operand.vmem [shape: f32[32,1], index: 2, kind: input, shape index: {}]   ;;  %s1717_s3 = inlined_call_operand.vmem [shape: f32[32,1], index: 3, kind: input, shape index: {}]   ;;  %s1718_s4 = inlined_call_operand.vmem [shape: bf16[32,32], index: 4, kind: input, shape index: {}]   ;;  %s1719_s5 = inlined_call_operand.vmem [shape: bf16[32,32], index: 5, kind: output, shape index: {}]  }
   0x1 LB: > { %s1133_s19 = sadd.s32 4294967295, %s1302_s18   ;;  %p1137_p0 = scmp.ge.s32.totalorder %s1302_s18, 1  ;;  %s1302_s18 = sphi %s1352_s18, %s15_s18  }
   0x2   : > { %p222_p1 = scmp.lt.s32.totalorder %s1302_s18, 3 }
   0x4   : > { %p223_p2 = pnand %p1137_p0, %p222_p1 }
   0x5   : > { %s1304_s24 = smov (!%p223_p2), 96   ;;  %s1305_s25 = smov (!%p223_p2), 124  }
   0x6   : > { %226 = sbr.rel (%p223_p2) target bundleno = 724 (0x2d4), region = 40  ;;  %s1306_s28 = smov (!%p223_p2), 68  }
   0x7   : > { %s1307_s16 = smov (!%p223_p2), 40   ;;  %s1308_s13 = smov (!%p223_p2), 24  }
   0x8   : > { %s1309_s22 = smov (!%p223_p2), 80   ;;  %s1310_s23 = smov (!%p223_p2), 120  }
   0x9   : > { %s1311_s7 = smov (!%p223_p2), 64   ;;  %s1312_s27 = smov (!%p223_p2), 20  }
   0xa   : > { %s1314_s11 = smov (!%p223_p2), 76   ;;  %s1315_s12 = smov (!%p223_p2), 48  }
   0xb   : > { %v640_v0 = vld [vmem:[%s1714_s0 + $0x10] sm:$0xf]  ;;  %v641_v3 = vld [vmem:[%s1714_s0 + $0x18] sm:$0xf]  ;;  %v437_v8 = vld [vmem:[%s1714_s0] sm:$0xf] }
   0xc   : > { %v439_v1 = vld [vmem:[%s1714_s0 + $0x10] sm:$0xf]  ;;  %650 = vrot.lane.b32.xlu1 %v640_v0, %s1304_s24  ;;  %v440_v4 = vld [vmem:[%s1714_s0 + $0x18] sm:$0xf]  ;;  %v638_v9 = vld [vmem:[%s1714_s0] sm:$0xf] }
   0xd   : > { %449 = vrot.lane.b32.xlu0 %v439_v1, %s1305_s25  ;;  %v463_v2 = vld [vmem:[%s1714_s0 + $0x10] sm:$0xf]  ;;  %v464_v5 = vld [vmem:[%s1714_s0 + $0x18] sm:$0xf]  ;;  %v438_v10 = vld [vmem:[%s1714_s0 + $0x8] sm:$0xf] }
   0xe   : > { %473 = vrot.lane.b32.xlu2 %v463_v2, %s1306_s28  ;;  %v665_v6 = vld [vmem:[%s1714_s0 + $0x18] sm:$0xf]  ;;  %v664_v7 = vld [vmem:[%s1714_s0 + $0x10] sm:$0xf]  ;;  %v639_v11 = vld [vmem:[%s1714_s0 + $0x8] sm:$0xf] }
   0xf   : > { %v462_v12 = vld [vmem:[%s1714_s0 + $0x8] sm:$0xf]  ;;  %v461_v13 = vld [vmem:[%s1714_s0] sm:$0xf]  ;;  %v406_v16 = vld [vmem:[%s1714_s0 + $0x10] sm:$0xff]  ;;  %vm302_vm0 = vcmask 125952  }
  0x10   : > { %v662_v14 = vld [vmem:[%s1714_s0] sm:$0xf]  ;;  %v663_v15 = vld [vmem:[%s1714_s0 + $0x8] sm:$0xf]  ;;  %v407_v17 = vld [vmem:[%s1714_s0 + $0x18] sm:$0xff]  ;;  %vm327_vm1 = vcmask 257152  }
  0x11   : > { %v383_v18 = vld [vmem:[%s1714_s0 + $0x18] sm:$0xf]  ;;  %v382_v19 = vld [vmem:[%s1714_s0 + $0x10] sm:$0xf]  ;;  %v405_v24 = vld [vmem:[%s1714_s0 + $0x8] sm:$0xff]  ;;  %s1318_s21 = smov 100  }
  0x12   : > { %v592_v20 = vld [vmem:[%s1714_s0 + $0x10] sm:$0xf]  ;;  %v593_v22 = vld [vmem:[%s1714_s0 + $0x18] sm:$0xf]  ;;  %v404_v25 = vld [vmem:[%s1714_s0] sm:$0xff]  ;;  %vm424_vm2 = vcmask 195584  }
  0x13   : > { %v616_v21 = vld [vmem:[%s1714_s0 + $0x10] sm:$0xf]  ;;  %v617_v23 = vld [vmem:[%s1714_s0 + $0x18] sm:$0xf]  ;;  %v380_v26 = vld [vmem:[%s1714_s0] sm:$0xf] }
  0x14   : > { %652 = vrot.lane.b32.xlu1 %v641_v3, %s1304_s24  ;;  %v590_v27 = vld [vmem:[%s1714_s0] sm:$0xf]  ;;  %v381_v28 = vld [vmem:[%s1714_s0 + $0x8] sm:$0xf]  ;;  %v334_v32 = vld [vmem:[%s1714_s0 + $0x10] sm:$0xf] }
  0x15   : > { %451 = vrot.lane.b32.xlu0 %v440_v4, %s1305_s25  ;;  %v591_v29 = vld [vmem:[%s1714_s0 + $0x8] sm:$0xf]  ;;  %v614_v31 = vld [vmem:[%s1714_s0] sm:$0xf]  ;;  %v335_v33 = vld [vmem:[%s1714_s0 + $0x18] sm:$0xf] }
  0x16   : > { %475 = vrot.lane.b32.xlu2 %v464_v5, %s1306_s28  ;;  %v615_v30 = vld [vmem:[%s1714_s0 + $0x8] sm:$0xf]  ;;  %v535_v35 = vld [vmem:[%s1714_s0 + $0x10] sm:$0xf]  ;;  %v536_v36 = vld [vmem:[%s1714_s0 + $0x18] sm:$0xf] }
  0x17   : > { %v358_v37 = vld [vmem:[%s1714_s0 + $0x10] sm:$0xf]  ;;  %v359_v39 = vld [vmem:[%s1714_s0 + $0x18] sm:$0xf]  ;;  %v333_v41 = vld [vmem:[%s1714_s0 + $0x8] sm:$0xf] }
  0x18   : > { %v332_v42 = vld [vmem:[%s1714_s0] sm:$0xf]  ;;  %v534_v47 = vld [vmem:[%s1714_s0 + $0x8] sm:$0xf]  ;;  %v688_v48 = vld [vmem:[%s1714_s0 + $0x10] sm:$0xf] }
  0x19   : > { %v533_v43 = vld [vmem:[%s1714_s0] sm:$0xf]  ;;  %v689_v49 = vld [vmem:[%s1714_s0 + $0x18] sm:$0xf]  ;;  %v357_v54 = vld [vmem:[%s1714_s0 + $0x8] sm:$0xf] }
  0x1a   : > { %v356_v53 = vld [vmem:[%s1714_s0] sm:$0xf]  ;;  %v712_v55 = vld [vmem:[%s1714_s0 + $0x14] sm:$0xf]  ;;  %v713_v60 = vld [vmem:[%s1714_s0 + $0x1c] sm:$0xf] }
  0x1b   : > { %v487_v61 = vld [vmem:[%s1714_s0 + $0x10] sm:$0xf]  ;;  %v488_v62 = vld [vmem:[%s1714_s0 + $0x18] sm:$0xf]  ;;  %v686_v3 = vld [vmem:[%s1714_s0] sm:$0xf] }
  0x1c   : > { %676 = vrot.lane.b32.xlu1 %v665_v6, %s1307_s16  ;;  %v687_v4 = vld [vmem:[%s1714_s0 + $0x8] sm:$0xf]  ;;  %v309_v5 = vld [vmem:[%s1714_s0 + $0x10] sm:$0xf]  ;;  %vm577_vm3 = vcmask 162816   ;;  %s1138_s14 = sshll.u32 %s1133_s19, 1 }
  0x1d   : > { %674 = vrot.lane.b32.xlu0 %v664_v7, %s1307_s16  ;;  %p267_p3 = scmp.lt.s32.totalorder %s1138_s14, 3  ;;  %vm897_vm4 = vcmask 261120   ;;  %vm1038_vm12 = vcmask 257024  }
  0x1e   : > { %445 = vrot.lane.b32.xlu2 %v437_v8, %s1305_s25 }
  0x1f   : > { %s1721_s14 = smov (!%p267_p3, %s1138_s14), 3 }
  0x20   : > { %s1260_s15 = smul.u32 12, %s1721_s14  ;;  %s1145_s29 = sshll.u32 %s1721_s14, 2 }
  0x22   : > { %s271_s17 = scalar_lea.vmem %s1715_s1, %s1260_s15 }
  0x24   : > { %646 = vrot.lane.b32.xlu1 %v638_v9, %s1304_s24  ;;  %v511_v9 = vld [vmem:[%s1714_s0 + $0x10] sm:$0xf] }
  0x25   : > { %447 = vrot.lane.b32.xlu0 %v438_v10, %s1305_s25  ;;  %v310_v10 = vld [vmem:[%s1714_s0 + $0x18] sm:$0xf] }
  0x26   : > { %648 = vrot.lane.b32.xlu2 %v639_v11, %s1304_s24  ;;  %v512_v11 = vld [vmem:[%s1714_s0 + $0x18] sm:$0xf]  ;;  %s1319_s24 = smov 44  }
  0x2c   : > { %471 = vrot.lane.b32.xlu1 %v462_v12, %s1306_s28 }
  0x2d   : > { %469 = vrot.lane.b32.xlu0 %v461_v13, %s1306_s28 }
  0x2e   : > { %670 = vrot.lane.b32.xlu2 %v662_v14, %s1307_s16 }
  0x34   : > { %416 = vrot.lane.b32.xlu1 %v406_v16, %s1308_s13 }
  0x35   : > { %672 = vrot.lane.b32.xlu0 %v663_v15, %s1307_s16  ;;  %v711_v15 = vld [vmem:[%s1714_s0 + $0xc] sm:$0xf] }
  0x36   : > { %418 = vrot.lane.b32.xlu2 %v407_v17, %s1308_s13 }
  0x3c   : > { %394 = vrot.lane.b32.xlu1 %v383_v18, %s1309_s22  ;;  %v710_v18 = vld [vmem:[%s1714_s0 + $0x4] sm:$0xf] }
  0x3d   : > { %392 = vrot.lane.b32.xlu0 %v382_v19, %s1309_s22  ;;  %v485_v19 = vld [vmem:[%s1714_s0] sm:$0xf] }
  0x3e   : > { %602 = vrot.lane.b32.xlu2 %v592_v20, %s1310_s23 }
  0x44   : > { %626 = vrot.lane.b32.xlu1 %v616_v21, %s1311_s7 }
  0x45   : > { %604 = vrot.lane.b32.xlu0 %v593_v22, %s1310_s23 }
  0x46   : > { %628 = vrot.lane.b32.xlu2 %v617_v23, %s1311_s7 }
  0x4c   : > { %414 = vrot.lane.b32.xlu1 %v405_v24, %s1308_s13 }
  0x4d   : > { %412 = vrot.lane.b32.xlu0 %v404_v25, %s1308_s13 }
  0x4e   : > { %388 = vrot.lane.b32.xlu2 %v380_v26, %s1309_s22 }
  0x54   : > { %598 = vrot.lane.b32.xlu1 %v590_v27, %s1310_s23  ;;  %v486_v27 = vld [vmem:[%s1714_s0 + $0x8] sm:$0xf] }
  0x55   : > { %390 = vrot.lane.b32.xlu0 %v381_v28, %s1309_s22  ;;  %s1313_s22 = smov 104   ;;  %v307_v28 = vld [vmem:[%s1714_s0] sm:$0xf] }
  0x56   : > { %600 = vrot.lane.b32.xlu2 %v591_v29, %s1310_s23  ;;  %v308_v29 = vld [vmem:[%s1714_s0 + $0x8] sm:$0xf]  ;;  %s295_s23 = scalar_lea.vmem %s1719_s5, %s1145_s29 }
  0x5c   : > { %624 = vrot.lane.b32.xlu1 %v615_v30, %s1311_s7 }
  0x5d   : > { %622 = vrot.lane.b32.xlu0 %v614_v31, %s1311_s7 }
  0x5e   : > { %569 = vrot.lane.b32.xlu2 %v406_v16, %s1312_s27 }
  0x64   : > { %344 = vrot.lane.b32.xlu1 %v334_v32, %s1313_s22  ;;  %v509_v32 = vld [vmem:[%s1714_s0] sm:$0xf] }
  0x65   : > { %571 = vrot.lane.b32.xlu0 %v407_v17, %s1312_s27 }
  0x66   : > { %346 = vrot.lane.b32.xlu2 %v335_v33, %s1313_s22 }
  0x68   : > { %v474_v34 = vpop.permute.xlu2 %473 }
  0x6c   : > { %547 = vrot.lane.b32.xlu1 %v536_v36, %s1314_s11 }
  0x6d   : > { %545 = vrot.lane.b32.xlu0 %v535_v35, %s1314_s11  ;;  %v510_v35 = vld [vmem:[%s1714_s0 + $0x8] sm:$0xf] }
  0x6e   : > { %368 = vrot.lane.b32.xlu2 %v358_v37, %s1315_s12 }
  0x70   : > { %v476_v38 = vpop.permute.xlu2 %475 }
  0x74   : > { %565 = vrot.lane.b32.xlu1 %v404_v25, %s1312_s27 }
  0x75   : > { %370 = vrot.lane.b32.xlu0 %v359_v39, %s1315_s12 }
  0x76   : > { %567 = vrot.lane.b32.xlu2 %v405_v24, %s1312_s27 }
  0x78   : > { %v446_v40 = vpop.permute.xlu2 %445 }
  0x79   : > { %457 = vst.msk [vmem:[#allocation2 + $0x30] sm:$0xf] %vm302_vm0, %v446_v40 }
  0x7c   : > { %342 = vrot.lane.b32.xlu1 %v333_v41, %s1313_s22 }
  0x7d   : > { %340 = vrot.lane.b32.xlu0 %v332_v42, %s1313_s22  ;;  %s1316_s22 = smov 72  }
  0x7e   : > { %v651_v44 = vpop.permute.xlu1 %650  ;;  %541 = vrot.lane.b32.xlu2 %v533_v43, %s1314_s11 }
  0x7f   : > { %v450_v45 = vpop.permute.xlu0 %449  ;;  %660 = vst.msk [vmem:[#allocation2 + $0x78] sm:$0xf] %vm302_vm0, %v651_v44 }
  0x80   : > { %459 = vst.msk [vmem:[#allocation2 + $0x38] sm:$0xf] %vm302_vm0, %v450_v45  ;;  %v649_v46 = vpop.permute.xlu2 %648 }
  0x81   : > { %483 = vst.msk [vmem:[#allocation2 + $0x38] sm:$0xf] %vm327_vm1, %v474_v34 }
  0x82   : > { %659 = vst.msk [vmem:[#allocation2 + $0x74] sm:$0xf] %vm302_vm0, %v649_v46 }
  0x84   : > { %698 = vrot.lane.b32.xlu1 %v688_v48, %s1316_s22 }
  0x85   : > { %543 = vrot.lane.b32.xlu0 %v534_v47, %s1314_s11  ;;  %s1317_s11 = smov 16  }
  0x86   : > { %v653_v50 = vpop.permute.xlu1 %652  ;;  %700 = vrot.lane.b32.xlu2 %v689_v49, %s1316_s22 }
  0x87   : > { %v452_v51 = vpop.permute.xlu0 %451  ;;  %661 = vst.msk [vmem:[#allocation2 + $0x7c] sm:$0xf] %vm302_vm0, %v653_v50 }
  0x88   : > { %460 = vst.msk [vmem:[#allocation2 + $0x3c] sm:$0xf] %vm302_vm0, %v452_v51  ;;  %v671_v52 = vpop.permute.xlu2 %670 }
  0x89   : > { %484 = vst.msk [vmem:[#allocation2 + $0x3c] sm:$0xf] %vm327_vm1, %v476_v38 }
  0x8c   : > { %366 = vrot.lane.b32.xlu1 %v357_v54, %s1315_s12 }
  0x8d   : > { %364 = vrot.lane.b32.xlu0 %v356_v53, %s1315_s12  ;;  %s1141_s12 = sshll.u32 %s1721_s14, 3 }
  0x8e   : > { %v677_v56 = vpop.permute.xlu1 %676  ;;  %722 = vrot.lane.b32.xlu2 %v712_v55, %s1317_s11  ;;  %s277_s16 = scalar_lea.vmem %s1716_s2, %s1141_s12  ;;  %s283_s27 = scalar_lea.vmem %s1717_s3, %s1141_s12 }
  0x8f   : > { %v675_v57 = vpop.permute.xlu0 %674  ;;  %685 = vst.msk [vmem:[#allocation2 + $0x7c] sm:$0xf] %vm327_vm1, %v677_v56 }
  0x90   : > { %684 = vst.msk [vmem:[#allocation2 + $0x78] sm:$0xf] %vm327_vm1, %v675_v57  ;;  %v1245_v58 = vld [vmem:[#allocation2 + $0x38] sm:$0xff]  ;;  %v419_v59 = vpop.permute.xlu2 %418 }
  0x91   : > { %901 = vmatpush.bf16.msra.mxu0 %v1245_v58  ;;  %v423_v17 = vrot.slane %v419_v59, 4 }
  0x93   : > { %v428_v20 = vsel %vm424_vm2, %v419_v59, %v423_v17 }
  0x94   : > { %497 = vrot.lane.b32.xlu1 %v487_v61, %s1318_s21 }
  0x95   : > { %724 = vrot.lane.b32.xlu0 %v713_v60, %s1317_s11 }
  0x96   : > { %v647_v63 = vpop.permute.xlu1 %646  ;;  %499 = vrot.lane.b32.xlu2 %v488_v62, %s1318_s21 }
  0x97   : > { %v448_v0 = vpop.permute.xlu0 %447  ;;  %658 = vst.msk [vmem:[#allocation2 + $0x70] sm:$0xf] %vm302_vm0, %v647_v63  ;;  %v1253_v1 = vld [vmem:[#allocation2 + $0x78] sm:$0xff] }
  0x98   : > { %458 = vst.msk [vmem:[#allocation2 + $0x34] sm:$0xf] %vm302_vm0, %v448_v0  ;;  %v603_v2 = vpop.permute.xlu2 %602  ;;  %915 = vmatpush.bf16.msra.mxu1 %v1253_v1 }
  0x99   : > { %682 = vst.msk [vmem:[#allocation2 + $0x70] sm:$0xf] %vm327_vm1, %v671_v52 }
  0x9a   : > { %612 = vst.msk [vmem:[#allocation2 + $0x68] sm:$0xf] %vm302_vm0, %v603_v2 }
  0x9c   : > { %696 = vrot.lane.b32.xlu1 %v687_v4, %s1316_s22 }
  0x9d   : > { %694 = vrot.lane.b32.xlu0 %v686_v3, %s1316_s22 }
  0x9e   : > { %v472_v6 = vpop.permute.xlu1 %471  ;;  %319 = vrot.lane.b32.xlu2 %v309_v5, %s1316_s22 }
  0x9f   : > { %v470_v7 = vpop.permute.xlu0 %469  ;;  %482 = vst.msk [vmem:[#allocation2 + $0x34] sm:$0xf] %vm327_vm1, %v472_v6 }
  0xa0   : > { %481 = vst.msk [vmem:[#allocation2 + $0x30] sm:$0xf] %vm327_vm1, %v470_v7  ;;  %v629_v8 = vpop.permute.xlu2 %628 }
  0xa4   : > { %521 = vrot.lane.b32.xlu1 %v511_v9, %s1319_s24 }
  0xa5   : > { %321 = vrot.lane.b32.xlu0 %v310_v10, %s1316_s22 }
  0xa6   : > { %v417_v13 = vpop.permute.xlu1 %416  ;;  %523 = vrot.lane.b32.xlu2 %v512_v11, %s1319_s24 }
  0xa7   : > { %v673_v12 = vpop.permute.xlu0 %672  ;;  %v1244_v14 = vld [vmem:[#allocation2 + $0x30] sm:$0xff]  ;;  %v422_v21 = vrot.slane %v417_v13, 4 }
  0xa8   : > { %683 = vst.msk [vmem:[#allocation2 + $0x74] sm:$0xf] %vm327_vm1, %v673_v12  ;;  %v389_v16 = vpop.permute.xlu2 %388  ;;  %902 = vmatpush.bf16.msra.mxu0 %v1244_v14  ;;  %v301_v14 = vld [vmem:[%s1714_s0 + $0x18] sm:$0xf] }
  0xa9   : > { %400 = vst.msk [vmem:[#allocation2 + $0x20] sm:$0xf] %vm302_vm0, %v389_v16  ;;  %v427_v26 = vsel %vm424_vm2, %v417_v13, %v422_v21 }
  0xaa   : > { %306 = vst.msk [vmem:[#allocation2 + $0xc] sm:$0xf] %vm302_vm0, %v301_v14 }
  0xac   : > { %720 = vrot.lane.b32.xlu1 %v711_v15, %s1317_s11 }
  0xad   : > { %718 = vrot.lane.b32.xlu0 %v710_v18, %s1317_s11 }
  0xae   : > { %v395_v22 = vpop.permute.xlu1 %394  ;;  %493 = vrot.lane.b32.xlu2 %v485_v19, %s1318_s21 }
  0xaf   : > { %v393_v23 = vpop.permute.xlu0 %392  ;;  %v1252_v24 = vld [vmem:[#allocation2 + $0x70] sm:$0xff]  ;;  %403 = vst.msk [vmem:[#allocation2 + $0x2c] sm:$0xf] %vm302_vm0, %v395_v22  ;;  %v299_v22 = vld [vmem:[%s1714_s0 + $0x8] sm:$0xf] }
  0xb0   : > { %436 = vst.msk [vmem:[#allocation2 + $0x2c] sm:$0xf] %vm327_vm1, %v428_v20  ;;  %916 = vmatpush.bf16.msra.mxu1 %v1252_v24  ;;  %v601_v25 = vpop.permute.xlu2 %600  ;;  %v298_v24 = vld [vmem:[%s1714_s0] sm:$0xf] }
  0xb1   : > { %402 = vst.msk [vmem:[#allocation2 + $0x28] sm:$0xf] %vm302_vm0, %v393_v23 }
  0xb2   : > { %435 = vst.msk [vmem:[#allocation2 + $0x28] sm:$0xf] %vm327_vm1, %v427_v26 }
  0xb3   : > { %611 = vst.msk [vmem:[#allocation2 + $0x64] sm:$0xf] %vm302_vm0, %v601_v25 }
  0xb4   : > { %315 = vrot.lane.b32.xlu1 %v307_v28, %s1316_s22  ;;  %304 = vst.msk [vmem:[#allocation2 + $0x4] sm:$0xf] %vm302_vm0, %v299_v22 }
  0xb5   : > { %495 = vrot.lane.b32.xlu0 %v486_v27, %s1318_s21  ;;  %303 = vst.msk [vmem:[#allocation2] sm:$0xf] %vm302_vm0, %v298_v24  ;;  %s289_s21 = scalar_lea.vmem %s1718_s4, %s1145_s29 }
  0xb6   : > { %v627_v30 = vpop.permute.xlu1 %626  ;;  %317 = vrot.lane.b32.xlu2 %v308_v29, %s1316_s22 }
  0xb7   : > { %v605_v31 = vpop.permute.xlu0 %604  ;;  %636 = vst.msk [vmem:[#allocation2 + $0x68] sm:$0xf] %vm327_vm1, %v627_v30 }
  0xb8   : > { %613 = vst.msk [vmem:[#allocation2 + $0x6c] sm:$0xf] %vm302_vm0, %v605_v31  ;;  %v570_v33 = vpop.permute.xlu2 %569 }
  0xb9   : > { %637 = vst.msk [vmem:[#allocation2 + $0x6c] sm:$0xf] %vm327_vm1, %v629_v8  ;;  %v1243_v34 = vld [vmem:[#allocation2 + $0x28] sm:$0xff]  ;;  %v575_v55 = vrot.slane %v570_v33, 4  ;;  %v300_v8 = vld [vmem:[%s1714_s0 + $0x10] sm:$0xf] }
  0xba   : > { %903 = vmatpush.bf16.msra.mxu0 %v1243_v34  ;;  %305 = vst.msk [vmem:[#allocation2 + $0x8] sm:$0xf] %vm302_vm0, %v300_v8 }
  0xbb   : > { %v580_v59 = vsel %vm577_vm3, %v570_v33, %v575_v55 }
  0xbc   : > { %519 = vrot.lane.b32.xlu1 %v510_v35, %s1319_s24  ;;  %v1158_v35 = vld [vmem:[%s271_s17 + $0x8] sm:$0xf] }
  0xbd   : > { %517 = vrot.lane.b32.xlu0 %v509_v32, %s1319_s24 }
  0xbe   : > { %v415_v36 = vpop.permute.xlu1 %414 }
  0xbf   : > { %v413_v37 = vpop.permute.xlu0 %412  ;;  %v421_v42 = vrot.slane %v415_v36, 4 }
  0xc0   : > { %v420_v38 = vrot.slane %v413_v37, 4  ;;  %v1251_v39 = vld [vmem:[#allocation2 + $0x68] sm:$0xff]  ;;  %v347_v40 = vpop.permute.xlu2 %346 }
  0xc1   : > { %355 = vst.msk [vmem:[#allocation2 + $0x1c] sm:$0xf] %vm302_vm0, %v347_v40  ;;  %917 = vmatpush.bf16.msra.mxu1 %v1251_v39  ;;  %v426_v45 = vsel %vm424_vm2, %v415_v36, %v421_v42  ;;  %v1237_v36 = vld [vmem:[%s271_s17 + $0x10] sm:$0xf0]  ;;  %v1236_v42 = vld [vmem:[%s271_s17 + $0x8] sm:$0xf0] }
  0xc2   : > { %v425_v41 = vsel %vm424_vm2, %v413_v37, %v420_v38  ;;  %v1159_v40 = vor.u32 %v1237_v36, %v1158_v35 }
  0xc3   : > { %433 = vst.msk [vmem:[#allocation2 + $0x20] sm:$0xf] %vm327_vm1, %v425_v41  ;;  %v1150_v41 = vld [vmem:[%s271_s17] sm:$0xf] }
  0xc6   : > { %v599_v43 = vpop.permute.xlu1 %598 }
  0xc7   : > { %v391_v44 = vpop.permute.xlu0 %390  ;;  %610 = vst.msk [vmem:[#allocation2 + $0x60] sm:$0xf] %vm302_vm0, %v599_v43 }
  0xc8   : > { %401 = vst.msk [vmem:[#allocation2 + $0x24] sm:$0xf] %vm302_vm0, %v391_v44  ;;  %v369_v46 = vpop.permute.xlu2 %368 }
  0xc9   : > { %434 = vst.msk [vmem:[#allocation2 + $0x24] sm:$0xf] %vm327_vm1, %v426_v45 }
  0xce   : > { %v625_v47 = vpop.permute.xlu1 %624 }
  0xcf   : > { %v623_v48 = vpop.permute.xlu0 %622  ;;  %635 = vst.msk [vmem:[#allocation2 + $0x64] sm:$0xf] %vm327_vm1, %v625_v47  ;;  %v1235_v47 = vld [vmem:[%s271_s17 + $0x4] sm:$0xf] }
  0xd0   : > { %634 = vst.msk [vmem:[#allocation2 + $0x60] sm:$0xf] %vm327_vm1, %v623_v48  ;;  %v1242_v49 = vld [vmem:[#allocation2 + $0x20] sm:$0xff]  ;;  %v568_v50 = vpop.permute.xlu2 %567  ;;  %v1152_v48 = vld [vmem:[%s271_s17 + $0xc] sm:$0xf0] }
  0xd1   : > { %904 = vmatpush.bf16.msra.mxu0 %v1242_v49  ;;  %v574_v9 = vrot.slane %v568_v50, 4 }
  0xd3   : > { %v579_v12 = vsel %vm577_vm3, %v568_v50, %v574_v9  ;;  %v1155_v50 = vor.u32 %v1235_v47, %v1152_v48  ;;  %v1013_v48 = vld [vmem:[%s283_s27 + $0x8] sm:$0xff] }
  0xd6   : > { %v345_v52 = vpop.permute.xlu1 %344 }
  0xd7   : > { %v572_v51 = vpop.permute.xlu0 %571  ;;  %354 = vst.msk [vmem:[#allocation2 + $0x18] sm:$0xf] %vm302_vm0, %v345_v52  ;;  %v1250_v53 = vld [vmem:[#allocation2 + $0x60] sm:$0xff] }
  0xd8   : > { %378 = vst.msk [vmem:[#allocation2 + $0x18] sm:$0xf] %vm327_vm1, %v369_v46  ;;  %v542_v54 = vpop.permute.xlu2 %541  ;;  %918 = vmatpush.bf16.msra.mxu1 %v1250_v53  ;;  %v576_v56 = vrot.slane %v572_v51, 4  ;;  %v1151_v46 = vor.u32 %v1236_v42, %v1150_v41 }
  0xd9   : > { %553 = vst.msk [vmem:[#allocation2 + $0x50] sm:$0xf] %vm302_vm0, %v542_v54 }
  0xda   : > { %v581_v61 = vsel %vm577_vm3, %v572_v51, %v576_v56 }
  0xde   : > { %v548_v58 = vpop.permute.xlu1 %547 }
  0xdf   : > { %v546_v57 = vpop.permute.xlu0 %545  ;;  %556 = vst.msk [vmem:[#allocation2 + $0x5c] sm:$0xf] %vm302_vm0, %v548_v58 }
  0xe0   : > { %555 = vst.msk [vmem:[#allocation2 + $0x58] sm:$0xf] %vm302_vm0, %v546_v57  ;;  %v701_v60 = vpop.permute.xlu2 %700 }
  0xe1   : > { %588 = vst.msk [vmem:[#allocation2 + $0x58] sm:$0xf] %vm327_vm1, %v580_v59 }
  0xe2   : > { %589 = vst.msk [vmem:[#allocation2 + $0x5c] sm:$0xf] %vm327_vm1, %v581_v61 }
  0xe3   : > { %709 = vst.msk [vmem:[#allocation2 + $0x8c] sm:$0xf] %vm302_vm0, %v701_v60 }
  0xe6   : > { %v566_v63 = vpop.permute.xlu1 %565 }
  0xe7   : > { %v371_v62 = vpop.permute.xlu0 %370  ;;  %v573_v0 = vrot.slane %v566_v63, 4 }
  0xe8   : > { %379 = vst.msk [vmem:[#allocation2 + $0x1c] sm:$0xf] %vm327_vm1, %v371_v62  ;;  %v723_v1 = vpop.permute.xlu2 %722 }
  0xe9   : > { %v578_v2 = vsel %vm577_vm3, %v566_v63, %v573_v0  ;;  %v1249_v3 = vld [vmem:[#allocation2 + $0x58] sm:$0xff] }
  0xea   : > { %586 = vst.msk [vmem:[#allocation2 + $0x50] sm:$0xf] %vm327_vm1, %v578_v2  ;;  %919 = vmatpush.bf16.msra.mxu1 %v1249_v3  ;;  %v1320_v3 = vmov 32.0  }
  0xeb   : > { %1290 = vrcp.f32 %v1320_v3 }
  0xee   : > { %v343_v4 = vpop.permute.xlu1 %342 }
  0xef   : > { %v341_v5 = vpop.permute.xlu0 %340  ;;  %v1241_v6 = vld [vmem:[#allocation2 + $0x18] sm:$0xff]  ;;  %353 = vst.msk [vmem:[#allocation2 + $0x14] sm:$0xf] %vm302_vm0, %v343_v4 }
  0xf0   : > { %352 = vst.msk [vmem:[#allocation2 + $0x10] sm:$0xf] %vm302_vm0, %v341_v5  ;;  %905 = vmatpush.bf16.msra.mxu0 %v1241_v6  ;;  %v500_v7 = vpop.permute.xlu2 %499 }
  0xf1   : > { %508 = vst.msk [vmem:[#allocation2 + $0x4c] sm:$0xf] %vm302_vm0, %v500_v7  ;;  %v1291_v4 = vpop.eup %1290 }
  0xf2   : > { %v950_v5 = vmul.f32 32.0, %v1291_v4  ;;  %vm954_vm5 = vweird.f32 %v1291_v4 }
  0xf4   : > { %v951_v6 = vsub.f32 1.0, %v950_v5 }
  0xf6   : > { %v699_v11 = vpop.permute.xlu1 %698  ;;  %v952_v7 = vmul.f32 %v1291_v4, %v951_v6 }
  0xf7   : > { %v544_v10 = vpop.permute.xlu0 %543  ;;  %708 = vst.msk [vmem:[#allocation2 + $0x88] sm:$0xf] %vm302_vm0, %v699_v11 }
  0xf8   : > { %554 = vst.msk [vmem:[#allocation2 + $0x54] sm:$0xf] %vm302_vm0, %v544_v10  ;;  %v320_v13 = vpop.permute.xlu2 %319  ;;  %v953_v8 = vadd.f32 %v1291_v4, %v952_v7  ;;  %v1321_v10 = vmov 0  }
  0xf9   : > { %587 = vst.msk [vmem:[#allocation2 + $0x54] sm:$0xf] %vm327_vm1, %v579_v12  ;;  %1287 = vset.pattern.permute.xlu2 %v1321_v10  ;;  %1289 = vset.pattern.permute.xlu1 %v1321_v10 }
  0xfa   : > { %732 = vst.msk [vmem:[#allocation2 + $0x88] sm:$0xf] %vm327_vm1, %v723_v1  ;;  %v955_v9 = vsel %vm954_vm5, %v1291_v4, %v953_v8  ;;  %1288 = vset.pattern.permute.xlu0 %v1321_v10 }
  0xfb   : > { %330 = vst.msk [vmem:[#allocation2 + $0x8] sm:$0xf] %vm327_vm1, %v320_v13 }
  0xfe   : > { %v367_v16 = vpop.permute.xlu1 %366 }
  0xff   : > { %v365_v15 = vpop.permute.xlu0 %364  ;;  %377 = vst.msk [vmem:[#allocation2 + $0x14] sm:$0xf] %vm327_vm1, %v367_v16 }
 0x100   : > { %376 = vst.msk [vmem:[#allocation2 + $0x10] sm:$0xf] %vm327_vm1, %v365_v15  ;;  %v1248_v17 = vld [vmem:[#allocation2 + $0x50] sm:$0xff]  ;;  %v524_v18 = vpop.permute.xlu2 %523 }
 0x101   : > { %920 = vmatpush.bf16.msra.mxu1 %v1248_v17  ;;  %532 = vst.msk [vmem:[#allocation2 + $0x4c] sm:$0xf] %vm327_vm1, %v524_v18 }
 0x106   : > { %v498_v20 = vpop.permute.xlu1 %497 }
 0x107   : > { %v725_v19 = vpop.permute.xlu0 %724  ;;  %v1240_v21 = vld [vmem:[#allocation2 + $0x10] sm:$0xff]  ;;  %507 = vst.msk [vmem:[#allocation2 + $0x48] sm:$0xf] %vm302_vm0, %v498_v20 }
 0x108   : > { %733 = vst.msk [vmem:[#allocation2 + $0x8c] sm:$0xf] %vm327_vm1, %v725_v19  ;;  %v494_v23 = vpop.permute.xlu2 %493  ;;  %906 = vmatpush.bf16.msra.mxu0 %v1240_v21 }
 0x109   : > { %505 = vst.msk [vmem:[#allocation2 + $0x40] sm:$0xf] %vm302_vm0, %v494_v23 }
 0x10e   : > { %v697_v26 = vpop.permute.xlu1 %696 }
 0x10f   : > { %v695_v25 = vpop.permute.xlu0 %694  ;;  %v1255_v27 = vld [vmem:[#allocation2 + $0x88] sm:$0xff]  ;;  %707 = vst.msk [vmem:[#allocation2 + $0x84] sm:$0xf] %vm302_vm0, %v697_v26 }
 0x110   : > { %706 = vst.msk [vmem:[#allocation2 + $0x80] sm:$0xf] %vm302_vm0, %v695_v25  ;;  %935 = vmatpush.bf16.msra.mxu2 %v1255_v27  ;;  %v318_v28 = vpop.permute.xlu2 %317 }
 0x111   : > { %329 = vst.msk [vmem:[#allocation2 + $0x4] sm:$0xf] %vm327_vm1, %v318_v28 }
 0x116   : > { %v522_v29 = vpop.permute.xlu1 %521 }
 0x117   : > { %v322_v30 = vpop.permute.xlu0 %321  ;;  %531 = vst.msk [vmem:[#allocation2 + $0x48] sm:$0xf] %vm327_vm1, %v522_v29 }
 0x118   : > { %331 = vst.msk [vmem:[#allocation2 + $0xc] sm:$0xf] %vm327_vm1, %v322_v30 }
 0x11e   : > { %v721_v31 = vpop.permute.xlu1 %720  ;;  %v1247_v33 = vld [vmem:[#allocation2 + $0x48] sm:$0xff] }
 0x11f   : > { %v719_v32 = vpop.permute.xlu0 %718  ;;  %731 = vst.msk [vmem:[#allocation2 + $0x84] sm:$0xf] %vm327_vm1, %v721_v31  ;;  %v1239_v34 = vld [vmem:[#allocation2 + $0x8] sm:$0xff]  ;;  %921 = vmatpush.bf16.msra.mxu1 %v1247_v33 }
 0x120   : > { %730 = vst.msk [vmem:[#allocation2 + $0x80] sm:$0xf] %vm327_vm1, %v719_v32  ;;  %907 = vmatpush.bf16.msra.mxu0 %v1239_v34  ;;  %v974_v34 = vld [vmem:[%s277_s16] sm:$0xff] }
 0x126   : > { %v316_v38 = vpop.permute.xlu1 %315 }
 0x127   : > { %v496_v37 = vpop.permute.xlu0 %495  ;;  %v1254_v39 = vld [vmem:[#allocation2 + $0x80] sm:$0xff]  ;;  %328 = vst.msk [vmem:[#allocation2] sm:$0xf] %vm327_vm1, %v316_v38 }
 0x128   : > { %506 = vst.msk [vmem:[#allocation2 + $0x44] sm:$0xf] %vm302_vm0, %v496_v37  ;;  %936 = vmatpush.bf16.msra.mxu2 %v1254_v39 }
 0x12b   : > { %1232 = vmatmul.msk.bf16.vlgmr.msra.gmra.mxu2 %vm897_vm4, %v1159_v40  ;;  %v1012_v40 = vld [vmem:[%s283_s27] sm:$0xff] }
 0x12e   : > { %v520_v44 = vpop.permute.xlu1 %519  ;;  %v1238_v45 = vld [vmem:[#allocation2] sm:$0xff] }
 0x12f   : > { %v518_v43 = vpop.permute.xlu0 %517  ;;  %530 = vst.msk [vmem:[#allocation2 + $0x44] sm:$0xf] %vm327_vm1, %v520_v44  ;;  %908 = vmatpush.bf16.msra.mxu0 %v1238_v45  ;;  %v975_v44 = vld [vmem:[%s277_s16 + $0x8] sm:$0xff] }
 0x130   : > { %529 = vst.msk [vmem:[#allocation2 + $0x40] sm:$0xf] %vm327_vm1, %v518_v43 }
 0x132   : > { %909 = vmatmul.bf16.vlgmr.msra.gmra.mxu0 %v1151_v46 }
 0x137   : > { %v1246_v49 = vld [vmem:[#allocation2 + $0x40] sm:$0xff] }
 0x138   : > { %922 = vmatpush.bf16.msra.mxu1 %v1246_v49 }
 0x13b   : > { %923 = vmatmul.bf16.vlgmr.msra.gmra.mxu1 %v1155_v50 }
 0x1ae   : > { %v938_v52 = vpop.f32.mrf.mxu2 }
 0x1af   : > { %v910_v51 = vpop.f32.mrf.mxu0 }
 0x1b6   : > { %v940_v62 = vpop.f32.mrf.mxu2 }
 0x1b7   : > { %v912_v59 = vpop.f32.mrf.mxu0 }
 0x1b8   : > { %v924_v53 = vpop.f32.mrf.mxu1 }
 0x1b9   : > { %v925_v54 = vadd.f32 %v924_v53, %v910_v51 }
 0x1bb   : > { %v1681_v55 = vadd.f32 %v938_v52, %v925_v54  ;;  %v1257_v52 = vld [vmem:[%s289_s21] sm:$0xff]  }
 0x1bc   : > { %v1258_v54 = vunpack.c.l.bf16 %v1257_v52 }
 0x1bd   : > { %v943_v56 = vsel %vm897_vm4, %v1681_v55, 0.0  ;;  %v958_v57 = vmul.f32 %v1681_v55, %v1681_v55 }
 0x1be   : > { %944 = vadd.xlane.f32.xlu2 %v943_v56 }
 0x1bf   : > { %v960_v58 = vsel %vm897_vm4, %v958_v57, 0.0 }
 0x1c0   : > { %v926_v60 = vpop.f32.mrf.mxu1  ;;  %961 = vadd.xlane.f32.xlu1 %v960_v58 }
 0x1c1   : > { %v927_v61 = vadd.f32 %v926_v60, %v912_v59 }
 0x1c3   : > { %v1688_v63 = vadd.f32 %v940_v62, %v927_v61  ;;  %v1259_v61 = vunpack.c.h.bf16 %v1257_v52 }
 0x1c5   : > { %v946_v0 = vsel %vm897_vm4, %v1688_v63, 0.0  ;;  %v959_v1 = vmul.f32 %v1688_v63, %v1688_v63 }
 0x1c6   : > { %947 = vadd.xlane.f32.xlu0 %v946_v0 }
 0x1c7   : > { %v963_v2 = vsel %vm897_vm4, %v959_v1, 0.0 }
 0x1c8   : > { %964 = vadd.xlane.f32.xlu2 %v963_v2 }
 0x231   : > { %v945_v11 = vpop.xlane.xlu2 %944 }
 0x232   : > { %v956_v12 = vmul.f32 %v955_v9, %v945_v11 }
 0x233   : > { %v962_v13 = vpop.xlane.xlu1 %961 }
 0x234   : > { %v968_v14 = vmul.f32 %v956_v12, %v956_v12  ;;  %v966_v15 = vmul.f32 %v962_v13, %v955_v9 }
 0x236   : > { %v970_v16 = vsub.f32 %v966_v15, %v968_v14 }
 0x238   : > { %v972_v17 = vmax.f32 %v970_v16, 0.0 }
 0x239   : > { %v948_v18 = vpop.xlane.xlu0 %947 }
 0x23a   : > { %v976_v19 = vadd.f32 1e-05, %v972_v17  ;;  %v957_v20 = vmul.f32 %v955_v9, %v948_v18 }
 0x23b   : > { %v965_v21 = vpop.xlane.xlu2 %964 }
 0x23c   : > { %1292 = vrsqrt.f32 %v976_v19  ;;  %v969_v22 = vmul.f32 %v957_v20, %v957_v20  ;;  %v967_v23 = vmul.f32 %v965_v21, %v955_v9  ;;  %vm984_vm7 = vweird.f32 %v976_v19 }
 0x23e   : > { %v971_v24 = vsub.f32 %v967_v23, %v969_v22 }
 0x240   : > { %v973_v25 = vmax.f32 %v971_v24, 0.0 }
 0x242   : > { %v1293_v26 = vpop.eup %1292  ;;  %v977_v27 = vadd.f32 1e-05, %v973_v25 }
 0x243   : > { %v979_v28 = vmul.f32 %v1293_v26, %v976_v19  ;;  %vm985_vm6 = vweird.f32 %v1293_v26 }
 0x244   : > { %1294 = vrsqrt.f32 %v977_v27  ;;  %vm986_vm8 = vmor %vm984_vm7, %vm985_vm6  ;;  %vm994_vm10 = vweird.f32 %v977_v27 }
 0x245   : > { %v980_v29 = vmul.f32 %v1293_v26, %v979_v28 }
 0x247   : > { %v981_v30 = vmul.f32 0.5, %v980_v29 }
 0x249   : > { %v982_v31 = vsub.f32 1.5, %v981_v30 }
 0x24a   : > { %v1295_v32 = vpop.eup %1294 }
 0x24b   : > { %v989_v33 = vmul.f32 %v1295_v32, %v977_v27  ;;  %v983_v35 = vmul.f32 %v1293_v26, %v982_v31  ;;  %vm995_vm9 = vweird.f32 %v1295_v32 }
 0x24c   : > { %vm996_vm11 = vmor %vm994_vm10, %vm995_vm9 }
 0x24d   : > { %v990_v36 = vmul.f32 %v1295_v32, %v989_v33  ;;  %v987_v37 = vsel %vm986_vm8, %v1293_v26, %v983_v35 }
 0x24e   : > { %v998_v38 = vmul.f32 %v987_v37, %v974_v34 }
 0x24f   : > { %v991_v39 = vmul.f32 0.5, %v990_v36 }
 0x250   : > { %1002 = vperm.xlu2 %1287, %v998_v38   ;;  %v1014_v41 = vmul.f32 %v998_v38, %v956_v12 }
 0x251   : > { %v992_v42 = vsub.f32 1.5, %v991_v39 }
 0x252   : > { %v1016_v43 = vsub.f32 %v1012_v40, %v1014_v41 }
 0x253   : > { %v993_v45 = vmul.f32 %v1295_v32, %v992_v42 }
 0x254   : > { %1020 = vperm.xlu1 %1289, %v1016_v43  }
 0x255   : > { %v997_v46 = vsel %vm996_vm11, %v1295_v32, %v993_v45 }
 0x256   : > { %v999_v47 = vmul.f32 %v997_v46, %v975_v44 }
 0x258   : > { %1007 = vperm.xlu0 %1288, %v999_v47   ;;  %v1015_v49 = vmul.f32 %v999_v47, %v957_v20 }
 0x25a   : > { %v1017_v50 = vsub.f32 %v1013_v48, %v1015_v49 }
 0x25c   : > { %1025 = vperm.xlu2 %1287, %v1017_v50  }
 0x2aa   : > { %v1003_v51 = vpop.permute.xlu2 %1002 }
 0x2ab   : > { %v1010_v53 = vmul.f32 %v1003_v51, %v1681_v55 }
 0x2b6   : > { %v1026_v0 = vpop.permute.xlu2 %1025 }
 0x2c6   : > { %v1021_v56 = vpop.permute.xlu1 %1020 }
 0x2c7   : > { %v1028_v57 = vadd.f32 %v1021_v56, %v1010_v53 }
 0x2c9   : > { %v1034_v58 = vadd.f32 %v1258_v54, %v1028_v57 }
 0x2ca   : > { %v1008_v59 = vpop.permute.xlu0 %1007 }
 0x2cb   : > { %v1036_v60 = vpack.c.bf16 %v1034_v58, %v1034_v58  ;;  %v1011_v62 = vmul.f32 %v1008_v59, %v1688_v63 }
 0x2cd   : > { %1039 = vst.msk [vmem:[%s295_s23] sm:$0xf] %vm1038_vm12, %v1036_v60  ;;  %v1029_v1 = vadd.f32 %v1026_v0, %v1011_v62 }
 0x2cf   : > { %v1035_v2 = vadd.f32 %v1259_v61, %v1029_v1 }
 0x2d1   : > { %v1037_v3 = vpack.c.bf16 %v1035_v2, %v1035_v2 }
 0x2d3   : > { %1040 = vst.msk [vmem:[%s295_s23 + $0x4] sm:$0xf] %vm1038_vm12, %v1037_v3 }
 0x2d4 PF: > { %s15_s18 = sadd.s32 1, %s1302_s18  }
 0x2d5   : > { %p12_p4 = scmp.ge.s32.totalorder %s15_s18, 4  }
 0x2d7   :  { %14 = sbr.rel (!%p12_p4) target bundleno = 1 (0x1), region = 79 }

// kernel: _lambda_.17
= control target key start
LH: loop header
LB: loop body
LE: loop exit
PB: predicated region body
PF: predicated region fallthrough
CT: control target
= control target key end

     0   :  { %s958_s28 = smov 104   ;;  %s959_s8 = smov 108   ;;  %vm31_vm0 = vcmask 125952   ;;  %vm56_vm1 = vcmask 257152   ;;  %vm221_vm2 = vcmask 523264   ;;  %vm84_vm3 = vcmask 261120   ;;  %s1473_s0 = inlined_call_operand.vmem [shape: bf16[32,80], index: 0, kind: input, shape index: {}]   ;;  %s1474_s3 = inlined_call_operand.vmem [shape: bf16[16,64], index: 3, kind: input, shape index: {}]   ;;  %s1475_s4 = inlined_call_operand.vmem [shape: bf16[16,128], index: 4, kind: input, shape index: {}]   ;;  %s1476_s1 = inlined_call_operand.vmem [shape: bf16[16,32], index: 1, kind: input, shape index: {}]   ;;  %s1477_s2 = inlined_call_operand.vmem [shape: bf16[16,64], index: 2, kind: input, shape index: {}]   ;;  %s1478_s5 = inlined_call_operand.vmem [shape: f32[16,1], index: 5, kind: input, shape index: {}]   ;;  %s1479_s6 = inlined_call_operand.vmem [shape: f32[16,1], index: 6, kind: input, shape index: {}]   ;;  %s1480_s7 = inlined_call_operand.vmem [shape: bf16[4,16,32], index: 7, kind: output, shape index: {}]  }
   0x1   :  { %v529_v0 = vld [vmem:[%s1473_s0 + $0x8] sm:$0xf]  ;;  %v527_v1 = vld [vmem:[%s1473_s0] sm:$0xf]  ;;  %v530_v3 = vld [vmem:[%s1473_s0 + $0xc] sm:$0xf] }
   0x2   :  { %539 = vrot.lane.b32.xlu0 %v529_v0, %s958_s28  ;;  %535 = vrot.lane.b32.xlu1 %v527_v1, %s958_s28  ;;  %v473_v2 = vld [vmem:[%s1473_s0 + $0x8] sm:$0xf]  ;;  %v528_v4 = vld [vmem:[%s1473_s0 + $0x4] sm:$0xf]  ;;  %s960_s21 = smov 84   ;;  %s961_s13 = smov 124  }
   0x3   :  { %483 = vrot.lane.b32.xlu2 %v473_v2, %s959_s8  ;;  %v474_v5 = vld [vmem:[%s1473_s0 + $0xc] sm:$0xf]  ;;  %v497_v7 = vld [vmem:[%s1473_s0 + $0x8] sm:$0xf]  ;;  %v471_v8 = vld [vmem:[%s1473_s0] sm:$0xf] }
   0x4   :  { %v498_v6 = vld [vmem:[%s1473_s0 + $0xc] sm:$0xf]  ;;  %v495_v9 = vld [vmem:[%s1473_s0] sm:$0xf]  ;;  %v472_v10 = vld [vmem:[%s1473_s0 + $0x4] sm:$0xf] }
   0x5   :  { %v496_v11 = vld [vmem:[%s1473_s0 + $0x4] sm:$0xf]  ;;  %v298_v12 = vld [vmem:[%s1473_s0 + $0xc] sm:$0xf]  ;;  %v297_v13 = vld [vmem:[%s1473_s0 + $0x8] sm:$0xf] }
   0x6   :  { %v425_v14 = vld [vmem:[%s1473_s0 + $0x8] sm:$0xf]  ;;  %v426_v16 = vld [vmem:[%s1473_s0 + $0xc] sm:$0xf]  ;;  %s962_s20 = smov 100   ;;  %s963_s26 = smov 80  }
   0x7   :  { %v449_v15 = vld [vmem:[%s1473_s0 + $0x8] sm:$0xf]  ;;  %v450_v17 = vld [vmem:[%s1473_s0 + $0xc] sm:$0xf]  ;;  %v295_v20 = vld [vmem:[%s1473_s0] sm:$0xf] }
   0x8   :  { %v161_v18 = vld [vmem:[%s1473_s0 + $0xc] sm:$0xf]  ;;  %v160_v19 = vld [vmem:[%s1473_s0 + $0x8] sm:$0xf]  ;;  %v423_v21 = vld [vmem:[%s1473_s0] sm:$0xf] }
   0x9   :  { %v296_v22 = vld [vmem:[%s1473_s0 + $0x4] sm:$0xf]  ;;  %v447_v25 = vld [vmem:[%s1473_s0] sm:$0xf]  ;;  %v241_v26 = vld [vmem:[%s1473_s0 + $0x8] sm:$0xf] }
   0xa   :  { %541 = vrot.lane.b32.xlu0 %v530_v3, %s958_s28  ;;  %537 = vrot.lane.b32.xlu1 %v528_v4, %s958_s28  ;;  %v424_v23 = vld [vmem:[%s1473_s0 + $0x4] sm:$0xf]  ;;  %v242_v27 = vld [vmem:[%s1473_s0 + $0xc] sm:$0xf]  ;;  %vm782_vm11 = vcmask 257024  }
   0xb   :  { %485 = vrot.lane.b32.xlu2 %v474_v5, %s959_s8  ;;  %v448_v24 = vld [vmem:[%s1473_s0 + $0x4] sm:$0xf]  ;;  %v158_v28 = vld [vmem:[%s1473_s0] sm:$0xf]  ;;  %v265_v30 = vld [vmem:[%s1473_s0 + $0x8] sm:$0xf] }
   0xc   :  { %v159_v29 = vld [vmem:[%s1473_s0 + $0x4] sm:$0xf]  ;;  %v266_v31 = vld [vmem:[%s1473_s0 + $0xc] sm:$0xf]  ;;  %v377_v32 = vld [vmem:[%s1473_s0 + $0x8] sm:$0xf] }
   0xd   :  { %v521_v33 = vld [vmem:[%s1473_s0 + $0x8] sm:$0xf]  ;;  %v519_v34 = vld [vmem:[%s1473_s0] sm:$0xf]  ;;  %v378_v35 = vld [vmem:[%s1473_s0 + $0xc] sm:$0xf] }
   0xe   :  { %525 = vst.msk [vmem:[#allocation5 + $0x38] sm:$0xf] %vm31_vm0, %v521_v33  ;;  %v401_v36 = vld [vmem:[%s1473_s0 + $0x8] sm:$0xf]  ;;  %v402_v37 = vld [vmem:[%s1473_s0 + $0xc] sm:$0xf] }
   0xf   :  { %523 = vst.msk [vmem:[#allocation5 + $0x30] sm:$0xf] %vm31_vm0, %v519_v34  ;;  %v522_v38 = vld [vmem:[%s1473_s0 + $0xc] sm:$0xf]  ;;  %v520_v39 = vld [vmem:[%s1473_s0 + $0x4] sm:$0xf] }
  0x10   :  { %526 = vst.msk [vmem:[#allocation5 + $0x3c] sm:$0xf] %vm31_vm0, %v522_v38  ;;  %v105_v41 = vld [vmem:[%s1473_s0 + $0xc] sm:$0xf]  ;;  %v104_v42 = vld [vmem:[%s1473_s0 + $0x8] sm:$0xf] }
  0x11   :  { %524 = vst.msk [vmem:[#allocation5 + $0x34] sm:$0xf] %vm31_vm0, %v520_v39  ;;  %v239_v43 = vld [vmem:[%s1473_s0] sm:$0xf]  ;;  %v240_v45 = vld [vmem:[%s1473_s0 + $0x4] sm:$0xf] }
  0x12   :  { %509 = vrot.lane.b32.xlu1 %v498_v6, %s960_s21  ;;  %507 = vrot.lane.b32.xlu0 %v497_v7, %s960_s21  ;;  %v38_v46 = vld [vmem:[%s1473_s0 + $0x8] sm:$0xf]  ;;  %v39_v47 = vld [vmem:[%s1473_s0 + $0xc] sm:$0xf] }
  0x13   :  { %479 = vrot.lane.b32.xlu2 %v471_v8, %s959_s8  ;;  %v128_v49 = vld [vmem:[%s1473_s0 + $0x8] sm:$0xf]  ;;  %v129_v50 = vld [vmem:[%s1473_s0 + $0xc] sm:$0xf]  ;;  %v263_v51 = vld [vmem:[%s1473_s0] sm:$0xf] }
  0x14   :  { %v290_v54 = vld [vmem:[%s1473_s0 + $0xc] sm:$0xf]  ;;  %v289_v55 = vld [vmem:[%s1473_s0 + $0x8] sm:$0xf]  ;;  %v264_v57 = vld [vmem:[%s1473_s0 + $0x4] sm:$0xf] }
  0x15   :  { %v375_v58 = vld [vmem:[%s1473_s0] sm:$0xf]  ;;  %294 = vst.msk [vmem:[#allocation4 + $0x1c] sm:$0xf] %vm31_vm0, %v290_v54  ;;  %v376_v59 = vld [vmem:[%s1473_s0 + $0x4] sm:$0xf] }
  0x16   :  { %293 = vst.msk [vmem:[#allocation4 + $0x18] sm:$0xf] %vm31_vm0, %v289_v55  ;;  %v399_v62 = vld [vmem:[%s1473_s0] sm:$0xf]  ;;  %v400_v0 = vld [vmem:[%s1473_s0 + $0x4] sm:$0xf] }
  0x17   :  { %v287_v1 = vld [vmem:[%s1473_s0] sm:$0xf]  ;;  %v153_v6 = vld [vmem:[%s1473_s0 + $0xc] sm:$0xf]  ;;  %v152_v7 = vld [vmem:[%s1473_s0 + $0x8] sm:$0xf] }
  0x18   :  { %291 = vst.msk [vmem:[#allocation4 + $0x10] sm:$0xf] %vm31_vm0, %v287_v1  ;;  %v102_v2 = vld [vmem:[%s1473_s0] sm:$0xf] }
  0x19   :  { %157 = vst.msk [vmem:[#allocation3 + $0x1c] sm:$0xf] %vm31_vm0, %v153_v6 }
  0x1a   :  { %503 = vrot.lane.b32.xlu1 %v495_v9, %s960_s21  ;;  %481 = vrot.lane.b32.xlu0 %v472_v10, %s959_s8  ;;  %v103_v9 = vld [vmem:[%s1473_s0 + $0x4] sm:$0xf]  ;;  %v36_v10 = vld [vmem:[%s1473_s0] sm:$0xf]  ;;  %156 = vst.msk [vmem:[#allocation3 + $0x18] sm:$0xf] %vm31_vm0, %v152_v7 }
  0x1b   :  { %505 = vrot.lane.b32.xlu2 %v496_v11, %s960_s21 }
  0x22   :  { %309 = vrot.lane.b32.xlu1 %v298_v12, %s958_s28  ;;  %307 = vrot.lane.b32.xlu0 %v297_v13, %s958_s28  ;;  %v37_v12 = vld [vmem:[%s1473_s0 + $0x4] sm:$0xf] }
  0x23   :  { %435 = vrot.lane.b32.xlu2 %v425_v14, %s961_s13 }
  0x2a   :  { %459 = vrot.lane.b32.xlu1 %v449_v15, %s962_s20  ;;  %437 = vrot.lane.b32.xlu0 %v426_v16, %s961_s13 }
  0x2b   :  { %461 = vrot.lane.b32.xlu2 %v450_v17, %s962_s20  ;;  %v288_v17 = vld [vmem:[%s1473_s0 + $0x4] sm:$0xf] }
  0x2c   :  { %292 = vst.msk [vmem:[#allocation4 + $0x14] sm:$0xf] %vm31_vm0, %v288_v17 }
  0x32   :  { %172 = vrot.lane.b32.xlu1 %v161_v18, %s958_s28  ;;  %170 = vrot.lane.b32.xlu0 %v160_v19, %s958_s28  ;;  %v126_v18 = vld [vmem:[%s1473_s0] sm:$0xf]  ;;  %v127_v19 = vld [vmem:[%s1473_s0 + $0x4] sm:$0xf] }
  0x33   :  { %303 = vrot.lane.b32.xlu2 %v295_v20, %s958_s28 }
  0x3a   :  { %431 = vrot.lane.b32.xlu1 %v423_v21, %s961_s13  ;;  %305 = vrot.lane.b32.xlu0 %v296_v22, %s958_s28 }
  0x3b   :  { %433 = vrot.lane.b32.xlu2 %v424_v23, %s961_s13 }
  0x42   :  { %457 = vrot.lane.b32.xlu1 %v448_v24, %s962_s20  ;;  %455 = vrot.lane.b32.xlu0 %v447_v25, %s962_s20 }
  0x43   :  { %251 = vrot.lane.b32.xlu2 %v241_v26, %s961_s13 }
  0x4a   :  { %253 = vrot.lane.b32.xlu0 %v242_v27, %s961_s13  ;;  %166 = vrot.lane.b32.xlu1 %v158_v28, %s958_s28  ;;  %v151_v28 = vld [vmem:[%s1473_s0 + $0x4] sm:$0xf] }
  0x4b   :  { %168 = vrot.lane.b32.xlu2 %v159_v29, %s958_s28  ;;  %v150_v29 = vld [vmem:[%s1473_s0] sm:$0xf]  ;;  %155 = vst.msk [vmem:[#allocation3 + $0x14] sm:$0xf] %vm31_vm0, %v151_v28 }
  0x4c   :  { %154 = vst.msk [vmem:[#allocation3 + $0x10] sm:$0xf] %vm31_vm0, %v150_v29 }
  0x52   :  { %275 = vrot.lane.b32.xlu0 %v265_v30, %s962_s20  ;;  %277 = vrot.lane.b32.xlu1 %v266_v31, %s962_s20 }
  0x53   :  { %387 = vrot.lane.b32.xlu2 %v377_v32, %s958_s28 }
  0x5a   :  { %389 = vrot.lane.b32.xlu0 %v378_v35, %s958_s28  ;;  %411 = vrot.lane.b32.xlu1 %v401_v36, %s963_s26 }
  0x5b   :  { %413 = vrot.lane.b32.xlu2 %v402_v37, %s963_s26 }
  0x5d   :  { %v484_v40 = vpop.permute.xlu2 %483 }
  0x5e   :  { %493 = vst.msk [vmem:[#allocation5 + $0x28] sm:$0xf] %vm31_vm0, %v484_v40 }
  0x62   :  { %116 = vrot.lane.b32.xlu1 %v105_v41, %s959_s8  ;;  %114 = vrot.lane.b32.xlu0 %v104_v42, %s959_s8 }
  0x63   :  { %247 = vrot.lane.b32.xlu2 %v239_v43, %s961_s13 }
  0x65   :  { %v486_v44 = vpop.permute.xlu2 %485 }
  0x66   :  { %494 = vst.msk [vmem:[#allocation5 + $0x2c] sm:$0xf] %vm31_vm0, %v486_v44 }
  0x6a   :  { %249 = vrot.lane.b32.xlu0 %v240_v45, %s961_s13  ;;  %48 = vrot.lane.b32.xlu1 %v38_v46, %s958_s28  ;;  %v30_v45 = vld [vmem:[%s1473_s0 + $0xc] sm:$0xf] }
  0x6b   :  { %50 = vrot.lane.b32.xlu2 %v39_v47, %s958_s28  ;;  %v29_v47 = vld [vmem:[%s1473_s0 + $0x8] sm:$0xf]  ;;  %35 = vst.msk [vmem:[#allocation2 + $0xc] sm:$0xf] %vm31_vm0, %v30_v45 }
  0x6c   :  { %34 = vst.msk [vmem:[#allocation2 + $0x8] sm:$0xf] %vm31_vm0, %v29_v47 }
  0x6d   :  { %v480_v48 = vpop.permute.xlu2 %479 }
  0x6e   :  { %491 = vst.msk [vmem:[#allocation5 + $0x20] sm:$0xf] %vm31_vm0, %v480_v48 }
  0x72   :  { %138 = vrot.lane.b32.xlu0 %v128_v49, %s960_s21  ;;  %140 = vrot.lane.b32.xlu1 %v129_v50, %s960_s21 }
  0x73   :  { %271 = vrot.lane.b32.xlu2 %v263_v51, %s962_s20 }
  0x74   :  { %v540_v52 = vpop.permute.xlu0 %539  ;;  %v536_v53 = vpop.permute.xlu1 %535 }
  0x75   :  { %549 = vst.msk [vmem:[#allocation5 + $0x38] sm:$0xf] %vm56_vm1, %v540_v52  ;;  %v506_v56 = vpop.permute.xlu2 %505 }
  0x76   :  { %547 = vst.msk [vmem:[#allocation5 + $0x30] sm:$0xf] %vm56_vm1, %v536_v53 }
  0x7a   :  { %273 = vrot.lane.b32.xlu0 %v264_v57, %s962_s20  ;;  %383 = vrot.lane.b32.xlu1 %v375_v58, %s958_s28 }
  0x7b   :  { %385 = vrot.lane.b32.xlu2 %v376_v59, %s958_s28 }
  0x7c   :  { %v542_v60 = vpop.permute.xlu0 %541  ;;  %v538_v61 = vpop.permute.xlu1 %537 }
  0x7d   :  { %550 = vst.msk [vmem:[#allocation5 + $0x3c] sm:$0xf] %vm56_vm1, %v542_v60  ;;  %v436_v63 = vpop.permute.xlu2 %435 }
  0x7e   :  { %548 = vst.msk [vmem:[#allocation5 + $0x34] sm:$0xf] %vm56_vm1, %v538_v61 }
  0x7f   :  { %445 = vst.msk [vmem:[#allocation5 + $0x18] sm:$0xf] %vm31_vm0, %v436_v63 }
  0x82   :  { %407 = vrot.lane.b32.xlu0 %v399_v62, %s963_s26  ;;  %409 = vrot.lane.b32.xlu1 %v400_v0, %s963_s26  ;;  %v28_v62 = vld [vmem:[%s1473_s0 + $0x4] sm:$0xf]  ;;  %v27_v0 = vld [vmem:[%s1473_s0] sm:$0xf] }
  0x83   :  { %110 = vrot.lane.b32.xlu2 %v102_v2, %s959_s8  ;;  %33 = vst.msk [vmem:[#allocation2 + $0x4] sm:$0xf] %vm31_vm0, %v28_v62 }
  0x84   :  { %v510_v3 = vpop.permute.xlu1 %509  ;;  %v508_v4 = vpop.permute.xlu0 %507  ;;  %v940_v5 = vld [vmem:[#allocation5 + $0x38] sm:$0xff]  ;;  %32 = vst.msk [vmem:[#allocation2] sm:$0xf] %vm31_vm0, %v27_v0 }
  0x85   :  { %518 = vst.msk [vmem:[#allocation5 + $0x2c] sm:$0xf] %vm56_vm1, %v510_v3  ;;  %623 = vmatpush.bf16.msra.mxu3 %v940_v5  ;;  %v462_v8 = vpop.permute.xlu2 %461  ;;  %v939_v11 = vld [vmem:[#allocation5 + $0x30] sm:$0xff] }
  0x86   :  { %517 = vst.msk [vmem:[#allocation5 + $0x28] sm:$0xf] %vm56_vm1, %v508_v4 }
  0x89   :  { %624 = vmatpush.bf16.msra.mxu3 %v939_v11  ;;  %v927_v11 = vld [vmem:[%s1474_s3] sm:$0xff] }
  0x8a   :  { %112 = vrot.lane.b32.xlu0 %v103_v9, %s959_s8  ;;  %44 = vrot.lane.b32.xlu1 %v36_v10, %s958_s28 }
  0x8b   :  { %46 = vrot.lane.b32.xlu2 %v37_v12, %s958_s28 }
  0x8c   :  { %v504_v13 = vpop.permute.xlu1 %503  ;;  %v482_v14 = vpop.permute.xlu0 %481 }
  0x8d   :  { %515 = vst.msk [vmem:[#allocation5 + $0x20] sm:$0xf] %vm56_vm1, %v504_v13  ;;  %v938_v15 = vld [vmem:[#allocation5 + $0x28] sm:$0xff]  ;;  %v304_v16 = vpop.permute.xlu2 %303 }
  0x8e   :  { %492 = vst.msk [vmem:[#allocation5 + $0x24] sm:$0xf] %vm31_vm0, %v482_v14  ;;  %625 = vmatpush.bf16.msra.mxu3 %v938_v15  ;;  %v932_v15 = vld [vmem:[%s1475_s4] sm:$0xff] }
  0x8f   :  { %516 = vst.msk [vmem:[#allocation5 + $0x24] sm:$0xf] %vm56_vm1, %v506_v56 }
  0x90   :  { %315 = vst.msk [vmem:[#allocation4 + $0x10] sm:$0xf] %vm56_vm1, %v304_v16 }
  0x92   :  { %134 = vrot.lane.b32.xlu0 %v126_v18, %s960_s21  ;;  %136 = vrot.lane.b32.xlu1 %v127_v19, %s960_s21  ;;  %v919_v19 = vld [vmem:[%s1476_s1] sm:$0xff] }
  0x94   :  { %v310_v20 = vpop.permute.xlu1 %309  ;;  %v308_v21 = vpop.permute.xlu0 %307 }
  0x95   :  { %318 = vst.msk [vmem:[#allocation4 + $0x1c] sm:$0xf] %vm56_vm1, %v310_v20  ;;  %v434_v23 = vpop.permute.xlu2 %433 }
  0x96   :  { %317 = vst.msk [vmem:[#allocation4 + $0x18] sm:$0xf] %vm56_vm1, %v308_v21  ;;  %v937_v22 = vld [vmem:[#allocation5 + $0x20] sm:$0xff]  ;;  %v922_v21 = vld [vmem:[%s1477_s2] sm:$0xff] }
  0x97   :  { %444 = vst.msk [vmem:[#allocation5 + $0x14] sm:$0xf] %vm31_vm0, %v434_v23  ;;  %626 = vmatpush.bf16.msra.mxu3 %v937_v22 }
  0x9c   :  { %v460_v24 = vpop.permute.xlu1 %459  ;;  %v438_v25 = vpop.permute.xlu0 %437 }
  0x9d   :  { %469 = vst.msk [vmem:[#allocation5 + $0x18] sm:$0xf] %vm56_vm1, %v460_v24  ;;  %v931_v26 = vld [vmem:[#allocation4 + $0x18] sm:$0xff]  ;;  %v252_v27 = vpop.permute.xlu2 %251 }
  0x9e   :  { %446 = vst.msk [vmem:[#allocation5 + $0x1c] sm:$0xf] %vm31_vm0, %v438_v25  ;;  %365 = vmatpush.bf16.msra.mxu2 %v931_v26 }
  0x9f   :  { %470 = vst.msk [vmem:[#allocation5 + $0x1c] sm:$0xf] %vm56_vm1, %v462_v8 }
  0xa0   :  { %261 = vst.msk [vmem:[#allocation4 + $0x8] sm:$0xf] %vm31_vm0, %v252_v27 }
  0xa4   :  { %v173_v30 = vpop.permute.xlu1 %172  ;;  %v171_v31 = vpop.permute.xlu0 %170 }
  0xa5   :  { %181 = vst.msk [vmem:[#allocation3 + $0x1c] sm:$0xf] %vm56_vm1, %v173_v30  ;;  %v169_v33 = vpop.permute.xlu2 %168 }
  0xa6   :  { %180 = vst.msk [vmem:[#allocation3 + $0x18] sm:$0xf] %vm56_vm1, %v171_v31  ;;  %v936_v32 = vld [vmem:[#allocation5 + $0x18] sm:$0xff] }
  0xa7   :  { %179 = vst.msk [vmem:[#allocation3 + $0x14] sm:$0xf] %vm56_vm1, %v169_v33  ;;  %627 = vmatpush.bf16.msra.mxu3 %v936_v32 }
  0xac   :  { %v432_v34 = vpop.permute.xlu1 %431  ;;  %v306_v35 = vpop.permute.xlu0 %305 }
  0xad   :  { %443 = vst.msk [vmem:[#allocation5 + $0x10] sm:$0xf] %vm31_vm0, %v432_v34  ;;  %v926_v36 = vld [vmem:[#allocation3 + $0x18] sm:$0xff]  ;;  %v388_v37 = vpop.permute.xlu2 %387 }
  0xae   :  { %316 = vst.msk [vmem:[#allocation4 + $0x14] sm:$0xf] %vm56_vm1, %v306_v35  ;;  %229 = vmatpush.bf16.msra.mxu1 %v926_v36 }
  0xaf   :  { %397 = vst.msk [vmem:[#allocation5 + $0x8] sm:$0xf] %vm31_vm0, %v388_v37 }
  0xb4   :  { %v458_v38 = vpop.permute.xlu1 %457  ;;  %v456_v39 = vpop.permute.xlu0 %455 }
  0xb5   :  { %468 = vst.msk [vmem:[#allocation5 + $0x14] sm:$0xf] %vm56_vm1, %v458_v38  ;;  %v930_v40 = vld [vmem:[#allocation4 + $0x10] sm:$0xff]  ;;  %v414_v41 = vpop.permute.xlu2 %413 }
  0xb6   :  { %467 = vst.msk [vmem:[#allocation5 + $0x10] sm:$0xf] %vm56_vm1, %v456_v39  ;;  %366 = vmatpush.bf16.msra.mxu2 %v930_v40 }
  0xbc   :  { %v254_v42 = vpop.permute.xlu0 %253  ;;  %v167_v43 = vpop.permute.xlu1 %166 }
  0xbd   :  { %262 = vst.msk [vmem:[#allocation4 + $0xc] sm:$0xf] %vm31_vm0, %v254_v42  ;;  %v935_v44 = vld [vmem:[#allocation5 + $0x10] sm:$0xff]  ;;  %v248_v46 = vpop.permute.xlu2 %247 }
  0xbe   :  { %178 = vst.msk [vmem:[#allocation3 + $0x10] sm:$0xf] %vm56_vm1, %v167_v43  ;;  %628 = vmatpush.bf16.msra.mxu3 %v935_v44 }
  0xbf   :  { %259 = vst.msk [vmem:[#allocation4] sm:$0xf] %vm31_vm0, %v248_v46 }
  0xc4   :  { %v276_v48 = vpop.permute.xlu0 %275  ;;  %v278_v49 = vpop.permute.xlu1 %277 }
  0xc5   :  { %285 = vst.msk [vmem:[#allocation4 + $0x8] sm:$0xf] %vm56_vm1, %v276_v48  ;;  %v925_v50 = vld [vmem:[#allocation3 + $0x10] sm:$0xff]  ;;  %v51_v51 = vpop.permute.xlu2 %50 }
  0xc6   :  { %286 = vst.msk [vmem:[#allocation4 + $0xc] sm:$0xf] %vm56_vm1, %v278_v49  ;;  %230 = vmatpush.bf16.msra.mxu1 %v925_v50 }
  0xc7   :  { %60 = vst.msk [vmem:[#allocation2 + $0xc] sm:$0xf] %vm56_vm1, %v51_v51 }
  0xcc   :  { %v390_v52 = vpop.permute.xlu0 %389  ;;  %v412_v53 = vpop.permute.xlu1 %411 }
  0xcd   :  { %398 = vst.msk [vmem:[#allocation5 + $0xc] sm:$0xf] %vm31_vm0, %v390_v52  ;;  %v929_v54 = vld [vmem:[#allocation4 + $0x8] sm:$0xff]  ;;  %v272_v55 = vpop.permute.xlu2 %271 }
  0xce   :  { %422 = vst.msk [vmem:[#allocation5 + $0xc] sm:$0xf] %vm56_vm1, %v414_v41  ;;  %367 = vmatpush.bf16.msra.mxu2 %v929_v54 }
  0xcf   :  { %421 = vst.msk [vmem:[#allocation5 + $0x8] sm:$0xf] %vm56_vm1, %v412_v53 }
  0xd0   :  { %283 = vst.msk [vmem:[#allocation4] sm:$0xf] %vm56_vm1, %v272_v55 }
  0xd4   :  { %v117_v56 = vpop.permute.xlu1 %116  ;;  %v115_v57 = vpop.permute.xlu0 %114 }
  0xd5   :  { %125 = vst.msk [vmem:[#allocation3 + $0xc] sm:$0xf] %vm31_vm0, %v117_v56  ;;  %v386_v59 = vpop.permute.xlu2 %385 }
  0xd6   :  { %124 = vst.msk [vmem:[#allocation3 + $0x8] sm:$0xf] %vm31_vm0, %v115_v57  ;;  %v934_v58 = vld [vmem:[#allocation5 + $0x8] sm:$0xff] }
  0xd7   :  { %396 = vst.msk [vmem:[#allocation5 + $0x4] sm:$0xf] %vm31_vm0, %v386_v59  ;;  %629 = vmatpush.bf16.msra.mxu3 %v934_v58  ;;  %v964_v58 = vmov 128.0  }
  0xd8   :  { %952 = vrcp.f32 %v964_v58  ;;  %v723_v58 = vld [vmem:[%s1478_s5 + $0x8] sm:$0xff] }
  0xdc   :  { %v250_v60 = vpop.permute.xlu0 %249  ;;  %v49_v61 = vpop.permute.xlu1 %48 }
  0xdd   :  { %260 = vst.msk [vmem:[#allocation4 + $0x4] sm:$0xf] %vm31_vm0, %v250_v60  ;;  %v111_v63 = vpop.permute.xlu2 %110 }
  0xde   :  { %59 = vst.msk [vmem:[#allocation2 + $0x8] sm:$0xf] %vm56_vm1, %v49_v61  ;;  %v953_v62 = vpop.eup %952 }
  0xdf   :  { %122 = vst.msk [vmem:[#allocation3] sm:$0xf] %vm31_vm0, %v111_v63  ;;  %v706_v63 = vmul.f32 128.0, %v953_v62  ;;  %vm710_vm4 = vweird.f32 %v953_v62 }
  0xe4   :  { %v139_v1 = vpop.permute.xlu0 %138  ;;  %v141_v2 = vpop.permute.xlu1 %140 }
  0xe5   :  { %148 = vst.msk [vmem:[#allocation3 + $0x8] sm:$0xf] %vm56_vm1, %v139_v1  ;;  %v921_v3 = vld [vmem:[#allocation2 + $0x8] sm:$0xff]  ;;  %v47_v4 = vpop.permute.xlu2 %46 }
  0xe6   :  { %149 = vst.msk [vmem:[#allocation3 + $0xc] sm:$0xf] %vm56_vm1, %v141_v2  ;;  %94 = vmatpush.bf16.msra.mxu0 %v921_v3  ;;  %v707_v3 = vsub.f32 1.0, %v706_v63 }
  0xe7   :  { %58 = vst.msk [vmem:[#allocation2 + $0x4] sm:$0xf] %vm56_vm1, %v47_v4 }
  0xe8   :  { %v708_v4 = vmul.f32 %v953_v62, %v707_v3 }
  0xec   :  { %v274_v5 = vpop.permute.xlu0 %273  ;;  %v384_v6 = vpop.permute.xlu1 %383 }
  0xed   :  { %284 = vst.msk [vmem:[#allocation4 + $0x4] sm:$0xf] %vm56_vm1, %v274_v5  ;;  %v924_v7 = vld [vmem:[#allocation3 + $0x8] sm:$0xff]  ;;  %v965_v5 = vmov 0  }
  0xee   :  { %395 = vst.msk [vmem:[#allocation5] sm:$0xf] %vm31_vm0, %v384_v6  ;;  %231 = vmatpush.bf16.msra.mxu1 %v924_v7  ;;  %949 = vset.pattern.permute.xlu2 %v965_v5 }
  0xef   :  { %950 = vset.pattern.permute.xlu0 %v965_v5  ;;  %951 = vset.pattern.permute.xlu1 %v965_v5 }
  0xf4   :  { %v408_v8 = vpop.permute.xlu0 %407  ;;  %v410_v9 = vpop.permute.xlu1 %409  ;;  %v928_v10 = vld [vmem:[#allocation4] sm:$0xff] }
  0xf5   :  { %419 = vst.msk [vmem:[#allocation5] sm:$0xf] %vm56_vm1, %v408_v8  ;;  %368 = vmatpush.bf16.msra.mxu2 %v928_v10 }
  0xf6   :  { %420 = vst.msk [vmem:[#allocation5 + $0x4] sm:$0xf] %vm56_vm1, %v410_v9  ;;  %v709_v9 = vadd.f32 %v953_v62, %v708_v4  ;;  %v749_v4 = vld [vmem:[%s1479_s6 + $0x8] sm:$0xff] }
  0xf8   :  { %876 = vmatmul.msk.bf16.vlgmr.msra.gmra.mxu2 %vm221_vm2, %v927_v11 }
  0xfc   :  { %v113_v12 = vpop.permute.xlu0 %112  ;;  %v45_v13 = vpop.permute.xlu1 %44 }
  0xfd   :  { %123 = vst.msk [vmem:[#allocation3 + $0x4] sm:$0xf] %vm31_vm0, %v113_v12  ;;  %v933_v14 = vld [vmem:[#allocation5] sm:$0xff] }
  0xfe   :  { %57 = vst.msk [vmem:[#allocation2] sm:$0xf] %vm56_vm1, %v45_v13  ;;  %630 = vmatpush.bf16.msra.mxu3 %v933_v14 }
 0x101   :  { %631 = vmatmul.bf16.vlgmr.msra.gmra.mxu3 %v932_v15  ;;  %v711_v15 = vsel %vm710_vm4, %v953_v62, %v709_v9 }
 0x104   :  { %v135_v16 = vpop.permute.xlu0 %134  ;;  %v137_v17 = vpop.permute.xlu1 %136 }
 0x105   :  { %146 = vst.msk [vmem:[#allocation3] sm:$0xf] %vm56_vm1, %v135_v16  ;;  %v920_v18 = vld [vmem:[#allocation2] sm:$0xff] }
 0x106   :  { %147 = vst.msk [vmem:[#allocation3 + $0x4] sm:$0xf] %vm56_vm1, %v137_v17  ;;  %95 = vmatpush.bf16.msra.mxu0 %v920_v18 }
 0x109   :  { %834 = vmatmul.msk.bf16.vlgmr.msra.gmra.mxu0 %vm84_vm3, %v919_v19 }
 0x10d   :  { %v923_v20 = vld [vmem:[#allocation3] sm:$0xff] }
 0x10e   :  { %232 = vmatpush.bf16.msra.mxu1 %v923_v20 }
 0x111   :  { %855 = vmatmul.msk.bf16.vlgmr.msra.gmra.mxu1 %vm221_vm2, %v922_v21 }
 0x17b   :  { %v1380_v30 = vpop.f32.mrf.mxu2 }
 0x17c   :  { %v677_v37 = vmul.f32 %v1380_v30, %v1380_v30  ;;  %v669_v42 = vsel %vm84_vm3, %v1380_v30, 0.0 }
 0x17e   :  { %v679_v41 = vsel %vm84_vm3, %v677_v37, 0.0 }
 0x183   :  { %v1394_v38 = vpop.f32.mrf.mxu2 }
 0x184   :  { %v1396_v39 = vpop.f32.mrf.mxu3  ;;  %v672_v40 = vsel %vm84_vm3, %v1394_v38, 0.0  ;;  %v678_v44 = vmul.f32 %v1394_v38, %v1394_v38 }
 0x185   :  { %v687_v45 = vsel %vm84_vm3, %v1396_v39, 0.0  ;;  %v695_v50 = vmul.f32 %v1396_v39, %v1396_v39 }
 0x186   :  { %v1365_v22 = vpop.f32.mrf.mxu0  ;;  %v682_v48 = vsel %vm84_vm3, %v678_v44, 0.0 }
 0x187   :  { %v637_v23 = vsel %vm84_vm3, %v1365_v22, 0.0  ;;  %v643_v24 = vmul.f32 %v1365_v22, %v1365_v22  ;;  %v697_v53 = vsel %vm84_vm3, %v695_v50, 0.0 }
 0x188   :  { %638 = vadd.xlane.f32.xlu2 %v637_v23 }
 0x189   :  { %v645_v28 = vsel %vm84_vm3, %v643_v24, 0.0 }
 0x18c   :  { %v1410_v47 = vpop.f32.mrf.mxu3 }
 0x18d   :  { %v696_v49 = vmul.f32 %v1410_v47, %v1410_v47  ;;  %v690_v52 = vsel %vm84_vm3, %v1410_v47, 0.0 }
 0x18e   :  { %v1371_v25 = vpop.f32.mrf.mxu0  ;;  %v1373_v26 = vpop.f32.mrf.mxu1 }
 0x18f   :  { %v651_v27 = vsel %vm84_vm3, %v1373_v26, 0.0  ;;  %v640_v29 = vsel %vm84_vm3, %v1371_v25, 0.0  ;;  %v659_v31 = vmul.f32 %v1373_v26, %v1373_v26  ;;  %v644_v32 = vmul.f32 %v1371_v25, %v1371_v25 }
 0x190   :  { %652 = vadd.xlane.f32.xlu1 %v651_v27  ;;  %646 = vadd.xlane.f32.xlu2 %v645_v28  ;;  %v700_v51 = vsel %vm84_vm3, %v696_v49, 0.0 }
 0x191   :  { %641 = vadd.xlane.f32.xlu0 %v640_v29  ;;  %v661_v34 = vsel %vm84_vm3, %v659_v31, 0.0  ;;  %v648_v36 = vsel %vm84_vm3, %v644_v32, 0.0 }
 0x196   :  { %v1386_v33 = vpop.f32.mrf.mxu1 }
 0x197   :  { %v654_v35 = vsel %vm84_vm3, %v1386_v33, 0.0  ;;  %v660_v43 = vmul.f32 %v1386_v33, %v1386_v33 }
 0x198   :  { %662 = vadd.xlane.f32.xlu1 %v661_v34  ;;  %655 = vadd.xlane.f32.xlu2 %v654_v35 }
 0x199   :  { %649 = vadd.xlane.f32.xlu0 %v648_v36  ;;  %v664_v46 = vsel %vm84_vm3, %v660_v43, 0.0 }
 0x1a0   :  { %673 = vadd.xlane.f32.xlu1 %v672_v40  ;;  %680 = vadd.xlane.f32.xlu2 %v679_v41 }
 0x1a1   :  { %670 = vadd.xlane.f32.xlu0 %v669_v42 }
 0x1a8   :  { %688 = vadd.xlane.f32.xlu1 %v687_v45  ;;  %665 = vadd.xlane.f32.xlu2 %v664_v46 }
 0x1a9   :  { %683 = vadd.xlane.f32.xlu0 %v682_v48 }
 0x1b0   :  { %701 = vadd.xlane.f32.xlu1 %v700_v51  ;;  %691 = vadd.xlane.f32.xlu2 %v690_v52 }
 0x1b1   :  { %698 = vadd.xlane.f32.xlu0 %v697_v53 }
 0x1fb   :  { %v639_v54 = vpop.xlane.xlu2 %638 }
 0x203   :  { %v653_v55 = vpop.xlane.xlu1 %652  ;;  %v647_v56 = vpop.xlane.xlu2 %646 }
 0x204   :  { %v642_v57 = vpop.xlane.xlu0 %641  ;;  %v657_v6 = vadd.f32 %v653_v55, %v639_v54 }
 0x20b   :  { %v663_v59 = vpop.xlane.xlu1 %662  ;;  %v656_v60 = vpop.xlane.xlu2 %655 }
 0x20c   :  { %v650_v61 = vpop.xlane.xlu0 %649  ;;  %v658_v14 = vadd.f32 %v656_v60, %v642_v57  ;;  %v667_v16 = vadd.f32 %v663_v59, %v647_v56  ;;  %v722_v56 = vld [vmem:[%s1478_s5] sm:$0xff] }
 0x213   :  { %v674_v0 = vpop.xlane.xlu1 %673  ;;  %v681_v1 = vpop.xlane.xlu2 %680 }
 0x214   :  { %v671_v2 = vpop.xlane.xlu0 %670  ;;  %v676_v17 = vadd.f32 %v674_v0, %v658_v14  ;;  %v685_v19 = vadd.f32 %v681_v1, %v667_v16  ;;  %v748_v0 = vld [vmem:[%s1479_s6] sm:$0xff] }
 0x215   :  { %v675_v11 = vadd.f32 %v671_v2, %v657_v6 }
 0x21b   :  { %v689_v7 = vpop.xlane.xlu1 %688  ;;  %v666_v8 = vpop.xlane.xlu2 %665 }
 0x21c   :  { %v684_v10 = vpop.xlane.xlu0 %683  ;;  %v668_v12 = vadd.f32 %v666_v8, %v650_v61  ;;  %v693_v13 = vadd.f32 %v689_v7, %v675_v11 }
 0x21e   :  { %v686_v18 = vadd.f32 %v684_v10, %v668_v12  ;;  %v712_v20 = vmul.f32 %v711_v15, %v693_v13 }
 0x220   :  { %v716_v32 = vmul.f32 %v712_v20, %v712_v20 }
 0x223   :  { %v702_v21 = vpop.xlane.xlu1 %701  ;;  %v692_v23 = vpop.xlane.xlu2 %691 }
 0x224   :  { %v704_v24 = vadd.f32 %v702_v21, %v686_v18  ;;  %v694_v27 = vadd.f32 %v692_v23, %v676_v17  ;;  %v699_v28 = vpop.xlane.xlu0 %698 }
 0x225   :  { %v703_v29 = vadd.f32 %v699_v28, %v685_v19 }
 0x226   :  { %v713_v31 = vmul.f32 %v711_v15, %v694_v27  ;;  %v715_v35 = vmul.f32 %v711_v15, %v704_v24 }
 0x227   :  { %v714_v34 = vmul.f32 %v711_v15, %v703_v29 }
 0x228   :  { %v717_v36 = vmul.f32 %v713_v31, %v713_v31 }
 0x229   :  { %v718_v37 = vsub.f32 %v714_v34, %v716_v32 }
 0x22a   :  { %v719_v40 = vsub.f32 %v715_v35, %v717_v36 }
 0x22b   :  { %v720_v41 = vmax.f32 %v718_v37, 0.0 }
 0x22c   :  { %v721_v42 = vmax.f32 %v719_v40, 0.0 }
 0x22d   :  { %v724_v43 = vadd.f32 1e-05, %v720_v41 }
 0x22e   :  { %v725_v44 = vadd.f32 1e-05, %v721_v42 }
 0x22f   :  { %954 = vrsqrt.f32 %v724_v43  ;;  %vm732_vm7 = vweird.f32 %v724_v43 }
 0x230   :  { %956 = vrsqrt.f32 %v725_v44  ;;  %vm742_vm9 = vweird.f32 %v725_v44 }
 0x235   :  { %v955_v45 = vpop.eup %954 }
 0x236   :  { %v957_v46 = vpop.eup %956  ;;  %v727_v48 = vmul.f32 %v955_v45, %v724_v43  ;;  %vm733_vm5 = vweird.f32 %v955_v45 }
 0x237   :  { %v737_v49 = vmul.f32 %v957_v46, %v725_v44  ;;  %vm743_vm6 = vweird.f32 %v957_v46  ;;  %vm734_vm8 = vmor %vm732_vm7, %vm733_vm5 }
 0x238   :  { %v728_v50 = vmul.f32 %v955_v45, %v727_v48  ;;  %vm744_vm10 = vmor %vm742_vm9, %vm743_vm6 }
 0x239   :  { %v738_v51 = vmul.f32 %v957_v46, %v737_v49 }
 0x23a   :  { %v729_v52 = vmul.f32 0.5, %v728_v50 }
 0x23b   :  { %v739_v53 = vmul.f32 0.5, %v738_v51 }
 0x23c   :  { %v730_v54 = vsub.f32 1.5, %v729_v52 }
 0x23d   :  { %v740_v55 = vsub.f32 1.5, %v739_v53 }
 0x23e   :  { %v731_v57 = vmul.f32 %v955_v45, %v730_v54 }
 0x23f   :  { %v741_v59 = vmul.f32 %v957_v46, %v740_v55 }
 0x240   :  { %v735_v60 = vsel %vm734_vm8, %v955_v45, %v731_v57 }
 0x241   :  { %v746_v61 = vmul.f32 %v735_v60, %v722_v56  ;;  %v745_v62 = vsel %vm744_vm10, %v957_v46, %v741_v59 }
 0x242   :  { %v747_v63 = vmul.f32 %v745_v62, %v723_v58 }
 0x243   :  { %756 = vperm.xlu2 %949, %v746_v61   ;;  %v750_v1 = vmul.f32 %v746_v61, %v712_v20 }
 0x244   :  { %761 = vperm.xlu0 %950, %v747_v63   ;;  %v751_v3 = vmul.f32 %v747_v63, %v713_v31 }
 0x245   :  { %v752_v2 = vsub.f32 %v748_v0, %v750_v1 }
 0x246   :  { %v753_v5 = vsub.f32 %v749_v4, %v751_v3 }
 0x247   :  { %768 = vperm.xlu1 %951, %v752_v2  }
 0x24b   :  { %773 = vperm.xlu2 %949, %v753_v5  }
 0x29d   :  { %v757_v6 = vpop.permute.xlu2 %756 }
 0x29e   :  { %v764_v13 = vmul.f32 %v757_v6, %v1365_v22  ;;  %v785_v14 = vmul.f32 %v757_v6, %v1373_v26  ;;  %v796_v15 = vmul.f32 %v757_v6, %v1380_v30  ;;  %v807_v16 = vmul.f32 %v757_v6, %v1396_v39 }
 0x2a5   :  { %v774_v12 = vpop.permute.xlu2 %773 }
 0x2b6   :  { %v762_v7 = vpop.permute.xlu0 %761 }
 0x2b7   :  { %v765_v8 = vmul.f32 %v762_v7, %v1371_v25  ;;  %v786_v9 = vmul.f32 %v762_v7, %v1386_v33  ;;  %v797_v10 = vmul.f32 %v762_v7, %v1394_v38  ;;  %v808_v11 = vmul.f32 %v762_v7, %v1410_v47 }
 0x2b9   :  { %v777_v17 = vadd.f32 %v774_v12, %v765_v8  ;;  %v788_v18 = vadd.f32 %v786_v9, %v774_v12  ;;  %v799_v19 = vadd.f32 %v797_v10, %v774_v12  ;;  %v810_v20 = vadd.f32 %v808_v11, %v774_v12  ;;  %v769_v25 = vpop.permute.xlu1 %768 }
 0x2ba   :  { %v776_v21 = vadd.f32 %v769_v25, %v764_v13  ;;  %v787_v33 = vadd.f32 %v785_v14, %v769_v25  ;;  %v798_v23 = vadd.f32 %v796_v15, %v769_v25  ;;  %v809_v38 = vadd.f32 %v807_v16, %v769_v25 }
 0x2bb   :  { %v779_v24 = vmax.f32 %v777_v17, 0.0  ;;  %v790_v47 = vmax.f32 %v788_v18, 0.0  ;;  %v801_v27 = vmax.f32 %v799_v19, 0.0  ;;  %v812_v28 = vmax.f32 %v810_v20, 0.0 }
 0x2bc   :  { %v778_v22 = vmax.f32 %v776_v21, 0.0  ;;  %v789_v26 = vmax.f32 %v787_v33, 0.0  ;;  %v800_v39 = vmax.f32 %v798_v23, 0.0  ;;  %v811_v34 = vmax.f32 %v809_v38, 0.0 }
 0x2bd   :  { %v781_v29 = vpack.c.bf16 %v779_v24, %v779_v24  ;;  %v792_v30 = vpack.c.bf16 %v790_v47, %v790_v47  ;;  %v803_v31 = vpack.c.bf16 %v801_v27, %v801_v27  ;;  %v814_v32 = vpack.c.bf16 %v812_v28, %v812_v28 }
 0x2be   :  { %v780_v35 = vpack.c.bf16 %v778_v22, %v778_v22  ;;  %v791_v36 = vpack.c.bf16 %v789_v26, %v789_v26  ;;  %v802_v37 = vpack.c.bf16 %v800_v39, %v800_v39  ;;  %v813_v40 = vpack.c.bf16 %v811_v34, %v811_v34 }
 0x2bf   :  { %784 = vst.msk [vmem:[%s1480_s7 + $0x4] sm:$0xf] %vm782_vm11, %v781_v29 }
 0x2c0   :  { %914 = vst.msk [vmem:[%s1480_s7 + $0xc] sm:$0xf] %vm782_vm11, %v792_v30 }
 0x2c1   :  { %916 = vst.msk [vmem:[%s1480_s7 + $0x14] sm:$0xf] %vm782_vm11, %v803_v31 }
 0x2c2   :  { %918 = vst.msk [vmem:[%s1480_s7 + $0x1c] sm:$0xf] %vm782_vm11, %v814_v32 }
 0x2c3   :  { %783 = vst.msk [vmem:[%s1480_s7] sm:$0xf] %vm782_vm11, %v780_v35 }
 0x2c4   :  { %913 = vst.msk [vmem:[%s1480_s7 + $0x8] sm:$0xf] %vm782_vm11, %v791_v36 }
 0x2c5   :  { %915 = vst.msk [vmem:[%s1480_s7 + $0x10] sm:$0xf] %vm782_vm11, %v802_v37 }
 0x2c6   :  { %917 = vst.msk [vmem:[%s1480_s7 + $0x18] sm:$0xf] %vm782_vm11, %v813_v40 }

// kernel: _lambda_.18
= control target key start
LH: loop header
LB: loop body
LE: loop exit
PB: predicated region body
PF: predicated region fallthrough
CT: control target
= control target key end

     0   :  { %s541_s28 = smov 48   ;;  %s542_s29 = smov 56   ;;  %vm29_vm0 = vcmask 519168   ;;  %vm42_vm1 = vcmask 1043968   ;;  %vm98_vm2 = vcmask 850944   ;;  %vm81_vm3 = vcmask 457728   ;;  %s795_s0 = inlined_call_operand.vmem [shape: bf16[16,288], index: 0, kind: input, shape index: {}]   ;;  %s796_s4 = inlined_call_operand.vmem [shape: bf16[8,64], index: 4, kind: input, shape index: {}]   ;;  %s797_s3 = inlined_call_operand.vmem [shape: bf16[8,32], index: 3, kind: input, shape index: {}]   ;;  %s798_s2 = inlined_call_operand.vmem [shape: bf16[8,32], index: 2, kind: input, shape index: {}]   ;;  %s799_s1 = inlined_call_operand.vmem [shape: bf16[8,16], index: 1, kind: input, shape index: {}]   ;;  %s800_s5 = inlined_call_operand.vmem [shape: f32[8,1], index: 5, kind: input, shape index: {}]   ;;  %s801_s6 = inlined_call_operand.vmem [shape: f32[8,1], index: 6, kind: input, shape index: {}]   ;;  %s802_s7 = inlined_call_operand.vmem [shape: bf16[4,8,128], index: 7, kind: output, shape index: {}]  }
   0x1   :  { %v322_v0 = vld [vmem:[%s795_s0 + $0x4] sm:$0xf]  ;;  %s543_s9 = smov 104   ;;  %v323_v3 = vld [vmem:[%s795_s0 + $0x10] sm:$0xf]  ;;  %s544_s22 = smov 120  }
   0x2   :  { %v286_v1 = vld [vmem:[%s795_s0] sm:$0xff]  ;;  %326 = vrot.lane.b32.xlu1 %v322_v0, %s541_s28  ;;  %v287_v4 = vld [vmem:[%s795_s0 + $0xc] sm:$0xff]  ;;  %s545_s11 = smov 40   ;;  %s546_s14 = smov 96   ;;  %vm238_vm4 = vcmask 392192   ;;  %vm255_vm5 = vcmask 785408  }
   0x3   :  { %290 = vrot.lane.b32.xlu0 %v286_v1, %s542_s29  ;;  %v302_v2 = vld [vmem:[%s795_s0 + $0x4] sm:$0xff]  ;;  %v303_v5 = vld [vmem:[%s795_s0 + $0x10] sm:$0xff]  ;;  %v262_v8 = vld [vmem:[%s795_s0] sm:$0xf]  ;;  %vm367_vm6 = vcmask 523264   ;;  %vm138_vm7 = vcmask 261120  }
   0x4   :  { %306 = vrot.lane.b32.xlu2 %v302_v2, %s543_s9  ;;  %v184_v6 = vld [vmem:[%s795_s0 + $0x10] sm:$0xf]  ;;  %v183_v7 = vld [vmem:[%s795_s0 + $0x4] sm:$0xf]  ;;  %v263_v9 = vld [vmem:[%s795_s0 + $0xc] sm:$0xf] }
   0x5   :  { %v275_v10 = vld [vmem:[%s795_s0 + $0x10] sm:$0xf]  ;;  %v274_v11 = vld [vmem:[%s795_s0 + $0x4] sm:$0xf]  ;;  %v155_v12 = vld [vmem:[%s795_s0] sm:$0xf] }
   0x6   :  { %v156_v13 = vld [vmem:[%s795_s0 + $0xc] sm:$0xf]  ;;  %v109_v14 = vld [vmem:[%s795_s0 + $0x4] sm:$0xf]  ;;  %v110_v16 = vld [vmem:[%s795_s0 + $0x10] sm:$0xf] }
   0x7   :  { %v167_v15 = vld [vmem:[%s795_s0 + $0x4] sm:$0xf]  ;;  %v168_v17 = vld [vmem:[%s795_s0 + $0x10] sm:$0xf]  ;;  %v318_v20 = vld [vmem:[%s795_s0] sm:$0xf] }
   0x8   :  { %v32_v18 = vld [vmem:[%s795_s0 + $0x4] sm:$0xf]  ;;  %v33_v19 = vld [vmem:[%s795_s0 + $0x10] sm:$0xf]  ;;  %320 = vst.msk [vmem:[#allocation5 + $0x18] sm:$0xf] %vm29_vm0, %v318_v20 }
   0x9   :  { %v319_v21 = vld [vmem:[%s795_s0 + $0xc] sm:$0xf]  ;;  %v179_v24 = vld [vmem:[%s795_s0] sm:$0xf]  ;;  %vm54_vm8 = vcmask 130048  }
   0xa   :  { %328 = vrot.lane.b32.xlu1 %v323_v3, %s541_s28  ;;  %321 = vst.msk [vmem:[#allocation5 + $0x1c] sm:$0xf] %vm29_vm0, %v319_v21  ;;  %v180_v23 = vld [vmem:[%s795_s0 + $0xc] sm:$0xf]  ;;  %v105_v50 = vld [vmem:[%s795_s0] sm:$0xf] }
   0xb   :  { %292 = vrot.lane.b32.xlu0 %v287_v4, %s542_s29  ;;  %182 = vst.msk [vmem:[#allocation4 + $0xc] sm:$0xf] %vm29_vm0, %v180_v23  ;;  %v106_v53 = vld [vmem:[%s795_s0 + $0xc] sm:$0xf]  ;;  %v195_v21 = vld [vmem:[%s797_s3] sm:$0xf] }
   0xc   :  { %308 = vrot.lane.b32.xlu2 %v303_v5, %s543_s9  ;;  %181 = vst.msk [vmem:[#allocation4 + $0x8] sm:$0xf] %vm29_vm0, %v179_v24  ;;  %v28_v63 = vld [vmem:[%s795_s0 + $0xc] sm:$0xf] }
   0xd   :  { %107 = vst.msk [vmem:[#allocation3 + $0x8] sm:$0xf] %vm29_vm0, %v105_v50  ;;  %v548_v50 = vmov 0  }
   0xe   :  { %108 = vst.msk [vmem:[#allocation3 + $0xc] sm:$0xf] %vm29_vm0, %v106_v53  ;;  %535 = vset.pattern.permute.xlu2 %v548_v50  ;;  %536 = vset.pattern.permute.xlu0 %v548_v50 }
   0xf   :  { %31 = vst.msk [vmem:[#allocation2 + $0x4] sm:$0xf] %vm29_vm0, %v28_v63 }
  0x12   :  { %189 = vrot.lane.b32.xlu1 %v184_v6, %s541_s28 }
  0x13   :  { %187 = vrot.lane.b32.xlu0 %v183_v7, %s541_s28 }
  0x14   :  { %266 = vrot.lane.b32.xlu2 %v262_v8, %s544_s22 }
  0x1a   :  { %232 = vrot.lane.b32.xlu1 %v286_v1, %s541_s28 }
  0x1b   :  { %268 = vrot.lane.b32.xlu0 %v263_v9, %s544_s22 }
  0x1c   :  { %234 = vrot.lane.b32.xlu2 %v287_v4, %s541_s28 }
  0x22   :  { %280 = vrot.lane.b32.xlu1 %v275_v10, %s545_s11 }
  0x23   :  { %278 = vrot.lane.b32.xlu0 %v274_v11, %s545_s11 }
  0x24   :  { %159 = vrot.lane.b32.xlu2 %v155_v12, %s544_s22  ;;  %v334_v12 = vld [vmem:[%s796_s4] sm:$0xf] }
  0x2a   :  { %249 = vrot.lane.b32.xlu1 %v302_v2, %s546_s14 }
  0x2b   :  { %161 = vrot.lane.b32.xlu0 %v156_v13, %s544_s22 }
  0x2c   :  { %251 = vrot.lane.b32.xlu2 %v303_v5, %s546_s14 }
  0x32   :  { %77 = vrot.lane.b32.xlu1 %v287_v4, %s542_s29 }
  0x33   :  { %75 = vrot.lane.b32.xlu0 %v286_v1, %s542_s29 }
  0x34   :  { %113 = vrot.lane.b32.xlu2 %v109_v14, %s541_s28 }
  0x3a   :  { %171 = vrot.lane.b32.xlu1 %v167_v15, %s545_s11 }
  0x3b   :  { %115 = vrot.lane.b32.xlu0 %v110_v16, %s541_s28 }
  0x3c   :  { %173 = vrot.lane.b32.xlu2 %v168_v17, %s545_s11 }
  0x42   :  { %94 = vrot.lane.b32.xlu1 %v303_v5, %s543_s9 }
  0x43   :  { %92 = vrot.lane.b32.xlu0 %v302_v2, %s543_s9  ;;  %v27_v2 = vld [vmem:[%s795_s0] sm:$0xf] }
  0x44   :  { %36 = vrot.lane.b32.xlu2 %v32_v18, %s541_s28  ;;  %30 = vst.msk [vmem:[#allocation2] sm:$0xf] %vm29_vm0, %v27_v2 }
  0x4b   :  { %38 = vrot.lane.b32.xlu0 %v33_v19, %s541_s28 }
  0x5e   :  { %v307_v22 = vpop.permute.xlu2 %306 }
  0x5f   :  { %v310_v27 = vrot.slane %v307_v22, 4 }
  0x61   :  { %v312_v31 = vsel %vm98_vm2, %v307_v22, %v310_v27 }
  0x66   :  { %v309_v25 = vpop.permute.xlu2 %308 }
  0x67   :  { %v311_v36 = vrot.slane %v309_v25, 4 }
  0x69   :  { %v313_v40 = vsel %vm98_vm2, %v309_v25, %v311_v36 }
  0x6e   :  { %v267_v26 = vpop.permute.xlu2 %266 }
  0x6f   :  { %272 = vst.msk [vmem:[#allocation5 + $0x8] sm:$0xf] %vm29_vm0, %v267_v26  ;;  %v121_v26 = vld [vmem:[%s798_s2] sm:$0xf] }
  0x74   :  { %v327_v28 = vpop.permute.xlu1 %326 }
  0x75   :  { %v291_v29 = vpop.permute.xlu0 %290  ;;  %332 = vst.msk [vmem:[#allocation5 + $0x18] sm:$0xf] %vm42_vm1, %v327_v28  ;;  %v45_v28 = vld [vmem:[%s799_s1] sm:$0xf] }
  0x76   :  { %v294_v30 = vrot.slane %v291_v29, 4  ;;  %v235_v32 = vpop.permute.xlu2 %234 }
  0x77   :  { %v237_v34 = vrot.slane %v235_v32, 4 }
  0x78   :  { %v296_v33 = vsel %vm81_vm3, %v291_v29, %v294_v30 }
  0x79   :  { %300 = vst.msk [vmem:[#allocation5 + $0x10] sm:$0xf] %vm29_vm0, %v296_v33  ;;  %v240_v35 = vsel %vm238_vm4, %v235_v32, %v237_v34 }
  0x7a   :  { %316 = vst.msk [vmem:[#allocation5 + $0x10] sm:$0xf] %vm42_vm1, %v312_v31 }
  0x7b   :  { %244 = vst.msk [vmem:[#allocation5 + $0x4] sm:$0xf] %vm29_vm0, %v240_v35 }
  0x7c   :  { %v329_v37 = vpop.permute.xlu1 %328 }
  0x7d   :  { %v293_v38 = vpop.permute.xlu0 %292  ;;  %333 = vst.msk [vmem:[#allocation5 + $0x1c] sm:$0xf] %vm42_vm1, %v329_v37 }
  0x7e   :  { %v295_v39 = vrot.slane %v293_v38, 4  ;;  %v160_v41 = vpop.permute.xlu2 %159 }
  0x7f   :  { %165 = vst.msk [vmem:[#allocation4] sm:$0xf] %vm29_vm0, %v160_v41  ;;  %v547_v41 = vmov 512.0  }
  0x80   :  { %v297_v42 = vsel %vm81_vm3, %v293_v38, %v295_v39  ;;  %537 = vrcp.f32 %v547_v41 }
  0x81   :  { %301 = vst.msk [vmem:[#allocation5 + $0x14] sm:$0xf] %vm29_vm0, %v297_v42 }
  0x82   :  { %317 = vst.msk [vmem:[#allocation5 + $0x14] sm:$0xf] %vm42_vm1, %v313_v40 }
  0x84   :  { %v190_v43 = vpop.permute.xlu1 %189  ;;  %v526_v45 = vld [vmem:[#allocation5 + $0x18] sm:$0xff] }
  0x85   :  { %v188_v44 = vpop.permute.xlu0 %187  ;;  %194 = vst.msk [vmem:[#allocation4 + $0xc] sm:$0xf] %vm42_vm1, %v190_v43  ;;  %375 = vmatpush.bf16.msra.mxu3 %v526_v45 }
  0x86   :  { %193 = vst.msk [vmem:[#allocation4 + $0x8] sm:$0xf] %vm42_vm1, %v188_v44  ;;  %v252_v46 = vpop.permute.xlu2 %251  ;;  %v538_v42 = vpop.eup %537 }
  0x87   :  { %v254_v47 = vrot.slane %v252_v46, 4  ;;  %v411_v44 = vmul.f32 512.0, %v538_v42  ;;  %vm415_vm9 = vweird.f32 %v538_v42 }
  0x89   :  { %v525_v48 = vld [vmem:[#allocation5 + $0x10] sm:$0xff]  ;;  %v257_v49 = vsel %vm255_vm5, %v252_v46, %v254_v47  ;;  %v412_v46 = vsub.f32 1.0, %v411_v44 }
  0x8a   :  { %376 = vmatpush.bf16.msra.mxu3 %v525_v48  ;;  %261 = vst.msk [vmem:[#allocation5 + $0x4] sm:$0xf] %vm42_vm1, %v257_v49 }
  0x8b   :  { %v413_v49 = vmul.f32 %v538_v42, %v412_v46 }
  0x8c   :  { %v233_v51 = vpop.permute.xlu1 %232 }
  0x8d   :  { %v269_v52 = vpop.permute.xlu0 %268  ;;  %v236_v54 = vrot.slane %v233_v51, 4  ;;  %v522_v55 = vld [vmem:[#allocation4 + $0x8] sm:$0xff]  ;;  %v414_v53 = vadd.f32 %v538_v42, %v413_v49 }
  0x8e   :  { %273 = vst.msk [vmem:[#allocation5 + $0xc] sm:$0xf] %vm29_vm0, %v269_v52  ;;  %v114_v56 = vpop.permute.xlu2 %113  ;;  %221 = vmatpush.bf16.msra.mxu2 %v522_v55 }
  0x8f   :  { %v239_v57 = vsel %vm238_vm4, %v233_v51, %v236_v54  ;;  %119 = vst.msk [vmem:[#allocation3 + $0x8] sm:$0xf] %vm42_vm1, %v114_v56 }
  0x90   :  { %243 = vst.msk [vmem:[#allocation5] sm:$0xf] %vm29_vm0, %v239_v57  ;;  %v416_v57 = vsel %vm415_vm9, %v538_v42, %v414_v53 }
  0x94   :  { %v281_v58 = vpop.permute.xlu1 %280 }
  0x95   :  { %v279_v59 = vpop.permute.xlu0 %278  ;;  %285 = vst.msk [vmem:[#allocation5 + $0xc] sm:$0xf] %vm42_vm1, %v281_v58 }
  0x96   :  { %284 = vst.msk [vmem:[#allocation5 + $0x8] sm:$0xf] %vm42_vm1, %v279_v59  ;;  %v174_v60 = vpop.permute.xlu2 %173 }
  0x9c   :  { %v250_v61 = vpop.permute.xlu1 %249 }
  0x9d   :  { %v162_v62 = vpop.permute.xlu0 %161  ;;  %v253_v0 = vrot.slane %v250_v61, 4  ;;  %v524_v1 = vld [vmem:[#allocation5 + $0x8] sm:$0xff] }
  0x9e   :  { %166 = vst.msk [vmem:[#allocation4 + $0x4] sm:$0xf] %vm29_vm0, %v162_v62  ;;  %377 = vmatpush.bf16.msra.mxu3 %v524_v1  ;;  %v37_v4 = vpop.permute.xlu2 %36 }
  0x9f   :  { %178 = vst.msk [vmem:[#allocation4 + $0x4] sm:$0xf] %vm42_vm1, %v174_v60  ;;  %v256_v3 = vsel %vm255_vm5, %v250_v61, %v253_v0 }
  0xa0   :  { %260 = vst.msk [vmem:[#allocation5] sm:$0xf] %vm42_vm1, %v256_v3 }
  0xa1   :  { %43 = vst.msk [vmem:[#allocation2] sm:$0xf] %vm42_vm1, %v37_v4 }
  0xa4   :  { %v78_v5 = vpop.permute.xlu1 %77 }
  0xa5   :  { %v76_v6 = vpop.permute.xlu0 %75  ;;  %v80_v7 = vrot.slane %v78_v5, 4 }
  0xa6   :  { %v79_v8 = vrot.slane %v76_v6, 4 }
  0xa7   :  { %v83_v9 = vsel %vm81_vm3, %v78_v5, %v80_v7  ;;  %v523_v11 = vld [vmem:[#allocation5] sm:$0xff] }
  0xa8   :  { %v82_v10 = vsel %vm81_vm3, %v76_v6, %v79_v8  ;;  %87 = vst.msk [vmem:[#allocation3 + $0x4] sm:$0xf] %vm29_vm0, %v83_v9  ;;  %378 = vmatpush.bf16.msra.mxu3 %v523_v11 }
  0xa9   :  { %86 = vst.msk [vmem:[#allocation3] sm:$0xf] %vm29_vm0, %v82_v10  ;;  %v422_v10 = vld [vmem:[%s800_s5] sm:$0xff] }
  0xab   :  { %514 = vmatmul.msk.bf16.vlgmr.msra.gmra.mxu3 %vm367_vm6, %v334_v12 }
  0xac   :  { %v172_v13 = vpop.permute.xlu1 %171 }
  0xad   :  { %v116_v14 = vpop.permute.xlu0 %115  ;;  %177 = vst.msk [vmem:[#allocation4] sm:$0xf] %vm42_vm1, %v172_v13 }
  0xae   :  { %120 = vst.msk [vmem:[#allocation3 + $0xc] sm:$0xf] %vm42_vm1, %v116_v14  ;;  %v435_v14 = vld [vmem:[%s801_s6] sm:$0xff] }
  0xb4   :  { %v95_v15 = vpop.permute.xlu1 %94  ;;  %v521_v17 = vld [vmem:[#allocation4] sm:$0xff] }
  0xb5   :  { %v93_v16 = vpop.permute.xlu0 %92  ;;  %v97_v18 = vrot.slane %v95_v15, 4  ;;  %v520_v20 = vld [vmem:[#allocation3 + $0x8] sm:$0xff]  ;;  %222 = vmatpush.bf16.msra.mxu2 %v521_v17 }
  0xb6   :  { %v96_v19 = vrot.slane %v93_v16, 4  ;;  %148 = vmatpush.bf16.msra.mxu1 %v520_v20 }
  0xb7   :  { %v100_v22 = vsel %vm98_vm2, %v95_v15, %v97_v18 }
  0xb8   :  { %v99_v23 = vsel %vm98_vm2, %v93_v16, %v96_v19  ;;  %104 = vst.msk [vmem:[#allocation3 + $0x4] sm:$0xf] %vm42_vm1, %v100_v22  ;;  %497 = vmatmul.msk.bf16.vlgmr.msra.gmra.mxu2 %vm138_vm7, %v195_v21 }
  0xb9   :  { %103 = vst.msk [vmem:[#allocation3] sm:$0xf] %vm42_vm1, %v99_v23 }
  0xbd   :  { %v39_v24 = vpop.permute.xlu0 %38 }
  0xbe   :  { %44 = vst.msk [vmem:[#allocation2 + $0x4] sm:$0xf] %vm42_vm1, %v39_v24 }
  0xc0   :  { %v519_v25 = vld [vmem:[#allocation3] sm:$0xff] }
  0xc1   :  { %149 = vmatpush.bf16.msra.mxu1 %v519_v25 }
  0xc4   :  { %488 = vmatmul.msk.bf16.vlgmr.msra.gmra.mxu1 %vm138_vm7, %v121_v26 }
  0xc5   :  { %v518_v27 = vld [vmem:[#allocation2] sm:$0xff] }
  0xc6   :  { %65 = vmatpush.bf16.msra.mxu0 %v518_v27 }
  0xc9   :  { %479 = vmatmul.msk.bf16.vlgmr.msra.gmra.mxu0 %vm54_vm8, %v45_v28 }
 0x12e   :  { %v753_v29 = vpop.f32.mrf.mxu3 }
 0x12f   :  { %v406_v40 = vmul.f32 %v753_v29, %v753_v29 }
 0x136   :  { %v382_v30 = vpop.f32.mrf.mxu3 }
 0x13b   :  { %v755_v31 = vpop.f32.mrf.mxu2 }
 0x13c   :  { %v399_v39 = vmul.f32 %v755_v31, %v755_v31 }
 0x141   :  { %v757_v32 = vpop.f32.mrf.mxu1 }
 0x142   :  { %389 = vadd.xlane.f32.xlu2 %v757_v32  ;;  %v392_v36 = vmul.f32 %v757_v32, %v757_v32 }
 0x143   :  { %v226_v33 = vpop.f32.mrf.mxu2 }
 0x146   :  { %v760_v34 = vpop.f32.mrf.mxu0 }
 0x147   :  { %384 = vadd.xlane.f32.xlu1 %v760_v34  ;;  %v386_v35 = vmul.f32 %v760_v34, %v760_v34 }
 0x149   :  { %387 = vadd.xlane.f32.xlu0 %v386_v35  ;;  %v153_v37 = vpop.f32.mrf.mxu1 }
 0x14a   :  { %393 = vadd.xlane.f32.xlu2 %v392_v36 }
 0x14e   :  { %v69_v38 = vpop.f32.mrf.mxu0 }
 0x14f   :  { %396 = vadd.xlane.f32.xlu1 %v755_v31 }
 0x151   :  { %403 = vadd.xlane.f32.xlu0 %v753_v29 }
 0x152   :  { %400 = vadd.xlane.f32.xlu2 %v399_v39 }
 0x157   :  { %407 = vadd.xlane.f32.xlu1 %v406_v40 }
 0x1b5   :  { %v390_v43 = vpop.xlane.xlu2 %389 }
 0x1ba   :  { %v385_v45 = vpop.xlane.xlu1 %384 }
 0x1bb   :  { %v391_v51 = vadd.f32 %v390_v43, %v385_v45 }
 0x1bc   :  { %v388_v47 = vpop.xlane.xlu0 %387 }
 0x1bd   :  { %v394_v48 = vpop.xlane.xlu2 %393 }
 0x1be   :  { %v395_v59 = vadd.f32 %v394_v48, %v388_v47 }
 0x1c2   :  { %v397_v52 = vpop.xlane.xlu1 %396 }
 0x1c3   :  { %v398_v54 = vadd.f32 %v397_v52, %v391_v51 }
 0x1c4   :  { %v404_v55 = vpop.xlane.xlu0 %403 }
 0x1c5   :  { %v405_v56 = vadd.f32 %v404_v55, %v398_v54  ;;  %v401_v58 = vpop.xlane.xlu2 %400 }
 0x1c6   :  { %v402_v61 = vadd.f32 %v401_v58, %v395_v59 }
 0x1c7   :  { %v417_v60 = vmul.f32 %v416_v57, %v405_v56 }
 0x1c9   :  { %v419_v0 = vmul.f32 %v417_v60, %v417_v60 }
 0x1ca   :  { %v408_v62 = vpop.xlane.xlu1 %407 }
 0x1cb   :  { %v409_v63 = vadd.f32 %v408_v62, %v402_v61 }
 0x1cd   :  { %v418_v1 = vmul.f32 %v416_v57, %v409_v63 }
 0x1cf   :  { %v420_v2 = vsub.f32 %v418_v1, %v419_v0 }
 0x1d1   :  { %v421_v3 = vmax.f32 %v420_v2, 0.0 }
 0x1d3   :  { %v423_v4 = vadd.f32 1e-05, %v421_v3 }
 0x1d5   :  { %539 = vrsqrt.f32 %v423_v4  ;;  %vm430_vm11 = vweird.f32 %v423_v4 }
 0x1db   :  { %v540_v5 = vpop.eup %539 }
 0x1dc   :  { %v425_v6 = vmul.f32 %v540_v5, %v423_v4  ;;  %vm431_vm10 = vweird.f32 %v540_v5 }
 0x1dd   :  { %vm432_vm12 = vmor %vm430_vm11, %vm431_vm10 }
 0x1de   :  { %v426_v7 = vmul.f32 %v540_v5, %v425_v6 }
 0x1e0   :  { %v427_v8 = vmul.f32 0.5, %v426_v7 }
 0x1e2   :  { %v428_v9 = vsub.f32 1.5, %v427_v8 }
 0x1e4   :  { %v429_v11 = vmul.f32 %v540_v5, %v428_v9 }
 0x1e6   :  { %v433_v12 = vsel %vm432_vm12, %v540_v5, %v429_v11 }
 0x1e7   :  { %v434_v13 = vmul.f32 %v433_v12, %v422_v10 }
 0x1e9   :  { %440 = vperm.xlu2 %535, %v434_v13   ;;  %v436_v15 = vmul.f32 %v434_v13, %v417_v60 }
 0x1eb   :  { %v437_v16 = vsub.f32 %v435_v14, %v436_v15 }
 0x1ed   :  { %446 = vperm.xlu0 %536, %v437_v16  }
 0x243   :  { %v441_v17 = vpop.permute.xlu2 %440 }
 0x244   :  { %v443_v18 = vmul.f32 %v441_v17, %v760_v34  ;;  %v453_v19 = vmul.f32 %v441_v17, %v757_v32  ;;  %v459_v20 = vmul.f32 %v441_v17, %v755_v31  ;;  %v465_v21 = vmul.f32 %v441_v17, %v753_v29 }
 0x25f   :  { %v447_v22 = vpop.permute.xlu0 %446 }
 0x260   :  { %v449_v23 = vadd.f32 %v447_v22, %v443_v18  ;;  %v454_v24 = vadd.f32 %v453_v19, %v447_v22  ;;  %v460_v25 = vadd.f32 %v459_v20, %v447_v22  ;;  %v466_v26 = vadd.f32 %v465_v21, %v447_v22 }
 0x262   :  { %v450_v27 = vmax.f32 %v449_v23, 0.0  ;;  %v455_v28 = vmax.f32 %v454_v24, 0.0  ;;  %v461_v30 = vmax.f32 %v460_v25, 0.0  ;;  %v467_v33 = vmax.f32 %v466_v26, 0.0 }
 0x264   :  { %v451_v35 = vpack.c.bf16 %v450_v27, %v450_v27  ;;  %v456_v36 = vpack.c.bf16 %v455_v28, %v455_v28  ;;  %v462_v37 = vpack.c.bf16 %v461_v30, %v461_v30  ;;  %v468_v38 = vpack.c.bf16 %v467_v33, %v467_v33 }
 0x266   :  { %452 = vst [vmem:[%s802_s7] sm:$0xf] %v451_v35 }
 0x267   :  { %515 = vst [vmem:[%s802_s7 + $0x4] sm:$0xf] %v456_v36 }
 0x268   :  { %516 = vst [vmem:[%s802_s7 + $0x8] sm:$0xf] %v462_v37 }
 0x269   :  { %517 = vst [vmem:[%s802_s7 + $0xc] sm:$0xf] %v468_v38 }

// kernel: _lambda_.19
= control target key start
LH: loop header
LB: loop body
LE: loop exit
PB: predicated region body
PF: predicated region fallthrough
CT: control target
= control target key end

     0   :  { %s832_s16 = smov 64   ;;  %s833_s17 = smov 96   ;;  %v839_v21 = vmov 0   ;;  %vm63_vm0 = vcmask 1043456   ;;  %vm185_vm1 = vcmask 392192   ;;  %vm97_vm2 = vcmask 523264   ;;  %s995_s0 = inlined_call_operand.vmem [shape: bf16[8,1728], index: 0, kind: input, shape index: {}]   ;;  %s996_s1 = inlined_call_operand.vmem [shape: bf16[3,144], index: 1, kind: input, shape index: {}]   ;;  %s997_s2 = inlined_call_operand.vmem [shape: f32[3,1], index: 2, kind: input, shape index: {}]   ;;  %s998_s3 = inlined_call_operand.vmem [shape: f32[3,512], index: 3, kind: output, shape index: {}]  }
   0x1   :  { %v219_v0 = vld [vmem:[%s995_s0 + $0x8] sm:$0xff]  ;;  %v203_v1 = vld [vmem:[%s995_s0] sm:$0xff]  ;;  %v174_v2 = vld [vmem:[%s995_s0 + $0x10] sm:$0xff]  ;;  %s834_s20 = smov 48   ;;  %s835_s4 = smov 80   ;;  %17 = vst [vmem:[#allocation2 + $0x10] sm:$0xff] %v839_v21  ;;  %823 = vset.pattern.permute.xlu0 %v839_v21 }
   0x2   :  { %223 = vrot.lane.b32.xlu0 %v219_v0, %s832_s16  ;;  %207 = vrot.lane.b32.xlu1 %v203_v1, %s833_s17  ;;  %52 = vst [vmem:[#allocation2] sm:$0xff] %v203_v1  ;;  %v220_v3 = vld [vmem:[%s995_s0 + $0x10] sm:$0xf]  ;;  %v204_v4 = vld [vmem:[%s995_s0 + $0x8] sm:$0xf]  ;;  %s836_s9 = smov 112  }
   0x3   :  { %178 = vrot.lane.b32.xlu2 %v174_v2, %s834_s20  ;;  %v175_v5 = vld [vmem:[%s995_s0 + $0x18] sm:$0xf]  ;;  %v233_v6 = vld [vmem:[%s995_s0 + $0x24] sm:$0xff]  ;;  %v146_v7 = vld [vmem:[%s995_s0 + $0x10] sm:$0xf]  ;;  %s837_s28 = smov 16  }
   0x4   :  { %85 = vst [vmem:[#allocation2 + $0x28] sm:$0xff] %v233_v6  ;;  %v234_v8 = vld [vmem:[%s995_s0 + $0x2c] sm:$0xf]  ;;  %v116_v9 = vld [vmem:[%s995_s0 + $0x8] sm:$0xf]  ;;  %v130_v16 = vld [vmem:[%s995_s0 + $0x18] sm:$0xff] }
   0x5   :  { %v87_v10 = vld [vmem:[%s995_s0 + $0x18] sm:$0xf]  ;;  %v189_v11 = vld [vmem:[%s995_s0 + $0x2c] sm:$0xff]  ;;  %v190_v12 = vld [vmem:[%s995_s0 + $0x34] sm:$0xf]  ;;  %18 = vst [vmem:[#allocation2 + $0x18] sm:$0xff] %v839_v21 }
   0x6   :  { %v70_v13 = vld [vmem:[%s995_s0 + $0x10] sm:$0xf]  ;;  %v161_v14 = vld [vmem:[%s995_s0 + $0x2c] sm:$0xf]  ;;  %v262_v15 = vld [vmem:[%s995_s0 + $0x34] sm:$0xf] }
   0x7   :  { %v131_v17 = vld [vmem:[%s995_s0 + $0x20] sm:$0xf]  ;;  %v102_v18 = vld [vmem:[%s995_s0 + $0x34] sm:$0xf]  ;;  %v248_v19 = vld [vmem:[%s995_s0 + $0x18] sm:$0xf] }
   0x8   :  { %v54_v20 = vld [vmem:[%s995_s0 + $0x20] sm:$0xf]  ;;  %21 = vst [vmem:[#allocation2 + $0x30] sm:$0xff] %v839_v21  ;;  %vm80_vm3 = vcmask 785408   ;;  %vm156_vm4 = vcmask 654336   ;;  %vm126_vm5 = vcmask 916480  }
   0x9   :  { %22 = vst [vmem:[#allocation2 + $0x38] sm:$0xff] %v839_v21  ;;  %vm141_vm6 = vcmask 130048   ;;  %vm65_vm7 = vcmask 261120  }
   0xa   :  { %225 = vrot.lane.b32.xlu0 %v220_v3, %s832_s16  ;;  %209 = vrot.lane.b32.xlu1 %v204_v4, %s833_s17  ;;  %25 = vst [vmem:[#allocation2 + $0x50] sm:$0xff] %v839_v21 }
   0xb   :  { %180 = vrot.lane.b32.xlu2 %v175_v5, %s834_s20  ;;  %26 = vst [vmem:[#allocation2 + $0x58] sm:$0xff] %v839_v21 }
   0xc   :  { %29 = vst [vmem:[#allocation2 + $0x70] sm:$0xff] %v839_v21 }
   0xd   :  { %30 = vst [vmem:[#allocation2 + $0x78] sm:$0xff] %v839_v21 }
   0xe   :  { %33 = vst [vmem:[#allocation2 + $0x90] sm:$0xff] %v839_v21 }
   0xf   :  { %34 = vst [vmem:[#allocation2 + $0x98] sm:$0xff] %v839_v21 }
  0x10   :  { %37 = vst [vmem:[#allocation2 + $0xb0] sm:$0xff] %v839_v21 }
  0x11   :  { %38 = vst [vmem:[#allocation2 + $0xb8] sm:$0xff] %v839_v21 }
  0x12   :  { %151 = vrot.lane.b32.xlu1 %v146_v7, %s835_s4  ;;  %149 = vrot.lane.b32.xlu0 %v219_v0, %s835_s4  ;;  %41 = vst [vmem:[#allocation2 + $0xd0] sm:$0xff] %v839_v21 }
  0x13   :  { %237 = vrot.lane.b32.xlu2 %v233_v6, %s833_s17  ;;  %42 = vst [vmem:[#allocation2 + $0xd8] sm:$0xff] %v839_v21 }
  0x14   :  { %45 = vst [vmem:[#allocation2 + $0xf0] sm:$0xff] %v839_v21 }
  0x15   :  { %46 = vst [vmem:[#allocation2 + $0xf8] sm:$0xff] %v839_v21 }
  0x16   :  { %49 = vst [vmem:[#allocation2 + $0x110] sm:$0xff] %v839_v21 }
  0x17   :  { %50 = vst [vmem:[#allocation2 + $0x118] sm:$0xff] %v839_v21  ;;  %v801_v3 = vld [vmem:[#allocation2 + $0xac] sm:$0xf0] }
  0x19   :  { %v805_v49 = vld [vmem:[#allocation2 + $0xcc] sm:$0xf0]  ;;  %v731_v54 = vld [vmem:[#allocation2 + $0xd0] sm:$0xf0] }
  0x1a   :  { %239 = vrot.lane.b32.xlu0 %v234_v8, %s833_s17  ;;  %119 = vrot.lane.b32.xlu1 %v203_v1, %s836_s9 }
  0x1b   :  { %121 = vrot.lane.b32.xlu2 %v116_v9, %s836_s9  ;;  %v809_v46 = vld [vmem:[#allocation2 + $0xec] sm:$0xf0]  ;;  %v747_v47 = vld [vmem:[#allocation2 + $0xf0] sm:$0xf0] }
  0x22   :  { %92 = vrot.lane.b32.xlu1 %v87_v10, %s832_s16  ;;  %90 = vrot.lane.b32.xlu0 %v174_v2, %s832_s16 }
  0x23   :  { %193 = vrot.lane.b32.xlu2 %v189_v11, %s835_s4 }
  0x2a   :  { %195 = vrot.lane.b32.xlu0 %v190_v12, %s835_s4  ;;  %73 = vrot.lane.b32.xlu1 %v219_v0, %s833_s17  ;;  %s838_s4 = smov 32  }
  0x2b   :  { %75 = vrot.lane.b32.xlu2 %v70_v13, %s833_s17  ;;  %v797_v13 = vld [vmem:[#allocation2 + $0x8c] sm:$0xf0] }
  0x32   :  { %164 = vrot.lane.b32.xlu0 %v233_v6, %s836_s9  ;;  %166 = vrot.lane.b32.xlu1 %v161_v14, %s836_s9  ;;  %v715_v6 = vld [vmem:[#allocation2 + $0xb0] sm:$0xf0] }
  0x33   :  { %265 = vrot.lane.b32.xlu2 %v189_v11, %s832_s16  ;;  %v699_v14 = vld [vmem:[#allocation2 + $0x90] sm:$0xf0] }
  0x3a   :  { %267 = vrot.lane.b32.xlu0 %v262_v15, %s832_s16  ;;  %134 = vrot.lane.b32.xlu1 %v130_v16, %s837_s28 }
  0x3b   :  { %136 = vrot.lane.b32.xlu2 %v131_v17, %s837_s28 }
  0x42   :  { %105 = vrot.lane.b32.xlu0 %v189_v11, %s833_s17  ;;  %107 = vrot.lane.b32.xlu1 %v102_v18, %s833_s17 }
  0x43   :  { %251 = vrot.lane.b32.xlu2 %v174_v2, %s838_s4 }
  0x4a   :  { %253 = vrot.lane.b32.xlu0 %v248_v19, %s838_s4  ;;  %57 = vrot.lane.b32.xlu1 %v130_v16, %s838_s4 }
  0x4b   :  { %59 = vrot.lane.b32.xlu2 %v54_v20, %s838_s4 }
  0x5d   :  { %v179_v22 = vpop.permute.xlu2 %178 }
  0x5e   :  { %v182_v23 = vrot.slane %v179_v22, 4 }
  0x65   :  { %v181_v24 = vpop.permute.xlu2 %180 }
  0x66   :  { %v183_v25 = vrot.slane %v181_v24, 4  ;;  %v217_v24 = vld [vmem:[%s995_s0 + $0x1c] sm:$0xff] }
  0x67   :  { %218 = vst [vmem:[#allocation2 + $0xc8] sm:$0xff] %v217_v24 }
  0x68   :  { %v184_v26 = vsel %vm63_vm0, %v182_v23, %v183_v25 }
  0x69   :  { %v186_v27 = vsel %vm185_vm1, %v179_v22, %v184_v26  ;;  %v793_v26 = vld [vmem:[#allocation2 + $0x6c] sm:$0xf0] }
  0x6a   :  { %188 = vst [vmem:[#allocation2 + $0xa0] sm:$0xff] %v186_v27  ;;  %v683_v27 = vld [vmem:[#allocation2 + $0x70] sm:$0xf0] }
  0x6d   :  { %v238_v30 = vpop.permute.xlu2 %237 }
  0x6e   :  { %v241_v59 = vrot.slane %v238_v30, 4 }
  0x71   :  { %v713_v4 = vld [vmem:[#allocation2 + $0xa0] sm:$0xf]  ;;  %v799_v5 = vld [vmem:[#allocation2 + $0xa4] sm:$0xf] }
  0x72   :  { %v714_v11 = vor.u32 %v801_v3, %v713_v4  ;;  %v718_v12 = vor.u32 %v799_v5, %v715_v6 }
  0x74   :  { %v224_v28 = vpop.permute.xlu0 %223  ;;  %v208_v29 = vpop.permute.xlu1 %207 }
  0x75   :  { %v211_v31 = vrot.slane %v208_v29, 4  ;;  %v227_v34 = vrot.slane %v224_v28, 4  ;;  %v122_v39 = vpop.permute.xlu2 %121 }
  0x76   :  { %v124_v62 = vrot.slane %v122_v39, 4 }
  0x7c   :  { %v226_v32 = vpop.permute.xlu0 %225  ;;  %v210_v33 = vpop.permute.xlu1 %209 }
  0x7d   :  { %v228_v35 = vrot.slane %v226_v32, 4  ;;  %v212_v36 = vrot.slane %v210_v33, 4  ;;  %v943_v50 = vpop.permute.xlu2 %193  ;;  %v275_v33 = vld [vmem:[%s996_s1] sm:$0xf] }
  0x7e   :  { %319 = vst [vmem:[#allocation1] ss:$4 sm:$0xff] %v275_v33  ;;  %v804_v33 = vld [vmem:[#allocation2 + $0xcc] sm:$0xf] }
  0x7f   :  { %v229_v37 = vsel %vm63_vm0, %v227_v34, %v228_v35  ;;  %v213_v38 = vsel %vm63_vm0, %v211_v31, %v212_v36  ;;  %v197_v34 = vrot.slane %v943_v50, 4 }
  0x80   :  { %v230_v40 = vsel %vm97_vm2, %v224_v28, %v229_v37  ;;  %v214_v41 = vsel %vm80_vm3, %v208_v29, %v213_v38 }
  0x81   :  { %232 = vst [vmem:[#allocation2 + $0xe0] sm:$0xff] %v230_v40 }
  0x82   :  { %216 = vst [vmem:[#allocation2 + $0xc0] sm:$0xff] %v214_v41  ;;  %v789_v41 = vld [vmem:[#allocation2 + $0x4c] sm:$0xf0] }
  0x84   :  { %v152_v42 = vpop.permute.xlu1 %151  ;;  %v150_v43 = vpop.permute.xlu0 %149 }
  0x85   :  { %v154_v44 = vrot.slane %v152_v42, 4  ;;  %v153_v45 = vrot.slane %v150_v43, 4  ;;  %v76_v15 = vpop.permute.xlu2 %75  ;;  %v667_v42 = vld [vmem:[#allocation2 + $0x50] sm:$0xf0] }
  0x86   :  { %v78_v35 = vrot.slane %v76_v15, 4 }
  0x87   :  { %v155_v48 = vsel %vm63_vm0, %v153_v45, %v154_v44 }
  0x88   :  { %v157_v51 = vsel %vm156_vm4, %v150_v43, %v155_v48  ;;  %v745_v52 = vld [vmem:[#allocation2 + $0xe0] sm:$0xf]  ;;  %v807_v53 = vld [vmem:[#allocation2 + $0xe4] sm:$0xf] }
  0x89   :  { %159 = vst [vmem:[#allocation2 + $0x80] sm:$0xff] %v157_v51  ;;  %v746_v55 = vor.u32 %v809_v46, %v745_v52  ;;  %v750_v56 = vor.u32 %v807_v53, %v747_v47  ;;  %v729_v57 = vld [vmem:[#allocation2 + $0xc0] sm:$0xf]  ;;  %v803_v58 = vld [vmem:[#allocation2 + $0xc4] sm:$0xf] }
  0x8a   :  { %v730_v60 = vor.u32 %v805_v49, %v729_v57  ;;  %v734_v61 = vor.u32 %v803_v58, %v731_v54  ;;  %v785_v58 = vld [vmem:[#allocation2 + $0x2c] sm:$0xf0] }
  0x8b   :  { %506 = vmatpush.bf16.msra.mxu0 %v746_v55  ;;  %532 = vmatpush.bf16.msra.mxu2 %v750_v56 }
  0x8c   :  { %v240_v63 = vpop.permute.xlu0 %239  ;;  %v120_v0 = vpop.permute.xlu1 %119 }
  0x8d   :  { %v242_v1 = vrot.slane %v240_v63, 4  ;;  %v123_v2 = vrot.slane %v120_v0, 4  ;;  %v266_v36 = vpop.permute.xlu2 %265  ;;  %v635_v63 = vld [vmem:[#allocation2 + $0x10] sm:$0xf0] }
  0x8e   :  { %v269_v4 = vrot.slane %v266_v36, 4 }
  0x8f   :  { %v243_v7 = vsel %vm63_vm0, %v241_v59, %v242_v1  ;;  %507 = vmatpush.bf16.msra.mxu0 %v730_v60  ;;  %533 = vmatpush.bf16.msra.mxu2 %v734_v61  ;;  %v125_v8 = vsel %vm63_vm0, %v123_v2, %v124_v62  ;;  %v651_v59 = vld [vmem:[#allocation2 + $0x30] sm:$0xf0]  ;;  %v781_v61 = vld [vmem:[#allocation2 + $0xc] sm:$0xf0]  ;;  %v779_v62 = vld [vmem:[#allocation2 + $0x4] sm:$0xf] }
  0x90   :  { %v244_v9 = vsel %vm80_vm3, %v238_v30, %v243_v7  ;;  %v127_v10 = vsel %vm126_vm5, %v120_v0, %v125_v8  ;;  %v697_v16 = vld [vmem:[#allocation2 + $0x80] sm:$0xf]  ;;  %v795_v17 = vld [vmem:[#allocation2 + $0x84] sm:$0xf] }
  0x91   :  { %246 = vst [vmem:[#allocation2 + $0xe8] sm:$0xff] %v244_v9  ;;  %v698_v22 = vor.u32 %v797_v13, %v697_v16  ;;  %v702_v23 = vor.u32 %v795_v17, %v699_v14  ;;  %v638_v9 = vor.u32 %v779_v62, %v635_v63  ;;  %v969_v16 = vld.sshfl [vmem:[#allocation1] sm:$0xff pattern:$0x73625140] }
  0x92   :  { %129 = vst [vmem:[#allocation2 + $0x60] sm:$0xff] %v127_v10 }
  0x93   :  { %508 = vmatpush.bf16.msra.mxu0 %v714_v11  ;;  %534 = vmatpush.bf16.msra.mxu2 %v718_v12 }
  0x94   :  { %v93_v18 = vpop.permute.xlu1 %92  ;;  %v91_v19 = vpop.permute.xlu0 %90 }
  0x95   :  { %v95_v20 = vrot.slane %v93_v18, 4  ;;  %v94_v21 = vrot.slane %v91_v19, 4  ;;  %v137_v56 = vpop.permute.xlu2 %136 }
  0x96   :  { %v139_v5 = vrot.slane %v137_v56, 4  ;;  %v813_v56 = vld [vmem:[#allocation2 + $0x10c] sm:$0xf0] }
  0x97   :  { %v96_v25 = vsel %vm63_vm0, %v94_v21, %v95_v20  ;;  %509 = vmatpush.bf16.msra.mxu0 %v698_v22  ;;  %535 = vmatpush.bf16.msra.mxu2 %v702_v23  ;;  %v814_v22 = vld [vmem:[#allocation2 + $0x114] sm:$0xf0]  ;;  %v771_v23 = vld [vmem:[#allocation2 + $0x118] sm:$0xf0] }
  0x98   :  { %v98_v28 = vsel %vm97_vm2, %v91_v19, %v96_v25  ;;  %v808_v25 = vld [vmem:[#allocation2 + $0xec] sm:$0xf] }
  0x99   :  { %100 = vst [vmem:[#allocation2 + $0x40] sm:$0xff] %v98_v28  ;;  %v681_v29 = vld [vmem:[#allocation2 + $0x60] sm:$0xf]  ;;  %v791_v30 = vld [vmem:[#allocation2 + $0x64] sm:$0xf] }
  0x9a   :  { %v682_v31 = vor.u32 %v793_v26, %v681_v29  ;;  %v686_v32 = vor.u32 %v791_v30, %v683_v27  ;;  %v755_v26 = vld [vmem:[#allocation2 + $0xf8] sm:$0xf0] }
  0x9c   :  { %v196_v37 = vpop.permute.xlu0 %195  ;;  %v74_v38 = vpop.permute.xlu1 %73  ;;  %510 = vmatpush.bf16.msra.mxu0 %v682_v31  ;;  %536 = vmatpush.bf16.msra.mxu2 %v686_v32 }
  0x9d   :  { %v198_v39 = vrot.slane %v196_v37, 4  ;;  %v77_v40 = vrot.slane %v74_v38, 4  ;;  %v252_v15 = vpop.permute.xlu2 %251 }
  0x9f   :  { %v199_v43 = vsel %vm63_vm0, %v197_v34, %v198_v39  ;;  %v79_v44 = vsel %vm63_vm0, %v77_v40, %v78_v35  ;;  %v739_v34 = vld [vmem:[#allocation2 + $0xd8] sm:$0xf0]  ;;  %v758_v35 = vor.u32 %v808_v25, %v755_v26  ;;  %v790_v26 = vld [vmem:[#allocation2 + $0x54] sm:$0xf0] }
  0xa0   :  { %v200_v45 = vsel %vm156_vm4, %v943_v50, %v199_v43  ;;  %v665_v46 = vld [vmem:[#allocation2 + $0x40] sm:$0xf]  ;;  %v787_v47 = vld [vmem:[#allocation2 + $0x44] sm:$0xf]  ;;  %v81_v48 = vsel %vm80_vm3, %v74_v38, %v79_v44  ;;  %v742_v40 = vor.u32 %v804_v33, %v739_v34 }
  0xa1   :  { %202 = vst [vmem:[#allocation2 + $0xa8] sm:$0xff] %v200_v45  ;;  %v666_v49 = vor.u32 %v789_v41, %v665_v46  ;;  %v670_v51 = vor.u32 %v787_v47, %v667_v42  ;;  %v633_v50 = vld [vmem:[#allocation2] sm:$0xf]  ;;  %v723_v46 = vld [vmem:[#allocation2 + $0xb8] sm:$0xf0] }
  0xa2   :  { %83 = vst [vmem:[#allocation2 + $0x20] sm:$0xff] %v81_v48  ;;  %v634_v8 = vor.u32 %v781_v61, %v633_v50  ;;  %v321_v38 = vld.sshfl [vmem:[#allocation1 + $0x8] sm:$0xff pattern:$0x73625140] }
  0xa3   :  { %511 = vmatpush.bf16.msra.mxu0 %v666_v49  ;;  %537 = vmatpush.bf16.msra.mxu2 %v670_v51  ;;  %v312_v51 = vld [vmem:[%s997_s2] sm:$0x7] }
  0xa4   :  { %v165_v52 = vpop.permute.xlu0 %164  ;;  %v167_v53 = vpop.permute.xlu1 %166  ;;  %315 = vperm.xlu0 %823, %v312_v51  }
  0xa5   :  { %v168_v54 = vrot.slane %v165_v52, 4  ;;  %v169_v55 = vrot.slane %v167_v53, 4  ;;  %v60_v30 = vpop.permute.xlu2 %59 }
  0xa6   :  { %v62_v37 = vrot.slane %v60_v30, 4 }
  0xa7   :  { %v170_v57 = vsel %vm63_vm0, %v168_v54, %v169_v55  ;;  %v707_v54 = vld [vmem:[#allocation2 + $0x98] sm:$0xf0] }
  0xa8   :  { %v171_v60 = vsel %vm126_vm5, %v165_v52, %v170_v57  ;;  %v800_v45 = vld [vmem:[#allocation2 + $0xac] sm:$0xf]  ;;  %v763_v57 = vld [vmem:[#allocation2 + $0x110] sm:$0xf0] }
  0xa9   :  { %173 = vst [vmem:[#allocation2 + $0x88] sm:$0xff] %v171_v60  ;;  %v649_v0 = vld [vmem:[#allocation2 + $0x20] sm:$0xf]  ;;  %v783_v1 = vld [vmem:[#allocation2 + $0x24] sm:$0xf]  ;;  %v726_v52 = vor.u32 %v800_v45, %v723_v46 }
  0xaa   :  { %v650_v2 = vor.u32 %v785_v58, %v649_v0  ;;  %v654_v3 = vor.u32 %v783_v1, %v651_v59  ;;  %v810_v58 = vld [vmem:[#allocation2 + $0xf4] sm:$0xf0]  ;;  %v753_v59 = vld [vmem:[#allocation2 + $0xe8] sm:$0xf]  ;;  %v691_v60 = vld [vmem:[#allocation2 + $0x78] sm:$0xf0] }
  0xab   :  { %v737_v1 = vld [vmem:[#allocation2 + $0xc8] sm:$0xf] }
  0xac   :  { %v268_v6 = vpop.permute.xlu0 %267  ;;  %v135_v7 = vpop.permute.xlu1 %134  ;;  %512 = vmatpush.bf16.msra.mxu0 %v650_v2  ;;  %538 = vmatpush.bf16.msra.mxu2 %v654_v3  ;;  %v806_v2 = vld [vmem:[#allocation2 + $0xd4] sm:$0xf0]  ;;  %v754_v3 = vor.u32 %v810_v58, %v753_v59 }
  0xad   :  { %v270_v10 = vrot.slane %v268_v6, 4  ;;  %v138_v11 = vrot.slane %v135_v7, 4  ;;  %v675_v6 = vld [vmem:[#allocation2 + $0x58] sm:$0xf0] }
  0xaf   :  { %v271_v12 = vsel %vm63_vm0, %v269_v4, %v270_v10  ;;  %v140_v13 = vsel %vm63_vm0, %v138_v11, %v139_v5  ;;  %v721_v11 = vld [vmem:[#allocation2 + $0xa8] sm:$0xf] }
  0xb0   :  { %v272_v14 = vsel %vm97_vm2, %v266_v36, %v271_v12  ;;  %513 = vmatpush.bf16.msra.mxu0 %v634_v8  ;;  %539 = vmatpush.bf16.msra.mxu2 %v638_v9  ;;  %v142_v17 = vsel %vm141_vm6, %v135_v7, %v140_v13  ;;  %v255_v36 = vrot.slane %v252_v15, 4  ;;  %v796_v53 = vld [vmem:[#allocation2 + $0x8c] sm:$0xf]  ;;  %v738_v7 = vor.u32 %v806_v2, %v737_v1  ;;  %v659_v9 = vld [vmem:[#allocation2 + $0x38] sm:$0xf0] }
  0xb1   :  { %274 = vst [vmem:[#allocation2 + $0x108] sm:$0xff] %v272_v14  ;;  %v710_v55 = vor.u32 %v796_v53, %v707_v54  ;;  %v784_v8 = vld [vmem:[#allocation2 + $0x2c] sm:$0xf]  ;;  %v802_v12 = vld [vmem:[#allocation2 + $0xb4] sm:$0xf0] }
  0xb2   :  { %144 = vst [vmem:[#allocation2 + $0x68] sm:$0xff] %v142_v17  ;;  %v662_v13 = vor.u32 %v784_v8, %v659_v9  ;;  %v722_v17 = vor.u32 %v802_v12, %v721_v11 }
  0xb3   :  { %540 = vmatmul.bf16.vlgmr.msra.gmra.mxu2 %v969_v16  ;;  %514 = vmatmul.bf16.vlgmr.msra.gmra.mxu0 %v969_v16 }
  0xb4   :  { %v106_v18 = vpop.permute.xlu0 %105  ;;  %v108_v19 = vpop.permute.xlu1 %107 }
  0xb5   :  { %v109_v20 = vrot.slane %v106_v18, 4  ;;  %v110_v21 = vrot.slane %v108_v19, 4  ;;  %v798_v19 = vld [vmem:[#allocation2 + $0x94] sm:$0xf0] }
  0xb7   :  { %v111_v24 = vsel %vm63_vm0, %v109_v20, %v110_v21 }
  0xb8   :  { %v112_v27 = vsel %vm80_vm3, %v106_v18, %v111_v24  ;;  %v769_v28 = vld [vmem:[#allocation2 + $0x108] sm:$0xf]  ;;  %v812_v29 = vld [vmem:[#allocation2 + $0x10c] sm:$0xf] }
  0xb9   :  { %114 = vst [vmem:[#allocation2 + $0x48] sm:$0xff] %v112_v27  ;;  %v770_v31 = vor.u32 %v814_v22, %v769_v28  ;;  %v774_v32 = vor.u32 %v812_v29, %v771_v23  ;;  %v792_v50 = vld [vmem:[#allocation2 + $0x6c] sm:$0xf]  ;;  %v705_v18 = vld [vmem:[#allocation2 + $0x88] sm:$0xf] }
  0xba   :  { %v694_v4 = vor.u32 %v792_v50, %v691_v60  ;;  %v706_v21 = vor.u32 %v798_v19, %v705_v18  ;;  %v689_v22 = vld [vmem:[#allocation2 + $0x68] sm:$0xf]  ;;  %v794_v23 = vld [vmem:[#allocation2 + $0x74] sm:$0xf0] }
  0xbb   :  { %578 = vmatpush.bf16.msra.mxu3 %v770_v31  ;;  %604 = vmatpush.bf16.msrb.mxu0 %v774_v32  ;;  %v690_v24 = vor.u32 %v794_v23, %v689_v22  ;;  %v657_v27 = vld [vmem:[#allocation2 + $0x28] sm:$0xf]  ;;  %v786_v28 = vld [vmem:[#allocation2 + $0x34] sm:$0xf0] }
  0xbc   :  { %v254_v39 = vpop.permute.xlu0 %253  ;;  %v58_v41 = vpop.permute.xlu1 %57  ;;  %v658_v30 = vor.u32 %v786_v28, %v657_v27  ;;  %v782_v32 = vld [vmem:[#allocation2 + $0x14] sm:$0xf0] }
  0xbd   :  { %v256_v42 = vrot.slane %v254_v39, 4  ;;  %v61_v43 = vrot.slane %v58_v41, 4 }
  0xbe   :  { %777 = vmatmul.msk.bf16.vlgmr.msra.gmra.mxu3 %vm141_vm6, %v321_v38 }
  0xbf   :  { %584 = vmatpush.bf16.msrb.mxu3 %v758_v35  ;;  %v257_v44 = vsel %vm63_vm0, %v255_v36, %v256_v42  ;;  %v64_v47 = vsel %vm63_vm0, %v61_v43, %v62_v37 }
  0xc0   :  { %v258_v48 = vsel %vm65_vm7, %v252_v15, %v257_v44  ;;  %v66_v49 = vsel %vm65_vm7, %v58_v41, %v64_v47  ;;  %v788_v5 = vld [vmem:[#allocation2 + $0x4c] sm:$0xf]  ;;  %v643_v15 = vld [vmem:[#allocation2 + $0x18] sm:$0xf0]  ;;  %v673_v25 = vld [vmem:[#allocation2 + $0x48] sm:$0xf] }
  0xc1   :  { %260 = vst [vmem:[#allocation2 + $0x100] sm:$0xff] %v258_v48  ;;  %v678_v10 = vor.u32 %v788_v5, %v675_v6  ;;  %v674_v29 = vor.u32 %v790_v26, %v673_v25 }
  0xc2   :  { %68 = vst [vmem:[#allocation2 + $0x8] sm:$0xff] %v66_v49 }
  0xc3   :  { %585 = vmatpush.bf16.msrb.mxu3 %v742_v40  ;;  %778 = vmatmul.msk.bf16.vlgmr.msrb.gmra.mxu0 %vm141_vm6, %v321_v38 }
  0xc7   :  { %586 = vmatpush.bf16.msrb.mxu3 %v726_v52 }
  0xc8   :  { %v761_v61 = vld [vmem:[#allocation2 + $0x100] sm:$0xf]  ;;  %v811_v62 = vld [vmem:[#allocation2 + $0x104] sm:$0xf] }
  0xc9   :  { %v762_v63 = vor.u32 %v813_v56, %v761_v61  ;;  %v766_v0 = vor.u32 %v811_v62, %v763_v57  ;;  %v780_v14 = vld [vmem:[#allocation2 + $0xc] sm:$0xf]  ;;  %v641_v31 = vld [vmem:[#allocation2 + $0x8] sm:$0xf] }
  0xca   :  { %v646_v20 = vor.u32 %v780_v14, %v643_v15  ;;  %v642_v33 = vor.u32 %v782_v32, %v641_v31 }
  0xcb   :  { %587 = vmatpush.bf16.msrb.mxu3 %v710_v55  ;;  %526 = vmatpush.bf16.msra.mxu1 %v762_v63 }
  0xcc   :  { %552 = vmatpush.bf16.msrb.mxu2 %v766_v0 }
  0xce   :  { %775 = vmatmul.msk.bf16.vlgmr.msra.gmra.mxu1 %vm141_vm6, %v321_v38 }
  0xcf   :  { %558 = vmatpush.bf16.msrb.mxu1 %v754_v3  ;;  %588 = vmatpush.bf16.msrb.mxu3 %v694_v4 }
  0xd0   :  { %776 = vmatmul.msk.bf16.vlgmr.msrb.gmra.mxu2 %vm141_vm6, %v321_v38 }
  0xd3   :  { %559 = vmatpush.bf16.msrb.mxu1 %v738_v7  ;;  %589 = vmatpush.bf16.msrb.mxu3 %v678_v10 }
  0xd7   :  { %560 = vmatpush.bf16.msrb.mxu1 %v722_v17  ;;  %590 = vmatpush.bf16.msrb.mxu3 %v662_v13 }
  0xdb   :  { %561 = vmatpush.bf16.msrb.mxu1 %v706_v21  ;;  %591 = vmatpush.bf16.msrb.mxu3 %v646_v20 }
  0xde   :  { %592 = vmatmul.bf16.vlgmr.msrb.gmra.mxu3 %v969_v16 }
  0xdf   :  { %562 = vmatpush.bf16.msrb.mxu1 %v690_v24 }
  0xe3   :  { %563 = vmatpush.bf16.msrb.mxu1 %v674_v29 }
  0xe7   :  { %564 = vmatpush.bf16.msrb.mxu1 %v658_v30 }
  0xeb   :  { %565 = vmatpush.bf16.msrb.mxu1 %v642_v33 }
  0xee   :  { %566 = vmatmul.bf16.vlgmr.msrb.gmra.mxu1 %v969_v16 }
 0x116   :  { %v316_v42 = vpop.permute.xlu0 %315 }
 0x130   :  { %v515_v34 = vpop.f32.mrf.mxu0 }
 0x131   :  { %v516_v44 = vadd.f32 %v515_v34, %v316_v42 }
 0x136   :  { %v541_v35 = vpop.f32.mrf.mxu2 }
 0x137   :  { %v542_v45 = vadd.f32 %v541_v35, %v316_v42 }
 0x138   :  { %v517_v36 = vpop.f32.mrf.mxu0 }
 0x13e   :  { %v543_v37 = vpop.f32.mrf.mxu2 }
 0x140   :  { %v606_v38 = vpop.f32.mrf.mxu0 }
 0x141   :  { %v580_v39 = vpop.f32.mrf.mxu3 }
 0x148   :  { %v608_v40 = vpop.f32.mrf.mxu0 }
 0x149   :  { %v582_v41 = vpop.f32.mrf.mxu3 }
 0x14b   :  { %v528_v43 = vpop.f32.mrf.mxu1 }
 0x14c   :  { %v529_v46 = vadd.f32 %v528_v43, %v516_v44 }
 0x14e   :  { %824 = vtanh.f32 %v529_v46 }
 0x153   :  { %v554_v47 = vpop.f32.mrf.mxu2  ;;  %v530_v49 = vpop.f32.mrf.mxu1 }
 0x154   :  { %v555_v48 = vadd.f32 %v554_v47, %v542_v45  ;;  %v825_v51 = vpop.eup %824 }
 0x156   :  { %826 = vtanh.f32 %v555_v48 }
 0x15b   :  { %v556_v16 = vpop.f32.mrf.mxu2 }
 0x15c   :  { %v827_v52 = vpop.eup %826 }
 0x15d   :  { %v618_v53 = vrot.slane %v827_v52, 4 }
 0x15f   :  { %v621_v54 = vsel %vm63_vm0, %v825_v51, %v618_v53 }
 0x160   :  { %625 = vst [vmem:[%s998_s3] sm:$0x77] %v621_v54 }
 0x161   :  { %v593_v55 = vpop.f32.mrf.mxu3 }
 0x162   :  { %v594_v56 = vadd.f32 %v593_v55, %v316_v42 }
 0x164   :  { %v607_v57 = vadd.f32 %v606_v38, %v594_v56 }
 0x166   :  { %828 = vtanh.f32 %v607_v57 }
 0x169   :  { %v595_v58 = vpop.f32.mrf.mxu3 }
 0x16b   :  { %v567_v59 = vpop.f32.mrf.mxu1 }
 0x16c   :  { %v568_v50 = vadd.f32 %v567_v59, %v316_v42  ;;  %v829_v61 = vpop.eup %828 }
 0x16d   :  { %v619_v62 = vrot.slane %v829_v61, 4 }
 0x16e   :  { %v581_v60 = vadd.f32 %v580_v39, %v568_v50 }
 0x170   :  { %830 = vtanh.f32 %v581_v60 }
 0x173   :  { %v569_v63 = vpop.f32.mrf.mxu1 }
 0x176   :  { %v831_v0 = vpop.eup %830 }
 0x177   :  { %v622_v1 = vsel %vm63_vm0, %v831_v0, %v619_v62 }
 0x178   :  { %626 = vst [vmem:[%s998_s3 + $0x8] sm:$0x77] %v622_v1 }

</bundles_post_ra>
